<compile_context>
chip_gen: v5e
topology: v5e:2x2
jax: 0.10.0
libtpu: 0.0.40
codegen_flags: <defaults>
</compile_context>

<pallas_src>
import jax
import jax.numpy as jnp
from jax import lax
from jax.experimental import pallas as pl
from jax.experimental.pallas import tpu as pltpu


def _round_up(x, m):
    return (x + m - 1) // m * m


def _choose_tk(k, cap=2048):
    """Largest multiple-of-128 divisor of k that is <= cap, else full k."""
    if k % 128 != 0 or k <= cap:
        return k
    tk = 128
    for cand in range(128, cap + 1, 128):
        if k % cand == 0:
            tk = cand
    return tk


def _vmem_limit(tm, tk, cout):
    x_blk = 4 * tm * tk * 2          # bf16
    w_blk = tk * cout * 2            # bf16
    o_blk = tm * cout * 4            # f32
    b_blk = cout * 4
    acc = 4 * tm * cout * 4
    need = 2 * (x_blk + w_blk + o_blk + b_blk) + acc + (8 << 20)
    return int(min(max(need, 16 << 20), 48 << 20))   # cap for v7x's 64 MiB/TC


def conv_relu_pool_kernel(x_ref, w_ref, b_ref, o_ref, acc_ref):
    # x_ref: (4, tm, tk) bf16    w_ref: (tk, Cout) bf16
    # b_ref: (1, Cout)  f32      o_ref: (tm, Cout) f32
    # acc_ref: (4*tm, Cout) f32 scratch, persistent across the K (reduction) axis.
    k = pl.program_id(1)

    @pl.when(k == 0)
    def _init():
        acc_ref[...] = jnp.zeros_like(acc_ref)

    xb = x_ref[...]                               # (4, tm, tk)
    p, tm, tk = xb.shape
    # One long-M matmul (4*tm rows): full MXU pipeline, RHS pushed once per K-chunk.
    acc_ref[...] += jnp.dot(xb.reshape(p * tm, tk), w_ref[...],
                            preferred_element_type=jnp.float32)

    @pl.when(k == pl.num_programs(1) - 1)
    def _finalize():
        # 2x2 max-pool over the 4 pool positions, then bias + ReLU (once).
        m = jnp.maximum(
            jnp.maximum(acc_ref[0 * tm:1 * tm, :], acc_ref[1 * tm:2 * tm, :]),
            jnp.maximum(acc_ref[2 * tm:3 * tm, :], acc_ref[3 * tm:4 * tm, :]))
        o_ref[...] = jnp.maximum(m + b_ref[...], 0.0).astype(o_ref.dtype)


def conv_relu_pool(x_nhwc, w_mat, bias):
    """One Conv2d(5x5, stride 1, pad 2) + ReLU + MaxPool2d(2) block."""
    N, H, W, Cin = x_nhwc.shape
    K, Cout = w_mat.shape
    assert K == 25 * Cin and H % 2 == 0 and W % 2 == 0
    H2, W2 = H // 2, W // 2
    M = N * H2 * W2

    # ---- host glue: pad + im2col grouped by 2x2 pool position -> (4, M, K) ----
    xp = jnp.pad(x_nhwc, ((0, 0), (2, 2), (2, 2), (0, 0)))
    cols = [xp[:, kh:kh + H, kw:kw + W, :] for kh in range(5) for kw in range(5)]
    patches = jnp.stack(cols, axis=3).reshape(N, H, W, K)       # K = (kh*5+kw)*Cin+ci
    patches = patches.reshape(N, H2, 2, W2, 2, K).transpose(2, 4, 0, 1, 3, 5)
    x_im2col = patches.reshape(4, M, K).astype(jnp.bfloat16)    # bf16 operands

    # ---- tiling ----
    tm = _round_up(min(M, 256), 16)          # multiple of 16 (bf16 sublane tile)
    m_pad = _round_up(M, tm)
    if m_pad != M:
        x_im2col = jnp.pad(x_im2col, ((0, 0), (0, m_pad - M), (0, 0)))
    nm = m_pad // tm
    tk = _choose_tk(K)                       # K-tiled only for K=3200/6400 layers
    nk = K // tk

    w_bf16 = w_mat.astype(jnp.bfloat16)
    b2 = bias.reshape(1, Cout).astype(jnp.float32)

    out = pl.pallas_call(
        conv_relu_pool_kernel,
        out_shape=jax.ShapeDtypeStruct((m_pad, Cout), jnp.float32),
        grid=(nm, nk),                                        # reduction axis last
        in_specs=[
            pl.BlockSpec((4, tm, tk), lambda i, k: (0, i, k)),
            pl.BlockSpec((tk, Cout), lambda i, k: (k, 0)),    # resident when nk==1
            pl.BlockSpec((1, Cout), lambda i, k: (0, 0)),
        ],
        out_specs=pl.BlockSpec((tm, Cout), lambda i, k: (i, 0)),
        scratch_shapes=[pltpu.VMEM((4 * tm, Cout), jnp.float32)],
        compiler_params=pltpu.CompilerParams(
            dimension_semantics=("parallel", "arbitrary"),    # M sharded on v7x 2TC
            vmem_limit_bytes=_vmem_limit(tm, tk, Cout)),
    )(x_im2col, w_bf16, b2)

    return out[:M].reshape(N, H2, W2, Cout)


def init_params(key):
    # Conv layers: (Cin, Cout) = (1,32), (32,64), (64,128), (128,256), (256,256)
    specs = [(1, 32), (32, 64), (64, 128), (128, 256), (256, 256)]
    params = []
    for cin, cout in specs:
        key, kw, kb = jax.random.split(key, 3)
        k = 25 * cin
        w = jax.random.normal(kw, (k, cout), jnp.float32) * (1.0 / jnp.sqrt(k))
        b = jax.random.normal(kb, (cout,), jnp.float32) * 0.01
        params.append((w, b))
    return params


@jax.jit
def cnn_forward(x_nchw, params):
    x = jnp.transpose(x_nchw, (0, 2, 3, 1))  # NCHW -> NHWC
    for w, b in params:
        x = conv_relu_pool(x, w, b)
    # Flatten(1): final spatial is 1x1, so NHWC and NCHW flatten orders coincide.
    return x.reshape(x.shape[0], -1)


def reference_forward(x_nchw, params):
    """Pure-JAX reference with matched bf16-truncated operands and exact (f32) accumulation."""
    x = jnp.transpose(x_nchw, (0, 2, 3, 1)).astype(jnp.float32)
    for w_mat, b in params:
        cin, cout = w_mat.shape[0] // 25, w_mat.shape[1]
        ker = w_mat.reshape(5, 5, cin, cout)  # HWIO, matches im2col K ordering
        x16 = x.astype(jnp.bfloat16).astype(jnp.float32)
        k16 = ker.astype(jnp.bfloat16).astype(jnp.float32)
        y = lax.conv_general_dilated(
            x16, k16, (1, 1), ((2, 2), (2, 2)),
            dimension_numbers=('NHWC', 'HWIO', 'NHWC'),
            precision=lax.Precision.HIGHEST)
        y = jnp.maximum(y + b, 0.0)
        x = lax.reduce_window(y, -jnp.inf, lax.max,
                              (1, 2, 2, 1), (1, 2, 2, 1), 'VALID')
    return x.reshape(x.shape[0], -1)


if __name__ == "__main__":
    key = jax.random.PRNGKey(0)
    kx, kp = jax.random.split(key)
    # Smallest input surviving 5 halvings: 32x32 -> 1x1; batch=2, 1 channel (NCHW).
    x = jax.random.normal(kx, (2, 1, 32, 32), jnp.float32)
    params = init_params(kp)

    out = jax.block_until_ready(cnn_forward(x, params))
    assert out.shape == (2, 256), out.shape

    ref = reference_forward(x, params)
    assert jnp.allclose(out, ref, rtol=5e-3, atol=5e-3), \
        float(jnp.max(jnp.abs(out - ref)))

    print("KERNEL_OK")
</pallas_src>

<mosaic_0001>
module attributes {stable_mosaic.version = 11 : i64} {
  func.func @conv_relu_pool_kernel(%arg0: i32, %arg1: i32, %arg2: memref<4x256x25xbf16, #tpu.memory_space<vmem>>, %arg3: memref<25x32xbf16, #tpu.memory_space<vmem>>, %arg4: memref<1x32xf32, #tpu.memory_space<vmem>>, %arg5: memref<256x32xf32, #tpu.memory_space<vmem>>, %arg6: memref<1024x32xf32, #tpu.memory_space<vmem>>) attributes {dimension_semantics = [#tpu.dimension_semantics<parallel>, #tpu.dimension_semantics<arbitrary>], iteration_bounds = array<i64: 2, 1>, scalar_prefetch = 0 : i64, scratch_operands = 1 : i64, tpu.core_type = #tpu.core_type<tc>, window_params = [{transform_indices = @transform_0, window_bounds = array<i64: 4, 256, 25>}, {transform_indices = @transform_1, window_bounds = array<i64: 25, 32>}, {pipeline_mode = #tpu.pipeline_mode<synchronous>, transform_indices = @transform_2, window_bounds = array<i64: 1, 32>}, {transform_indices = @transform_3, window_bounds = array<i64: 256, 32>}]} {
    %c0_i32 = arith.constant 0 : i32
    %0 = arith.cmpi eq, %arg1, %c0_i32 : i32
    %1 = arith.extui %0 : i1 to i32
    %c0_i32_0 = arith.constant 0 : i32
    %2 = arith.cmpi ne, %1, %c0_i32_0 : i32
    scf.if %2 {
      %cst_11 = arith.constant 0.000000e+00 : f32
      %13 = vector.broadcast %cst_11 : f32 to vector<1024x32xf32>
      %c0_12 = arith.constant 0 : index
      %c0_13 = arith.constant 0 : index
      %14 = vector.load %arg6[%c0_12, %c0_13] : memref<1024x32xf32, #tpu.memory_space<vmem>>, vector<1024x32xf32>
      tpu.vector_store %arg6[%c0_12, %c0_13], %13 {strides = array<i32>} : memref<1024x32xf32, #tpu.memory_space<vmem>>, vector<1024x32xf32>,
    } else {
    }
    %c0 = arith.constant 0 : index
    %c0_1 = arith.constant 0 : index
    %c0_2 = arith.constant 0 : index
    %3 = vector.load %arg2[%c0, %c0_1, %c0_2] : memref<4x256x25xbf16, #tpu.memory_space<vmem>>, vector<4x256x25xbf16>
    %c0_3 = arith.constant 0 : index
    %c0_4 = arith.constant 0 : index
    %4 = vector.load %arg6[%c0_3, %c0_4] : memref<1024x32xf32, #tpu.memory_space<vmem>>, vector<1024x32xf32>
    %5 = vector.shape_cast %3 : vector<4x256x25xbf16> to vector<1024x25xbf16>
    %c0_5 = arith.constant 0 : index
    %c0_6 = arith.constant 0 : index
    %6 = vector.load %arg3[%c0_5, %c0_6] : memref<25x32xbf16, #tpu.memory_space<vmem>>, vector<25x32xbf16>
    %cst = arith.constant dense<0.000000e+00> : vector<1024x32xf32>
    %7 = tpu.matmul %5, %6, %cst {dimension_numbers = #tpu.dot_dimension_numbers<[1], [0], [0], [1], [0, 0, 1, 1], [], []>} : vector<1024x25xbf16>, vector<25x32xbf16>, vector<1024x32xf32> -> vector<1024x32xf32>
    %8 = arith.addf %4, %7 : vector<1024x32xf32>
    %c0_7 = arith.constant 0 : index
    %c0_8 = arith.constant 0 : index
    %9 = vector.load %arg6[%c0_7, %c0_8] : memref<1024x32xf32, #tpu.memory_space<vmem>>, vector<1024x32xf32>
    tpu.vector_store %arg6[%c0_7, %c0_8], %8 {strides = array<i32>} : memref<1024x32xf32, #tpu.memory_space<vmem>>, vector<1024x32xf32>,
    %c0_i32_9 = arith.constant 0 : i32
    %10 = arith.cmpi eq, %arg1, %c0_i32_9 : i32
    %11 = arith.extui %10 : i1 to i32
    %c0_i32_10 = arith.constant 0 : i32
    %12 = arith.cmpi ne, %11, %c0_i32_10 : i32
    scf.if %12 {
      %c0_11 = arith.constant 0 : index
      %c0_12 = arith.constant 0 : index
      %13 = vector.load %arg6[%c0_11, %c0_12] : memref<1024x32xf32, #tpu.memory_space<vmem>>, vector<256x32xf32>
      %c256 = arith.constant 256 : index
      %c0_13 = arith.constant 0 : index
      %14 = vector.load %arg6[%c256, %c0_13] : memref<1024x32xf32, #tpu.memory_space<vmem>>, vector<256x32xf32>
      %15 = arith.maximumf %13, %14 : vector<256x32xf32>
      %c512 = arith.constant 512 : index
      %c0_14 = arith.constant 0 : index
      %16 = vector.load %arg6[%c512, %c0_14] : memref<1024x32xf32, #tpu.memory_space<vmem>>, vector<256x32xf32>
      %c768 = arith.constant 768 : index
      %c0_15 = arith.constant 0 : index
      %17 = vector.load %arg6[%c768, %c0_15] : memref<1024x32xf32, #tpu.memory_space<vmem>>, vector<256x32xf32>
      %18 = arith.maximumf %16, %17 : vector<256x32xf32>
      %19 = arith.maximumf %15, %18 : vector<256x32xf32>
      %c0_16 = arith.constant 0 : index
      %c0_17 = arith.constant 0 : index
      %20 = vector.load %arg4[%c0_16, %c0_17] : memref<1x32xf32, #tpu.memory_space<vmem>>, vector<1x32xf32>
      %21 = vector.broadcast %20 : vector<1x32xf32> to vector<256x32xf32>
      %22 = arith.addf %19, %21 : vector<256x32xf32>
      %cst_18 = arith.constant 0.000000e+00 : f32
      %23 = vector.broadcast %cst_18 : f32 to vector<256x32xf32>
      %24 = arith.maximumf %22, %23 : vector<256x32xf32>
      %c0_19 = arith.constant 0 : index
      %c0_20 = arith.constant 0 : index
      %25 = vector.load %arg5[%c0_19, %c0_20] : memref<256x32xf32, #tpu.memory_space<vmem>>, vector<256x32xf32>
      tpu.vector_store %arg5[%c0_19, %c0_20], %24 {strides = array<i32>} : memref<256x32xf32, #tpu.memory_space<vmem>>, vector<256x32xf32>,
    } else {
    }
    return
  }
  func.func @transform_0(%arg0: i32, %arg1: i32) -> (i32, i32, i32) {
    %c0_i32 = arith.constant 0 : i32
    %c0_i32_0 = arith.constant 0 : i32
    return %c0_i32, %arg0, %arg1 : i32, i32, i32
  }
  func.func @transform_1(%arg0: i32, %arg1: i32) -> (i32, i32) {
    %c0_i32 = arith.constant 0 : i32
    %c0_i32_0 = arith.constant 0 : i32
    return %arg1, %c0_i32 : i32, i32
  }
  func.func @transform_2(%arg0: i32, %arg1: i32) -> (i32, i32) {
    %c0_i32 = arith.constant 0 : i32
    %c0_i32_0 = arith.constant 0 : i32
    %c0_i32_1 = arith.constant 0 : i32
    return %c0_i32, %c0_i32_0 : i32, i32
  }
  func.func @transform_3(%arg0: i32, %arg1: i32) -> (i32, i32) {
    %c0_i32 = arith.constant 0 : i32
    %c0_i32_0 = arith.constant 0 : i32
    return %arg0, %c0_i32 : i32, i32
  }
}

module attributes {stable_mosaic.version = 11 : i64} {
  func.func @conv_relu_pool_kernel(%arg0: i32, %arg1: i32, %arg2: memref<4x128x800xbf16, #tpu.memory_space<vmem>>, %arg3: memref<800x64xbf16, #tpu.memory_space<vmem>>, %arg4: memref<1x64xf32, #tpu.memory_space<vmem>>, %arg5: memref<128x64xf32, #tpu.memory_space<vmem>>, %arg6: memref<512x64xf32, #tpu.memory_space<vmem>>) attributes {dimension_semantics = [#tpu.dimension_semantics<parallel>, #tpu.dimension_semantics<arbitrary>], iteration_bounds = array<i64: 1, 1>, scalar_prefetch = 0 : i64, scratch_operands = 1 : i64, tpu.core_type = #tpu.core_type<tc>, window_params = [{transform_indices = @transform_0, window_bounds = array<i64: 4, 128, 800>}, {transform_indices = @transform_1, window_bounds = array<i64: 800, 64>}, {pipeline_mode = #tpu.pipeline_mode<synchronous>, transform_indices = @transform_2, window_bounds = array<i64: 1, 64>}, {transform_indices = @transform_3, window_bounds = array<i64: 128, 64>}]} {
    %c0_i32 = arith.constant 0 : i32
    %0 = arith.cmpi eq, %arg1, %c0_i32 : i32
    %1 = arith.extui %0 : i1 to i32
    %c0_i32_0 = arith.constant 0 : i32
    %2 = arith.cmpi ne, %1, %c0_i32_0 : i32
    scf.if %2 {
      %cst_11 = arith.constant 0.000000e+00 : f32
      %13 = vector.broadcast %cst_11 : f32 to vector<512x64xf32>
      %c0_12 = arith.constant 0 : index
      %c0_13 = arith.constant 0 : index
      %14 = vector.load %arg6[%c0_12, %c0_13] : memref<512x64xf32, #tpu.memory_space<vmem>>, vector<512x64xf32>
      tpu.vector_store %arg6[%c0_12, %c0_13], %13 {strides = array<i32>} : memref<512x64xf32, #tpu.memory_space<vmem>>, vector<512x64xf32>,
    } else {
    }
    %c0 = arith.constant 0 : index
    %c0_1 = arith.constant 0 : index
    %c0_2 = arith.constant 0 : index
    %3 = vector.load %arg2[%c0, %c0_1, %c0_2] : memref<4x128x800xbf16, #tpu.memory_space<vmem>>, vector<4x128x800xbf16>
    %c0_3 = arith.constant 0 : index
    %c0_4 = arith.constant 0 : index
    %4 = vector.load %arg6[%c0_3, %c0_4] : memref<512x64xf32, #tpu.memory_space<vmem>>, vector<512x64xf32>
    %5 = vector.shape_cast %3 : vector<4x128x800xbf16> to vector<512x800xbf16>
    %c0_5 = arith.constant 0 : index
    %c0_6 = arith.constant 0 : index
    %6 = vector.load %arg3[%c0_5, %c0_6] : memref<800x64xbf16, #tpu.memory_space<vmem>>, vector<800x64xbf16>
    %cst = arith.constant dense<0.000000e+00> : vector<512x64xf32>
    %7 = tpu.matmul %5, %6, %cst {dimension_numbers = #tpu.dot_dimension_numbers<[1], [0], [0], [1], [0, 0, 1, 1], [], []>} : vector<512x800xbf16>, vector<800x64xbf16>, vector<512x64xf32> -> vector<512x64xf32>
    %8 = arith.addf %4, %7 : vector<512x64xf32>
    %c0_7 = arith.constant 0 : index
    %c0_8 = arith.constant 0 : index
    %9 = vector.load %arg6[%c0_7, %c0_8] : memref<512x64xf32, #tpu.memory_space<vmem>>, vector<512x64xf32>
    tpu.vector_store %arg6[%c0_7, %c0_8], %8 {strides = array<i32>} : memref<512x64xf32, #tpu.memory_space<vmem>>, vector<512x64xf32>,
    %c0_i32_9 = arith.constant 0 : i32
    %10 = arith.cmpi eq, %arg1, %c0_i32_9 : i32
    %11 = arith.extui %10 : i1 to i32
    %c0_i32_10 = arith.constant 0 : i32
    %12 = arith.cmpi ne, %11, %c0_i32_10 : i32
    scf.if %12 {
      %c0_11 = arith.constant 0 : index
      %c0_12 = arith.constant 0 : index
      %13 = vector.load %arg6[%c0_11, %c0_12] : memref<512x64xf32, #tpu.memory_space<vmem>>, vector<128x64xf32>
      %c128 = arith.constant 128 : index
      %c0_13 = arith.constant 0 : index
      %14 = vector.load %arg6[%c128, %c0_13] : memref<512x64xf32, #tpu.memory_space<vmem>>, vector<128x64xf32>
      %15 = arith.maximumf %13, %14 : vector<128x64xf32>
      %c256 = arith.constant 256 : index
      %c0_14 = arith.constant 0 : index
      %16 = vector.load %arg6[%c256, %c0_14] : memref<512x64xf32, #tpu.memory_space<vmem>>, vector<128x64xf32>
      %c384 = arith.constant 384 : index
      %c0_15 = arith.constant 0 : index
      %17 = vector.load %arg6[%c384, %c0_15] : memref<512x64xf32, #tpu.memory_space<vmem>>, vector<128x64xf32>
      %18 = arith.maximumf %16, %17 : vector<128x64xf32>
      %19 = arith.maximumf %15, %18 : vector<128x64xf32>
      %c0_16 = arith.constant 0 : index
      %c0_17 = arith.constant 0 : index
      %20 = vector.load %arg4[%c0_16, %c0_17] : memref<1x64xf32, #tpu.memory_space<vmem>>, vector<1x64xf32>
      %21 = vector.broadcast %20 : vector<1x64xf32> to vector<128x64xf32>
      %22 = arith.addf %19, %21 : vector<128x64xf32>
      %cst_18 = arith.constant 0.000000e+00 : f32
      %23 = vector.broadcast %cst_18 : f32 to vector<128x64xf32>
      %24 = arith.maximumf %22, %23 : vector<128x64xf32>
      %c0_19 = arith.constant 0 : index
      %c0_20 = arith.constant 0 : index
      %25 = vector.load %arg5[%c0_19, %c0_20] : memref<128x64xf32, #tpu.memory_space<vmem>>, vector<128x64xf32>
      tpu.vector_store %arg5[%c0_19, %c0_20], %24 {strides = array<i32>} : memref<128x64xf32, #tpu.memory_space<vmem>>, vector<128x64xf32>,
    } else {
    }
    return
  }
  func.func @transform_0(%arg0: i32, %arg1: i32) -> (i32, i32, i32) {
    %c0_i32 = arith.constant 0 : i32
    %c0_i32_0 = arith.constant 0 : i32
    return %c0_i32, %arg0, %arg1 : i32, i32, i32
  }
  func.func @transform_1(%arg0: i32, %arg1: i32) -> (i32, i32) {
    %c0_i32 = arith.constant 0 : i32
    %c0_i32_0 = arith.constant 0 : i32
    return %arg1, %c0_i32 : i32, i32
  }
  func.func @transform_2(%arg0: i32, %arg1: i32) -> (i32, i32) {
    %c0_i32 = arith.constant 0 : i32
    %c0_i32_0 = arith.constant 0 : i32
    %c0_i32_1 = arith.constant 0 : i32
    return %c0_i32, %c0_i32_0 : i32, i32
  }
  func.func @transform_3(%arg0: i32, %arg1: i32) -> (i32, i32) {
    %c0_i32 = arith.constant 0 : i32
    %c0_i32_0 = arith.constant 0 : i32
    return %arg0, %c0_i32 : i32, i32
  }
}

module attributes {stable_mosaic.version = 11 : i64} {
  func.func @conv_relu_pool_kernel(%arg0: i32, %arg1: i32, %arg2: memref<4x32x1600xbf16, #tpu.memory_space<vmem>>, %arg3: memref<1600x128xbf16, #tpu.memory_space<vmem>>, %arg4: memref<1x128xf32, #tpu.memory_space<vmem>>, %arg5: memref<32x128xf32, #tpu.memory_space<vmem>>, %arg6: memref<128x128xf32, #tpu.memory_space<vmem>>) attributes {dimension_semantics = [#tpu.dimension_semantics<parallel>, #tpu.dimension_semantics<arbitrary>], iteration_bounds = array<i64: 1, 1>, scalar_prefetch = 0 : i64, scratch_operands = 1 : i64, tpu.core_type = #tpu.core_type<tc>, window_params = [{transform_indices = @transform_0, window_bounds = array<i64: 4, 32, 1600>}, {transform_indices = @transform_1, window_bounds = array<i64: 1600, 128>}, {pipeline_mode = #tpu.pipeline_mode<synchronous>, transform_indices = @transform_2, window_bounds = array<i64: 1, 128>}, {transform_indices = @transform_3, window_bounds = array<i64: 32, 128>}]} {
    %c0_i32 = arith.constant 0 : i32
    %0 = arith.cmpi eq, %arg1, %c0_i32 : i32
    %1 = arith.extui %0 : i1 to i32
    %c0_i32_0 = arith.constant 0 : i32
    %2 = arith.cmpi ne, %1, %c0_i32_0 : i32
    scf.if %2 {
      %cst_11 = arith.constant 0.000000e+00 : f32
      %13 = vector.broadcast %cst_11 : f32 to vector<128x128xf32>
      %c0_12 = arith.constant 0 : index
      %c0_13 = arith.constant 0 : index
      %14 = vector.load %arg6[%c0_12, %c0_13] : memref<128x128xf32, #tpu.memory_space<vmem>>, vector<128x128xf32>
      tpu.vector_store %arg6[%c0_12, %c0_13], %13 {strides = array<i32>} : memref<128x128xf32, #tpu.memory_space<vmem>>, vector<128x128xf32>,
    } else {
    }
    %c0 = arith.constant 0 : index
    %c0_1 = arith.constant 0 : index
    %c0_2 = arith.constant 0 : index
    %3 = vector.load %arg2[%c0, %c0_1, %c0_2] : memref<4x32x1600xbf16, #tpu.memory_space<vmem>>, vector<4x32x1600xbf16>
    %c0_3 = arith.constant 0 : index
    %c0_4 = arith.constant 0 : index
    %4 = vector.load %arg6[%c0_3, %c0_4] : memref<128x128xf32, #tpu.memory_space<vmem>>, vector<128x128xf32>
    %5 = vector.shape_cast %3 : vector<4x32x1600xbf16> to vector<128x1600xbf16>
    %c0_5 = arith.constant 0 : index
    %c0_6 = arith.constant 0 : index
    %6 = vector.load %arg3[%c0_5, %c0_6] : memref<1600x128xbf16, #tpu.memory_space<vmem>>, vector<1600x128xbf16>
    %cst = arith.constant dense<0.000000e+00> : vector<128x128xf32>
    %7 = tpu.matmul %5, %6, %cst {dimension_numbers = #tpu.dot_dimension_numbers<[1], [0], [0], [1], [0, 0, 1, 1], [], []>} : vector<128x1600xbf16>, vector<1600x128xbf16>, vector<128x128xf32> -> vector<128x128xf32>
    %8 = arith.addf %4, %7 : vector<128x128xf32>
    %c0_7 = arith.constant 0 : index
    %c0_8 = arith.constant 0 : index
    %9 = vector.load %arg6[%c0_7, %c0_8] : memref<128x128xf32, #tpu.memory_space<vmem>>, vector<128x128xf32>
    tpu.vector_store %arg6[%c0_7, %c0_8], %8 {strides = array<i32>} : memref<128x128xf32, #tpu.memory_space<vmem>>, vector<128x128xf32>,
    %c0_i32_9 = arith.constant 0 : i32
    %10 = arith.cmpi eq, %arg1, %c0_i32_9 : i32
    %11 = arith.extui %10 : i1 to i32
    %c0_i32_10 = arith.constant 0 : i32
    %12 = arith.cmpi ne, %11, %c0_i32_10 : i32
    scf.if %12 {
      %c0_11 = arith.constant 0 : index
      %c0_12 = arith.constant 0 : index
      %13 = vector.load %arg6[%c0_11, %c0_12] : memref<128x128xf32, #tpu.memory_space<vmem>>, vector<32x128xf32>
      %c32 = arith.constant 32 : index
      %c0_13 = arith.constant 0 : index
      %14 = vector.load %arg6[%c32, %c0_13] : memref<128x128xf32, #tpu.memory_space<vmem>>, vector<32x128xf32>
      %15 = arith.maximumf %13, %14 : vector<32x128xf32>
      %c64 = arith.constant 64 : index
      %c0_14 = arith.constant 0 : index
      %16 = vector.load %arg6[%c64, %c0_14] : memref<128x128xf32, #tpu.memory_space<vmem>>, vector<32x128xf32>
      %c96 = arith.constant 96 : index
      %c0_15 = arith.constant 0 : index
      %17 = vector.load %arg6[%c96, %c0_15] : memref<128x128xf32, #tpu.memory_space<vmem>>, vector<32x128xf32>
      %18 = arith.maximumf %16, %17 : vector<32x128xf32>
      %19 = arith.maximumf %15, %18 : vector<32x128xf32>
      %c0_16 = arith.constant 0 : index
      %c0_17 = arith.constant 0 : index
      %20 = vector.load %arg4[%c0_16, %c0_17] : memref<1x128xf32, #tpu.memory_space<vmem>>, vector<1x128xf32>
      %21 = vector.broadcast %20 : vector<1x128xf32> to vector<32x128xf32>
      %22 = arith.addf %19, %21 : vector<32x128xf32>
      %cst_18 = arith.constant 0.000000e+00 : f32
      %23 = vector.broadcast %cst_18 : f32 to vector<32x128xf32>
      %24 = arith.maximumf %22, %23 : vector<32x128xf32>
      %c0_19 = arith.constant 0 : index
      %c0_20 = arith.constant 0 : index
      %25 = vector.load %arg5[%c0_19, %c0_20] : memref<32x128xf32, #tpu.memory_space<vmem>>, vector<32x128xf32>
      tpu.vector_store %arg5[%c0_19, %c0_20], %24 {strides = array<i32>} : memref<32x128xf32, #tpu.memory_space<vmem>>, vector<32x128xf32>,
    } else {
    }
    return
  }
  func.func @transform_0(%arg0: i32, %arg1: i32) -> (i32, i32, i32) {
    %c0_i32 = arith.constant 0 : i32
    %c0_i32_0 = arith.constant 0 : i32
    return %c0_i32, %arg0, %arg1 : i32, i32, i32
  }
  func.func @transform_1(%arg0: i32, %arg1: i32) -> (i32, i32) {
    %c0_i32 = arith.constant 0 : i32
    %c0_i32_0 = arith.constant 0 : i32
    return %arg1, %c0_i32 : i32, i32
  }
  func.func @transform_2(%arg0: i32, %arg1: i32) -> (i32, i32) {
    %c0_i32 = arith.constant 0 : i32
    %c0_i32_0 = arith.constant 0 : i32
    %c0_i32_1 = arith.constant 0 : i32
    return %c0_i32, %c0_i32_0 : i32, i32
  }
  func.func @transform_3(%arg0: i32, %arg1: i32) -> (i32, i32) {
    %c0_i32 = arith.constant 0 : i32
    %c0_i32_0 = arith.constant 0 : i32
    return %arg0, %c0_i32 : i32, i32
  }
}

module attributes {stable_mosaic.version = 11 : i64} {
  func.func @conv_relu_pool_kernel(%arg0: i32, %arg1: i32, %arg2: memref<4x16x640xbf16, #tpu.memory_space<vmem>>, %arg3: memref<640x256xbf16, #tpu.memory_space<vmem>>, %arg4: memref<1x256xf32, #tpu.memory_space<vmem>>, %arg5: memref<16x256xf32, #tpu.memory_space<vmem>>, %arg6: memref<64x256xf32, #tpu.memory_space<vmem>>) attributes {dimension_semantics = [#tpu.dimension_semantics<parallel>, #tpu.dimension_semantics<arbitrary>], iteration_bounds = array<i64: 1, 5>, scalar_prefetch = 0 : i64, scratch_operands = 1 : i64, tpu.core_type = #tpu.core_type<tc>, window_params = [{transform_indices = @transform_0, window_bounds = array<i64: 4, 16, 640>}, {transform_indices = @transform_1, window_bounds = array<i64: 640, 256>}, {pipeline_mode = #tpu.pipeline_mode<synchronous>, transform_indices = @transform_2, window_bounds = array<i64: 1, 256>}, {transform_indices = @transform_3, window_bounds = array<i64: 16, 256>}]} {
    %c0_i32 = arith.constant 0 : i32
    %0 = arith.cmpi eq, %arg1, %c0_i32 : i32
    %1 = arith.extui %0 : i1 to i32
    %c0_i32_0 = arith.constant 0 : i32
    %2 = arith.cmpi ne, %1, %c0_i32_0 : i32
    scf.if %2 {
      %cst_10 = arith.constant 0.000000e+00 : f32
      %13 = vector.broadcast %cst_10 : f32 to vector<64x256xf32>
      %c0_11 = arith.constant 0 : index
      %c0_12 = arith.constant 0 : index
      %14 = vector.load %arg6[%c0_11, %c0_12] : memref<64x256xf32, #tpu.memory_space<vmem>>, vector<64x256xf32>
      tpu.vector_store %arg6[%c0_11, %c0_12], %13 {strides = array<i32>} : memref<64x256xf32, #tpu.memory_space<vmem>>, vector<64x256xf32>,
    } else {
    }
    %c0 = arith.constant 0 : index
    %c0_1 = arith.constant 0 : index
    %c0_2 = arith.constant 0 : index
    %3 = vector.load %arg2[%c0, %c0_1, %c0_2] : memref<4x16x640xbf16, #tpu.memory_space<vmem>>, vector<4x16x640xbf16>
    %c0_3 = arith.constant 0 : index
    %c0_4 = arith.constant 0 : index
    %4 = vector.load %arg6[%c0_3, %c0_4] : memref<64x256xf32, #tpu.memory_space<vmem>>, vector<64x256xf32>
    %5 = vector.shape_cast %3 : vector<4x16x640xbf16> to vector<64x640xbf16>
    %c0_5 = arith.constant 0 : index
    %c0_6 = arith.constant 0 : index
    %6 = vector.load %arg3[%c0_5, %c0_6] : memref<640x256xbf16, #tpu.memory_space<vmem>>, vector<640x256xbf16>
    %cst = arith.constant dense<0.000000e+00> : vector<64x256xf32>
    %7 = tpu.matmul %5, %6, %cst {dimension_numbers = #tpu.dot_dimension_numbers<[1], [0], [0], [1], [0, 0, 1, 1], [], []>} : vector<64x640xbf16>, vector<640x256xbf16>, vector<64x256xf32> -> vector<64x256xf32>
    %8 = arith.addf %4, %7 : vector<64x256xf32>
    %c0_7 = arith.constant 0 : index
    %c0_8 = arith.constant 0 : index
    %9 = vector.load %arg6[%c0_7, %c0_8] : memref<64x256xf32, #tpu.memory_space<vmem>>, vector<64x256xf32>
    tpu.vector_store %arg6[%c0_7, %c0_8], %8 {strides = array<i32>} : memref<64x256xf32, #tpu.memory_space<vmem>>, vector<64x256xf32>,
    %c4_i32 = arith.constant 4 : i32
    %10 = arith.cmpi eq, %arg1, %c4_i32 : i32
    %11 = arith.extui %10 : i1 to i32
    %c0_i32_9 = arith.constant 0 : i32
    %12 = arith.cmpi ne, %11, %c0_i32_9 : i32
    scf.if %12 {
      %c0_10 = arith.constant 0 : index
      %c0_11 = arith.constant 0 : index
      %13 = vector.load %arg6[%c0_10, %c0_11] : memref<64x256xf32, #tpu.memory_space<vmem>>, vector<16x256xf32>
      %c16 = arith.constant 16 : index
      %c0_12 = arith.constant 0 : index
      %14 = vector.load %arg6[%c16, %c0_12] : memref<64x256xf32, #tpu.memory_space<vmem>>, vector<16x256xf32>
      %15 = arith.maximumf %13, %14 : vector<16x256xf32>
      %c32 = arith.constant 32 : index
      %c0_13 = arith.constant 0 : index
      %16 = vector.load %arg6[%c32, %c0_13] : memref<64x256xf32, #tpu.memory_space<vmem>>, vector<16x256xf32>
      %c48 = arith.constant 48 : index
      %c0_14 = arith.constant 0 : index
      %17 = vector.load %arg6[%c48, %c0_14] : memref<64x256xf32, #tpu.memory_space<vmem>>, vector<16x256xf32>
      %18 = arith.maximumf %16, %17 : vector<16x256xf32>
      %19 = arith.maximumf %15, %18 : vector<16x256xf32>
      %c0_15 = arith.constant 0 : index
      %c0_16 = arith.constant 0 : index
      %20 = vector.load %arg4[%c0_15, %c0_16] : memref<1x256xf32, #tpu.memory_space<vmem>>, vector<1x256xf32>
      %21 = vector.broadcast %20 : vector<1x256xf32> to vector<16x256xf32>
      %22 = arith.addf %19, %21 : vector<16x256xf32>
      %cst_17 = arith.constant 0.000000e+00 : f32
      %23 = vector.broadcast %cst_17 : f32 to vector<16x256xf32>
      %24 = arith.maximumf %22, %23 : vector<16x256xf32>
      %c0_18 = arith.constant 0 : index
      %c0_19 = arith.constant 0 : index
      %25 = vector.load %arg5[%c0_18, %c0_19] : memref<16x256xf32, #tpu.memory_space<vmem>>, vector<16x256xf32>
      tpu.vector_store %arg5[%c0_18, %c0_19], %24 {strides = array<i32>} : memref<16x256xf32, #tpu.memory_space<vmem>>, vector<16x256xf32>,
    } else {
    }
    return
  }
  func.func @transform_0(%arg0: i32, %arg1: i32) -> (i32, i32, i32) {
    %c0_i32 = arith.constant 0 : i32
    %c0_i32_0 = arith.constant 0 : i32
    return %c0_i32, %arg0, %arg1 : i32, i32, i32
  }
  func.func @transform_1(%arg0: i32, %arg1: i32) -> (i32, i32) {
    %c0_i32 = arith.constant 0 : i32
    %c0_i32_0 = arith.constant 0 : i32
    return %arg1, %c0_i32 : i32, i32
  }
  func.func @transform_2(%arg0: i32, %arg1: i32) -> (i32, i32) {
    %c0_i32 = arith.constant 0 : i32
    %c0_i32_0 = arith.constant 0 : i32
    %c0_i32_1 = arith.constant 0 : i32
    return %c0_i32, %c0_i32_0 : i32, i32
  }
  func.func @transform_3(%arg0: i32, %arg1: i32) -> (i32, i32) {
    %c0_i32 = arith.constant 0 : i32
    %c0_i32_0 = arith.constant 0 : i32
    return %arg0, %c0_i32 : i32, i32
  }
}

module attributes {stable_mosaic.version = 11 : i64} {
  func.func @conv_relu_pool_kernel(%arg0: i32, %arg1: i32, %arg2: memref<4x16x1280xbf16, #tpu.memory_space<vmem>>, %arg3: memref<1280x256xbf16, #tpu.memory_space<vmem>>, %arg4: memref<1x256xf32, #tpu.memory_space<vmem>>, %arg5: memref<16x256xf32, #tpu.memory_space<vmem>>, %arg6: memref<64x256xf32, #tpu.memory_space<vmem>>) attributes {dimension_semantics = [#tpu.dimension_semantics<parallel>, #tpu.dimension_semantics<arbitrary>], iteration_bounds = array<i64: 1, 5>, scalar_prefetch = 0 : i64, scratch_operands = 1 : i64, tpu.core_type = #tpu.core_type<tc>, window_params = [{transform_indices = @transform_0, window_bounds = array<i64: 4, 16, 1280>}, {transform_indices = @transform_1, window_bounds = array<i64: 1280, 256>}, {pipeline_mode = #tpu.pipeline_mode<synchronous>, transform_indices = @transform_2, window_bounds = array<i64: 1, 256>}, {transform_indices = @transform_3, window_bounds = array<i64: 16, 256>}]} {
    %c0_i32 = arith.constant 0 : i32
    %0 = arith.cmpi eq, %arg1, %c0_i32 : i32
    %1 = arith.extui %0 : i1 to i32
    %c0_i32_0 = arith.constant 0 : i32
    %2 = arith.cmpi ne, %1, %c0_i32_0 : i32
    scf.if %2 {
      %cst_10 = arith.constant 0.000000e+00 : f32
      %13 = vector.broadcast %cst_10 : f32 to vector<64x256xf32>
      %c0_11 = arith.constant 0 : index
      %c0_12 = arith.constant 0 : index
      %14 = vector.load %arg6[%c0_11, %c0_12] : memref<64x256xf32, #tpu.memory_space<vmem>>, vector<64x256xf32>
      tpu.vector_store %arg6[%c0_11, %c0_12], %13 {strides = array<i32>} : memref<64x256xf32, #tpu.memory_space<vmem>>, vector<64x256xf32>,
    } else {
    }
    %c0 = arith.constant 0 : index
    %c0_1 = arith.constant 0 : index
    %c0_2 = arith.constant 0 : index
    %3 = vector.load %arg2[%c0, %c0_1, %c0_2] : memref<4x16x1280xbf16, #tpu.memory_space<vmem>>, vector<4x16x1280xbf16>
    %c0_3 = arith.constant 0 : index
    %c0_4 = arith.constant 0 : index
    %4 = vector.load %arg6[%c0_3, %c0_4] : memref<64x256xf32, #tpu.memory_space<vmem>>, vector<64x256xf32>
    %5 = vector.shape_cast %3 : vector<4x16x1280xbf16> to vector<64x1280xbf16>
    %c0_5 = arith.constant 0 : index
    %c0_6 = arith.constant 0 : index
    %6 = vector.load %arg3[%c0_5, %c0_6] : memref<1280x256xbf16, #tpu.memory_space<vmem>>, vector<1280x256xbf16>
    %cst = arith.constant dense<0.000000e+00> : vector<64x256xf32>
    %7 = tpu.matmul %5, %6, %cst {dimension_numbers = #tpu.dot_dimension_numbers<[1], [0], [0], [1], [0, 0, 1, 1], [], []>} : vector<64x1280xbf16>, vector<1280x256xbf16>, vector<64x256xf32> -> vector<64x256xf32>
    %8 = arith.addf %4, %7 : vector<64x256xf32>
    %c0_7 = arith.constant 0 : index
    %c0_8 = arith.constant 0 : index
    %9 = vector.load %arg6[%c0_7, %c0_8] : memref<64x256xf32, #tpu.memory_space<vmem>>, vector<64x256xf32>
    tpu.vector_store %arg6[%c0_7, %c0_8], %8 {strides = array<i32>} : memref<64x256xf32, #tpu.memory_space<vmem>>, vector<64x256xf32>,
    %c4_i32 = arith.constant 4 : i32
    %10 = arith.cmpi eq, %arg1, %c4_i32 : i32
    %11 = arith.extui %10 : i1 to i32
    %c0_i32_9 = arith.constant 0 : i32
    %12 = arith.cmpi ne, %11, %c0_i32_9 : i32
    scf.if %12 {
      %c0_10 = arith.constant 0 : index
      %c0_11 = arith.constant 0 : index
      %13 = vector.load %arg6[%c0_10, %c0_11] : memref<64x256xf32, #tpu.memory_space<vmem>>, vector<16x256xf32>
      %c16 = arith.constant 16 : index
      %c0_12 = arith.constant 0 : index
      %14 = vector.load %arg6[%c16, %c0_12] : memref<64x256xf32, #tpu.memory_space<vmem>>, vector<16x256xf32>
      %15 = arith.maximumf %13, %14 : vector<16x256xf32>
      %c32 = arith.constant 32 : index
      %c0_13 = arith.constant 0 : index
      %16 = vector.load %arg6[%c32, %c0_13] : memref<64x256xf32, #tpu.memory_space<vmem>>, vector<16x256xf32>
      %c48 = arith.constant 48 : index
      %c0_14 = arith.constant 0 : index
      %17 = vector.load %arg6[%c48, %c0_14] : memref<64x256xf32, #tpu.memory_space<vmem>>, vector<16x256xf32>
      %18 = arith.maximumf %16, %17 : vector<16x256xf32>
      %19 = arith.maximumf %15, %18 : vector<16x256xf32>
      %c0_15 = arith.constant 0 : index
      %c0_16 = arith.constant 0 : index
      %20 = vector.load %arg4[%c0_15, %c0_16] : memref<1x256xf32, #tpu.memory_space<vmem>>, vector<1x256xf32>
      %21 = vector.broadcast %20 : vector<1x256xf32> to vector<16x256xf32>
      %22 = arith.addf %19, %21 : vector<16x256xf32>
      %cst_17 = arith.constant 0.000000e+00 : f32
      %23 = vector.broadcast %cst_17 : f32 to vector<16x256xf32>
      %24 = arith.maximumf %22, %23 : vector<16x256xf32>
      %c0_18 = arith.constant 0 : index
      %c0_19 = arith.constant 0 : index
      %25 = vector.load %arg5[%c0_18, %c0_19] : memref<16x256xf32, #tpu.memory_space<vmem>>, vector<16x256xf32>
      tpu.vector_store %arg5[%c0_18, %c0_19], %24 {strides = array<i32>} : memref<16x256xf32, #tpu.memory_space<vmem>>, vector<16x256xf32>,
    } else {
    }
    return
  }
  func.func @transform_0(%arg0: i32, %arg1: i32) -> (i32, i32, i32) {
    %c0_i32 = arith.constant 0 : i32
    %c0_i32_0 = arith.constant 0 : i32
    return %c0_i32, %arg0, %arg1 : i32, i32, i32
  }
  func.func @transform_1(%arg0: i32, %arg1: i32) -> (i32, i32) {
    %c0_i32 = arith.constant 0 : i32
    %c0_i32_0 = arith.constant 0 : i32
    return %arg1, %c0_i32 : i32, i32
  }
  func.func @transform_2(%arg0: i32, %arg1: i32) -> (i32, i32) {
    %c0_i32 = arith.constant 0 : i32
    %c0_i32_0 = arith.constant 0 : i32
    %c0_i32_1 = arith.constant 0 : i32
    return %c0_i32, %c0_i32_0 : i32, i32
  }
  func.func @transform_3(%arg0: i32, %arg1: i32) -> (i32, i32) {
    %c0_i32 = arith.constant 0 : i32
    %c0_i32_0 = arith.constant 0 : i32
    return %arg0, %c0_i32 : i32, i32
  }
}

</mosaic_0001>

<bundles_post_ra>
// kernel: cnn_forward.5
= control target key start
LH: loop header
LB: loop body
LE: loop exit
PB: predicated region body
PF: predicated region fallthrough
CT: control target
= control target key end

     0   :  { %s3209_s12 = smov 0   ;;  %s3211_s13 = smov 0   ;;  %s4125_s0 = inlined_call_operand.vmem [shape: bf16[4,512,25], index: 0, kind: input, shape index: {}]   ;;  %s4126_s1 = inlined_call_operand.vmem [shape: bf16[25,32], index: 1, kind: input, shape index: {}]   ;;  %s4127_s2 = inlined_call_operand.vmem [shape: f32[1,32], index: 2, kind: input, shape index: {}]   ;;  %s4128_s3 = inlined_call_operand.vmem [shape: f32[512,32], index: 3, kind: output, shape index: {}]  }
   0x1   :  { %s3213_s14 = smov 0   ;;  %s3215_s15 = smov 0  }
   0x2   :  { %s3217_s16 = smov 0  }
   0x3 LB: > { %s25_s17 = sadd.s32 1, %s3181_s15  ;;  %p41_p1 = scmp.ne.s32.totalorder %s3173_s13, %s3169_s12  ;;  %s3185_s16 = sphi %s3217_s16, %s13_s16   ;;  %s3181_s15 = sphi %s3215_s15, %s4133_s15   ;;  %s3177_s14 = sphi %s3213_s14, %s4132_s14   ;;  %s3173_s13 = sphi %s3211_s13, %s4131_s13   ;;  %s3169_s12 = sphi %s3209_s12, %s4130_s12  }
   0x4   : > { %p27_p0 = scmp.ge.s32.totalorder %s25_s17, 2  ;;  %p42_p2 = scmp.eq.s32.totalorder %s3185_s16, 0 }
   0x5   : > { %s34_s19 = sadd.s32 1, %s3173_s13  ;;  %p2692_p5 = scmp.ge.s32.totalorder %s3185_s16, 2 }
   0x6   : > { %s4135_s17 = smov (%p27_p0, %s25_s17), 0  ;;  %p43_p3 = por %p42_p2, %p41_p1 }
   0x7   : > { %s29_s18 = ssub.s32 %s3181_s15, %s4135_s17  ;;  %152 = sbr.rel (%p2692_p5) target bundleno = 80 (0x50), region = 24 }
   0x8   : > { %p32_p4 = scmp.eq.s32.totalorder %s29_s18, 0 }
   0xa   : > { %s3244_s20 = scalar_select %p32_p4, %s3173_s13, %s34_s19  }
   0xc   : > { %155 = sbr.rel (!%p43_p3) target bundleno = 80 (0x50), region = 28  ;;  %s157_s21 = sand.u32 (%p43_p3), 1, %s3173_s13  }
   0xd   : > { %s3030_s22 = sshll.u32 (%p43_p3), %s3181_s15, 7  ;;  %s2693_s23 = sshll.u32 (%p43_p3), %s157_s21, 9 }
   0xe   : > { %s3252_s26 = scalar_lea.vmem (%p43_p3), %s4125_s0, %s3030_s22  ;;  %s3257_s27 = scalar_lea.vmem (%p43_p3), [#allocation3], %s2693_s23 }
   0xf   : > { %v180_v0 = vld [vmem:[%s3252_s26] sm:$0xff] (%p43_p3)   ;;  %v184_v1 = vld [vmem:[%s3252_s26 + $0x8] sm:$0xff] (%p43_p3)   ;;  %v188_v2 = vld [vmem:[%s3252_s26 + $0x10] sm:$0xff] (%p43_p3)  }
  0x10   : > { %181 = vst [vmem:[%s3257_s27] sm:$0xff] (%p43_p3), %v180_v0   ;;  %v192_v3 = vld [vmem:[%s3252_s26 + $0x18] sm:$0xff] (%p43_p3)   ;;  %v196_v4 = vld [vmem:[%s3252_s26 + $0x20] sm:$0xff] (%p43_p3)   ;;  %v200_v5 = vld [vmem:[%s3252_s26 + $0x28] sm:$0xff] (%p43_p3)  }
  0x11   : > { %185 = vst [vmem:[%s3257_s27 + $0x8] sm:$0xff] %v184_v1   ;;  %v204_v6 = vld [vmem:[%s3252_s26 + $0x30] sm:$0xff]   ;;  %v208_v7 = vld [vmem:[%s3252_s26 + $0x38] sm:$0xff]   ;;  %v212_v8 = vld [vmem:[%s3252_s26 + $0x40] sm:$0xff]  }
  0x12   : > { %189 = vst [vmem:[%s3257_s27 + $0x10] sm:$0xff] %v188_v2   ;;  %v216_v9 = vld [vmem:[%s3252_s26 + $0x48] sm:$0xff]   ;;  %v220_v10 = vld [vmem:[%s3252_s26 + $0x50] sm:$0xff]   ;;  %v224_v11 = vld [vmem:[%s3252_s26 + $0x58] sm:$0xff]  }
  0x13   : > { %193 = vst [vmem:[%s3257_s27 + $0x18] sm:$0xff] %v192_v3   ;;  %v228_v12 = vld [vmem:[%s3252_s26 + $0x60] sm:$0xff]   ;;  %v232_v13 = vld [vmem:[%s3252_s26 + $0x68] sm:$0xff]   ;;  %v236_v14 = vld [vmem:[%s3252_s26 + $0x70] sm:$0xff]  }
  0x14   : > { %197 = vst [vmem:[%s3257_s27 + $0x20] sm:$0xff] %v196_v4   ;;  %v240_v15 = vld [vmem:[%s3252_s26 + $0x78] sm:$0xff]   ;;  %v244_v16 = vld [vmem:[%s3252_s26 + $0x100] sm:$0xff]   ;;  %v248_v17 = vld [vmem:[%s3252_s26 + $0x108] sm:$0xff]  }
  0x15   : > { %201 = vst [vmem:[%s3257_s27 + $0x28] sm:$0xff] %v200_v5   ;;  %v252_v18 = vld [vmem:[%s3252_s26 + $0x110] sm:$0xff]   ;;  %v256_v19 = vld [vmem:[%s3252_s26 + $0x118] sm:$0xff]   ;;  %v260_v20 = vld [vmem:[%s3252_s26 + $0x120] sm:$0xff]  }
  0x16   : > { %205 = vst [vmem:[%s3257_s27 + $0x30] sm:$0xff] %v204_v6   ;;  %v264_v21 = vld [vmem:[%s3252_s26 + $0x128] sm:$0xff]   ;;  %v268_v22 = vld [vmem:[%s3252_s26 + $0x130] sm:$0xff]   ;;  %v272_v23 = vld [vmem:[%s3252_s26 + $0x138] sm:$0xff]  }
  0x17   : > { %209 = vst [vmem:[%s3257_s27 + $0x38] sm:$0xff] %v208_v7   ;;  %v276_v24 = vld [vmem:[%s3252_s26 + $0x140] sm:$0xff]   ;;  %v280_v25 = vld [vmem:[%s3252_s26 + $0x148] sm:$0xff]   ;;  %v284_v26 = vld [vmem:[%s3252_s26 + $0x150] sm:$0xff]  }
  0x18   : > { %213 = vst [vmem:[%s3257_s27 + $0x40] sm:$0xff] %v212_v8   ;;  %v288_v27 = vld [vmem:[%s3252_s26 + $0x158] sm:$0xff]   ;;  %v292_v28 = vld [vmem:[%s3252_s26 + $0x160] sm:$0xff]   ;;  %v296_v29 = vld [vmem:[%s3252_s26 + $0x168] sm:$0xff]  }
  0x19   : > { %217 = vst [vmem:[%s3257_s27 + $0x48] sm:$0xff] %v216_v9   ;;  %v300_v30 = vld [vmem:[%s3252_s26 + $0x170] sm:$0xff]   ;;  %v304_v31 = vld [vmem:[%s3252_s26 + $0x178] sm:$0xff]   ;;  %v308_v32 = vld [vmem:[%s3252_s26 + $0x200] sm:$0xff]  }
  0x1a   : > { %221 = vst [vmem:[%s3257_s27 + $0x50] sm:$0xff] %v220_v10   ;;  %v312_v33 = vld [vmem:[%s3252_s26 + $0x208] sm:$0xff]   ;;  %v316_v34 = vld [vmem:[%s3252_s26 + $0x210] sm:$0xff]   ;;  %v320_v35 = vld [vmem:[%s3252_s26 + $0x218] sm:$0xff]  }
  0x1b   : > { %225 = vst [vmem:[%s3257_s27 + $0x58] sm:$0xff] %v224_v11   ;;  %v324_v36 = vld [vmem:[%s3252_s26 + $0x220] sm:$0xff]   ;;  %v328_v37 = vld [vmem:[%s3252_s26 + $0x228] sm:$0xff]   ;;  %v332_v38 = vld [vmem:[%s3252_s26 + $0x230] sm:$0xff]  }
  0x1c   : > { %229 = vst [vmem:[%s3257_s27 + $0x60] sm:$0xff] %v228_v12   ;;  %v336_v39 = vld [vmem:[%s3252_s26 + $0x238] sm:$0xff]   ;;  %v340_v40 = vld [vmem:[%s3252_s26 + $0x240] sm:$0xff]   ;;  %v344_v41 = vld [vmem:[%s3252_s26 + $0x248] sm:$0xff]  }
  0x1d   : > { %233 = vst [vmem:[%s3257_s27 + $0x68] sm:$0xff] %v232_v13   ;;  %v348_v42 = vld [vmem:[%s3252_s26 + $0x250] sm:$0xff]   ;;  %v352_v43 = vld [vmem:[%s3252_s26 + $0x258] sm:$0xff]   ;;  %v356_v44 = vld [vmem:[%s3252_s26 + $0x260] sm:$0xff]  }
  0x1e   : > { %237 = vst [vmem:[%s3257_s27 + $0x70] sm:$0xff] %v236_v14   ;;  %v360_v45 = vld [vmem:[%s3252_s26 + $0x268] sm:$0xff]   ;;  %v364_v46 = vld [vmem:[%s3252_s26 + $0x270] sm:$0xff]   ;;  %v368_v47 = vld [vmem:[%s3252_s26 + $0x278] sm:$0xff]  }
  0x1f   : > { %241 = vst [vmem:[%s3257_s27 + $0x78] sm:$0xff] %v240_v15   ;;  %v372_v48 = vld [vmem:[%s3252_s26 + $0x300] sm:$0xff]   ;;  %v376_v49 = vld [vmem:[%s3252_s26 + $0x308] sm:$0xff]   ;;  %v380_v50 = vld [vmem:[%s3252_s26 + $0x310] sm:$0xff]  }
  0x20   : > { %245 = vst [vmem:[%s3257_s27 + $0x80] sm:$0xff] %v244_v16   ;;  %v384_v51 = vld [vmem:[%s3252_s26 + $0x318] sm:$0xff]   ;;  %v388_v52 = vld [vmem:[%s3252_s26 + $0x320] sm:$0xff]   ;;  %v392_v53 = vld [vmem:[%s3252_s26 + $0x328] sm:$0xff]  }
  0x21   : > { %249 = vst [vmem:[%s3257_s27 + $0x88] sm:$0xff] %v248_v17   ;;  %v396_v54 = vld [vmem:[%s3252_s26 + $0x330] sm:$0xff]   ;;  %v400_v55 = vld [vmem:[%s3252_s26 + $0x338] sm:$0xff]   ;;  %v404_v56 = vld [vmem:[%s3252_s26 + $0x340] sm:$0xff]  }
  0x22   : > { %253 = vst [vmem:[%s3257_s27 + $0x90] sm:$0xff] %v252_v18   ;;  %v408_v57 = vld [vmem:[%s3252_s26 + $0x348] sm:$0xff]   ;;  %v412_v58 = vld [vmem:[%s3252_s26 + $0x350] sm:$0xff]   ;;  %v416_v59 = vld [vmem:[%s3252_s26 + $0x358] sm:$0xff]  }
  0x23   : > { %257 = vst [vmem:[%s3257_s27 + $0x98] sm:$0xff] %v256_v19   ;;  %v420_v60 = vld [vmem:[%s3252_s26 + $0x360] sm:$0xff]   ;;  %v424_v61 = vld [vmem:[%s3252_s26 + $0x368] sm:$0xff]   ;;  %v428_v62 = vld [vmem:[%s3252_s26 + $0x370] sm:$0xff]  }
  0x24   : > { %261 = vst [vmem:[%s3257_s27 + $0xa0] sm:$0xff] %v260_v20   ;;  %v432_v63 = vld [vmem:[%s3252_s26 + $0x378] sm:$0xff]  }
  0x25   : > { %265 = vst [vmem:[%s3257_s27 + $0xa8] sm:$0xff] %v264_v21  }
  0x26   : > { %269 = vst [vmem:[%s3257_s27 + $0xb0] sm:$0xff] %v268_v22  }
  0x27   : > { %273 = vst [vmem:[%s3257_s27 + $0xb8] sm:$0xff] %v272_v23  }
  0x28   : > { %277 = vst [vmem:[%s3257_s27 + $0xc0] sm:$0xff] %v276_v24  }
  0x29   : > { %281 = vst [vmem:[%s3257_s27 + $0xc8] sm:$0xff] %v280_v25  }
  0x2a   : > { %285 = vst [vmem:[%s3257_s27 + $0xd0] sm:$0xff] %v284_v26  }
  0x2b   : > { %289 = vst [vmem:[%s3257_s27 + $0xd8] sm:$0xff] %v288_v27  }
  0x2c   : > { %293 = vst [vmem:[%s3257_s27 + $0xe0] sm:$0xff] %v292_v28  }
  0x2d   : > { %297 = vst [vmem:[%s3257_s27 + $0xe8] sm:$0xff] %v296_v29  }
  0x2e   : > { %301 = vst [vmem:[%s3257_s27 + $0xf0] sm:$0xff] %v300_v30  }
  0x2f   : > { %305 = vst [vmem:[%s3257_s27 + $0xf8] sm:$0xff] %v304_v31  }
  0x30   : > { %309 = vst [vmem:[%s3257_s27 + $0x100] sm:$0xff] %v308_v32  }
  0x31   : > { %313 = vst [vmem:[%s3257_s27 + $0x108] sm:$0xff] %v312_v33  }
  0x32   : > { %317 = vst [vmem:[%s3257_s27 + $0x110] sm:$0xff] %v316_v34  }
  0x33   : > { %321 = vst [vmem:[%s3257_s27 + $0x118] sm:$0xff] %v320_v35  }
  0x34   : > { %325 = vst [vmem:[%s3257_s27 + $0x120] sm:$0xff] %v324_v36  }
  0x35   : > { %329 = vst [vmem:[%s3257_s27 + $0x128] sm:$0xff] %v328_v37  }
  0x36   : > { %333 = vst [vmem:[%s3257_s27 + $0x130] sm:$0xff] %v332_v38  }
  0x37   : > { %337 = vst [vmem:[%s3257_s27 + $0x138] sm:$0xff] %v336_v39  }
  0x38   : > { %341 = vst [vmem:[%s3257_s27 + $0x140] sm:$0xff] %v340_v40  }
  0x39   : > { %345 = vst [vmem:[%s3257_s27 + $0x148] sm:$0xff] %v344_v41  }
  0x3a   : > { %349 = vst [vmem:[%s3257_s27 + $0x150] sm:$0xff] %v348_v42  }
  0x3b   : > { %353 = vst [vmem:[%s3257_s27 + $0x158] sm:$0xff] %v352_v43  }
  0x3c   : > { %357 = vst [vmem:[%s3257_s27 + $0x160] sm:$0xff] %v356_v44  }
  0x3d   : > { %361 = vst [vmem:[%s3257_s27 + $0x168] sm:$0xff] %v360_v45  }
  0x3e   : > { %365 = vst [vmem:[%s3257_s27 + $0x170] sm:$0xff] %v364_v46  }
  0x3f   : > { %369 = vst [vmem:[%s3257_s27 + $0x178] sm:$0xff] %v368_v47  }
  0x40   : > { %373 = vst [vmem:[%s3257_s27 + $0x180] sm:$0xff] %v372_v48  }
  0x41   : > { %377 = vst [vmem:[%s3257_s27 + $0x188] sm:$0xff] %v376_v49  }
  0x42   : > { %381 = vst [vmem:[%s3257_s27 + $0x190] sm:$0xff] %v380_v50  }
  0x43   : > { %385 = vst [vmem:[%s3257_s27 + $0x198] sm:$0xff] %v384_v51  }
  0x44   : > { %389 = vst [vmem:[%s3257_s27 + $0x1a0] sm:$0xff] %v388_v52  }
  0x45   : > { %393 = vst [vmem:[%s3257_s27 + $0x1a8] sm:$0xff] %v392_v53  }
  0x46   : > { %397 = vst [vmem:[%s3257_s27 + $0x1b0] sm:$0xff] %v396_v54  }
  0x47   : > { %401 = vst [vmem:[%s3257_s27 + $0x1b8] sm:$0xff] %v400_v55  }
  0x48   : > { %405 = vst [vmem:[%s3257_s27 + $0x1c0] sm:$0xff] %v404_v56  }
  0x49   : > { %409 = vst [vmem:[%s3257_s27 + $0x1c8] sm:$0xff] %v408_v57  }
  0x4a   : > { %413 = vst [vmem:[%s3257_s27 + $0x1d0] sm:$0xff] %v412_v58  }
  0x4b   : > { %417 = vst [vmem:[%s3257_s27 + $0x1d8] sm:$0xff] %v416_v59  }
  0x4c   : > { %421 = vst [vmem:[%s3257_s27 + $0x1e0] sm:$0xff] %v420_v60  }
  0x4d   : > { %425 = vst [vmem:[%s3257_s27 + $0x1e8] sm:$0xff] %v424_v61  }
  0x4e   : > { %429 = vst [vmem:[%s3257_s27 + $0x1f0] sm:$0xff] %v428_v62  }
  0x4f   : > { %433 = vst [vmem:[%s3257_s27 + $0x1f8] sm:$0xff] %v432_v63  }
  0x50 PF: > { %p2696_p6 = scmp.ge.s32.totalorder %s3185_s16, 1  ;;  %p714_p7 = scmp.lt.s32.totalorder %s3185_s16, 3 }
  0x52   : > { %p715_p8 = pnand %p2696_p6, %p714_p7 }
  0x53   : > { %s721_s5 = sand.u32 (!%p715_p8), 1, %s3169_s12   ;;  %s2698_s10 = sshll.u32 (!%p715_p8), %s3177_s14, 5 }
  0x54   : > { %718 = sbr.rel (%p715_p8) target bundleno = 504 (0x1f8), region = 69  ;;  %s2697_s6 = sshll.u32 (!%p715_p8), %s721_s5, 9 }
  0x55   : > { %s3396_s9 = scalar_lea.vmem (!%p715_p8), [#allocation3], %s2697_s6  ;;  %p3800_p9 = scmp.lt.s32.totalorder (!%p715_p8), %s2698_s10, 63 }
  0x59   : > { %v2962_v0 = vld [vmem:[%s4126_s1 + $0x8] sm:$0xf]  ;;  %v3096_v1 = vld [vmem:[%s4126_s1 + $0x8] sm:$0x10]  ;;  %vm1680_vm0 = vcmask 1043456   ;;  %vm1681_vm1 = vcmask 1044480  }
  0x5a   : > { %v2963_v2 = vor.u32 %v3096_v1, %v2962_v0  ;;  %v3187_v3 = vmov 65535   ;;  %v3095_v7 = vld [vmem:[%s4126_s1] sm:$0xff]  ;;  %vm1487_vm2 = vcmask 203776   ;;  %v3032_v12 = vld [vmem:[%s3396_s9 + $0x8] sm:$0xff]  ;;  %v3033_v16 = vld [vmem:[%s3396_s9 + $0x10] sm:$0xff]  ;;  %vm767_vm3 = vcmask 261120  }
  0x5b   : > { %v1682_v4 = vsel %vm1680_vm0, 4294967295, %v3187_v3  ;;  %v3031_v8 = vld [vmem:[%s3396_s9] sm:$0xff]  ;;  %v3048_v13 = vld [vmem:[%s3396_s9 + $0x88] sm:$0xff]  ;;  %v3049_v17 = vld [vmem:[%s3396_s9 + $0x90] sm:$0xff]  ;;  %v3188_v32 = vmov 0.0   ;;  %s4137_s10 = smov (!%p3800_p9, %s2698_s10), 63 }
  0x5c   : > { %v1683_v5 = vsel %vm1681_vm1, %v1682_v4, 0  ;;  %v3047_v9 = vld [vmem:[%s3396_s9 + $0x80] sm:$0xff]  ;;  %v3064_v14 = vld [vmem:[%s3396_s9 + $0x108] sm:$0xff]  ;;  %v3065_v18 = vld [vmem:[%s3396_s9 + $0x110] sm:$0xff]  ;;  %768 = vst.msk [vmem:[#allocation2] sm:$0xff] %vm767_vm3, %v3188_v32  ;;  %s2699_s14 = sshll.u32 %s4137_s10, 3 }
  0x5d   : > { %v1685_v6 = vand.u32 %v2963_v2, %v1683_v5  ;;  %v3063_v10 = vld [vmem:[%s3396_s9 + $0x100] sm:$0xff]  ;;  %v3080_v15 = vld [vmem:[%s3396_s9 + $0x188] sm:$0xff]  ;;  %v3081_v19 = vld [vmem:[%s3396_s9 + $0x190] sm:$0xff]  ;;  %769 = vst.msk [vmem:[#allocation2 + $0x8] sm:$0xff] %vm767_vm3, %v3188_v32  ;;  %s3857_s22 = scalar_lea.vmem %s4128_s3, %s2699_s14 }
  0x5e   : > { %v3079_v11 = vld [vmem:[%s3396_s9 + $0x180] sm:$0xff]  ;;  %v3034_v20 = vld [vmem:[%s3396_s9 + $0x18] sm:$0xff]  ;;  %v3036_v28 = vld [vmem:[%s3396_s9 + $0x28] sm:$0xff]  ;;  %770 = vst.msk [vmem:[#allocation2 + $0x10] sm:$0xff] %vm767_vm3, %v3188_v32 }
  0x5f   : > { %1693 = vmatpush.bf16.msra.mxu0 %v1685_v6  ;;  %3097 = vmatpush.bf16.msra.mxu1 %v1685_v6  ;;  %v3050_v21 = vld [vmem:[%s3396_s9 + $0x98] sm:$0xff]  ;;  %v3035_v24 = vld [vmem:[%s3396_s9 + $0x20] sm:$0xff]  ;;  %v3052_v29 = vld [vmem:[%s3396_s9 + $0xa8] sm:$0xff]  ;;  %771 = vst.msk [vmem:[#allocation2 + $0x18] sm:$0xff] %vm767_vm3, %v3188_v32 }
  0x60   : > { %3098 = vmatpush.bf16.msra.mxu2 %v1685_v6  ;;  %3099 = vmatpush.bf16.msra.mxu3 %v1685_v6  ;;  %v3066_v22 = vld [vmem:[%s3396_s9 + $0x118] sm:$0xff]  ;;  %v3051_v25 = vld [vmem:[%s3396_s9 + $0xa0] sm:$0xff]  ;;  %v3068_v30 = vld [vmem:[%s3396_s9 + $0x128] sm:$0xff]  ;;  %772 = vst.msk [vmem:[#allocation2 + $0x20] sm:$0xff] %vm767_vm3, %v3188_v32 }
  0x61   : > { %v3082_v23 = vld [vmem:[%s3396_s9 + $0x198] sm:$0xff]  ;;  %v3067_v26 = vld [vmem:[%s3396_s9 + $0x120] sm:$0xff]  ;;  %v3084_v31 = vld [vmem:[%s3396_s9 + $0x1a8] sm:$0xff]  ;;  %773 = vst.msk [vmem:[#allocation2 + $0x28] sm:$0xff] %vm767_vm3, %v3188_v32 }
  0x62   : > { %v3083_v27 = vld [vmem:[%s3396_s9 + $0x1a0] sm:$0xff]  ;;  %774 = vst.msk [vmem:[#allocation2 + $0x30] sm:$0xff] %vm767_vm3, %v3188_v32  ;;  %v3037_v33 = vld [vmem:[%s3396_s9 + $0x30] sm:$0xff]  ;;  %v3038_v37 = vld [vmem:[%s3396_s9 + $0x38] sm:$0xff] }
  0x63   : > { %1694 = vmatpush.bf16.msra.mxu0 %v3095_v7  ;;  %3100 = vmatpush.bf16.msra.mxu1 %v3095_v7  ;;  %775 = vst.msk [vmem:[#allocation2 + $0x38] sm:$0xff] %vm767_vm3, %v3188_v32  ;;  %v3053_v34 = vld [vmem:[%s3396_s9 + $0xb0] sm:$0xff]  ;;  %v3054_v38 = vld [vmem:[%s3396_s9 + $0xb8] sm:$0xff]  ;;  %v1024_v41 = vld [vmem:[#allocation2] sm:$0xff] }
  0x64   : > { %3101 = vmatpush.bf16.msra.mxu2 %v3095_v7  ;;  %3102 = vmatpush.bf16.msra.mxu3 %v3095_v7  ;;  %776 = vst.msk [vmem:[#allocation2 + $0x40] sm:$0xff] %vm767_vm3, %v3188_v32  ;;  %v3069_v35 = vld [vmem:[%s3396_s9 + $0x130] sm:$0xff]  ;;  %v3070_v39 = vld [vmem:[%s3396_s9 + $0x138] sm:$0xff]  ;;  %v3039_v45 = vld [vmem:[%s3396_s9 + $0x40] sm:$0xff] }
  0x65   : > { %777 = vst.msk [vmem:[#allocation2 + $0x48] sm:$0xff] %vm767_vm3, %v3188_v32  ;;  %v3085_v36 = vld [vmem:[%s3396_s9 + $0x1b0] sm:$0xff]  ;;  %v3086_v40 = vld [vmem:[%s3396_s9 + $0x1b8] sm:$0xff]  ;;  %v3055_v46 = vld [vmem:[%s3396_s9 + $0xc0] sm:$0xff] }
  0x66   : > { %2964 = vmatmul.msk.bf16.vlgmr.msra.gmra.mxu0 %vm1487_vm2, %v3031_v8  ;;  %2980 = vmatmul.msk.bf16.vlgmr.msra.gmra.mxu1 %vm1487_vm2, %v3047_v9  ;;  %778 = vst.msk [vmem:[#allocation2 + $0x50] sm:$0xff] %vm767_vm3, %v3188_v32  ;;  %v3071_v47 = vld [vmem:[%s3396_s9 + $0x140] sm:$0xff]  ;;  %v3040_v57 = vld [vmem:[%s3396_s9 + $0x48] sm:$0xff]  ;;  %v3041_v7 = vld [vmem:[%s3396_s9 + $0x50] sm:$0xff] }
  0x67   : > { %2996 = vmatmul.msk.bf16.vlgmr.msra.gmra.mxu2 %vm1487_vm2, %v3063_v10  ;;  %3012 = vmatmul.msk.bf16.vlgmr.msra.gmra.mxu3 %vm1487_vm2, %v3079_v11  ;;  %779 = vst.msk [vmem:[#allocation2 + $0x58] sm:$0xff] %vm767_vm3, %v3188_v32  ;;  %v3087_v48 = vld [vmem:[%s3396_s9 + $0x1c0] sm:$0xff]  ;;  %v3056_v58 = vld [vmem:[%s3396_s9 + $0xc8] sm:$0xff]  ;;  %v3057_v8 = vld [vmem:[%s3396_s9 + $0xd0] sm:$0xff] }
  0x68   : > { %780 = vst.msk [vmem:[#allocation2 + $0x60] sm:$0xff] %vm767_vm3, %v3188_v32  ;;  %v3072_v59 = vld [vmem:[%s3396_s9 + $0x148] sm:$0xff]  ;;  %v3073_v9 = vld [vmem:[%s3396_s9 + $0x150] sm:$0xff] }
  0x69   : > { %781 = vst.msk [vmem:[#allocation2 + $0x68] sm:$0xff] %vm767_vm3, %v3188_v32  ;;  %v3088_v60 = vld [vmem:[%s3396_s9 + $0x1c8] sm:$0xff]  ;;  %v3089_v11 = vld [vmem:[%s3396_s9 + $0x1d0] sm:$0xff] }
  0x6a   : > { %782 = vst.msk [vmem:[#allocation2 + $0x70] sm:$0xff] %vm767_vm3, %v3188_v32 }
  0x6b   : > { %783 = vst.msk [vmem:[#allocation2 + $0x78] sm:$0xff] %vm767_vm3, %v3188_v32 }
  0x6c   : > { %784 = vst.msk [vmem:[#allocation2 + $0x80] sm:$0xff] %vm767_vm3, %v3188_v32 }
  0x6d   : > { %785 = vst.msk [vmem:[#allocation2 + $0x88] sm:$0xff] %vm767_vm3, %v3188_v32 }
  0x6e   : > { %786 = vst.msk [vmem:[#allocation2 + $0x90] sm:$0xff] %vm767_vm3, %v3188_v32 }
  0x6f   : > { %787 = vst.msk [vmem:[#allocation2 + $0x98] sm:$0xff] %vm767_vm3, %v3188_v32 }
  0x70   : > { %788 = vst.msk [vmem:[#allocation2 + $0xa0] sm:$0xff] %vm767_vm3, %v3188_v32 }
  0x71   : > { %789 = vst.msk [vmem:[#allocation2 + $0xa8] sm:$0xff] %vm767_vm3, %v3188_v32 }
  0x72   : > { %790 = vst.msk [vmem:[#allocation2 + $0xb0] sm:$0xff] %vm767_vm3, %v3188_v32 }
  0x73   : > { %791 = vst.msk [vmem:[#allocation2 + $0xb8] sm:$0xff] %vm767_vm3, %v3188_v32 }
  0x74   : > { %792 = vst.msk [vmem:[#allocation2 + $0xc0] sm:$0xff] %vm767_vm3, %v3188_v32 }
  0x75   : > { %793 = vst.msk [vmem:[#allocation2 + $0xc8] sm:$0xff] %vm767_vm3, %v3188_v32 }
  0x76   : > { %2965 = vmatmul.msk.bf16.gmra.mxu0 %vm1487_vm2, %v3032_v12  ;;  %2981 = vmatmul.msk.bf16.gmra.mxu1 %vm1487_vm2, %v3048_v13  ;;  %794 = vst.msk [vmem:[#allocation2 + $0xd0] sm:$0xff] %vm767_vm3, %v3188_v32  ;;  %v1025_v13 = vld [vmem:[#allocation2 + $0x8] sm:$0xff] }
  0x77   : > { %2997 = vmatmul.msk.bf16.gmra.mxu2 %vm1487_vm2, %v3064_v14  ;;  %3013 = vmatmul.msk.bf16.gmra.mxu3 %vm1487_vm2, %v3080_v15  ;;  %795 = vst.msk [vmem:[#allocation2 + $0xd8] sm:$0xff] %vm767_vm3, %v3188_v32 }
  0x78   : > { %796 = vst.msk [vmem:[#allocation2 + $0xe0] sm:$0xff] %vm767_vm3, %v3188_v32 }
  0x79   : > { %797 = vst.msk [vmem:[#allocation2 + $0xe8] sm:$0xff] %vm767_vm3, %v3188_v32 }
  0x7a   : > { %798 = vst.msk [vmem:[#allocation2 + $0xf0] sm:$0xff] %vm767_vm3, %v3188_v32 }
  0x7b   : > { %799 = vst.msk [vmem:[#allocation2 + $0xf8] sm:$0xff] %vm767_vm3, %v3188_v32 }
  0x7c   : > { %800 = vst.msk [vmem:[#allocation2 + $0x100] sm:$0xff] %vm767_vm3, %v3188_v32 }
  0x7d   : > { %801 = vst.msk [vmem:[#allocation2 + $0x108] sm:$0xff] %vm767_vm3, %v3188_v32 }
  0x7e   : > { %802 = vst.msk [vmem:[#allocation2 + $0x110] sm:$0xff] %vm767_vm3, %v3188_v32 }
  0x7f   : > { %803 = vst.msk [vmem:[#allocation2 + $0x118] sm:$0xff] %vm767_vm3, %v3188_v32 }
  0x80   : > { %804 = vst.msk [vmem:[#allocation2 + $0x120] sm:$0xff] %vm767_vm3, %v3188_v32 }
  0x81   : > { %805 = vst.msk [vmem:[#allocation2 + $0x128] sm:$0xff] %vm767_vm3, %v3188_v32 }
  0x82   : > { %806 = vst.msk [vmem:[#allocation2 + $0x130] sm:$0xff] %vm767_vm3, %v3188_v32 }
  0x83   : > { %807 = vst.msk [vmem:[#allocation2 + $0x138] sm:$0xff] %vm767_vm3, %v3188_v32  ;;  %v1056_v3 = vld [vmem:[#allocation2 + $0x100] sm:$0xff] }
  0x84   : > { %808 = vst.msk [vmem:[#allocation2 + $0x140] sm:$0xff] %vm767_vm3, %v3188_v32  ;;  %v1057_v15 = vld [vmem:[#allocation2 + $0x108] sm:$0xff] }
  0x85   : > { %809 = vst.msk [vmem:[#allocation2 + $0x148] sm:$0xff] %vm767_vm3, %v3188_v32 }
  0x86   : > { %2966 = vmatmul.msk.bf16.gmra.mxu0 %vm1487_vm2, %v3033_v16  ;;  %2982 = vmatmul.msk.bf16.gmra.mxu1 %vm1487_vm2, %v3049_v17  ;;  %810 = vst.msk [vmem:[#allocation2 + $0x150] sm:$0xff] %vm767_vm3, %v3188_v32 }
  0x87   : > { %2998 = vmatmul.msk.bf16.gmra.mxu2 %vm1487_vm2, %v3065_v18  ;;  %3014 = vmatmul.msk.bf16.gmra.mxu3 %vm1487_vm2, %v3081_v19  ;;  %811 = vst.msk [vmem:[#allocation2 + $0x158] sm:$0xff] %vm767_vm3, %v3188_v32 }
  0x88   : > { %812 = vst.msk [vmem:[#allocation2 + $0x160] sm:$0xff] %vm767_vm3, %v3188_v32 }
  0x89   : > { %813 = vst.msk [vmem:[#allocation2 + $0x168] sm:$0xff] %vm767_vm3, %v3188_v32 }
  0x8a   : > { %814 = vst.msk [vmem:[#allocation2 + $0x170] sm:$0xff] %vm767_vm3, %v3188_v32 }
  0x8b   : > { %815 = vst.msk [vmem:[#allocation2 + $0x178] sm:$0xff] %vm767_vm3, %v3188_v32 }
  0x8c   : > { %816 = vst.msk [vmem:[#allocation2 + $0x180] sm:$0xff] %vm767_vm3, %v3188_v32 }
  0x8d   : > { %817 = vst.msk [vmem:[#allocation2 + $0x188] sm:$0xff] %vm767_vm3, %v3188_v32 }
  0x8e   : > { %818 = vst.msk [vmem:[#allocation2 + $0x190] sm:$0xff] %vm767_vm3, %v3188_v32 }
  0x8f   : > { %819 = vst.msk [vmem:[#allocation2 + $0x198] sm:$0xff] %vm767_vm3, %v3188_v32 }
  0x90   : > { %820 = vst.msk [vmem:[#allocation2 + $0x1a0] sm:$0xff] %vm767_vm3, %v3188_v32 }
  0x91   : > { %821 = vst.msk [vmem:[#allocation2 + $0x1a8] sm:$0xff] %vm767_vm3, %v3188_v32 }
  0x92   : > { %822 = vst.msk [vmem:[#allocation2 + $0x1b0] sm:$0xff] %vm767_vm3, %v3188_v32 }
  0x93   : > { %823 = vst.msk [vmem:[#allocation2 + $0x1b8] sm:$0xff] %vm767_vm3, %v3188_v32 }
  0x94   : > { %824 = vst.msk [vmem:[#allocation2 + $0x1c0] sm:$0xff] %vm767_vm3, %v3188_v32 }
  0x95   : > { %825 = vst.msk [vmem:[#allocation2 + $0x1c8] sm:$0xff] %vm767_vm3, %v3188_v32 }
  0x96   : > { %2967 = vmatmul.msk.bf16.gmra.mxu0 %vm1487_vm2, %v3034_v20  ;;  %2983 = vmatmul.msk.bf16.gmra.mxu1 %vm1487_vm2, %v3050_v21  ;;  %826 = vst.msk [vmem:[#allocation2 + $0x1d0] sm:$0xff] %vm767_vm3, %v3188_v32 }
  0x97   : > { %2999 = vmatmul.msk.bf16.gmra.mxu2 %vm1487_vm2, %v3066_v22  ;;  %3015 = vmatmul.msk.bf16.gmra.mxu3 %vm1487_vm2, %v3082_v23  ;;  %827 = vst.msk [vmem:[#allocation2 + $0x1d8] sm:$0xff] %vm767_vm3, %v3188_v32  ;;  %v1026_v23 = vld [vmem:[#allocation2 + $0x10] sm:$0xff] }
  0x98   : > { %828 = vst.msk [vmem:[#allocation2 + $0x1e0] sm:$0xff] %vm767_vm3, %v3188_v32 }
  0x99   : > { %829 = vst.msk [vmem:[#allocation2 + $0x1e8] sm:$0xff] %vm767_vm3, %v3188_v32 }
  0x9a   : > { %830 = vst.msk [vmem:[#allocation2 + $0x1f0] sm:$0xff] %vm767_vm3, %v3188_v32 }
  0x9b   : > { %831 = vst.msk [vmem:[#allocation2 + $0x1f8] sm:$0xff] %vm767_vm3, %v3188_v32 }
  0x9c   : > { %832 = vst.msk [vmem:[#allocation2 + $0x200] sm:$0xff] %vm767_vm3, %v3188_v32 }
  0x9d   : > { %833 = vst.msk [vmem:[#allocation2 + $0x208] sm:$0xff] %vm767_vm3, %v3188_v32 }
  0x9e   : > { %834 = vst.msk [vmem:[#allocation2 + $0x210] sm:$0xff] %vm767_vm3, %v3188_v32 }
  0x9f   : > { %835 = vst.msk [vmem:[#allocation2 + $0x218] sm:$0xff] %vm767_vm3, %v3188_v32 }
  0xa0   : > { %836 = vst.msk [vmem:[#allocation2 + $0x220] sm:$0xff] %vm767_vm3, %v3188_v32 }
  0xa1   : > { %837 = vst.msk [vmem:[#allocation2 + $0x228] sm:$0xff] %vm767_vm3, %v3188_v32 }
  0xa2   : > { %838 = vst.msk [vmem:[#allocation2 + $0x230] sm:$0xff] %vm767_vm3, %v3188_v32 }
  0xa3   : > { %839 = vst.msk [vmem:[#allocation2 + $0x238] sm:$0xff] %vm767_vm3, %v3188_v32  ;;  %v1088_v4 = vld [vmem:[#allocation2 + $0x200] sm:$0xff] }
  0xa4   : > { %840 = vst.msk [vmem:[#allocation2 + $0x240] sm:$0xff] %vm767_vm3, %v3188_v32  ;;  %v1089_v17 = vld [vmem:[#allocation2 + $0x208] sm:$0xff] }
  0xa5   : > { %841 = vst.msk [vmem:[#allocation2 + $0x248] sm:$0xff] %vm767_vm3, %v3188_v32 }
  0xa6   : > { %2968 = vmatmul.msk.bf16.gmra.mxu0 %vm1487_vm2, %v3035_v24  ;;  %2984 = vmatmul.msk.bf16.gmra.mxu1 %vm1487_vm2, %v3051_v25  ;;  %842 = vst.msk [vmem:[#allocation2 + $0x250] sm:$0xff] %vm767_vm3, %v3188_v32  ;;  %v1058_v25 = vld [vmem:[#allocation2 + $0x110] sm:$0xff] }
  0xa7   : > { %3000 = vmatmul.msk.bf16.gmra.mxu2 %vm1487_vm2, %v3067_v26  ;;  %3016 = vmatmul.msk.bf16.gmra.mxu3 %vm1487_vm2, %v3083_v27  ;;  %843 = vst.msk [vmem:[#allocation2 + $0x258] sm:$0xff] %vm767_vm3, %v3188_v32 }
  0xa8   : > { %844 = vst.msk [vmem:[#allocation2 + $0x260] sm:$0xff] %vm767_vm3, %v3188_v32 }
  0xa9   : > { %845 = vst.msk [vmem:[#allocation2 + $0x268] sm:$0xff] %vm767_vm3, %v3188_v32 }
  0xaa   : > { %846 = vst.msk [vmem:[#allocation2 + $0x270] sm:$0xff] %vm767_vm3, %v3188_v32 }
  0xab   : > { %847 = vst.msk [vmem:[#allocation2 + $0x278] sm:$0xff] %vm767_vm3, %v3188_v32 }
  0xac   : > { %848 = vst.msk [vmem:[#allocation2 + $0x280] sm:$0xff] %vm767_vm3, %v3188_v32 }
  0xad   : > { %849 = vst.msk [vmem:[#allocation2 + $0x288] sm:$0xff] %vm767_vm3, %v3188_v32 }
  0xae   : > { %850 = vst.msk [vmem:[#allocation2 + $0x290] sm:$0xff] %vm767_vm3, %v3188_v32 }
  0xaf   : > { %851 = vst.msk [vmem:[#allocation2 + $0x298] sm:$0xff] %vm767_vm3, %v3188_v32 }
  0xb0   : > { %852 = vst.msk [vmem:[#allocation2 + $0x2a0] sm:$0xff] %vm767_vm3, %v3188_v32 }
  0xb1   : > { %853 = vst.msk [vmem:[#allocation2 + $0x2a8] sm:$0xff] %vm767_vm3, %v3188_v32 }
  0xb2   : > { %854 = vst.msk [vmem:[#allocation2 + $0x2b0] sm:$0xff] %vm767_vm3, %v3188_v32 }
  0xb3   : > { %855 = vst.msk [vmem:[#allocation2 + $0x2b8] sm:$0xff] %vm767_vm3, %v3188_v32 }
  0xb4   : > { %856 = vst.msk [vmem:[#allocation2 + $0x2c0] sm:$0xff] %vm767_vm3, %v3188_v32 }
  0xb5   : > { %857 = vst.msk [vmem:[#allocation2 + $0x2c8] sm:$0xff] %vm767_vm3, %v3188_v32 }
  0xb6   : > { %2969 = vmatmul.msk.bf16.gmra.mxu0 %vm1487_vm2, %v3036_v28  ;;  %2985 = vmatmul.msk.bf16.gmra.mxu1 %vm1487_vm2, %v3052_v29  ;;  %858 = vst.msk [vmem:[#allocation2 + $0x2d0] sm:$0xff] %vm767_vm3, %v3188_v32  ;;  %v1090_v29 = vld [vmem:[#allocation2 + $0x210] sm:$0xff] }
  0xb7   : > { %3001 = vmatmul.msk.bf16.gmra.mxu2 %vm1487_vm2, %v3068_v30  ;;  %3017 = vmatmul.msk.bf16.gmra.mxu3 %vm1487_vm2, %v3084_v31  ;;  %859 = vst.msk [vmem:[#allocation2 + $0x2d8] sm:$0xff] %vm767_vm3, %v3188_v32 }
  0xb8   : > { %860 = vst.msk [vmem:[#allocation2 + $0x2e0] sm:$0xff] %vm767_vm3, %v3188_v32 }
  0xb9   : > { %861 = vst.msk [vmem:[#allocation2 + $0x2e8] sm:$0xff] %vm767_vm3, %v3188_v32 }
  0xba   : > { %862 = vst.msk [vmem:[#allocation2 + $0x2f0] sm:$0xff] %vm767_vm3, %v3188_v32 }
  0xbb   : > { %863 = vst.msk [vmem:[#allocation2 + $0x2f8] sm:$0xff] %vm767_vm3, %v3188_v32 }
  0xbc   : > { %864 = vst.msk [vmem:[#allocation2 + $0x300] sm:$0xff] %vm767_vm3, %v3188_v32 }
  0xbd   : > { %865 = vst.msk [vmem:[#allocation2 + $0x308] sm:$0xff] %vm767_vm3, %v3188_v32 }
  0xbe   : > { %866 = vst.msk [vmem:[#allocation2 + $0x310] sm:$0xff] %vm767_vm3, %v3188_v32 }
  0xbf   : > { %867 = vst.msk [vmem:[#allocation2 + $0x318] sm:$0xff] %vm767_vm3, %v3188_v32 }
  0xc0   : > { %868 = vst.msk [vmem:[#allocation2 + $0x320] sm:$0xff] %vm767_vm3, %v3188_v32 }
  0xc1   : > { %869 = vst.msk [vmem:[#allocation2 + $0x328] sm:$0xff] %vm767_vm3, %v3188_v32 }
  0xc2   : > { %870 = vst.msk [vmem:[#allocation2 + $0x330] sm:$0xff] %vm767_vm3, %v3188_v32 }
  0xc3   : > { %871 = vst.msk [vmem:[#allocation2 + $0x338] sm:$0xff] %vm767_vm3, %v3188_v32  ;;  %v1120_v10 = vld [vmem:[#allocation2 + $0x300] sm:$0xff] }
  0xc4   : > { %872 = vst.msk [vmem:[#allocation2 + $0x340] sm:$0xff] %vm767_vm3, %v3188_v32  ;;  %v1121_v19 = vld [vmem:[#allocation2 + $0x308] sm:$0xff] }
  0xc5   : > { %873 = vst.msk [vmem:[#allocation2 + $0x348] sm:$0xff] %vm767_vm3, %v3188_v32  ;;  %v1122_v31 = vld [vmem:[#allocation2 + $0x310] sm:$0xff] }
  0xc6   : > { %2970 = vmatmul.msk.bf16.gmra.mxu0 %vm1487_vm2, %v3037_v33  ;;  %2986 = vmatmul.msk.bf16.gmra.mxu1 %vm1487_vm2, %v3053_v34  ;;  %874 = vst.msk [vmem:[#allocation2 + $0x350] sm:$0xff] %vm767_vm3, %v3188_v32  ;;  %v1027_v33 = vld [vmem:[#allocation2 + $0x18] sm:$0xff] }
  0xc7   : > { %3002 = vmatmul.msk.bf16.gmra.mxu2 %vm1487_vm2, %v3069_v35  ;;  %3018 = vmatmul.msk.bf16.gmra.mxu3 %vm1487_vm2, %v3085_v36  ;;  %875 = vst.msk [vmem:[#allocation2 + $0x358] sm:$0xff] %vm767_vm3, %v3188_v32  ;;  %v1059_v36 = vld [vmem:[#allocation2 + $0x118] sm:$0xff] }
  0xc8   : > { %876 = vst.msk [vmem:[#allocation2 + $0x360] sm:$0xff] %vm767_vm3, %v3188_v32 }
  0xc9   : > { %877 = vst.msk [vmem:[#allocation2 + $0x368] sm:$0xff] %vm767_vm3, %v3188_v32 }
  0xca   : > { %878 = vst.msk [vmem:[#allocation2 + $0x370] sm:$0xff] %vm767_vm3, %v3188_v32 }
  0xcb   : > { %879 = vst.msk [vmem:[#allocation2 + $0x378] sm:$0xff] %vm767_vm3, %v3188_v32 }
  0xcc   : > { %880 = vst.msk [vmem:[#allocation2 + $0x380] sm:$0xff] %vm767_vm3, %v3188_v32 }
  0xcd   : > { %881 = vst.msk [vmem:[#allocation2 + $0x388] sm:$0xff] %vm767_vm3, %v3188_v32 }
  0xce   : > { %882 = vst.msk [vmem:[#allocation2 + $0x390] sm:$0xff] %vm767_vm3, %v3188_v32 }
  0xcf   : > { %883 = vst.msk [vmem:[#allocation2 + $0x398] sm:$0xff] %vm767_vm3, %v3188_v32 }
  0xd0   : > { %884 = vst.msk [vmem:[#allocation2 + $0x3a0] sm:$0xff] %vm767_vm3, %v3188_v32 }
  0xd1   : > { %885 = vst.msk [vmem:[#allocation2 + $0x3a8] sm:$0xff] %vm767_vm3, %v3188_v32 }
  0xd2   : > { %886 = vst.msk [vmem:[#allocation2 + $0x3b0] sm:$0xff] %vm767_vm3, %v3188_v32 }
  0xd3   : > { %887 = vst.msk [vmem:[#allocation2 + $0x3b8] sm:$0xff] %vm767_vm3, %v3188_v32 }
  0xd4   : > { %888 = vst.msk [vmem:[#allocation2 + $0x3c0] sm:$0xff] %vm767_vm3, %v3188_v32 }
  0xd5   : > { %889 = vst.msk [vmem:[#allocation2 + $0x3c8] sm:$0xff] %vm767_vm3, %v3188_v32 }
  0xd6   : > { %2971 = vmatmul.msk.bf16.gmra.mxu0 %vm1487_vm2, %v3038_v37  ;;  %2987 = vmatmul.msk.bf16.gmra.mxu1 %vm1487_vm2, %v3054_v38  ;;  %890 = vst.msk [vmem:[#allocation2 + $0x3d0] sm:$0xff] %vm767_vm3, %v3188_v32  ;;  %v1091_v38 = vld [vmem:[#allocation2 + $0x218] sm:$0xff] }
  0xd7   : > { %3003 = vmatmul.msk.bf16.gmra.mxu2 %vm1487_vm2, %v3070_v39  ;;  %3019 = vmatmul.msk.bf16.gmra.mxu3 %vm1487_vm2, %v3086_v40  ;;  %891 = vst.msk [vmem:[#allocation2 + $0x3d8] sm:$0xff] %vm767_vm3, %v3188_v32 }
  0xd8   : > { %892 = vst.msk [vmem:[#allocation2 + $0x3e0] sm:$0xff] %vm767_vm3, %v3188_v32 }
  0xd9   : > { %893 = vst.msk [vmem:[#allocation2 + $0x3e8] sm:$0xff] %vm767_vm3, %v3188_v32 }
  0xda   : > { %894 = vst.msk [vmem:[#allocation2 + $0x3f0] sm:$0xff] %vm767_vm3, %v3188_v32 }
  0xdb   : > { %895 = vst.msk [vmem:[#allocation2 + $0x3f8] sm:$0xff] %vm767_vm3, %v3188_v32 }
  0xe3   : > { %v1696_v42 = vpop.f32.mrf.mxu0  ;;  %v3639_v44 = vpop.f32.mrf.mxu1 }
  0xe4   : > { %v2016_v43 = vadd.f32 %v1696_v42, %v1024_v41  ;;  %v2048_v12 = vadd.f32 %v3639_v44, %v1056_v3  ;;  %v1123_v41 = vld [vmem:[#allocation2 + $0x318] sm:$0xff] }
  0xe6   : > { %2145 = vst.msk [vmem:[#allocation2] sm:$0xff] %vm767_vm3, %v2016_v43  ;;  %2972 = vmatmul.msk.bf16.gmra.mxu0 %vm1487_vm2, %v3039_v45  ;;  %2988 = vmatmul.msk.bf16.gmra.mxu1 %vm1487_vm2, %v3055_v46  ;;  %v3825_v46 = vld [vmem:[%s4127_s2] ss:$0 sm:$0xff] }
  0xe7   : > { %3004 = vmatmul.msk.bf16.gmra.mxu2 %vm1487_vm2, %v3071_v47  ;;  %3020 = vmatmul.msk.bf16.gmra.mxu3 %vm1487_vm2, %v3087_v48  ;;  %2177 = vst.msk [vmem:[#allocation2 + $0x100] sm:$0xff] %vm767_vm3, %v2048_v12  ;;  %v1028_v48 = vld [vmem:[#allocation2 + $0x20] sm:$0xff] }
  0xea   : > { %v3661_v49 = vpop.f32.mrf.mxu2  ;;  %v3665_v50 = vpop.f32.mrf.mxu3 }
  0xeb   : > { %v3673_v51 = vpop.f32.mrf.mxu0  ;;  %v3675_v52 = vpop.f32.mrf.mxu1  ;;  %v2080_v14 = vadd.f32 %v3661_v49, %v1088_v4  ;;  %v2112_v16 = vadd.f32 %v3665_v50, %v1120_v10  ;;  %v1060_v49 = vld [vmem:[#allocation2 + $0x120] sm:$0xff] }
  0xec   : > { %v2017_v18 = vadd.f32 %v3673_v51, %v1025_v13  ;;  %v2049_v22 = vadd.f32 %v3675_v52, %v1057_v15  ;;  %v1124_v4 = vld [vmem:[#allocation2 + $0x320] sm:$0xff] }
  0xed   : > { %2209 = vst.msk [vmem:[#allocation2 + $0x200] sm:$0xff] %vm767_vm3, %v2080_v14  ;;  %v2276_v34 = vld [vmem:[#allocation2] sm:$0xff] }
  0xee   : > { %2241 = vst.msk [vmem:[#allocation2 + $0x300] sm:$0xff] %vm767_vm3, %v2112_v16  ;;  %v2308_v39 = vld [vmem:[#allocation2 + $0x100] sm:$0xff] }
  0xef   : > { %2146 = vst.msk [vmem:[#allocation2 + $0x8] sm:$0xff] %vm767_vm3, %v2017_v18  ;;  %v2340_v44 = vmax.f32 %v2276_v34, %v2308_v39 }
  0xf0   : > { %2178 = vst.msk [vmem:[#allocation2 + $0x108] sm:$0xff] %vm767_vm3, %v2049_v22  ;;  %v1093_v22 = vld [vmem:[#allocation2 + $0x228] sm:$0xff] }
  0xf2   : > { %v3689_v53 = vpop.f32.mrf.mxu2  ;;  %v3691_v54 = vpop.f32.mrf.mxu3 }
  0xf3   : > { %v3697_v55 = vpop.f32.mrf.mxu0  ;;  %v3699_v56 = vpop.f32.mrf.mxu1  ;;  %v2081_v24 = vadd.f32 %v3689_v53, %v1089_v17  ;;  %v2113_v28 = vadd.f32 %v3691_v54, %v1121_v19  ;;  %v3042_v54 = vld [vmem:[%s3396_s9 + $0x58] sm:$0xff] }
  0xf4   : > { %v2018_v30 = vadd.f32 %v3697_v55, %v1026_v23  ;;  %v2050_v32 = vadd.f32 %v3699_v56, %v1058_v25  ;;  %v2372_v45 = vld [vmem:[#allocation2 + $0x200] sm:$0xff]  ;;  %v3058_v55 = vld [vmem:[%s3396_s9 + $0xd8] sm:$0xff]  ;;  %v1125_v25 = vld [vmem:[#allocation2 + $0x328] sm:$0xff] }
  0xf5   : > { %2210 = vst.msk [vmem:[#allocation2 + $0x208] sm:$0xff] %vm767_vm3, %v2081_v24  ;;  %v2404_v50 = vld [vmem:[#allocation2 + $0x300] sm:$0xff] }
  0xf6   : > { %2973 = vmatmul.msk.bf16.gmra.mxu0 %vm1487_vm2, %v3040_v57  ;;  %2989 = vmatmul.msk.bf16.gmra.mxu1 %vm1487_vm2, %v3056_v58  ;;  %2242 = vst.msk [vmem:[#allocation2 + $0x308] sm:$0xff] %vm767_vm3, %v2113_v28  ;;  %v2436_v56 = vmax.f32 %v2372_v45, %v2404_v50  ;;  %v1092_v58 = vld [vmem:[#allocation2 + $0x220] sm:$0xff] }
  0xf7   : > { %3005 = vmatmul.msk.bf16.gmra.mxu2 %vm1487_vm2, %v3072_v59  ;;  %3021 = vmatmul.msk.bf16.gmra.mxu3 %vm1487_vm2, %v3088_v60  ;;  %2147 = vst.msk [vmem:[#allocation2 + $0x10] sm:$0xff] %vm767_vm3, %v2018_v30  ;;  %v3074_v59 = vld [vmem:[%s3396_s9 + $0x158] sm:$0xff] }
  0xf8   : > { %2179 = vst.msk [vmem:[#allocation2 + $0x110] sm:$0xff] %vm767_vm3, %v2050_v32  ;;  %v3090_v60 = vld [vmem:[%s3396_s9 + $0x1d8] sm:$0xff] }
  0xfa   : > { %v3721_v61 = vpop.f32.mrf.mxu2  ;;  %v3723_v62 = vpop.f32.mrf.mxu3 }
  0xfb   : > { %v3729_v63 = vpop.f32.mrf.mxu0  ;;  %v3731_v0 = vpop.f32.mrf.mxu1  ;;  %v2082_v35 = vadd.f32 %v3721_v61, %v1090_v29  ;;  %v2114_v37 = vadd.f32 %v3723_v62, %v1122_v31  ;;  %v2277_v61 = vld [vmem:[#allocation2 + $0x8] sm:$0xff]  ;;  %v1030_v31 = vld [vmem:[#allocation2 + $0x30] sm:$0xff] }
  0xfc   : > { %v2019_v40 = vadd.f32 %v3729_v63, %v1027_v33  ;;  %v2051_v47 = vadd.f32 %v3731_v0, %v1059_v36  ;;  %v2309_v62 = vld [vmem:[#allocation2 + $0x108] sm:$0xff]  ;;  %v2468_v0 = vmax.f32 %v2340_v44, %v2436_v56 }
  0xfd   : > { %2211 = vst.msk [vmem:[#allocation2 + $0x210] sm:$0xff] %vm767_vm3, %v2082_v35 }
  0xfe   : > { %2243 = vst.msk [vmem:[#allocation2 + $0x310] sm:$0xff] %vm767_vm3, %v2114_v37  ;;  %v1062_v37 = vld [vmem:[#allocation2 + $0x130] sm:$0xff] }
  0xff   : > { %2148 = vst.msk [vmem:[#allocation2 + $0x18] sm:$0xff] %vm767_vm3, %v2019_v40  ;;  %v2310_v12 = vld [vmem:[#allocation2 + $0x110] sm:$0xff] }
 0x100   : > { %2180 = vst.msk [vmem:[#allocation2 + $0x118] sm:$0xff] %vm767_vm3, %v2051_v47  ;;  %v1094_v40 = vld [vmem:[#allocation2 + $0x230] sm:$0xff] }
 0x101   : > { %v1126_v47 = vld [vmem:[#allocation2 + $0x330] sm:$0xff] }
 0x102   : > { %v3745_v1 = vpop.f32.mrf.mxu2  ;;  %v3747_v2 = vpop.f32.mrf.mxu3 }
 0x103   : > { %v3753_v5 = vpop.f32.mrf.mxu0  ;;  %v3755_v6 = vpop.f32.mrf.mxu1  ;;  %v2083_v51 = vadd.f32 %v3745_v1, %v1091_v38  ;;  %v2115_v57 = vadd.f32 %v3747_v2, %v1123_v41  ;;  %v2373_v1 = vld [vmem:[#allocation2 + $0x208] sm:$0xff] }
 0x104   : > { %v2020_v63 = vadd.f32 %v3753_v5, %v1028_v48  ;;  %v2052_v3 = vadd.f32 %v3755_v6, %v1060_v49  ;;  %v2405_v2 = vld [vmem:[#allocation2 + $0x308] sm:$0xff]  ;;  %v2504_v5 = vadd.f32 %v3825_v46, %v2468_v0  ;;  %v2278_v6 = vld [vmem:[#allocation2 + $0x10] sm:$0xff]  ;;  %v1031_v49 = vld [vmem:[#allocation2 + $0x38] sm:$0xff] }
 0x105   : > { %2212 = vst.msk [vmem:[#allocation2 + $0x218] sm:$0xff] %vm767_vm3, %v2083_v51  ;;  %v2437_v10 = vmax.f32 %v2373_v1, %v2405_v2  ;;  %v2342_v18 = vmax.f32 %v2278_v6, %v2310_v12  ;;  %v2374_v19 = vld [vmem:[#allocation2 + $0x210] sm:$0xff]  ;;  %v3091_v0 = vld [vmem:[%s3396_s9 + $0x1e0] sm:$0xff] }
 0x106   : > { %2974 = vmatmul.msk.bf16.gmra.mxu0 %vm1487_vm2, %v3041_v7  ;;  %2990 = vmatmul.msk.bf16.gmra.mxu1 %vm1487_vm2, %v3057_v8  ;;  %v1029_v8 = vld [vmem:[#allocation2 + $0x28] sm:$0xff]  ;;  %2244 = vst.msk [vmem:[#allocation2 + $0x318] sm:$0xff] %vm767_vm3, %v2115_v57  ;;  %v2536_v16 = vmax.f32 %v2504_v5, 0.0  ;;  %v2406_v23 = vld [vmem:[#allocation2 + $0x310] sm:$0xff]  ;;  %v2279_v32 = vld [vmem:[#allocation2 + $0x18] sm:$0xff] }
 0x107   : > { %3006 = vmatmul.msk.bf16.gmra.mxu2 %vm1487_vm2, %v3073_v9  ;;  %3022 = vmatmul.msk.bf16.gmra.mxu3 %vm1487_vm2, %v3089_v11  ;;  %v2341_v9 = vmax.f32 %v2277_v61, %v2309_v62  ;;  %v1061_v11 = vld [vmem:[#allocation2 + $0x128] sm:$0xff]  ;;  %2149 = vst.msk [vmem:[#allocation2 + $0x20] sm:$0xff] %vm767_vm3, %v2020_v63  ;;  %v2438_v30 = vmax.f32 %v2374_v19, %v2406_v23  ;;  %v2311_v33 = vld [vmem:[#allocation2 + $0x118] sm:$0xff]  ;;  %v3043_v57 = vld [vmem:[%s3396_s9 + $0x60] sm:$0xff] }
 0x108   : > { %2181 = vst.msk [vmem:[#allocation2 + $0x120] sm:$0xff] %vm767_vm3, %v2052_v3  ;;  %v1063_v61 = vld [vmem:[#allocation2 + $0x138] sm:$0xff]  ;;  %v3075_v63 = vld [vmem:[%s3396_s9 + $0x160] sm:$0xff] }
 0x109   : > { %v2469_v17 = vmax.f32 %v2341_v9, %v2437_v10  ;;  %2568 = vst.msk [vmem:[%s3857_s22] sm:$0xff] %vm767_vm3, %v2536_v16  ;;  %v2470_v35 = vmax.f32 %v2342_v18, %v2438_v30  ;;  %v1064_v16 = vld [vmem:[#allocation2 + $0x140] sm:$0xff] }
 0x10a   : > { %v3781_v20 = vpop.f32.mrf.mxu2  ;;  %v3783_v21 = vpop.f32.mrf.mxu3  ;;  %v1096_v19 = vld [vmem:[#allocation2 + $0x240] sm:$0xff] }
 0x10b   : > { %v3790_v26 = vpop.f32.mrf.mxu0  ;;  %v3792_v27 = vpop.f32.mrf.mxu1  ;;  %v2084_v7 = vadd.f32 %v3781_v20, %v1092_v58  ;;  %v2116_v13 = vadd.f32 %v3783_v21, %v1124_v4  ;;  %v2505_v29 = vadd.f32 %v3825_v46, %v2469_v17  ;;  %v2506_v41 = vadd.f32 %v3825_v46, %v2470_v35  ;;  %v3059_v58 = vld [vmem:[%s3396_s9 + $0xe0] sm:$0xff]  ;;  %v1095_v4 = vld [vmem:[#allocation2 + $0x238] sm:$0xff]  ;;  %v1033_v35 = vld [vmem:[#allocation2 + $0x48] sm:$0xff] }
 0x10c   : > { %v2021_v20 = vadd.f32 %v3790_v26, %v1029_v8  ;;  %v2053_v24 = vadd.f32 %v3792_v27, %v1061_v11  ;;  %v2375_v36 = vld [vmem:[#allocation2 + $0x218] sm:$0xff] }
 0x10d   : > { %2213 = vst.msk [vmem:[#allocation2 + $0x220] sm:$0xff] %vm767_vm3, %v2084_v7  ;;  %v2537_v34 = vmax.f32 %v2505_v29, 0.0  ;;  %v2407_v38 = vld [vmem:[#allocation2 + $0x318] sm:$0xff] }
 0x10e   : > { %2245 = vst.msk [vmem:[#allocation2 + $0x320] sm:$0xff] %vm767_vm3, %v2116_v13  ;;  %v2439_v44 = vmax.f32 %v2375_v36, %v2407_v38  ;;  %v2280_v45 = vld [vmem:[#allocation2 + $0x20] sm:$0xff]  ;;  %v1127_v8 = vld [vmem:[#allocation2 + $0x338] sm:$0xff]  ;;  %v1065_v38 = vld [vmem:[#allocation2 + $0x148] sm:$0xff] }
 0x10f   : > { %2150 = vst.msk [vmem:[#allocation2 + $0x28] sm:$0xff] %vm767_vm3, %v2021_v20  ;;  %v2312_v48 = vld [vmem:[#allocation2 + $0x120] sm:$0xff] }
 0x110   : > { %2182 = vst.msk [vmem:[#allocation2 + $0x128] sm:$0xff] %vm767_vm3, %v2053_v24  ;;  %v1032_v13 = vld [vmem:[#allocation2 + $0x40] sm:$0xff] }
 0x111   : > { %2569 = vst.msk [vmem:[%s3857_s22 + $0x8] sm:$0xff] %vm767_vm3, %v2537_v34 }
 0x112   : > { %v3812_v42 = vpop.f32.mrf.mxu2  ;;  %v3814_v43 = vpop.f32.mrf.mxu3 }
 0x113   : > { %v3831_v52 = vpop.f32.mrf.mxu0  ;;  %v3833_v53 = vpop.f32.mrf.mxu1  ;;  %v2085_v26 = vadd.f32 %v3812_v42, %v1093_v22  ;;  %v2117_v27 = vadd.f32 %v3814_v43, %v1125_v25  ;;  %v2343_v42 = vmax.f32 %v2279_v32, %v2311_v33 }
 0x114   : > { %v2022_v39 = vadd.f32 %v3831_v52, %v1030_v31  ;;  %v2054_v43 = vadd.f32 %v3833_v53, %v1062_v37  ;;  %v2538_v52 = vmax.f32 %v2506_v41, 0.0 }
 0x115   : > { %2214 = vst.msk [vmem:[#allocation2 + $0x228] sm:$0xff] %vm767_vm3, %v2085_v26  ;;  %v2408_v3 = vld [vmem:[#allocation2 + $0x320] sm:$0xff] }
 0x116   : > { %2975 = vmatmul.msk.bf16.gmra.mxu0 %vm1487_vm2, %v3042_v54  ;;  %2991 = vmatmul.msk.bf16.gmra.mxu1 %vm1487_vm2, %v3058_v55  ;;  %v2471_v54 = vmax.f32 %v2343_v42, %v2439_v44  ;;  %v2376_v55 = vld [vmem:[#allocation2 + $0x220] sm:$0xff]  ;;  %2246 = vst.msk [vmem:[#allocation2 + $0x328] sm:$0xff] %vm767_vm3, %v2117_v27  ;;  %v2281_v6 = vld [vmem:[#allocation2 + $0x28] sm:$0xff] }
 0x117   : > { %3007 = vmatmul.msk.bf16.gmra.mxu2 %vm1487_vm2, %v3074_v59  ;;  %3023 = vmatmul.msk.bf16.gmra.mxu3 %vm1487_vm2, %v3090_v60  ;;  %v2344_v59 = vmax.f32 %v2280_v45, %v2312_v48  ;;  %2151 = vst.msk [vmem:[#allocation2 + $0x30] sm:$0xff] %vm767_vm3, %v2022_v39  ;;  %v2440_v2 = vmax.f32 %v2376_v55, %v2408_v3  ;;  %v2313_v11 = vld [vmem:[#allocation2 + $0x128] sm:$0xff]  ;;  %v1066_v55 = vld [vmem:[#allocation2 + $0x150] sm:$0xff] }
 0x118   : > { %2570 = vst.msk [vmem:[%s3857_s22 + $0x10] sm:$0xff] %vm767_vm3, %v2538_v52  ;;  %v2507_v1 = vadd.f32 %v3825_v46, %v2471_v54  ;;  %v2345_v23 = vmax.f32 %v2281_v6, %v2313_v11  ;;  %v1097_v44 = vld [vmem:[#allocation2 + $0x248] sm:$0xff] }
 0x119   : > { %2183 = vst.msk [vmem:[#allocation2 + $0x130] sm:$0xff] %vm767_vm3, %v2054_v43  ;;  %v2472_v10 = vmax.f32 %v2344_v59, %v2440_v2  ;;  %v1129_v45 = vld [vmem:[#allocation2 + $0x348] sm:$0xff]  ;;  %v1034_v43 = vld [vmem:[#allocation2 + $0x50] sm:$0xff] }
 0x11a   : > { %v1871_v14 = vpop.f32.mrf.mxu2  ;;  %v1951_v15 = vpop.f32.mrf.mxu3  ;;  %v2539_v5 = vmax.f32 %v2507_v1, 0.0  ;;  %v3044_v59 = vld [vmem:[%s3396_s9 + $0x68] sm:$0xff] }
 0x11b   : > { %v1713_v28 = vpop.f32.mrf.mxu0  ;;  %v1793_v21 = vpop.f32.mrf.mxu1  ;;  %v2086_v56 = vadd.f32 %v1871_v14, %v1094_v40  ;;  %v2118_v60 = vadd.f32 %v1951_v15, %v1126_v47  ;;  %v2508_v17 = vadd.f32 %v3825_v46, %v2472_v10  ;;  %v3092_v1 = vld [vmem:[%s3396_s9 + $0x1e8] sm:$0xff] }
 0x11c   : > { %v2023_v7 = vadd.f32 %v1713_v28, %v1031_v49  ;;  %v2055_v9 = vadd.f32 %v1793_v21, %v1063_v61  ;;  %2571 = vst.msk [vmem:[%s3857_s22 + $0x18] sm:$0xff] %vm767_vm3, %v2539_v5  ;;  %v2377_v14 = vld [vmem:[#allocation2 + $0x228] sm:$0xff]  ;;  %v1128_v21 = vld [vmem:[#allocation2 + $0x340] sm:$0xff] }
 0x11d   : > { %2215 = vst.msk [vmem:[#allocation2 + $0x230] sm:$0xff] %vm767_vm3, %v2086_v56  ;;  %v2409_v18 = vld [vmem:[#allocation2 + $0x328] sm:$0xff]  ;;  %v2540_v29 = vmax.f32 %v2508_v17, 0.0 }
 0x11e   : > { %2247 = vst.msk [vmem:[#allocation2 + $0x330] sm:$0xff] %vm767_vm3, %v2118_v60  ;;  %v2441_v24 = vmax.f32 %v2377_v14, %v2409_v18  ;;  %v2282_v25 = vld [vmem:[#allocation2 + $0x30] sm:$0xff]  ;;  %v3060_v60 = vld [vmem:[%s3396_s9 + $0xe8] sm:$0xff] }
 0x11f   : > { %2152 = vst.msk [vmem:[#allocation2 + $0x38] sm:$0xff] %vm767_vm3, %v2023_v7 }
 0x120   : > { %2184 = vst.msk [vmem:[#allocation2 + $0x138] sm:$0xff] %vm767_vm3, %v2055_v9  ;;  %v2473_v33 = vmax.f32 %v2345_v23, %v2441_v24  ;;  %v2314_v26 = vld [vmem:[#allocation2 + $0x130] sm:$0xff] }
 0x121   : > { %2572 = vst.msk [vmem:[%s3857_s22 + $0x20] sm:$0xff] %vm767_vm3, %v2540_v29  ;;  %v2346_v36 = vmax.f32 %v2282_v25, %v2314_v26 }
 0x122   : > { %v1873_v50 = vpop.f32.mrf.mxu2  ;;  %v1953_v51 = vpop.f32.mrf.mxu3  ;;  %v2509_v39 = vadd.f32 %v3825_v46, %v2473_v33 }
 0x123   : > { %v1716_v53 = vpop.f32.mrf.mxu0  ;;  %v1796_v62 = vpop.f32.mrf.mxu1  ;;  %v2087_v12 = vadd.f32 %v1873_v50, %v1095_v4  ;;  %v2119_v15 = vadd.f32 %v1953_v51, %v1127_v8 }
 0x124   : > { %v2024_v28 = vadd.f32 %v1716_v53, %v1032_v13  ;;  %v2056_v30 = vadd.f32 %v1796_v62, %v1064_v16  ;;  %v2378_v27 = vld [vmem:[#allocation2 + $0x230] sm:$0xff]  ;;  %v2541_v47 = vmax.f32 %v2509_v39, 0.0 }
 0x125   : > { %2216 = vst.msk [vmem:[#allocation2 + $0x238] sm:$0xff] %vm767_vm3, %v2087_v12  ;;  %v2410_v40 = vld [vmem:[#allocation2 + $0x330] sm:$0xff] }
 0x126   : > { %2976 = vmatmul.msk.bf16.gmra.mxu0 %vm1487_vm2, %v3043_v57  ;;  %2992 = vmatmul.msk.bf16.gmra.mxu1 %vm1487_vm2, %v3059_v58  ;;  %2248 = vst.msk [vmem:[#allocation2 + $0x338] sm:$0xff] %vm767_vm3, %v2119_v15  ;;  %v2442_v41 = vmax.f32 %v2378_v27, %v2410_v40  ;;  %v2283_v50 = vld [vmem:[#allocation2 + $0x38] sm:$0xff]  ;;  %v1098_v12 = vld [vmem:[#allocation2 + $0x250] sm:$0xff]  ;;  %v1036_v40 = vld [vmem:[#allocation2 + $0x60] sm:$0xff] }
 0x127   : > { %3008 = vmatmul.msk.bf16.gmra.mxu2 %vm1487_vm2, %v3075_v63  ;;  %3024 = vmatmul.msk.bf16.gmra.mxu3 %vm1487_vm2, %v3091_v0  ;;  %2153 = vst.msk [vmem:[#allocation2 + $0x40] sm:$0xff] %vm767_vm3, %v2024_v28  ;;  %v2315_v51 = vld [vmem:[#allocation2 + $0x138] sm:$0xff]  ;;  %v3076_v0 = vld [vmem:[%s3396_s9 + $0x168] sm:$0xff]  ;;  %v1130_v13 = vld [vmem:[#allocation2 + $0x350] sm:$0xff] }
 0x128   : > { %2185 = vst.msk [vmem:[#allocation2 + $0x140] sm:$0xff] %vm767_vm3, %v2056_v30  ;;  %v2474_v49 = vmax.f32 %v2346_v36, %v2442_v41  ;;  %v2347_v3 = vmax.f32 %v2283_v50, %v2315_v51  ;;  %v3045_v50 = vld [vmem:[%s3396_s9 + $0x70] sm:$0xff] }
 0x129   : > { %2573 = vst.msk [vmem:[%s3857_s22 + $0x28] sm:$0xff] %vm767_vm3, %v2541_v47  ;;  %v1068_v47 = vld [vmem:[#allocation2 + $0x160] sm:$0xff]  ;;  %v3061_v51 = vld [vmem:[%s3396_s9 + $0xf0] sm:$0xff] }
 0x12a   : > { %v1876_v20 = vpop.f32.mrf.mxu2  ;;  %v1956_v22 = vpop.f32.mrf.mxu3  ;;  %v2510_v61 = vadd.f32 %v3825_v46, %v2474_v49 }
 0x12b   : > { %v1718_v31 = vpop.f32.mrf.mxu0  ;;  %v1798_v32 = vpop.f32.mrf.mxu1  ;;  %v2088_v34 = vadd.f32 %v1876_v20, %v1096_v19  ;;  %v2120_v37 = vadd.f32 %v1956_v22, %v1128_v21  ;;  %v1035_v19 = vld [vmem:[#allocation2 + $0x58] sm:$0xff] }
 0x12c   : > { %v2025_v42 = vadd.f32 %v1718_v31, %v1033_v35  ;;  %v2057_v48 = vadd.f32 %v1798_v32, %v1065_v38  ;;  %v2379_v56 = vld [vmem:[#allocation2 + $0x238] sm:$0xff]  ;;  %v2542_v7 = vmax.f32 %v2510_v61, 0.0 }
 0x12d   : > { %2217 = vst.msk [vmem:[#allocation2 + $0x240] sm:$0xff] %vm767_vm3, %v2088_v34  ;;  %v2411_v53 = vld [vmem:[#allocation2 + $0x338] sm:$0xff] }
 0x12e   : > { %2249 = vst.msk [vmem:[#allocation2 + $0x340] sm:$0xff] %vm767_vm3, %v2120_v37  ;;  %v2443_v4 = vmax.f32 %v2379_v56, %v2411_v53  ;;  %v2284_v8 = vld [vmem:[#allocation2 + $0x40] sm:$0xff]  ;;  %v1067_v20 = vld [vmem:[#allocation2 + $0x158] sm:$0xff]  ;;  %v3093_v56 = vld [vmem:[%s3396_s9 + $0x1f0] sm:$0xff] }
 0x12f   : > { %2154 = vst.msk [vmem:[#allocation2 + $0x48] sm:$0xff] %vm767_vm3, %v2025_v42  ;;  %v2316_v10 = vld [vmem:[#allocation2 + $0x140] sm:$0xff]  ;;  %v1099_v37 = vld [vmem:[#allocation2 + $0x258] sm:$0xff] }
 0x130   : > { %2186 = vst.msk [vmem:[#allocation2 + $0x148] sm:$0xff] %vm767_vm3, %v2057_v48  ;;  %v2475_v9 = vmax.f32 %v2347_v3, %v2443_v4  ;;  %v2348_v6 = vmax.f32 %v2284_v8, %v2316_v10  ;;  %v1131_v38 = vld [vmem:[#allocation2 + $0x358] sm:$0xff] }
 0x131   : > { %2574 = vst.msk [vmem:[%s3857_s22 + $0x30] sm:$0xff] %vm767_vm3, %v2542_v7  ;;  %v1069_v7 = vld [vmem:[#allocation2 + $0x168] sm:$0xff] }
 0x132   : > { %v1878_v52 = vpop.f32.mrf.mxu2  ;;  %v1958_v54 = vpop.f32.mrf.mxu3  ;;  %v2511_v14 = vadd.f32 %v3825_v46, %v2475_v9 }
 0x133   : > { %v2089_v57 = vadd.f32 %v1878_v52, %v1097_v44  ;;  %v2121_v58 = vadd.f32 %v1958_v54, %v1129_v45  ;;  %v1721_v62 = vpop.f32.mrf.mxu0  ;;  %v1801_v63 = vpop.f32.mrf.mxu1 }
 0x134   : > { %v2026_v2 = vadd.f32 %v1721_v62, %v1034_v43  ;;  %v2058_v5 = vadd.f32 %v1801_v63, %v1066_v55  ;;  %v2380_v11 = vld [vmem:[#allocation2 + $0x240] sm:$0xff]  ;;  %v2543_v22 = vmax.f32 %v2511_v14, 0.0  ;;  %v3077_v55 = vld [vmem:[%s3396_s9 + $0x170] sm:$0xff] }
 0x135   : > { %2218 = vst.msk [vmem:[#allocation2 + $0x248] sm:$0xff] %vm767_vm3, %v2089_v57  ;;  %v2412_v15 = vld [vmem:[#allocation2 + $0x340] sm:$0xff] }
 0x136   : > { %2250 = vst.msk [vmem:[#allocation2 + $0x348] sm:$0xff] %vm767_vm3, %v2121_v58  ;;  %2977 = vmatmul.msk.bf16.gmra.mxu0 %vm1487_vm2, %v3044_v59  ;;  %2993 = vmatmul.msk.bf16.gmra.mxu1 %vm1487_vm2, %v3060_v60  ;;  %v2444_v16 = vmax.f32 %v2380_v11, %v2412_v15  ;;  %v2285_v28 = vld [vmem:[#allocation2 + $0x48] sm:$0xff]  ;;  %v1100_v63 = vld [vmem:[#allocation2 + $0x260] sm:$0xff] }
 0x137   : > { %3009 = vmatmul.msk.bf16.gmra.mxu2 %vm1487_vm2, %v3076_v0  ;;  %3025 = vmatmul.msk.bf16.gmra.mxu3 %vm1487_vm2, %v3092_v1  ;;  %2155 = vst.msk [vmem:[#allocation2 + $0x50] sm:$0xff] %vm767_vm3, %v2026_v2  ;;  %v2317_v21 = vld [vmem:[#allocation2 + $0x148] sm:$0xff]  ;;  %v1132_v0 = vld [vmem:[#allocation2 + $0x360] sm:$0xff] }
 0x138   : > { %2187 = vst.msk [vmem:[#allocation2 + $0x150] sm:$0xff] %vm767_vm3, %v2058_v5  ;;  %v2476_v25 = vmax.f32 %v2348_v6, %v2444_v16  ;;  %v2349_v35 = vmax.f32 %v2285_v28, %v2317_v21  ;;  %v1037_v2 = vld [vmem:[#allocation2 + $0x68] sm:$0xff] }
 0x139   : > { %2575 = vst.msk [vmem:[%s3857_s22 + $0x38] sm:$0xff] %vm767_vm3, %v2543_v22  ;;  %v1101_v22 = vld [vmem:[#allocation2 + $0x268] sm:$0xff] }
 0x13a   : > { %v1881_v17 = vpop.f32.mrf.mxu2  ;;  %v1961_v18 = vpop.f32.mrf.mxu3  ;;  %v2512_v26 = vadd.f32 %v3825_v46, %v2476_v25 }
 0x13b   : > { %v2090_v23 = vadd.f32 %v1881_v17, %v1098_v12  ;;  %v2122_v24 = vadd.f32 %v1961_v18, %v1130_v13  ;;  %v1723_v29 = vpop.f32.mrf.mxu0  ;;  %v1803_v30 = vpop.f32.mrf.mxu1 }
 0x13c   : > { %v2381_v31 = vld [vmem:[#allocation2 + $0x248] sm:$0xff]  ;;  %v2027_v32 = vadd.f32 %v1723_v29, %v1035_v19  ;;  %v2059_v33 = vadd.f32 %v1803_v30, %v1067_v20  ;;  %v2544_v27 = vmax.f32 %v2512_v26, 0.0  ;;  %v1038_v30 = vld [vmem:[#allocation2 + $0x70] sm:$0xff]  ;;  %v3046_v26 = vld [vmem:[%s3396_s9 + $0x78] sm:$0xff] }
 0x13d   : > { %v2413_v34 = vld [vmem:[#allocation2 + $0x348] sm:$0xff]  ;;  %2219 = vst.msk [vmem:[#allocation2 + $0x250] sm:$0xff] %vm767_vm3, %v2090_v23 }
 0x13e   : > { %v2445_v36 = vmax.f32 %v2381_v31, %v2413_v34  ;;  %2251 = vst.msk [vmem:[#allocation2 + $0x350] sm:$0xff] %vm767_vm3, %v2122_v24  ;;  %v2286_v41 = vld [vmem:[#allocation2 + $0x50] sm:$0xff]  ;;  %v1133_v23 = vld [vmem:[#allocation2 + $0x368] sm:$0xff]  ;;  %v3062_v34 = vld [vmem:[%s3396_s9 + $0xf8] sm:$0xff] }
 0x13f   : > { %2156 = vst.msk [vmem:[#allocation2 + $0x58] sm:$0xff] %vm767_vm3, %v2027_v32  ;;  %v2318_v42 = vld [vmem:[#allocation2 + $0x150] sm:$0xff] }
 0x140   : > { %v2477_v39 = vmax.f32 %v2349_v35, %v2445_v36  ;;  %2188 = vst.msk [vmem:[#allocation2 + $0x158] sm:$0xff] %vm767_vm3, %v2059_v33  ;;  %v2350_v58 = vmax.f32 %v2286_v41, %v2318_v42  ;;  %v1070_v31 = vld [vmem:[#allocation2 + $0x170] sm:$0xff] }
 0x141   : > { %2576 = vst.msk [vmem:[%s3857_s22 + $0x40] sm:$0xff] %vm767_vm3, %v2544_v27 }
 0x142   : > { %v1883_v44 = vpop.f32.mrf.mxu2  ;;  %v1963_v45 = vpop.f32.mrf.mxu3  ;;  %v2513_v48 = vadd.f32 %v3825_v46, %v2477_v39  ;;  %v3078_v39 = vld [vmem:[%s3396_s9 + $0x178] sm:$0xff] }
 0x143   : > { %v2091_v43 = vadd.f32 %v1883_v44, %v1099_v37  ;;  %v2123_v49 = vadd.f32 %v1963_v45, %v1131_v38  ;;  %v1726_v52 = vpop.f32.mrf.mxu0  ;;  %v1806_v54 = vpop.f32.mrf.mxu1 }
 0x144   : > { %v2545_v57 = vmax.f32 %v2513_v48, 0.0  ;;  %v2382_v59 = vld [vmem:[#allocation2 + $0x250] sm:$0xff]  ;;  %v2028_v60 = vadd.f32 %v1726_v52, %v1036_v40  ;;  %v2060_v61 = vadd.f32 %v1806_v54, %v1068_v47  ;;  %v3094_v40 = vld [vmem:[%s3396_s9 + $0x1f8] sm:$0xff] }
 0x145   : > { %2220 = vst.msk [vmem:[#allocation2 + $0x258] sm:$0xff] %vm767_vm3, %v2091_v43  ;;  %v2414_v53 = vld [vmem:[#allocation2 + $0x350] sm:$0xff]  ;;  %v1039_v52 = vld [vmem:[#allocation2 + $0x78] sm:$0xff] }
 0x146   : > { %2252 = vst.msk [vmem:[#allocation2 + $0x358] sm:$0xff] %vm767_vm3, %v2123_v49  ;;  %v2446_v62 = vmax.f32 %v2382_v59, %v2414_v53  ;;  %2978 = vmatmul.msk.bf16.gmra.mxu0 %vm1487_vm2, %v3045_v50  ;;  %2994 = vmatmul.msk.bf16.gmra.mxu1 %vm1487_vm2, %v3061_v51  ;;  %v2287_v5 = vld [vmem:[#allocation2 + $0x58] sm:$0xff]  ;;  %v1102_v48 = vld [vmem:[#allocation2 + $0x270] sm:$0xff] }
 0x147   : > { %2577 = vst.msk [vmem:[%s3857_s22 + $0x48] sm:$0xff] %vm767_vm3, %v2545_v57  ;;  %3010 = vmatmul.msk.bf16.gmra.mxu2 %vm1487_vm2, %v3077_v55  ;;  %3026 = vmatmul.msk.bf16.gmra.mxu3 %vm1487_vm2, %v3093_v56  ;;  %v2319_v9 = vld [vmem:[#allocation2 + $0x158] sm:$0xff]  ;;  %v1134_v43 = vld [vmem:[#allocation2 + $0x370] sm:$0xff] }
 0x148   : > { %2157 = vst.msk [vmem:[#allocation2 + $0x60] sm:$0xff] %vm767_vm3, %v2028_v60  ;;  %v2478_v1 = vmax.f32 %v2350_v58, %v2446_v62  ;;  %v2351_v18 = vmax.f32 %v2287_v5, %v2319_v9  ;;  %v1071_v54 = vld [vmem:[#allocation2 + $0x178] sm:$0xff] }
 0x149   : > { %2189 = vst.msk [vmem:[#allocation2 + $0x160] sm:$0xff] %vm767_vm3, %v2060_v61 }
 0x14a   : > { %v1886_v3 = vpop.f32.mrf.mxu2  ;;  %v1966_v4 = vpop.f32.mrf.mxu3  ;;  %v2514_v8 = vadd.f32 %v3825_v46, %v2478_v1 }
 0x14b   : > { %v2092_v10 = vadd.f32 %v1886_v3, %v1100_v63  ;;  %v2124_v6 = vadd.f32 %v1966_v4, %v1132_v0  ;;  %v1728_v12 = vpop.f32.mrf.mxu0  ;;  %v1808_v13 = vpop.f32.mrf.mxu1  ;;  %v1103_v4 = vld [vmem:[#allocation2 + $0x278] sm:$0xff] }
 0x14c   : > { %v2383_v11 = vld [vmem:[#allocation2 + $0x258] sm:$0xff]  ;;  %v2546_v14 = vmax.f32 %v2514_v8, 0.0  ;;  %v2029_v16 = vadd.f32 %v1728_v12, %v1037_v2  ;;  %v2061_v17 = vadd.f32 %v1808_v13, %v1069_v7  ;;  %v1040_v8 = vld [vmem:[#allocation2 + $0x80] sm:$0xff] }
 0x14d   : > { %v2415_v15 = vld [vmem:[#allocation2 + $0x358] sm:$0xff]  ;;  %2221 = vst.msk [vmem:[#allocation2 + $0x260] sm:$0xff] %vm767_vm3, %v2092_v10 }
 0x14e   : > { %v2447_v19 = vmax.f32 %v2383_v11, %v2415_v15  ;;  %2253 = vst.msk [vmem:[#allocation2 + $0x360] sm:$0xff] %vm767_vm3, %v2124_v6  ;;  %v1135_v2 = vld [vmem:[#allocation2 + $0x378] sm:$0xff]  ;;  %v1072_v11 = vld [vmem:[#allocation2 + $0x180] sm:$0xff] }
 0x14f   : > { %2578 = vst.msk [vmem:[%s3857_s22 + $0x50] sm:$0xff] %vm767_vm3, %v2546_v14  ;;  %v2288_v24 = vld [vmem:[#allocation2 + $0x60] sm:$0xff] }
 0x150   : > { %v2479_v20 = vmax.f32 %v2351_v18, %v2447_v19  ;;  %2158 = vst.msk [vmem:[#allocation2 + $0x68] sm:$0xff] %vm767_vm3, %v2029_v16  ;;  %v2320_v25 = vld [vmem:[#allocation2 + $0x160] sm:$0xff] }
 0x151   : > { %2190 = vst.msk [vmem:[#allocation2 + $0x168] sm:$0xff] %vm767_vm3, %v2061_v17  ;;  %v2352_v36 = vmax.f32 %v2288_v24, %v2320_v25  ;;  %v1104_v25 = vld [vmem:[#allocation2 + $0x280] sm:$0xff] }
 0x152   : > { %v2515_v28 = vadd.f32 %v3825_v46, %v2479_v20  ;;  %v1888_v21 = vpop.f32.mrf.mxu2  ;;  %v1968_v29 = vpop.f32.mrf.mxu3 }
 0x153   : > { %v2093_v32 = vadd.f32 %v1888_v21, %v1101_v22  ;;  %v2125_v33 = vadd.f32 %v1968_v29, %v1133_v23  ;;  %v1731_v37 = vpop.f32.mrf.mxu0  ;;  %v1811_v38 = vpop.f32.mrf.mxu1 }
 0x154   : > { %v2547_v35 = vmax.f32 %v2515_v28, 0.0  ;;  %v2384_v27 = vld [vmem:[#allocation2 + $0x260] sm:$0xff]  ;;  %v2030_v42 = vadd.f32 %v1731_v37, %v1038_v30  ;;  %v2062_v44 = vadd.f32 %v1811_v38, %v1070_v31  ;;  %v1041_v31 = vld [vmem:[#allocation2 + $0x88] sm:$0xff] }
 0x155   : > { %v2416_v41 = vld [vmem:[#allocation2 + $0x360] sm:$0xff]  ;;  %2222 = vst.msk [vmem:[#allocation2 + $0x268] sm:$0xff] %vm767_vm3, %v2093_v32  ;;  %v1073_v32 = vld [vmem:[#allocation2 + $0x188] sm:$0xff] }
 0x156   : > { %2579 = vst.msk [vmem:[%s3857_s22 + $0x58] sm:$0xff] %vm767_vm3, %v2547_v35  ;;  %v2448_v45 = vmax.f32 %v2384_v27, %v2416_v41  ;;  %2979 = vmatmul.msk.bf16.gmra.mxu0 %vm1487_vm2, %v3046_v26  ;;  %2995 = vmatmul.msk.bf16.gmra.mxu1 %vm1487_vm2, %v3062_v34  ;;  %v1136_v28 = vld [vmem:[#allocation2 + $0x380] sm:$0xff] }
 0x157   : > { %2254 = vst.msk [vmem:[#allocation2 + $0x368] sm:$0xff] %vm767_vm3, %v2125_v33  ;;  %3011 = vmatmul.msk.bf16.gmra.mxu2 %vm1487_vm2, %v3078_v39  ;;  %3027 = vmatmul.msk.bf16.gmra.mxu3 %vm1487_vm2, %v3094_v40  ;;  %v2289_v58 = vld [vmem:[#allocation2 + $0x68] sm:$0xff] }
 0x158   : > { %v2480_v47 = vmax.f32 %v2352_v36, %v2448_v45  ;;  %2159 = vst.msk [vmem:[#allocation2 + $0x70] sm:$0xff] %vm767_vm3, %v2030_v42  ;;  %v2321_v59 = vld [vmem:[#allocation2 + $0x168] sm:$0xff] }
 0x159   : > { %2191 = vst.msk [vmem:[#allocation2 + $0x170] sm:$0xff] %vm767_vm3, %v2062_v44  ;;  %v2353_v1 = vmax.f32 %v2289_v58, %v2321_v59 }
 0x15a   : > { %v2516_v49 = vadd.f32 %v3825_v46, %v2480_v47  ;;  %v1891_v50 = vpop.f32.mrf.mxu2  ;;  %v1971_v51 = vpop.f32.mrf.mxu3 }
 0x15b   : > { %v2094_v55 = vadd.f32 %v1891_v50, %v1102_v48  ;;  %v2126_v56 = vadd.f32 %v1971_v51, %v1134_v43  ;;  %v1733_v61 = vpop.f32.mrf.mxu0  ;;  %v1813_v53 = vpop.f32.mrf.mxu1  ;;  %v1105_v48 = vld [vmem:[#allocation2 + $0x288] sm:$0xff] }
 0x15c   : > { %v2548_v57 = vmax.f32 %v2516_v49, 0.0  ;;  %v2385_v60 = vld [vmem:[#allocation2 + $0x268] sm:$0xff]  ;;  %v2031_v62 = vadd.f32 %v1733_v61, %v1039_v52  ;;  %v2063_v63 = vadd.f32 %v1813_v53, %v1071_v54 }
 0x15d   : > { %2223 = vst.msk [vmem:[#allocation2 + $0x270] sm:$0xff] %vm767_vm3, %v2094_v55  ;;  %v1137_v43 = vld [vmem:[#allocation2 + $0x388] sm:$0xff]  ;;  %v1042_v55 = vld [vmem:[#allocation2 + $0x90] sm:$0xff] }
 0x15e   : > { %2580 = vst.msk [vmem:[%s3857_s22 + $0x60] sm:$0xff] %vm767_vm3, %v2548_v57  ;;  %v2417_v0 = vld [vmem:[#allocation2 + $0x368] sm:$0xff] }
 0x15f   : > { %v2449_v3 = vmax.f32 %v2385_v60, %v2417_v0  ;;  %2255 = vst.msk [vmem:[#allocation2 + $0x370] sm:$0xff] %vm767_vm3, %v2126_v56  ;;  %v2290_v5 = vld [vmem:[#allocation2 + $0x70] sm:$0xff] }
 0x160   : > { %2160 = vst.msk [vmem:[#allocation2 + $0x78] sm:$0xff] %vm767_vm3, %v2031_v62  ;;  %v2322_v9 = vld [vmem:[#allocation2 + $0x170] sm:$0xff] }
 0x161   : > { %v2481_v7 = vmax.f32 %v2353_v1, %v2449_v3  ;;  %2192 = vst.msk [vmem:[#allocation2 + $0x178] sm:$0xff] %vm767_vm3, %v2063_v63  ;;  %v2354_v19 = vmax.f32 %v2290_v5, %v2322_v9  ;;  %v1074_v56 = vld [vmem:[#allocation2 + $0x190] sm:$0xff]  ;;  %v1043_v5 = vld [vmem:[#allocation2 + $0x98] sm:$0xff] }
 0x162   : > { %v1893_v10 = vpop.f32.mrf.mxu2  ;;  %v1973_v6 = vpop.f32.mrf.mxu3 }
 0x163   : > { %v2517_v12 = vadd.f32 %v3825_v46, %v2481_v7  ;;  %v2095_v13 = vadd.f32 %v1893_v10, %v1103_v4  ;;  %v2127_v14 = vadd.f32 %v1973_v6, %v1135_v2  ;;  %v1736_v16 = vpop.f32.mrf.mxu0  ;;  %v1816_v17 = vpop.f32.mrf.mxu1  ;;  %v1106_v2 = vld [vmem:[#allocation2 + $0x290] sm:$0xff]  ;;  %v1075_v6 = vld [vmem:[#allocation2 + $0x198] sm:$0xff] }
 0x164   : > { %v2386_v15 = vld [vmem:[#allocation2 + $0x270] sm:$0xff]  ;;  %v2032_v20 = vadd.f32 %v1736_v16, %v1040_v8  ;;  %v2064_v22 = vadd.f32 %v1816_v17, %v1072_v11 }
 0x165   : > { %v2549_v18 = vmax.f32 %v2517_v12, 0.0  ;;  %2224 = vst.msk [vmem:[#allocation2 + $0x278] sm:$0xff] %vm767_vm3, %v2095_v13  ;;  %v1138_v7 = vld [vmem:[#allocation2 + $0x390] sm:$0xff] }
 0x166   : > { %v2418_v23 = vld [vmem:[#allocation2 + $0x370] sm:$0xff]  ;;  %2256 = vst.msk [vmem:[#allocation2 + $0x378] sm:$0xff] %vm767_vm3, %v2127_v14 }
 0x167   : > { %2581 = vst.msk [vmem:[%s3857_s22 + $0x68] sm:$0xff] %vm767_vm3, %v2549_v18  ;;  %v2450_v24 = vmax.f32 %v2386_v15, %v2418_v23  ;;  %v2291_v26 = vld [vmem:[#allocation2 + $0x78] sm:$0xff] }
 0x168   : > { %2161 = vst.msk [vmem:[#allocation2 + $0x80] sm:$0xff] %vm767_vm3, %v2032_v20  ;;  %v2323_v34 = vld [vmem:[#allocation2 + $0x178] sm:$0xff] }
 0x169   : > { %v2482_v21 = vmax.f32 %v2354_v19, %v2450_v24  ;;  %2193 = vst.msk [vmem:[#allocation2 + $0x180] sm:$0xff] %vm767_vm3, %v2064_v22  ;;  %v2355_v44 = vmax.f32 %v2291_v26, %v2323_v34  ;;  %v1076_v34 = vld [vmem:[#allocation2 + $0x1a0] sm:$0xff] }
 0x16a   : > { %v1896_v29 = vpop.f32.mrf.mxu2  ;;  %v1976_v30 = vpop.f32.mrf.mxu3 }
 0x16b   : > { %v2518_v33 = vadd.f32 %v3825_v46, %v2482_v21  ;;  %v2096_v35 = vadd.f32 %v1896_v29, %v1104_v25  ;;  %v2128_v36 = vadd.f32 %v1976_v30, %v1136_v28  ;;  %v1738_v37 = vpop.f32.mrf.mxu0  ;;  %v1818_v38 = vpop.f32.mrf.mxu1  ;;  %v1107_v28 = vld [vmem:[#allocation2 + $0x298] sm:$0xff]  ;;  %v1044_v29 = vld [vmem:[#allocation2 + $0xa0] sm:$0xff] }
 0x16c   : > { %v2387_v27 = vld [vmem:[#allocation2 + $0x278] sm:$0xff]  ;;  %v2033_v41 = vadd.f32 %v1738_v37, %v1041_v31  ;;  %v2065_v42 = vadd.f32 %v1818_v38, %v1073_v32 }
 0x16d   : > { %v2550_v39 = vmax.f32 %v2518_v33, 0.0  ;;  %v2419_v40 = vld [vmem:[#allocation2 + $0x378] sm:$0xff]  ;;  %2225 = vst.msk [vmem:[#allocation2 + $0x280] sm:$0xff] %vm767_vm3, %v2096_v35 }
 0x16e   : > { %v2451_v45 = vmax.f32 %v2387_v27, %v2419_v40  ;;  %2257 = vst.msk [vmem:[#allocation2 + $0x380] sm:$0xff] %vm767_vm3, %v2128_v36  ;;  %v1139_v21 = vld [vmem:[#allocation2 + $0x398] sm:$0xff] }
 0x16f   : > { %2582 = vst.msk [vmem:[%s3857_s22 + $0x70] sm:$0xff] %vm767_vm3, %v2550_v39  ;;  %v2292_v49 = vld [vmem:[#allocation2 + $0x80] sm:$0xff] }
 0x170   : > { %v2483_v47 = vmax.f32 %v2355_v44, %v2451_v45  ;;  %2162 = vst.msk [vmem:[#allocation2 + $0x88] sm:$0xff] %vm767_vm3, %v2033_v41  ;;  %v2324_v50 = vld [vmem:[#allocation2 + $0x180] sm:$0xff] }
 0x171   : > { %2194 = vst.msk [vmem:[#allocation2 + $0x188] sm:$0xff] %vm767_vm3, %v2065_v42  ;;  %v2356_v60 = vmax.f32 %v2292_v49, %v2324_v50  ;;  %v1045_v49 = vld [vmem:[#allocation2 + $0xa8] sm:$0xff] }
 0x172   : > { %v2519_v51 = vadd.f32 %v3825_v46, %v2483_v47  ;;  %v1898_v52 = vpop.f32.mrf.mxu2  ;;  %v1978_v54 = vpop.f32.mrf.mxu3  ;;  %v1108_v47 = vld [vmem:[#allocation2 + $0x2a0] sm:$0xff] }
 0x173   : > { %v2097_v57 = vadd.f32 %v1898_v52, %v1105_v48  ;;  %v2129_v58 = vadd.f32 %v1978_v54, %v1137_v43  ;;  %v1741_v53 = vpop.f32.mrf.mxu0  ;;  %v1821_v62 = vpop.f32.mrf.mxu1  ;;  %v1140_v48 = vld [vmem:[#allocation2 + $0x3a0] sm:$0xff]  ;;  %v1077_v52 = vld [vmem:[#allocation2 + $0x1a8] sm:$0xff] }
 0x174   : > { %v2551_v59 = vmax.f32 %v2519_v51, 0.0  ;;  %v2388_v61 = vld [vmem:[#allocation2 + $0x280] sm:$0xff]  ;;  %v2034_v0 = vadd.f32 %v1741_v53, %v1042_v55  ;;  %v2066_v1 = vadd.f32 %v1821_v62, %v1074_v56 }
 0x175   : > { %v2420_v63 = vld [vmem:[#allocation2 + $0x380] sm:$0xff]  ;;  %2226 = vst.msk [vmem:[#allocation2 + $0x288] sm:$0xff] %vm767_vm3, %v2097_v57 }
 0x176   : > { %2583 = vst.msk [vmem:[%s3857_s22 + $0x78] sm:$0xff] %vm767_vm3, %v2551_v59  ;;  %v2452_v3 = vmax.f32 %v2388_v61, %v2420_v63 }
 0x177   : > { %2258 = vst.msk [vmem:[#allocation2 + $0x388] sm:$0xff] %vm767_vm3, %v2129_v58  ;;  %v2293_v12 = vld [vmem:[#allocation2 + $0x88] sm:$0xff] }
 0x178   : > { %v2484_v4 = vmax.f32 %v2356_v60, %v2452_v3  ;;  %2163 = vst.msk [vmem:[#allocation2 + $0x90] sm:$0xff] %vm767_vm3, %v2034_v0  ;;  %v2325_v13 = vld [vmem:[#allocation2 + $0x188] sm:$0xff] }
 0x179   : > { %2195 = vst.msk [vmem:[#allocation2 + $0x190] sm:$0xff] %vm767_vm3, %v2066_v1  ;;  %v2357_v23 = vmax.f32 %v2293_v12, %v2325_v13 }
 0x17a   : > { %v2520_v8 = vadd.f32 %v3825_v46, %v2484_v4  ;;  %v1901_v9 = vpop.f32.mrf.mxu2  ;;  %v1981_v10 = vpop.f32.mrf.mxu3  ;;  %v1141_v4 = vld [vmem:[#allocation2 + $0x3a8] sm:$0xff] }
 0x17b   : > { %v2098_v15 = vadd.f32 %v1901_v9, %v1106_v2  ;;  %v2130_v16 = vadd.f32 %v1981_v10, %v1138_v7  ;;  %v1743_v17 = vpop.f32.mrf.mxu0  ;;  %v1823_v18 = vpop.f32.mrf.mxu1 }
 0x17c   : > { %v2552_v11 = vmax.f32 %v2520_v8, 0.0  ;;  %v2389_v14 = vld [vmem:[#allocation2 + $0x288] sm:$0xff]  ;;  %v2035_v19 = vadd.f32 %v1743_v17, %v1043_v5  ;;  %v2067_v22 = vadd.f32 %v1823_v18, %v1075_v6  ;;  %v1046_v5 = vld [vmem:[#allocation2 + $0xb0] sm:$0xff] }
 0x17d   : > { %2227 = vst.msk [vmem:[#allocation2 + $0x290] sm:$0xff] %vm767_vm3, %v2098_v15  ;;  %v1078_v6 = vld [vmem:[#allocation2 + $0x1b0] sm:$0xff] }
 0x17e   : > { %2584 = vst.msk [vmem:[%s3857_s22 + $0x80] sm:$0xff] %vm767_vm3, %v2552_v11  ;;  %v2421_v20 = vld [vmem:[#allocation2 + $0x388] sm:$0xff]  ;;  %v4027_v11 = vld [vmem:[%s4127_s2] ss:$0 sm:$0xff] }
 0x17f   : > { %v2453_v24 = vmax.f32 %v2389_v14, %v2421_v20  ;;  %2259 = vst.msk [vmem:[#allocation2 + $0x390] sm:$0xff] %vm767_vm3, %v2130_v16  ;;  %v2294_v31 = vld [vmem:[#allocation2 + $0x90] sm:$0xff] }
 0x180   : > { %2164 = vst.msk [vmem:[#allocation2 + $0x98] sm:$0xff] %vm767_vm3, %v2035_v19  ;;  %v2326_v32 = vld [vmem:[#allocation2 + $0x190] sm:$0xff] }
 0x181   : > { %v2485_v25 = vmax.f32 %v2357_v23, %v2453_v24  ;;  %2196 = vst.msk [vmem:[#allocation2 + $0x198] sm:$0xff] %vm767_vm3, %v2067_v22  ;;  %v2358_v40 = vmax.f32 %v2294_v31, %v2326_v32 }
 0x182   : > { %v1903_v33 = vpop.f32.mrf.mxu2  ;;  %v1983_v26 = vpop.f32.mrf.mxu3 }
 0x183   : > { %v2521_v30 = vadd.f32 %v3825_v46, %v2485_v25  ;;  %v2099_v35 = vadd.f32 %v1903_v33, %v1107_v28  ;;  %v2131_v36 = vadd.f32 %v1983_v26, %v1139_v21  ;;  %v1746_v27 = vpop.f32.mrf.mxu0  ;;  %v1826_v37 = vpop.f32.mrf.mxu1  ;;  %v1110_v28 = vld [vmem:[#allocation2 + $0x2b0] sm:$0xff]  ;;  %v1079_v33 = vld [vmem:[#allocation2 + $0x1b8] sm:$0xff] }
 0x184   : > { %v2036_v39 = vadd.f32 %v1746_v27, %v1044_v29  ;;  %v2390_v41 = vld [vmem:[#allocation2 + $0x290] sm:$0xff]  ;;  %v2068_v42 = vadd.f32 %v1826_v37, %v1076_v34  ;;  %v1047_v29 = vld [vmem:[#allocation2 + $0xb8] sm:$0xff] }
 0x185   : > { %v2553_v38 = vmax.f32 %v2521_v30, 0.0  ;;  %2228 = vst.msk [vmem:[#allocation2 + $0x298] sm:$0xff] %vm767_vm3, %v2099_v35  ;;  %v1142_v21 = vld [vmem:[#allocation2 + $0x3b0] sm:$0xff] }
 0x186   : > { %v2422_v44 = vld [vmem:[#allocation2 + $0x390] sm:$0xff]  ;;  %2260 = vst.msk [vmem:[#allocation2 + $0x398] sm:$0xff] %vm767_vm3, %v2131_v36 }
 0x187   : > { %2585 = vst.msk [vmem:[%s3857_s22 + $0x88] sm:$0xff] %vm767_vm3, %v2553_v38  ;;  %v2454_v45 = vmax.f32 %v2390_v41, %v2422_v44  ;;  %v2295_v59 = vld [vmem:[#allocation2 + $0x98] sm:$0xff] }
 0x188   : > { %2165 = vst.msk [vmem:[#allocation2 + $0xa0] sm:$0xff] %vm767_vm3, %v2036_v39  ;;  %v2327_v60 = vld [vmem:[#allocation2 + $0x198] sm:$0xff] }
 0x189   : > { %v2486_v43 = vmax.f32 %v2358_v40, %v2454_v45  ;;  %2197 = vst.msk [vmem:[#allocation2 + $0x1a0] sm:$0xff] %vm767_vm3, %v2068_v42  ;;  %v2359_v1 = vmax.f32 %v2295_v59, %v2327_v60 }
 0x18a   : > { %v1906_v50 = vpop.f32.mrf.mxu2  ;;  %v1986_v51 = vpop.f32.mrf.mxu3 }
 0x18b   : > { %v2522_v54 = vadd.f32 %v3825_v46, %v2486_v43  ;;  %v2100_v55 = vadd.f32 %v1906_v50, %v1108_v47  ;;  %v2132_v56 = vadd.f32 %v1986_v51, %v1140_v48  ;;  %v1748_v57 = vpop.f32.mrf.mxu0  ;;  %v1828_v58 = vpop.f32.mrf.mxu1  ;;  %v1109_v46 = vld [vmem:[#allocation2 + $0x2a8] sm:$0xff]  ;;  %v1111_v48 = vld [vmem:[#allocation2 + $0x2b8] sm:$0xff] }
 0x18c   : > { %v2391_v61 = vld [vmem:[#allocation2 + $0x298] sm:$0xff]  ;;  %v2037_v53 = vadd.f32 %v1748_v57, %v1045_v49  ;;  %v2069_v63 = vadd.f32 %v1828_v58, %v1077_v52  ;;  %v1048_v49 = vld [vmem:[#allocation2 + $0xc0] sm:$0xff] }
 0x18d   : > { %v2554_v62 = vmax.f32 %v2522_v54, 0.0  ;;  %2229 = vst.msk [vmem:[#allocation2 + $0x2a0] sm:$0xff] %vm767_vm3, %v2100_v55  ;;  %v2423_v0 = vld [vmem:[#allocation2 + $0x398] sm:$0xff] }
 0x18e   : > { %2261 = vst.msk [vmem:[#allocation2 + $0x3a0] sm:$0xff] %vm767_vm3, %v2132_v56  ;;  %v2455_v3 = vmax.f32 %v2391_v61, %v2423_v0  ;;  %v1143_v43 = vld [vmem:[#allocation2 + $0x3b8] sm:$0xff]  ;;  %v1080_v56 = vld [vmem:[#allocation2 + $0x1c0] sm:$0xff] }
 0x18f   : > { %2586 = vst.msk [vmem:[%s3857_s22 + $0x90] sm:$0xff] %vm767_vm3, %v2554_v62  ;;  %v2296_v7 = vld [vmem:[#allocation2 + $0xa0] sm:$0xff] }
 0x190   : > { %2166 = vst.msk [vmem:[#allocation2 + $0xa8] sm:$0xff] %vm767_vm3, %v2037_v53  ;;  %v2487_v2 = vmax.f32 %v2359_v1, %v2455_v3  ;;  %v2328_v8 = vld [vmem:[#allocation2 + $0x1a0] sm:$0xff] }
 0x191   : > { %2198 = vst.msk [vmem:[#allocation2 + $0x1a8] sm:$0xff] %vm767_vm3, %v2069_v63  ;;  %v2360_v17 = vmax.f32 %v2296_v7, %v2328_v8  ;;  %v1049_v7 = vld [vmem:[#allocation2 + $0xc8] sm:$0xff] }
 0x192   : > { %v1908_v9 = vpop.f32.mrf.mxu2  ;;  %v1988_v10 = vpop.f32.mrf.mxu3  ;;  %v2523_v12 = vadd.f32 %v4027_v11, %v2487_v2 }
 0x193   : > { %v2101_v13 = vadd.f32 %v1908_v9, %v1109_v46  ;;  %v2133_v14 = vadd.f32 %v1988_v10, %v1141_v4  ;;  %v1751_v15 = vpop.f32.mrf.mxu0  ;;  %v1831_v16 = vpop.f32.mrf.mxu1  ;;  %v1112_v46 = vld [vmem:[#allocation2 + $0x2c0] sm:$0xff]  ;;  %v1081_v9 = vld [vmem:[#allocation2 + $0x1c8] sm:$0xff] }
 0x194   : > { %v2392_v18 = vld [vmem:[#allocation2 + $0x2a0] sm:$0xff]  ;;  %v2038_v19 = vadd.f32 %v1751_v15, %v1046_v5  ;;  %v2555_v20 = vmax.f32 %v2523_v12, 0.0  ;;  %v2070_v23 = vadd.f32 %v1831_v16, %v1078_v6 }
 0x195   : > { %v2424_v22 = vld [vmem:[#allocation2 + $0x3a0] sm:$0xff]  ;;  %2230 = vst.msk [vmem:[#allocation2 + $0x2a8] sm:$0xff] %vm767_vm3, %v2101_v13 }
 0x196   : > { %v2456_v24 = vmax.f32 %v2392_v18, %v2424_v22  ;;  %2262 = vst.msk [vmem:[#allocation2 + $0x3a8] sm:$0xff] %vm767_vm3, %v2133_v14  ;;  %v1144_v4 = vld [vmem:[#allocation2 + $0x3c0] sm:$0xff] }
 0x197   : > { %2587 = vst.msk [vmem:[%s3857_s22 + $0x98] sm:$0xff] %vm767_vm3, %v2555_v20  ;;  %v2297_v26 = vld [vmem:[#allocation2 + $0xa8] sm:$0xff] }
 0x198   : > { %v2488_v25 = vmax.f32 %v2360_v17, %v2456_v24  ;;  %2167 = vst.msk [vmem:[#allocation2 + $0xb0] sm:$0xff] %vm767_vm3, %v2038_v19  ;;  %v2329_v34 = vld [vmem:[#allocation2 + $0x1a8] sm:$0xff] }
 0x199   : > { %2199 = vst.msk [vmem:[#allocation2 + $0x1b0] sm:$0xff] %vm767_vm3, %v2070_v23  ;;  %v2361_v44 = vmax.f32 %v2297_v26, %v2329_v34  ;;  %v1082_v26 = vld [vmem:[#allocation2 + $0x1d0] sm:$0xff] }
 0x19a   : > { %v2524_v30 = vadd.f32 %v4027_v11, %v2488_v25  ;;  %v1911_v31 = vpop.f32.mrf.mxu2  ;;  %v1991_v32 = vpop.f32.mrf.mxu3  ;;  %v1113_v25 = vld [vmem:[#allocation2 + $0x2c8] sm:$0xff] }
 0x19b   : > { %v2102_v35 = vadd.f32 %v1911_v31, %v1110_v28  ;;  %v2134_v36 = vadd.f32 %v1991_v32, %v1142_v21  ;;  %v1753_v27 = vpop.f32.mrf.mxu0  ;;  %v1833_v37 = vpop.f32.mrf.mxu1  ;;  %v1145_v28 = vld [vmem:[#allocation2 + $0x3c8] sm:$0xff]  ;;  %v1050_v31 = vld [vmem:[#allocation2 + $0xd0] sm:$0xff] }
 0x19c   : > { %v2556_v38 = vmax.f32 %v2524_v30, 0.0  ;;  %v2393_v39 = vld [vmem:[#allocation2 + $0x2a8] sm:$0xff]  ;;  %v2039_v40 = vadd.f32 %v1753_v27, %v1047_v29  ;;  %v2071_v42 = vadd.f32 %v1833_v37, %v1079_v33 }
 0x19d   : > { %v2425_v41 = vld [vmem:[#allocation2 + $0x3a8] sm:$0xff]  ;;  %2231 = vst.msk [vmem:[#allocation2 + $0x2b0] sm:$0xff] %vm767_vm3, %v2102_v35 }
 0x19e   : > { %2588 = vst.msk [vmem:[%s3857_s22 + $0xa0] sm:$0xff] %vm767_vm3, %v2556_v38  ;;  %v2457_v45 = vmax.f32 %v2393_v39, %v2425_v41 }
 0x19f   : > { %2263 = vst.msk [vmem:[#allocation2 + $0x3b0] sm:$0xff] %vm767_vm3, %v2134_v36  ;;  %v2298_v51 = vld [vmem:[#allocation2 + $0xb0] sm:$0xff] }
 0x1a0   : > { %v2489_v47 = vmax.f32 %v2361_v44, %v2457_v45  ;;  %2168 = vst.msk [vmem:[#allocation2 + $0xb8] sm:$0xff] %vm767_vm3, %v2039_v40  ;;  %v2330_v52 = vld [vmem:[#allocation2 + $0x1b0] sm:$0xff] }
 0x1a1   : > { %2200 = vst.msk [vmem:[#allocation2 + $0x1b8] sm:$0xff] %vm767_vm3, %v2071_v42  ;;  %v2362_v63 = vmax.f32 %v2298_v51, %v2330_v52 }
 0x1a2   : > { %v2525_v50 = vadd.f32 %v4027_v11, %v2489_v47  ;;  %v1913_v54 = vpop.f32.mrf.mxu2  ;;  %v1993_v55 = vpop.f32.mrf.mxu3 }
 0x1a3   : > { %v2103_v57 = vadd.f32 %v1913_v54, %v1111_v48  ;;  %v2135_v58 = vadd.f32 %v1993_v55, %v1143_v43  ;;  %v1756_v59 = vpop.f32.mrf.mxu0  ;;  %v1836_v60 = vpop.f32.mrf.mxu1  ;;  %v1114_v48 = vld [vmem:[#allocation2 + $0x2d0] sm:$0xff]  ;;  %v1083_v54 = vld [vmem:[#allocation2 + $0x1d8] sm:$0xff] }
 0x1a4   : > { %v2557_v61 = vmax.f32 %v2525_v50, 0.0  ;;  %v2394_v53 = vld [vmem:[#allocation2 + $0x2b0] sm:$0xff]  ;;  %v2040_v62 = vadd.f32 %v1756_v59, %v1048_v49  ;;  %v2072_v0 = vadd.f32 %v1836_v60, %v1080_v56  ;;  %v1051_v49 = vld [vmem:[#allocation2 + $0xd8] sm:$0xff] }
 0x1a5   : > { %2232 = vst.msk [vmem:[#allocation2 + $0x2b8] sm:$0xff] %vm767_vm3, %v2103_v57  ;;  %v1146_v43 = vld [vmem:[#allocation2 + $0x3d0] sm:$0xff] }
 0x1a6   : > { %2589 = vst.msk [vmem:[%s3857_s22 + $0xa8] sm:$0xff] %vm767_vm3, %v2557_v61  ;;  %v2426_v1 = vld [vmem:[#allocation2 + $0x3b0] sm:$0xff] }
 0x1a7   : > { %v2458_v3 = vmax.f32 %v2394_v53, %v2426_v1  ;;  %2264 = vst.msk [vmem:[#allocation2 + $0x3b8] sm:$0xff] %vm767_vm3, %v2135_v58  ;;  %v2299_v15 = vld [vmem:[#allocation2 + $0xb8] sm:$0xff] }
 0x1a8   : > { %2169 = vst.msk [vmem:[#allocation2 + $0xc0] sm:$0xff] %vm767_vm3, %v2040_v62  ;;  %v2331_v16 = vld [vmem:[#allocation2 + $0x1b8] sm:$0xff] }
 0x1a9   : > { %v2490_v2 = vmax.f32 %v2362_v63, %v2458_v3  ;;  %2201 = vst.msk [vmem:[#allocation2 + $0x1c0] sm:$0xff] %vm767_vm3, %v2072_v0  ;;  %v2363_v23 = vmax.f32 %v2299_v15, %v2331_v16 }
 0x1aa   : > { %v1916_v8 = vpop.f32.mrf.mxu2  ;;  %v1996_v5 = vpop.f32.mrf.mxu3 }
 0x1ab   : > { %v2526_v10 = vadd.f32 %v4027_v11, %v2490_v2  ;;  %v2104_v6 = vadd.f32 %v1916_v8, %v1112_v46  ;;  %v2136_v12 = vadd.f32 %v1996_v5, %v1144_v4  ;;  %v1758_v13 = vpop.f32.mrf.mxu0  ;;  %v1838_v14 = vpop.f32.mrf.mxu1  ;;  %v1115_v4 = vld [vmem:[#allocation2 + $0x2d8] sm:$0xff] }
 0x1ac   : > { %v2395_v17 = vld [vmem:[#allocation2 + $0x2b8] sm:$0xff]  ;;  %v2041_v18 = vadd.f32 %v1758_v13, %v1049_v7  ;;  %v2073_v20 = vadd.f32 %v1838_v14, %v1081_v9  ;;  %v1052_v7 = vld [vmem:[#allocation2 + $0xe0] sm:$0xff] }
 0x1ad   : > { %v2558_v19 = vmax.f32 %v2526_v10, 0.0  ;;  %2233 = vst.msk [vmem:[#allocation2 + $0x2c0] sm:$0xff] %vm767_vm3, %v2104_v6  ;;  %v1147_v2 = vld [vmem:[#allocation2 + $0x3d8] sm:$0xff] }
 0x1ae   : > { %v2427_v22 = vld [vmem:[#allocation2 + $0x3b8] sm:$0xff]  ;;  %2265 = vst.msk [vmem:[#allocation2 + $0x3c0] sm:$0xff] %vm767_vm3, %v2136_v12  ;;  %v1084_v12 = vld [vmem:[#allocation2 + $0x1e0] sm:$0xff] }
 0x1af   : > { %2590 = vst.msk [vmem:[%s3857_s22 + $0xb0] sm:$0xff] %vm767_vm3, %v2558_v19  ;;  %v2459_v24 = vmax.f32 %v2395_v17, %v2427_v22  ;;  %v2300_v29 = vld [vmem:[#allocation2 + $0xc0] sm:$0xff] }
 0x1b0   : > { %2170 = vst.msk [vmem:[#allocation2 + $0xc8] sm:$0xff] %vm767_vm3, %v2041_v18  ;;  %v2332_v30 = vld [vmem:[#allocation2 + $0x1c0] sm:$0xff] }
 0x1b1   : > { %v2491_v21 = vmax.f32 %v2363_v23, %v2459_v24  ;;  %2202 = vst.msk [vmem:[#allocation2 + $0x1c8] sm:$0xff] %vm767_vm3, %v2073_v20  ;;  %v2364_v38 = vmax.f32 %v2300_v29, %v2332_v30  ;;  %v1053_v29 = vld [vmem:[#allocation2 + $0xe8] sm:$0xff] }
 0x1b2   : > { %v1918_v32 = vpop.f32.mrf.mxu2  ;;  %v1998_v33 = vpop.f32.mrf.mxu3 }
 0x1b3   : > { %v2527_v34 = vadd.f32 %v4027_v11, %v2491_v21  ;;  %v2105_v35 = vadd.f32 %v1918_v32, %v1113_v25  ;;  %v2137_v36 = vadd.f32 %v1998_v33, %v1145_v28  ;;  %v1761_v27 = vpop.f32.mrf.mxu0  ;;  %v1841_v37 = vpop.f32.mrf.mxu1  ;;  %v1116_v25 = vld [vmem:[#allocation2 + $0x2e0] sm:$0xff]  ;;  %v1085_v32 = vld [vmem:[#allocation2 + $0x1e8] sm:$0xff] }
 0x1b4   : > { %v2396_v39 = vld [vmem:[#allocation2 + $0x2c0] sm:$0xff]  ;;  %v2042_v40 = vadd.f32 %v1761_v27, %v1050_v31  ;;  %v2074_v44 = vadd.f32 %v1841_v37, %v1082_v26 }
 0x1b5   : > { %v2559_v41 = vmax.f32 %v2527_v34, 0.0  ;;  %v2428_v42 = vld [vmem:[#allocation2 + $0x3c0] sm:$0xff]  ;;  %2234 = vst.msk [vmem:[#allocation2 + $0x2c8] sm:$0xff] %vm767_vm3, %v2105_v35 }
 0x1b6   : > { %v2460_v45 = vmax.f32 %v2396_v39, %v2428_v42  ;;  %2266 = vst.msk [vmem:[#allocation2 + $0x3c8] sm:$0xff] %vm767_vm3, %v2137_v36  ;;  %v1148_v28 = vld [vmem:[#allocation2 + $0x3e0] sm:$0xff] }
 0x1b7   : > { %2591 = vst.msk [vmem:[%s3857_s22 + $0xb8] sm:$0xff] %vm767_vm3, %v2559_v41  ;;  %v2301_v55 = vld [vmem:[#allocation2 + $0xc8] sm:$0xff] }
 0x1b8   : > { %v2492_v47 = vmax.f32 %v2364_v38, %v2460_v45  ;;  %2171 = vst.msk [vmem:[#allocation2 + $0xd0] sm:$0xff] %vm767_vm3, %v2042_v40  ;;  %v2333_v56 = vld [vmem:[#allocation2 + $0x1c8] sm:$0xff] }
 0x1b9   : > { %2203 = vst.msk [vmem:[#allocation2 + $0x1d0] sm:$0xff] %vm767_vm3, %v2074_v44  ;;  %v2365_v1 = vmax.f32 %v2301_v55, %v2333_v56  ;;  %v1086_v55 = vld [vmem:[#allocation2 + $0x1f0] sm:$0xff] }
 0x1ba   : > { %v2528_v50 = vadd.f32 %v4027_v11, %v2492_v47  ;;  %v1921_v51 = vpop.f32.mrf.mxu2  ;;  %v2001_v52 = vpop.f32.mrf.mxu3  ;;  %v1117_v47 = vld [vmem:[#allocation2 + $0x2e8] sm:$0xff] }
 0x1bb   : > { %v2106_v57 = vadd.f32 %v1921_v51, %v1114_v48  ;;  %v2138_v58 = vadd.f32 %v2001_v52, %v1146_v43  ;;  %v1763_v59 = vpop.f32.mrf.mxu0  ;;  %v1843_v60 = vpop.f32.mrf.mxu1  ;;  %v1149_v48 = vld [vmem:[#allocation2 + $0x3e8] sm:$0xff]  ;;  %v1054_v51 = vld [vmem:[#allocation2 + $0xf0] sm:$0xff] }
 0x1bc   : > { %v2560_v61 = vmax.f32 %v2528_v50, 0.0  ;;  %v2397_v53 = vld [vmem:[#allocation2 + $0x2c8] sm:$0xff]  ;;  %v2043_v62 = vadd.f32 %v1763_v59, %v1051_v49  ;;  %v2075_v0 = vadd.f32 %v1843_v60, %v1083_v54 }
 0x1bd   : > { %v2429_v63 = vld [vmem:[#allocation2 + $0x3c8] sm:$0xff]  ;;  %2235 = vst.msk [vmem:[#allocation2 + $0x2d0] sm:$0xff] %vm767_vm3, %v2106_v57 }
 0x1be   : > { %2592 = vst.msk [vmem:[%s3857_s22 + $0xc0] sm:$0xff] %vm767_vm3, %v2560_v61  ;;  %v2461_v3 = vmax.f32 %v2397_v53, %v2429_v63 }
 0x1bf   : > { %2267 = vst.msk [vmem:[#allocation2 + $0x3d0] sm:$0xff] %vm767_vm3, %v2138_v58  ;;  %v2302_v5 = vld [vmem:[#allocation2 + $0xd0] sm:$0xff] }
 0x1c0   : > { %v2493_v46 = vmax.f32 %v2365_v1, %v2461_v3  ;;  %2172 = vst.msk [vmem:[#allocation2 + $0xd8] sm:$0xff] %vm767_vm3, %v2043_v62  ;;  %v2334_v9 = vld [vmem:[#allocation2 + $0x1d0] sm:$0xff] }
 0x1c1   : > { %2204 = vst.msk [vmem:[#allocation2 + $0x1d8] sm:$0xff] %vm767_vm3, %v2075_v0  ;;  %v2366_v20 = vmax.f32 %v2302_v5, %v2334_v9 }
 0x1c2   : > { %v2529_v8 = vadd.f32 %v4027_v11, %v2493_v46  ;;  %v1923_v10 = vpop.f32.mrf.mxu2  ;;  %v2003_v6 = vpop.f32.mrf.mxu3 }
 0x1c3   : > { %v2107_v13 = vadd.f32 %v1923_v10, %v1115_v4  ;;  %v2139_v14 = vadd.f32 %v2003_v6, %v1147_v2  ;;  %v1766_v15 = vpop.f32.mrf.mxu0  ;;  %v1846_v16 = vpop.f32.mrf.mxu1  ;;  %v1118_v4 = vld [vmem:[#allocation2 + $0x2f0] sm:$0xff]  ;;  %v1087_v10 = vld [vmem:[#allocation2 + $0x1f8] sm:$0xff] }
 0x1c4   : > { %v2561_v17 = vmax.f32 %v2529_v8, 0.0  ;;  %v2398_v18 = vld [vmem:[#allocation2 + $0x2d0] sm:$0xff]  ;;  %v2044_v19 = vadd.f32 %v1766_v15, %v1052_v7  ;;  %v2076_v22 = vadd.f32 %v1846_v16, %v1084_v12  ;;  %v1055_v7 = vld [vmem:[#allocation2 + $0xf8] sm:$0xff] }
 0x1c5   : > { %2236 = vst.msk [vmem:[#allocation2 + $0x2d8] sm:$0xff] %vm767_vm3, %v2107_v13  ;;  %v1150_v2 = vld [vmem:[#allocation2 + $0x3f0] sm:$0xff] }
 0x1c6   : > { %2593 = vst.msk [vmem:[%s3857_s22 + $0xc8] sm:$0xff] %vm767_vm3, %v2561_v17  ;;  %v2430_v23 = vld [vmem:[#allocation2 + $0x3d0] sm:$0xff] }
 0x1c7   : > { %v2462_v24 = vmax.f32 %v2398_v18, %v2430_v23  ;;  %2268 = vst.msk [vmem:[#allocation2 + $0x3d8] sm:$0xff] %vm767_vm3, %v2139_v14  ;;  %v2303_v27 = vld [vmem:[#allocation2 + $0xd8] sm:$0xff] }
 0x1c8   : > { %2173 = vst.msk [vmem:[#allocation2 + $0xe0] sm:$0xff] %vm767_vm3, %v2044_v19  ;;  %v2335_v37 = vld [vmem:[#allocation2 + $0x1d8] sm:$0xff] }
 0x1c9   : > { %v2494_v21 = vmax.f32 %v2366_v20, %v2462_v24  ;;  %2205 = vst.msk [vmem:[#allocation2 + $0x1e0] sm:$0xff] %vm767_vm3, %v2076_v22  ;;  %v2367_v44 = vmax.f32 %v2303_v27, %v2335_v37 }
 0x1ca   : > { %v1926_v30 = vpop.f32.mrf.mxu2  ;;  %v2006_v31 = vpop.f32.mrf.mxu3 }
 0x1cb   : > { %v2530_v33 = vadd.f32 %v4027_v11, %v2494_v21  ;;  %v2108_v26 = vadd.f32 %v1926_v30, %v1116_v25  ;;  %v2140_v34 = vadd.f32 %v2006_v31, %v1148_v28  ;;  %v1768_v35 = vpop.f32.mrf.mxu0  ;;  %v1848_v36 = vpop.f32.mrf.mxu1  ;;  %v1119_v28 = vld [vmem:[#allocation2 + $0x2f8] sm:$0xff] }
 0x1cc   : > { %v2399_v38 = vld [vmem:[#allocation2 + $0x2d8] sm:$0xff]  ;;  %v2045_v39 = vadd.f32 %v1768_v35, %v1053_v29  ;;  %v2077_v41 = vadd.f32 %v1848_v36, %v1085_v32 }
 0x1cd   : > { %v2562_v40 = vmax.f32 %v2530_v33, 0.0  ;;  %2237 = vst.msk [vmem:[#allocation2 + $0x2e0] sm:$0xff] %vm767_vm3, %v2108_v26  ;;  %v1151_v21 = vld [vmem:[#allocation2 + $0x3f8] sm:$0xff] }
 0x1ce   : > { %v2431_v42 = vld [vmem:[#allocation2 + $0x3d8] sm:$0xff]  ;;  %2269 = vst.msk [vmem:[#allocation2 + $0x3e0] sm:$0xff] %vm767_vm3, %v2140_v34 }
 0x1cf   : > { %2594 = vst.msk [vmem:[%s3857_s22 + $0xd0] sm:$0xff] %vm767_vm3, %v2562_v40  ;;  %v2463_v45 = vmax.f32 %v2399_v38, %v2431_v42  ;;  %v2304_v49 = vld [vmem:[#allocation2 + $0xe0] sm:$0xff] }
 0x1d0   : > { %2174 = vst.msk [vmem:[#allocation2 + $0xe8] sm:$0xff] %vm767_vm3, %v2045_v39  ;;  %v2336_v50 = vld [vmem:[#allocation2 + $0x1e0] sm:$0xff] }
 0x1d1   : > { %v2495_v43 = vmax.f32 %v2367_v44, %v2463_v45  ;;  %2206 = vst.msk [vmem:[#allocation2 + $0x1e8] sm:$0xff] %vm767_vm3, %v2077_v41  ;;  %v2368_v61 = vmax.f32 %v2304_v49, %v2336_v50 }
 0x1d2   : > { %v1928_v52 = vpop.f32.mrf.mxu2  ;;  %v2008_v54 = vpop.f32.mrf.mxu3 }
 0x1d3   : > { %v2531_v56 = vadd.f32 %v4027_v11, %v2495_v43  ;;  %v2109_v57 = vadd.f32 %v1928_v52, %v1117_v47  ;;  %v2141_v58 = vadd.f32 %v2008_v54, %v1149_v48  ;;  %v1771_v59 = vpop.f32.mrf.mxu0  ;;  %v1851_v60 = vpop.f32.mrf.mxu1 }
 0x1d4   : > { %v2400_v53 = vld [vmem:[#allocation2 + $0x2e0] sm:$0xff]  ;;  %v2046_v62 = vadd.f32 %v1771_v59, %v1054_v51  ;;  %v2078_v1 = vadd.f32 %v1851_v60, %v1086_v55 }
 0x1d5   : > { %v2563_v63 = vmax.f32 %v2531_v56, 0.0  ;;  %v2432_v0 = vld [vmem:[#allocation2 + $0x3e0] sm:$0xff]  ;;  %2238 = vst.msk [vmem:[#allocation2 + $0x2e8] sm:$0xff] %vm767_vm3, %v2109_v57 }
 0x1d6   : > { %v2464_v3 = vmax.f32 %v2400_v53, %v2432_v0  ;;  %2270 = vst.msk [vmem:[#allocation2 + $0x3e8] sm:$0xff] %vm767_vm3, %v2141_v58 }
 0x1d7   : > { %2595 = vst.msk [vmem:[%s3857_s22 + $0xd8] sm:$0xff] %vm767_vm3, %v2563_v63  ;;  %v2305_v6 = vld [vmem:[#allocation2 + $0xe8] sm:$0xff] }
 0x1d8   : > { %v2496_v46 = vmax.f32 %v2368_v61, %v2464_v3  ;;  %2175 = vst.msk [vmem:[#allocation2 + $0xf0] sm:$0xff] %vm767_vm3, %v2046_v62  ;;  %v2337_v12 = vld [vmem:[#allocation2 + $0x1e8] sm:$0xff] }
 0x1d9   : > { %2207 = vst.msk [vmem:[#allocation2 + $0x1f0] sm:$0xff] %vm767_vm3, %v2078_v1  ;;  %v2369_v23 = vmax.f32 %v2305_v6, %v2337_v12 }
 0x1da   : > { %v2532_v8 = vadd.f32 %v4027_v11, %v2496_v46  ;;  %v1931_v5 = vpop.f32.mrf.mxu2  ;;  %v2011_v9 = vpop.f32.mrf.mxu3 }
 0x1db   : > { %v2110_v13 = vadd.f32 %v1931_v5, %v1118_v4  ;;  %v2142_v14 = vadd.f32 %v2011_v9, %v1150_v2  ;;  %v1773_v15 = vpop.f32.mrf.mxu0  ;;  %v1853_v16 = vpop.f32.mrf.mxu1 }
 0x1dc   : > { %v2564_v17 = vmax.f32 %v2532_v8, 0.0  ;;  %v2401_v18 = vld [vmem:[#allocation2 + $0x2e8] sm:$0xff]  ;;  %v2047_v19 = vadd.f32 %v1773_v15, %v1055_v7  ;;  %v2079_v22 = vadd.f32 %v1853_v16, %v1087_v10 }
 0x1dd   : > { %v2433_v20 = vld [vmem:[#allocation2 + $0x3e8] sm:$0xff]  ;;  %2239 = vst.msk [vmem:[#allocation2 + $0x2f0] sm:$0xff] %vm767_vm3, %v2110_v13 }
 0x1de   : > { %2596 = vst.msk [vmem:[%s3857_s22 + $0xe0] sm:$0xff] %vm767_vm3, %v2564_v17  ;;  %v2465_v24 = vmax.f32 %v2401_v18, %v2433_v20 }
 0x1df   : > { %2271 = vst.msk [vmem:[#allocation2 + $0x3f0] sm:$0xff] %vm767_vm3, %v2142_v14  ;;  %v2306_v30 = vld [vmem:[#allocation2 + $0xf0] sm:$0xff] }
 0x1e0   : > { %v2497_v25 = vmax.f32 %v2369_v23, %v2465_v24  ;;  %2176 = vst.msk [vmem:[#allocation2 + $0xf8] sm:$0xff] %vm767_vm3, %v2047_v19  ;;  %v2338_v31 = vld [vmem:[#allocation2 + $0x1f0] sm:$0xff] }
 0x1e1   : > { %2208 = vst.msk [vmem:[#allocation2 + $0x1f8] sm:$0xff] %vm767_vm3, %v2079_v22  ;;  %v2370_v27 = vmax.f32 %v2306_v30, %v2338_v31 }
 0x1e2   : > { %v2533_v29 = vadd.f32 %v4027_v11, %v2497_v25  ;;  %v1933_v32 = vpop.f32.mrf.mxu2  ;;  %v2013_v33 = vpop.f32.mrf.mxu3 }
 0x1e3   : > { %v2111_v26 = vadd.f32 %v1933_v32, %v1119_v28  ;;  %v2143_v34 = vadd.f32 %v2013_v33, %v1151_v21 }
 0x1e4   : > { %v2565_v35 = vmax.f32 %v2533_v29, 0.0  ;;  %v2402_v36 = vld [vmem:[#allocation2 + $0x2f0] sm:$0xff] }
 0x1e5   : > { %2240 = vst.msk [vmem:[#allocation2 + $0x2f8] sm:$0xff] %vm767_vm3, %v2111_v26 }
 0x1e6   : > { %2597 = vst.msk [vmem:[%s3857_s22 + $0xe8] sm:$0xff] %vm767_vm3, %v2565_v35  ;;  %v2434_v37 = vld [vmem:[#allocation2 + $0x3f0] sm:$0xff] }
 0x1e7   : > { %v2466_v38 = vmax.f32 %v2402_v36, %v2434_v37  ;;  %2272 = vst.msk [vmem:[#allocation2 + $0x3f8] sm:$0xff] %vm767_vm3, %v2143_v34  ;;  %v2307_v41 = vld [vmem:[#allocation2 + $0xf8] sm:$0xff] }
 0x1e8   : > { %v2339_v42 = vld [vmem:[#allocation2 + $0x1f8] sm:$0xff] }
 0x1e9   : > { %v2498_v39 = vmax.f32 %v2370_v27, %v2466_v38  ;;  %v2371_v48 = vmax.f32 %v2307_v41, %v2339_v42 }
 0x1eb   : > { %v2534_v40 = vadd.f32 %v4027_v11, %v2498_v39 }
 0x1ec   : > { %v2403_v44 = vld [vmem:[#allocation2 + $0x2f8] sm:$0xff] }
 0x1ed   : > { %v2566_v45 = vmax.f32 %v2534_v40, 0.0 }
 0x1ee   : > { %v2435_v47 = vld [vmem:[#allocation2 + $0x3f8] sm:$0xff] }
 0x1ef   : > { %2598 = vst.msk [vmem:[%s3857_s22 + $0xf0] sm:$0xff] %vm767_vm3, %v2566_v45  ;;  %v2467_v43 = vmax.f32 %v2403_v44, %v2435_v47 }
 0x1f1   : > { %v2499_v49 = vmax.f32 %v2371_v48, %v2467_v43 }
 0x1f3   : > { %v2535_v50 = vadd.f32 %v4027_v11, %v2499_v49 }
 0x1f5   : > { %v2567_v51 = vmax.f32 %v2535_v50, 0.0 }
 0x1f7   : > { %2599 = vst.msk [vmem:[%s3857_s22 + $0xf8] sm:$0xff] %vm767_vm3, %v2567_v51 }
 0x1f8 PF: > { %s13_s16 = sadd.s32 1, %s3185_s16   ;;  %s4130_s12 = smov %s3173_s13 }
 0x1f9   : > { %p10_p10 = scmp.ge.s32.totalorder %s13_s16, 4   ;;  %s4131_s13 = smov %s3244_s20 }
 0x1fa   : > { %s4132_s14 = smov %s3181_s15  ;;  %s4133_s15 = smov %s4135_s17 }
 0x1fb   :  { %12 = sbr.rel (!%p10_p10) target bundleno = 3 (0x3), region = 119 }

// kernel: cnn_forward.6
= control target key start
LH: loop header
LB: loop body
LE: loop exit
PB: predicated region body
PF: predicated region fallthrough
CT: control target
= control target key end

     0   :  { %vm1924_vm0 = vcmask 261120   ;;  %vm19_vm1 = vcmask 523264   ;;  %s7104_s1 = inlined_call_operand.vmem [shape: bf16[800,64], index: 1, kind: input, shape index: {}]   ;;  %s7105_s0 = inlined_call_operand.vmem [shape: bf16[4,128,800], index: 0, kind: input, shape index: {}]   ;;  %s7106_s2 = inlined_call_operand.vmem [shape: f32[1,64], index: 2, kind: input, shape index: {}]   ;;  %s7107_s3 = inlined_call_operand.vmem [shape: f32[128,64], index: 3, kind: output, shape index: {}]  }
   0x1   :  { %v4863_v0 = vld [vmem:[%s7104_s1 + $0x38] sm:$0xff]  ;;  %v4862_v3 = vld [vmem:[%s7104_s1 + $0x30] sm:$0xff]  ;;  %v4861_v6 = vld [vmem:[%s7104_s1 + $0x28] sm:$0xff] }
   0x2   :  { %v4959_v1 = vld [vmem:[%s7104_s1 + $0x78] sm:$0xff]  ;;  %2021 = vmatpush.bf16.msra.mxu0 %v4863_v0  ;;  %4906 = vmatpush.bf16.msra.mxu3 %v4863_v0  ;;  %v4974_v4 = vld [vmem:[%s7104_s1 + $0x70] sm:$0xff]  ;;  %v4989_v7 = vld [vmem:[%s7104_s1 + $0x68] sm:$0xff] }
   0x3   :  { %v4964_v2 = vld [vmem:[%s7104_s1 + $0xb8] sm:$0xff]  ;;  %2190 = vmatpush.bf16.msra.mxu1 %v4959_v1  ;;  %v4979_v5 = vld [vmem:[%s7104_s1 + $0xb0] sm:$0xff]  ;;  %v4994_v8 = vld [vmem:[%s7104_s1 + $0xa8] sm:$0xff] }
   0x4   :  { %2359 = vmatpush.bf16.msra.mxu2 %v4964_v2  ;;  %v4860_v9 = vld [vmem:[%s7104_s1 + $0x20] sm:$0xff]  ;;  %v4859_v12 = vld [vmem:[%s7104_s1 + $0x18] sm:$0xff]  ;;  %v4858_v15 = vld [vmem:[%s7104_s1 + $0x10] sm:$0xff] }
   0x5   :  { %v5004_v10 = vld [vmem:[%s7104_s1 + $0x60] sm:$0xff]  ;;  %v5019_v13 = vld [vmem:[%s7104_s1 + $0x58] sm:$0xff]  ;;  %v5034_v16 = vld [vmem:[%s7104_s1 + $0x50] sm:$0xff] }
   0x6   :  { %2022 = vmatpush.bf16.msra.mxu0 %v4862_v3  ;;  %4907 = vmatpush.bf16.msra.mxu3 %v4862_v3  ;;  %v5009_v11 = vld [vmem:[%s7104_s1 + $0xa0] sm:$0xff]  ;;  %v5024_v14 = vld [vmem:[%s7104_s1 + $0x98] sm:$0xff]  ;;  %v5039_v17 = vld [vmem:[%s7104_s1 + $0x90] sm:$0xff] }
   0x7   :  { %2191 = vmatpush.bf16.msra.mxu1 %v4974_v4  ;;  %v4857_v18 = vld [vmem:[%s7104_s1 + $0x8] sm:$0xff]  ;;  %v4856_v21 = vld [vmem:[%s7104_s1] sm:$0xff]  ;;  %v4635_v25 = vld [vmem:[%s7105_s0 + $0x18] sm:$0xf0] }
   0x8   :  { %2360 = vmatpush.bf16.msra.mxu2 %v4979_v5  ;;  %v4865_v19 = vld [vmem:[%s7104_s1 + $0x48] sm:$0xff]  ;;  %v5060_v22 = vld [vmem:[%s7104_s1 + $0x40] sm:$0xff]  ;;  %v4803_v27 = vld [vmem:[%s7105_s0 + $0x558] sm:$0xf0] }
   0x9   :  { %v5052_v20 = vld [vmem:[%s7104_s1 + $0x88] sm:$0xff]  ;;  %v5065_v23 = vld [vmem:[%s7104_s1 + $0x80] sm:$0xff]  ;;  %v4895_v37 = vld [vmem:[%s7104_s1 + $0x138] sm:$0xff] }
   0xa   :  { %2023 = vmatpush.bf16.msra.mxu0 %v4861_v6  ;;  %4908 = vmatpush.bf16.msra.mxu3 %v4861_v6  ;;  %v3506_v24 = vld [vmem:[%s7105_s0] sm:$0xf]  ;;  %v4632_v28 = vld [vmem:[%s7105_s0 + $0x4] sm:$0xf]  ;;  %v3514_v30 = vld [vmem:[%s7105_s0 + $0x8] sm:$0xf] }
   0xb   :  { %2192 = vmatpush.bf16.msra.mxu1 %v4989_v7  ;;  %v4178_v26 = vld [vmem:[%s7105_s0 + $0x540] sm:$0xf]  ;;  %v4636_v31 = vld [vmem:[%s7105_s0 + $0x20] sm:$0xf0]  ;;  %v4905_v32 = vld [vmem:[%s7104_s1 + $0x188] sm:$0xff]  ;;  %v3507_v33 = vor.u32 %v4635_v25, %v3506_v24 }
   0xc   :  { %2361 = vmatpush.bf16.msra.mxu2 %v4994_v8  ;;  %v3508_v29 = vld [vmem:[%s7105_s0 + $0x1c] sm:$0xf0]  ;;  %v4179_v34 = vor.u32 %v4803_v27, %v4178_v26  ;;  %v3515_v36 = vor.u32 %v4636_v31, %v3514_v30  ;;  %v4903_v38 = vld [vmem:[%s7104_s1 + $0x178] sm:$0xff]  ;;  %v4642_v40 = vld [vmem:[%s7105_s0 + $0x50] sm:$0xf0] }
   0xd   :  { %v3511_v35 = vor.u32 %v4632_v28, %v3508_v29  ;;  %v3534_v39 = vld [vmem:[%s7105_s0 + $0x38] sm:$0xf]  ;;  %v4810_v42 = vld [vmem:[%s7105_s0 + $0x590] sm:$0xf0]  ;;  %v4639_v43 = vld [vmem:[%s7105_s0 + $0x3c] sm:$0xf] }
   0xe   :  { %2024 = vmatpush.bf16.msra.mxu0 %v4860_v9  ;;  %4909 = vmatpush.bf16.msra.mxu3 %v4860_v9  ;;  %v4206_v41 = vld [vmem:[%s7105_s0 + $0x578] sm:$0xf]  ;;  %v3542_v45 = vld [vmem:[%s7105_s0 + $0x40] sm:$0xf]  ;;  %v4643_v46 = vld [vmem:[%s7105_s0 + $0x58] sm:$0xf0]  ;;  %v3535_v47 = vor.u32 %v4642_v40, %v3534_v39 }
   0xf   :  { %2193 = vmatpush.bf16.msra.mxu1 %v5004_v10  ;;  %v3536_v44 = vld [vmem:[%s7105_s0 + $0x54] sm:$0xf0]  ;;  %v4207_v48 = vor.u32 %v4810_v42, %v4206_v41  ;;  %v3543_v50 = vor.u32 %v4643_v46, %v3542_v45  ;;  %v4894_v51 = vld [vmem:[%s7104_s1 + $0x130] sm:$0xff]  ;;  %v4649_v54 = vld [vmem:[%s7105_s0 + $0x88] sm:$0xf0] }
  0x10   :  { %2362 = vmatpush.bf16.msra.mxu2 %v5009_v11  ;;  %v3539_v49 = vor.u32 %v4639_v43, %v3536_v44  ;;  %v4902_v52 = vld [vmem:[%s7104_s1 + $0x170] sm:$0xff]  ;;  %v4817_v56 = vld [vmem:[%s7105_s0 + $0x5c8] sm:$0xf0]  ;;  %v3570_v59 = vld [vmem:[%s7105_s0 + $0x78] sm:$0xf] }
  0x11   :  { %v3562_v53 = vld [vmem:[%s7105_s0 + $0x70] sm:$0xf]  ;;  %v4646_v57 = vld [vmem:[%s7105_s0 + $0x74] sm:$0xf]  ;;  %v4656_v3 = vld [vmem:[%s7105_s0 + $0xc0] sm:$0xf0] }
  0x12   :  { %2025 = vmatpush.bf16.msra.mxu0 %v4859_v12  ;;  %4910 = vmatpush.bf16.msra.mxu3 %v4859_v12  ;;  %v4234_v55 = vld [vmem:[%s7105_s0 + $0x5b0] sm:$0xf]  ;;  %v4650_v60 = vld [vmem:[%s7105_s0 + $0x90] sm:$0xf0]  ;;  %v3563_v61 = vor.u32 %v4649_v54, %v3562_v53  ;;  %v3592_v6 = vld [vmem:[%s7105_s0 + $0xc4] sm:$0xf0] }
  0x13   :  { %2194 = vmatpush.bf16.msra.mxu1 %v5019_v13  ;;  %v3564_v58 = vld [vmem:[%s7105_s0 + $0x8c] sm:$0xf0]  ;;  %v4235_v62 = vor.u32 %v4817_v56, %v4234_v55  ;;  %v3571_v0 = vor.u32 %v4650_v60, %v3570_v59  ;;  %v4893_v26 = vld [vmem:[%s7104_s1 + $0x128] sm:$0xff]  ;;  %v4670_v28 = vld [vmem:[%s7105_s0 + $0x130] sm:$0xf0] }
  0x14   :  { %2363 = vmatpush.bf16.msra.mxu2 %v5024_v14  ;;  %v3567_v63 = vor.u32 %v4646_v57, %v3564_v58  ;;  %v4901_v27 = vld [vmem:[%s7104_s1 + $0x168] sm:$0xff]  ;;  %v4318_v29 = vld [vmem:[%s7105_s0 + $0x658] sm:$0xf]  ;;  %v4838_v30 = vld [vmem:[%s7105_s0 + $0x670] sm:$0xf0] }
  0x15   :  { %v4667_v31 = vld [vmem:[%s7105_s0 + $0x11c] sm:$0xf]  ;;  %v3674_v39 = vld [vmem:[%s7105_s0 + $0x150] sm:$0xf]  ;;  %v4677_v40 = vld [vmem:[%s7105_s0 + $0x168] sm:$0xf0] }
  0x16   :  { %2026 = vmatpush.bf16.msra.mxu0 %v4858_v15  ;;  %4911 = vmatpush.bf16.msra.mxu3 %v4858_v15  ;;  %v3618_v15 = vld [vmem:[%s7105_s0 + $0xe0] sm:$0xf]  ;;  %v4346_v41 = vld [vmem:[%s7105_s0 + $0x690] sm:$0xf]  ;;  %v4845_v42 = vld [vmem:[%s7105_s0 + $0x6a8] sm:$0xf0] }
  0x17   :  { %2195 = vmatpush.bf16.msra.mxu1 %v5034_v16  ;;  %v4674_v43 = vld [vmem:[%s7105_s0 + $0x154] sm:$0xf]  ;;  %v3676_v44 = vld [vmem:[%s7105_s0 + $0x16c] sm:$0xf0]  ;;  %v3682_v45 = vld [vmem:[%s7105_s0 + $0x158] sm:$0xf] }
  0x18   :  { %2364 = vmatpush.bf16.msra.mxu2 %v5039_v17  ;;  %v4678_v46 = vld [vmem:[%s7105_s0 + $0x170] sm:$0xf0]  ;;  %v4374_v53 = vld [vmem:[%s7105_s0 + $0x6c8] sm:$0xf]  ;;  %v4852_v54 = vld [vmem:[%s7105_s0 + $0x6e0] sm:$0xf0] }
  0x19   :  { %v4681_v55 = vld [vmem:[%s7105_s0 + $0x18c] sm:$0xf]  ;;  %v3704_v56 = vld [vmem:[%s7105_s0 + $0x1a4] sm:$0xf0]  ;;  %v3710_v57 = vld [vmem:[%s7105_s0 + $0x190] sm:$0xf]  ;;  %v4375_v60 = vor.u32 %v4852_v54, %v4374_v53 }
  0x1a   :  { %2027 = vmatpush.bf16.msra.mxu0 %v4857_v18  ;;  %4912 = vmatpush.bf16.msra.mxu3 %v4857_v18  ;;  %v3620_v18 = vld [vmem:[%s7105_s0 + $0xfc] sm:$0xf0]  ;;  %v4685_v58 = vld [vmem:[%s7105_s0 + $0x1a8] sm:$0xf0]  ;;  %v4706_v53 = vld [vmem:[%s7105_s0 + $0x250] sm:$0xf0] }
  0x1b   :  { %2196 = vmatpush.bf16.msra.mxu1 %v4865_v19 }
  0x1c   :  { %2365 = vmatpush.bf16.msra.mxu2 %v5052_v20 }
  0x1e   :  { %2028 = vmatpush.bf16.msra.mxu0 %v4856_v21  ;;  %4913 = vmatpush.bf16.msra.mxu3 %v4856_v21 }
  0x1f   :  { %2197 = vmatpush.bf16.msra.mxu1 %v5060_v22 }
  0x20   :  { %2366 = vmatpush.bf16.msra.mxu2 %v5065_v23 }
  0x21   :  { %2029 = vmatmul.bf16.vlgmr.msra.gmra.mxu0 %v3507_v33  ;;  %2149 = vmatmul.bf16.vlgmr.msra.gmra.mxu3 %v4179_v34  ;;  %v3654_v33 = vld [vmem:[%s7105_s0 + $0x120] sm:$0xf]  ;;  %v4671_v34 = vld [vmem:[%s7105_s0 + $0x138] sm:$0xf0] }
  0x22   :  { %4914 = vmatpush.bf16.msrb.mxu3 %v4959_v1  ;;  %2198 = vmatmul.bf16.vlgmr.msra.gmra.mxu1 %v3511_v35  ;;  %v3590_v1 = vld [vmem:[%s7105_s0 + $0xa8] sm:$0xf] }
  0x23   :  { %2367 = vmatmul.bf16.vlgmr.msra.gmra.mxu2 %v3515_v36  ;;  %2697 = vmatpush.bf16.msrb.mxu0 %v4895_v37  ;;  %v3591_v9 = vor.u32 %v4656_v3, %v3590_v1  ;;  %v4319_v36 = vor.u32 %v4838_v30, %v4318_v29  ;;  %v3730_v1 = vld [vmem:[%s7105_s0 + $0x1c0] sm:$0xf]  ;;  %v4691_v3 = vld [vmem:[%s7105_s0 + $0x1d8] sm:$0xf0] }
  0x24   :  { %3041 = vmatpush.bf16.msrb.mxu2 %v4905_v32  ;;  %2866 = vmatpush.bf16.msrb.mxu1 %v4903_v38  ;;  %v3648_v32 = vld [vmem:[%s7105_s0 + $0x134] sm:$0xf0]  ;;  %v3655_v38 = vor.u32 %v4671_v34, %v3654_v33  ;;  %v4699_v29 = vld [vmem:[%s7105_s0 + $0x218] sm:$0xf0] }
  0x25   :  { %v3651_v37 = vor.u32 %v4667_v31, %v3648_v32 }
  0x26   :  { %4915 = vmatpush.bf16.msrb.mxu3 %v4974_v4  ;;  %v4824_v4 = vld [vmem:[%s7105_s0 + $0x600] sm:$0xf0] }
  0x27   :  { %2698 = vmatpush.bf16.msrb.mxu0 %v4894_v51  ;;  %v3702_v51 = vld [vmem:[%s7105_s0 + $0x188] sm:$0xf] }
  0x28   :  { %2867 = vmatpush.bf16.msrb.mxu1 %v4902_v52  ;;  %v4684_v52 = vld [vmem:[%s7105_s0 + $0x1a0] sm:$0xf0] }
  0x29   :  { %v3703_v59 = vor.u32 %v4684_v52, %v3702_v51  ;;  %v3788_v51 = vld [vmem:[%s7105_s0 + $0x24c] sm:$0xf0]  ;;  %v3794_v52 = vld [vmem:[%s7105_s0 + $0x238] sm:$0xf] }
  0x2a   :  { %4916 = vmatpush.bf16.msrb.mxu3 %v4989_v7  ;;  %v3598_v7 = vld [vmem:[%s7105_s0 + $0xb0] sm:$0xf] }
  0x2b   :  { %2699 = vmatpush.bf16.msrb.mxu0 %v4893_v26  ;;  %v4807_v26 = vld [vmem:[%s7105_s0 + $0x57c] sm:$0xf] }
  0x2c   :  { %2868 = vmatpush.bf16.msrb.mxu1 %v4901_v27  ;;  %v4208_v27 = vld [vmem:[%s7105_s0 + $0x594] sm:$0xf0] }
  0x2d   :  { %v4211_v33 = vor.u32 %v4807_v26, %v4208_v27 }
  0x2e   :  { %4917 = vmatpush.bf16.msrb.mxu3 %v5004_v10 }
  0x31   :  { %2034 = vmatmul.bf16.gmra.mxu0 %v3535_v47  ;;  %2154 = vmatmul.bf16.gmra.mxu3 %v4207_v48  ;;  %v3675_v47 = vor.u32 %v4677_v40, %v3674_v39  ;;  %v4347_v48 = vor.u32 %v4845_v42, %v4346_v41 }
  0x32   :  { %4918 = vmatpush.bf16.msrb.mxu3 %v5019_v13  ;;  %2203 = vmatmul.bf16.gmra.mxu1 %v3539_v49  ;;  %v3679_v49 = vor.u32 %v4674_v43, %v3676_v44 }
  0x33   :  { %2372 = vmatmul.bf16.gmra.mxu2 %v3543_v50  ;;  %v3683_v50 = vor.u32 %v4678_v46, %v3682_v45  ;;  %v3786_v46 = vld [vmem:[%s7105_s0 + $0x230] sm:$0xf] }
  0x36   :  { %4919 = vmatpush.bf16.msrb.mxu3 %v5034_v16  ;;  %v4831_v16 = vld [vmem:[%s7105_s0 + $0x638] sm:$0xf0] }
  0x3a   :  { %4920 = vmatpush.bf16.msrb.mxu3 %v4865_v19  ;;  %v3626_v19 = vld [vmem:[%s7105_s0 + $0xe8] sm:$0xf] }
  0x3e   :  { %4921 = vmatpush.bf16.msrb.mxu3 %v5060_v22 }
  0x41   :  { %2039 = vmatmul.bf16.gmra.mxu0 %v3563_v61  ;;  %2159 = vmatmul.bf16.gmra.mxu3 %v4235_v62  ;;  %v3707_v61 = vor.u32 %v4681_v55, %v3704_v56  ;;  %v3711_v62 = vor.u32 %v4685_v58, %v3710_v57 }
  0x42   :  { %4922 = vmatpush.bf16.msra.mxu3 %v4964_v2  ;;  %2208 = vmatmul.bf16.gmra.mxu1 %v3567_v63  ;;  %v4262_v2 = vld [vmem:[%s7105_s0 + $0x5e8] sm:$0xf]  ;;  %v4892_v63 = vld [vmem:[%s7104_s1 + $0x120] sm:$0xff] }
  0x43   :  { %2377 = vmatmul.bf16.gmra.mxu2 %v3571_v0  ;;  %v4263_v10 = vor.u32 %v4824_v4, %v4262_v2  ;;  %v4900_v0 = vld [vmem:[%s7104_s1 + $0x160] sm:$0xff]  ;;  %2700 = vmatpush.bf16.msrb.mxu0 %v4892_v63 }
  0x44   :  { %v4688_v2 = vld [vmem:[%s7105_s0 + $0x1c4] sm:$0xf]  ;;  %2869 = vmatpush.bf16.msrb.mxu1 %v4900_v0 }
  0x45   :  { %v4800_v4 = vld [vmem:[%s7105_s0 + $0x544] sm:$0xf] }
  0x46   :  { %4923 = vmatpush.bf16.msra.mxu3 %v4979_v5  ;;  %v4653_v5 = vld [vmem:[%s7105_s0 + $0xac] sm:$0xf] }
  0x47   :  { %v3595_v12 = vor.u32 %v4653_v5, %v3592_v6  ;;  %v4180_v5 = vld [vmem:[%s7105_s0 + $0x55c] sm:$0xf0] }
  0x48   :  { %v3732_v6 = vld [vmem:[%s7105_s0 + $0x1dc] sm:$0xf0] }
  0x4a   :  { %4924 = vmatpush.bf16.msra.mxu3 %v4994_v8  ;;  %v4657_v8 = vld [vmem:[%s7105_s0 + $0xc8] sm:$0xf0] }
  0x4b   :  { %v3599_v13 = vor.u32 %v4657_v8, %v3598_v7  ;;  %v3738_v7 = vld [vmem:[%s7105_s0 + $0x1c8] sm:$0xf]  ;;  %v4692_v8 = vld [vmem:[%s7105_s0 + $0x1e0] sm:$0xf0] }
  0x4e   :  { %4925 = vmatpush.bf16.msra.mxu3 %v5009_v11  ;;  %v4663_v11 = vld [vmem:[%s7105_s0 + $0xf8] sm:$0xf0] }
  0x4f   :  { %v3619_v21 = vor.u32 %v4663_v11, %v3618_v15  ;;  %v3739_v15 = vor.u32 %v4692_v8, %v3738_v7  ;;  %v4891_v7 = vld [vmem:[%s7104_s1 + $0x118] sm:$0xff] }
  0x50   :  { %v4899_v8 = vld [vmem:[%s7104_s1 + $0x158] sm:$0xff]  ;;  %2701 = vmatpush.bf16.msrb.mxu0 %v4891_v7 }
  0x51   :  { %2044 = vmatmul.bf16.gmra.mxu0 %v3591_v9  ;;  %2164 = vmatmul.bf16.gmra.mxu3 %v4263_v10  ;;  %v3731_v9 = vor.u32 %v4691_v3, %v3730_v1  ;;  %v4183_v10 = vor.u32 %v4800_v4, %v4180_v5  ;;  %v4320_v7 = vld [vmem:[%s7105_s0 + $0x674] sm:$0xf0] }
  0x52   :  { %4926 = vmatpush.bf16.msra.mxu3 %v5024_v14  ;;  %2213 = vmatmul.bf16.gmra.mxu1 %v3595_v12  ;;  %v4290_v14 = vld [vmem:[%s7105_s0 + $0x620] sm:$0xf] }
  0x53   :  { %2382 = vmatmul.bf16.gmra.mxu2 %v3599_v13  ;;  %v4291_v22 = vor.u32 %v4831_v16, %v4290_v14  ;;  %v3735_v13 = vor.u32 %v4688_v2, %v3732_v6  ;;  %v4904_v6 = vld [vmem:[%s7104_s1 + $0x180] sm:$0xff]  ;;  %2870 = vmatpush.bf16.msrb.mxu1 %v4899_v8  ;;  %v3872_v8 = vld [vmem:[%s7105_s0 + $0x2f4] sm:$0xf0] }
  0x54   :  { %3042 = vmatpush.bf16.msrb.mxu2 %v4904_v6  ;;  %v4835_v6 = vld [vmem:[%s7105_s0 + $0x65c] sm:$0xf] }
  0x56   :  { %4927 = vmatpush.bf16.msra.mxu3 %v5039_v17  ;;  %v4660_v17 = vld [vmem:[%s7105_s0 + $0xe4] sm:$0xf] }
  0x57   :  { %v3623_v24 = vor.u32 %v4660_v17, %v3620_v18 }
  0x5a   :  { %4928 = vmatpush.bf16.msra.mxu3 %v5052_v20  ;;  %v4664_v20 = vld [vmem:[%s7105_s0 + $0x100] sm:$0xf0] }
  0x5b   :  { %v3627_v25 = vor.u32 %v4664_v20, %v3626_v19 }
  0x5e   :  { %4929 = vmatpush.bf16.msra.mxu3 %v5065_v23  ;;  %v3646_v23 = vld [vmem:[%s7105_s0 + $0x118] sm:$0xf] }
  0x5f   :  { %v3647_v35 = vor.u32 %v4670_v28, %v3646_v23  ;;  %v3760_v23 = vld [vmem:[%s7105_s0 + $0x214] sm:$0xf0]  ;;  %v3766_v28 = vld [vmem:[%s7105_s0 + $0x200] sm:$0xf] }
  0x61   :  { %2049 = vmatmul.bf16.gmra.mxu0 %v3619_v21  ;;  %2169 = vmatmul.bf16.gmra.mxu3 %v4291_v22  ;;  %v3758_v22 = vld [vmem:[%s7105_s0 + $0x1f8] sm:$0xf] }
  0x62   :  { %2218 = vmatmul.bf16.gmra.mxu1 %v3623_v24  ;;  %v4698_v24 = vld [vmem:[%s7105_s0 + $0x210] sm:$0xf0] }
  0x63   :  { %2387 = vmatmul.bf16.gmra.mxu2 %v3627_v25  ;;  %v4695_v25 = vld [vmem:[%s7105_s0 + $0x1fc] sm:$0xf]  ;;  %v3759_v32 = vor.u32 %v4698_v24, %v3758_v22 }
  0x71   :  { %2054 = vmatmul.bf16.gmra.mxu0 %v3647_v35  ;;  %2174 = vmatmul.bf16.gmra.mxu3 %v4319_v36  ;;  %v3763_v36 = vor.u32 %v4695_v25, %v3760_v23 }
  0x72   :  { %2223 = vmatmul.bf16.gmra.mxu1 %v3651_v37  ;;  %v3767_v37 = vor.u32 %v4699_v29, %v3766_v28 }
  0x73   :  { %2392 = vmatmul.bf16.gmra.mxu2 %v3655_v38 }
  0x81   :  { %2059 = vmatmul.bf16.gmra.mxu0 %v3675_v47  ;;  %2179 = vmatmul.bf16.gmra.mxu3 %v4347_v48  ;;  %v4705_v47 = vld [vmem:[%s7105_s0 + $0x248] sm:$0xf0]  ;;  %v4702_v48 = vld [vmem:[%s7105_s0 + $0x234] sm:$0xf] }
  0x82   :  { %2228 = vmatmul.bf16.gmra.mxu1 %v3679_v49  ;;  %v4814_v49 = vld [vmem:[%s7105_s0 + $0x5b4] sm:$0xf]  ;;  %v3787_v56 = vor.u32 %v4705_v47, %v3786_v46  ;;  %v4720_v46 = vld [vmem:[%s7105_s0 + $0x2c0] sm:$0xf0] }
  0x83   :  { %2397 = vmatmul.bf16.gmra.mxu2 %v3683_v50  ;;  %v4236_v50 = vld [vmem:[%s7105_s0 + $0x5cc] sm:$0xf0] }
  0x84   :  { %v4239_v57 = vor.u32 %v4814_v49, %v4236_v50 }
  0x91   :  { %2064 = vmatmul.bf16.gmra.mxu0 %v3703_v59  ;;  %2184 = vmatmul.bf16.gmra.mxu3 %v4375_v60  ;;  %v3791_v60 = vor.u32 %v4702_v48, %v3788_v51 }
  0x92   :  { %2233 = vmatmul.bf16.gmra.mxu1 %v3707_v61  ;;  %v3795_v61 = vor.u32 %v4706_v53, %v3794_v52 }
  0x93   :  { %2402 = vmatmul.bf16.gmra.mxu2 %v3711_v62 }
  0x9e   :  { %v2030_v12 = vpop.f32.mrf.mxu0 }
  0x9f   :  { %v2199_v11 = vpop.f32.mrf.mxu1 }
  0xa0   :  { %v2200_v14 = vadd.f32 %v2199_v11, %v2030_v12  ;;  %v4709_v12 = vld [vmem:[%s7105_s0 + $0x26c] sm:$0xf]  ;;  %v3816_v11 = vld [vmem:[%s7105_s0 + $0x284] sm:$0xf0] }
  0xa1   :  { %2069 = vmatmul.bf16.gmra.mxu0 %v3731_v9  ;;  %2318 = vmatmul.bf16.vlgmr.msrb.gmra.mxu3 %v4183_v10  ;;  %v3814_v9 = vld [vmem:[%s7105_s0 + $0x268] sm:$0xf]  ;;  %v4712_v10 = vld [vmem:[%s7105_s0 + $0x280] sm:$0xf0]  ;;  %v3819_v26 = vor.u32 %v4709_v12, %v3816_v11  ;;  %v4323_v11 = vor.u32 %v4835_v6, %v4320_v7 }
  0xa2   :  { %2238 = vmatmul.bf16.gmra.mxu1 %v3735_v13  ;;  %v4821_v13 = vld [vmem:[%s7105_s0 + $0x5ec] sm:$0xf] }
  0xa3   :  { %2407 = vmatmul.bf16.gmra.mxu2 %v3739_v15  ;;  %v4264_v15 = vld [vmem:[%s7105_s0 + $0x604] sm:$0xf0] }
  0xa4   :  { %v5328_v16 = vpop.f32.mrf.mxu3  ;;  %v4267_v22 = vor.u32 %v4821_v13, %v4264_v15 }
  0xa6   :  { %v2368_v17 = vpop.f32.mrf.mxu2  ;;  %v2032_v19 = vpop.f32.mrf.mxu0 }
  0xa7   :  { %v5330_v18 = vadd.f32 %v2368_v17, %v2200_v14  ;;  %v2201_v20 = vpop.f32.mrf.mxu1  ;;  %v3822_v14 = vld [vmem:[%s7105_s0 + $0x270] sm:$0xf]  ;;  %v4713_v17 = vld [vmem:[%s7105_s0 + $0x288] sm:$0xf0] }
  0xa8   :  { %v2202_v21 = vadd.f32 %v2201_v20, %v2032_v19  ;;  %v3823_v27 = vor.u32 %v4713_v17, %v3822_v14 }
  0xac   :  { %v5356_v30 = vpop.f32.mrf.mxu3 }
  0xae   :  { %v2370_v31 = vpop.f32.mrf.mxu2  ;;  %v2035_v35 = vpop.f32.mrf.mxu0 }
  0xaf   :  { %v5358_v34 = vadd.f32 %v2370_v31, %v2202_v21  ;;  %v2204_v38 = vpop.f32.mrf.mxu1  ;;  %v3815_v21 = vor.u32 %v4712_v10, %v3814_v9  ;;  %v3878_v9 = vld [vmem:[%s7105_s0 + $0x2e0] sm:$0xf]  ;;  %v4727_v10 = vld [vmem:[%s7105_s0 + $0x2f8] sm:$0xf0] }
  0xb0   :  { %v2205_v39 = vadd.f32 %v2204_v38, %v2035_v35  ;;  %v4719_v38 = vld [vmem:[%s7105_s0 + $0x2b8] sm:$0xf0] }
  0xb1   :  { %2074 = vmatmul.bf16.gmra.mxu0 %v3759_v32  ;;  %2323 = vmatmul.bf16.gmra.mxu3 %v4211_v33 }
  0xb2   :  { %2243 = vmatmul.bf16.gmra.mxu1 %v3763_v36 }
  0xb3   :  { %2412 = vmatmul.bf16.gmra.mxu2 %v3767_v37  ;;  %v3842_v37 = vld [vmem:[%s7105_s0 + $0x2a0] sm:$0xf] }
  0xb4   :  { %v5360_v40 = vpop.f32.mrf.mxu3  ;;  %v3843_v49 = vor.u32 %v4719_v38, %v3842_v37  ;;  %v3898_v37 = vld [vmem:[%s7105_s0 + $0x310] sm:$0xf]  ;;  %v4733_v38 = vld [vmem:[%s7105_s0 + $0x328] sm:$0xf0] }
  0xb6   :  { %v2373_v41 = vpop.f32.mrf.mxu2  ;;  %v2037_v43 = vpop.f32.mrf.mxu0 }
  0xb7   :  { %v5362_v42 = vadd.f32 %v2373_v41, %v2205_v39  ;;  %v2206_v44 = vpop.f32.mrf.mxu1  ;;  %v4716_v39 = vld [vmem:[%s7105_s0 + $0x2a4] sm:$0xf] }
  0xb8   :  { %v2207_v45 = vadd.f32 %v2206_v44, %v2037_v43  ;;  %v4828_v41 = vld [vmem:[%s7105_s0 + $0x624] sm:$0xf]  ;;  %v4292_v43 = vld [vmem:[%s7105_s0 + $0x63c] sm:$0xf0] }
  0xb9   :  { %v3844_v44 = vld [vmem:[%s7105_s0 + $0x2bc] sm:$0xf0]  ;;  %v4295_v50 = vor.u32 %v4828_v41, %v4292_v43  ;;  %v4842_v41 = vld [vmem:[%s7105_s0 + $0x694] sm:$0xf]  ;;  %v4348_v43 = vld [vmem:[%s7105_s0 + $0x6ac] sm:$0xf0] }
  0xba   :  { %v3847_v53 = vor.u32 %v4716_v39, %v3844_v44  ;;  %v4730_v39 = vld [vmem:[%s7105_s0 + $0x314] sm:$0xf]  ;;  %v3900_v44 = vld [vmem:[%s7105_s0 + $0x32c] sm:$0xf0] }
  0xbc   :  { %v5388_v54 = vpop.f32.mrf.mxu3 }
  0xbe   :  { %v2375_v55 = vpop.f32.mrf.mxu2  ;;  %v2040_v59 = vpop.f32.mrf.mxu0 }
  0xbf   :  { %v5390_v58 = vadd.f32 %v2375_v55, %v2207_v45  ;;  %v2209_v62 = vpop.f32.mrf.mxu1  ;;  %v3850_v45 = vld [vmem:[%s7105_s0 + $0x2a8] sm:$0xf] }
  0xc0   :  { %v2210_v63 = vadd.f32 %v2209_v62, %v2040_v59  ;;  %v3851_v55 = vor.u32 %v4720_v46, %v3850_v45  ;;  %v3906_v45 = vld [vmem:[%s7105_s0 + $0x318] sm:$0xf]  ;;  %v4734_v46 = vld [vmem:[%s7105_s0 + $0x330] sm:$0xf0] }
  0xc1   :  { %2079 = vmatmul.bf16.gmra.mxu0 %v3787_v56  ;;  %2328 = vmatmul.bf16.gmra.mxu3 %v4239_v57 }
  0xc2   :  { %2248 = vmatmul.bf16.gmra.mxu1 %v3791_v60 }
  0xc3   :  { %2417 = vmatmul.bf16.gmra.mxu2 %v3795_v61 }
  0xc4   :  { %v5392_v0 = vpop.f32.mrf.mxu3 }
  0xc6   :  { %v2378_v1 = vpop.f32.mrf.mxu2  ;;  %v2042_v2 = vpop.f32.mrf.mxu0 }
  0xc7   :  { %v5394_v3 = vadd.f32 %v2378_v1, %v2210_v63  ;;  %v2211_v4 = vpop.f32.mrf.mxu1 }
  0xc8   :  { %v2212_v5 = vadd.f32 %v2211_v4, %v2042_v2  ;;  %v3870_v2 = vld [vmem:[%s7105_s0 + $0x2d8] sm:$0xf]  ;;  %v4726_v4 = vld [vmem:[%s7105_s0 + $0x2f0] sm:$0xf0] }
  0xc9   :  { %v3871_v15 = vor.u32 %v4726_v4, %v3870_v2 }
  0xcc   :  { %v5429_v19 = vpop.f32.mrf.mxu3 }
  0xce   :  { %v2380_v20 = vpop.f32.mrf.mxu2  ;;  %v2045_v25 = vpop.f32.mrf.mxu0 }
  0xcf   :  { %v5431_v24 = vadd.f32 %v2380_v20, %v2212_v5  ;;  %v2214_v23 = vpop.f32.mrf.mxu1  ;;  %v4723_v5 = vld [vmem:[%s7105_s0 + $0x2dc] sm:$0xf] }
  0xd0   :  { %v2215_v28 = vadd.f32 %v2214_v23, %v2045_v25  ;;  %v3875_v20 = vor.u32 %v4723_v5, %v3872_v8  ;;  %v3926_v8 = vld [vmem:[%s7105_s0 + $0x348] sm:$0xf] }
  0xd1   :  { %2084 = vmatmul.bf16.gmra.mxu0 %v3815_v21  ;;  %2333 = vmatmul.bf16.gmra.mxu3 %v4267_v22  ;;  %v3879_v21 = vor.u32 %v4727_v10, %v3878_v9  ;;  %v4740_v9 = vld [vmem:[%s7105_s0 + $0x360] sm:$0xf0]  ;;  %v4737_v10 = vld [vmem:[%s7105_s0 + $0x34c] sm:$0xf] }
  0xd2   :  { %2253 = vmatmul.bf16.gmra.mxu1 %v3819_v26 }
  0xd3   :  { %2422 = vmatmul.bf16.gmra.mxu2 %v3823_v27 }
  0xd4   :  { %v5433_v29 = vpop.f32.mrf.mxu3 }
  0xd6   :  { %v2383_v31 = vpop.f32.mrf.mxu2  ;;  %v2047_v33 = vpop.f32.mrf.mxu0 }
  0xd7   :  { %v5435_v32 = vadd.f32 %v2383_v31, %v2215_v28  ;;  %v2216_v35 = vpop.f32.mrf.mxu1 }
  0xd8   :  { %v2217_v36 = vadd.f32 %v2216_v35, %v2047_v33  ;;  %v4890_v35 = vld [vmem:[%s7104_s1 + $0x110] sm:$0xff] }
  0xd9   :  { %2702 = vmatpush.bf16.msrb.mxu0 %v4890_v35 }
  0xdc   :  { %v5461_v47 = vpop.f32.mrf.mxu3 }
  0xde   :  { %v2385_v48 = vpop.f32.mrf.mxu2  ;;  %v2050_v52 = vpop.f32.mrf.mxu0 }
  0xdf   :  { %v5463_v51 = vadd.f32 %v2385_v48, %v2217_v36  ;;  %v2219_v56 = vpop.f32.mrf.mxu1  ;;  %v4898_v36 = vld [vmem:[%s7104_s1 + $0x150] sm:$0xff] }
  0xe0   :  { %v2220_v57 = vadd.f32 %v2219_v56, %v2050_v52  ;;  %2871 = vmatpush.bf16.msrb.mxu1 %v4898_v36  ;;  %v4351_v52 = vor.u32 %v4842_v41, %v4348_v43  ;;  %v3903_v56 = vor.u32 %v4730_v39, %v3900_v44 }
  0xe1   :  { %2089 = vmatmul.bf16.gmra.mxu0 %v3843_v49  ;;  %2338 = vmatmul.bf16.gmra.mxu3 %v4295_v50  ;;  %v3899_v50 = vor.u32 %v4733_v38, %v3898_v37  ;;  %v4886_v38 = vld [vmem:[%s7104_s1 + $0xf0] sm:$0xff] }
  0xe2   :  { %2258 = vmatmul.bf16.gmra.mxu1 %v3847_v53 }
  0xe3   :  { %2427 = vmatmul.bf16.gmra.mxu2 %v3851_v55 }
  0xe4   :  { %v5465_v59 = vpop.f32.mrf.mxu3 }
  0xe6   :  { %v2388_v60 = vpop.f32.mrf.mxu2  ;;  %v2052_v62 = vpop.f32.mrf.mxu0 }
  0xe7   :  { %v5467_v61 = vadd.f32 %v2388_v60, %v2220_v57  ;;  %v2221_v63 = vpop.f32.mrf.mxu1  ;;  %v3907_v57 = vor.u32 %v4734_v46, %v3906_v45 }
  0xe8   :  { %v2222_v1 = vadd.f32 %v2221_v63, %v2052_v62  ;;  %v4887_v63 = vld [vmem:[%s7104_s1 + $0xf8] sm:$0xff] }
  0xe9   :  { %2528 = vmatpush.bf16.msrb.mxu3 %v4887_v63 }
  0xec   :  { %v5493_v12 = vpop.f32.mrf.mxu3 }
  0xed   :  { %2529 = vmatpush.bf16.msrb.mxu3 %v4886_v38  ;;  %v4751_v38 = vld [vmem:[%s7105_s0 + $0x3bc] sm:$0xf] }
  0xee   :  { %v2390_v13 = vpop.f32.mrf.mxu2  ;;  %v2055_v17 = vpop.f32.mrf.mxu0 }
  0xef   :  { %v5495_v14 = vadd.f32 %v2390_v13, %v2222_v1  ;;  %v2224_v22 = vpop.f32.mrf.mxu1  ;;  %v4849_v13 = vld [vmem:[%s7105_s0 + $0x6cc] sm:$0xf] }
  0xf0   :  { %v2225_v25 = vadd.f32 %v2224_v22, %v2055_v17  ;;  %v3934_v17 = vld [vmem:[%s7105_s0 + $0x350] sm:$0xf] }
  0xf1   :  { %2094 = vmatmul.bf16.gmra.mxu0 %v3871_v15  ;;  %2343 = vmatmul.bf16.gmra.mxu3 %v4323_v11  ;;  %v4376_v15 = vld [vmem:[%s7105_s0 + $0x6e4] sm:$0xf0] }
  0xf2   :  { %2263 = vmatmul.bf16.gmra.mxu1 %v3875_v20  ;;  %v3928_v11 = vld [vmem:[%s7105_s0 + $0x364] sm:$0xf0]  ;;  %v4741_v20 = vld [vmem:[%s7105_s0 + $0x368] sm:$0xf0] }
  0xf3   :  { %2432 = vmatmul.bf16.gmra.mxu2 %v3879_v21  ;;  %v3935_v35 = vor.u32 %v4741_v20, %v3934_v17 }
  0xf4   :  { %v5497_v26 = vpop.f32.mrf.mxu3 }
  0xf6   :  { %v2393_v27 = vpop.f32.mrf.mxu2  ;;  %v2057_v28 = vpop.f32.mrf.mxu0 }
  0xf7   :  { %v5499_v23 = vadd.f32 %v2393_v27, %v2225_v25  ;;  %v2226_v31 = vpop.f32.mrf.mxu1  ;;  %v3927_v25 = vor.u32 %v4740_v9, %v3926_v8  ;;  %v4379_v27 = vor.u32 %v4849_v13, %v4376_v15 }
  0xf8   :  { %v2227_v33 = vadd.f32 %v2226_v31, %v2057_v28 }
  0xfc   :  { %v5531_v48 = vpop.f32.mrf.mxu3 }
  0xfe   :  { %v2395_v49 = vpop.f32.mrf.mxu2  ;;  %v2060_v55 = vpop.f32.mrf.mxu0 }
  0xff   :  { %v5533_v53 = vadd.f32 %v2395_v49, %v2227_v33  ;;  %v2229_v60 = vpop.f32.mrf.mxu1  ;;  %v3931_v33 = vor.u32 %v4737_v10, %v3928_v11  ;;  %v3954_v49 = vld [vmem:[%s7105_s0 + $0x380] sm:$0xf]  ;;  %v4885_v11 = vld [vmem:[%s7104_s1 + $0xe8] sm:$0xff] }
 0x100   :  { %v2230_v62 = vadd.f32 %v2229_v60, %v2060_v55  ;;  %v4186_v55 = vld [vmem:[%s7105_s0 + $0x548] sm:$0xf]  ;;  %2530 = vmatpush.bf16.msrb.mxu3 %v4885_v11 }
 0x101   :  { %7108 = vst [vmem:[#allocation3_spill] sm:$0xff] %v5533_v53  ;;  %2099 = vmatmul.bf16.gmra.mxu0 %v3899_v50  ;;  %2348 = vmatmul.bf16.gmra.mxu3 %v4351_v52  ;;  %v4747_v50 = vld [vmem:[%s7105_s0 + $0x398] sm:$0xf0]  ;;  %v4744_v52 = vld [vmem:[%s7105_s0 + $0x384] sm:$0xf] }
 0x102   :  { %2268 = vmatmul.bf16.gmra.mxu1 %v3903_v56  ;;  %v4804_v56 = vld [vmem:[%s7105_s0 + $0x560] sm:$0xf0]  ;;  %v3962_v60 = vld [vmem:[%s7105_s0 + $0x388] sm:$0xf] }
 0x103   :  { %2437 = vmatmul.bf16.gmra.mxu2 %v3907_v57  ;;  %v3956_v57 = vld [vmem:[%s7105_s0 + $0x39c] sm:$0xf0] }
 0x104   :  { %v5538_v1 = vpop.f32.mrf.mxu3  ;;  %v3959_v9 = vor.u32 %v4744_v52, %v3956_v57 }
 0x106   :  { %v2398_v2 = vpop.f32.mrf.mxu2  ;;  %v2062_v5 = vpop.f32.mrf.mxu0 }
 0x107   :  { %v5540_v4 = vadd.f32 %v2398_v2, %v2230_v62  ;;  %v2231_v6 = vpop.f32.mrf.mxu1  ;;  %v4748_v62 = vld [vmem:[%s7105_s0 + $0x3a0] sm:$0xf0] }
 0x108   :  { %v2232_v7 = vadd.f32 %v2231_v6, %v2062_v5  ;;  %v3955_v5 = vor.u32 %v4747_v50, %v3954_v49  ;;  %v4187_v6 = vor.u32 %v4804_v56, %v4186_v55  ;;  %v3963_v10 = vor.u32 %v4748_v62, %v3962_v60  ;;  %v4755_v49 = vld [vmem:[%s7105_s0 + $0x3d8] sm:$0xf0] }
 0x109   :  { %7109 = vst [vmem:[#allocation4_spill] sm:$0xff] %v5540_v4 }
 0x10c   :  { %v5566_v21 = vpop.f32.mrf.mxu3 }
 0x10e   :  { %v2400_v22 = vpop.f32.mrf.mxu2  ;;  %v2065_v31 = vpop.f32.mrf.mxu0 }
 0x10f   :  { %v5568_v28 = vadd.f32 %v2400_v22, %v2232_v7  ;;  %v2234_v36 = vpop.f32.mrf.mxu1 }
 0x110   :  { %v2235_v37 = vadd.f32 %v2234_v36, %v2065_v31  ;;  %v3982_v36 = vld [vmem:[%s7105_s0 + $0x3b8] sm:$0xf] }
 0x111   :  { %7110 = vst [vmem:[#allocation5_spill] sm:$0xff] %v5568_v28  ;;  %2104 = vmatmul.bf16.gmra.mxu0 %v3927_v25  ;;  %2353 = vmatmul.bf16.gmra.mxu3 %v4379_v27 }
 0x112   :  { %2273 = vmatmul.bf16.gmra.mxu1 %v3931_v33  ;;  %v4889_v33 = vld [vmem:[%s7104_s1 + $0x108] sm:$0xff] }
 0x113   :  { %2442 = vmatmul.bf16.gmra.mxu2 %v3935_v35  ;;  %v4897_v35 = vld [vmem:[%s7104_s1 + $0x148] sm:$0xff]  ;;  %2703 = vmatpush.bf16.msrb.mxu0 %v4889_v33  ;;  %v4242_v33 = vld [vmem:[%s7105_s0 + $0x5b8] sm:$0xf] }
 0x114   :  { %v5573_v39 = vpop.f32.mrf.mxu3  ;;  %2872 = vmatpush.bf16.msrb.mxu1 %v4897_v35  ;;  %v4818_v35 = vld [vmem:[%s7105_s0 + $0x5d0] sm:$0xf0] }
 0x116   :  { %v2403_v41 = vpop.f32.mrf.mxu2  ;;  %v2067_v44 = vpop.f32.mrf.mxu0 }
 0x117   :  { %v5575_v43 = vadd.f32 %v2403_v41, %v2235_v37  ;;  %v2236_v45 = vpop.f32.mrf.mxu1  ;;  %v4754_v37 = vld [vmem:[%s7105_s0 + $0x3d0] sm:$0xf0]  ;;  %v4214_v41 = vld [vmem:[%s7105_s0 + $0x580] sm:$0xf] }
 0x118   :  { %v2237_v46 = vadd.f32 %v2236_v45, %v2067_v44  ;;  %v4811_v44 = vld [vmem:[%s7105_s0 + $0x598] sm:$0xf0]  ;;  %v3984_v45 = vld [vmem:[%s7105_s0 + $0x3d4] sm:$0xf0]  ;;  %v3983_v55 = vor.u32 %v4754_v37, %v3982_v36  ;;  %v4012_v36 = vld [vmem:[%s7105_s0 + $0x40c] sm:$0xf0] }
 0x119   :  { %7111 = vst [vmem:[#allocation6_spill] sm:$0xff] %v5575_v43  ;;  %v4215_v56 = vor.u32 %v4811_v44, %v4214_v41  ;;  %v3987_v62 = vor.u32 %v4751_v38, %v3984_v45  ;;  %v4018_v37 = vld [vmem:[%s7105_s0 + $0x3f8] sm:$0xf]  ;;  %v4762_v38 = vld [vmem:[%s7105_s0 + $0x410] sm:$0xf0] }
 0x11c   :  { %v5601_v63 = vpop.f32.mrf.mxu3 }
 0x11e   :  { %v2405_v2 = vpop.f32.mrf.mxu2  ;;  %v2070_v8 = vpop.f32.mrf.mxu0 }
 0x11f   :  { %v5603_v7 = vadd.f32 %v2405_v2, %v2237_v46  ;;  %v2239_v13 = vpop.f32.mrf.mxu1  ;;  %v3990_v46 = vld [vmem:[%s7105_s0 + $0x3c0] sm:$0xf] }
 0x120   :  { %v2240_v15 = vadd.f32 %v2239_v13, %v2070_v8  ;;  %v3991_v2 = vor.u32 %v4755_v49, %v3990_v46  ;;  %v4884_v8 = vld [vmem:[%s7104_s1 + $0xe0] sm:$0xff]  ;;  %v4243_v46 = vor.u32 %v4818_v35, %v4242_v33  ;;  %v4825_v33 = vld [vmem:[%s7105_s0 + $0x608] sm:$0xf0]  ;;  %v4040_v35 = vld [vmem:[%s7105_s0 + $0x444] sm:$0xf0] }
 0x121   :  { %7112 = vst [vmem:[#allocation7_spill] sm:$0xff] %v5603_v7  ;;  %2109 = vmatmul.bf16.gmra.mxu0 %v3955_v5  ;;  %2487 = vmatmul.bf16.vlgmr.msra.gmra.mxu3 %v4187_v6 }
 0x122   :  { %2278 = vmatmul.bf16.gmra.mxu1 %v3959_v9  ;;  %2531 = vmatpush.bf16.msrb.mxu3 %v4884_v8 }
 0x123   :  { %2447 = vmatmul.bf16.gmra.mxu2 %v3963_v10 }
 0x124   :  { %v5608_v17 = vpop.f32.mrf.mxu3 }
 0x126   :  { %v2408_v20 = vpop.f32.mrf.mxu2  ;;  %v2072_v25 = vpop.f32.mrf.mxu0 }
 0x127   :  { %v5610_v22 = vadd.f32 %v2408_v20, %v2240_v15  ;;  %v2241_v27 = vpop.f32.mrf.mxu1 }
 0x128   :  { %v2242_v31 = vadd.f32 %v2241_v27, %v2072_v25  ;;  %v4010_v25 = vld [vmem:[%s7105_s0 + $0x3f0] sm:$0xf]  ;;  %v4761_v27 = vld [vmem:[%s7105_s0 + $0x408] sm:$0xf0] }
 0x129   :  { %7113 = vst [vmem:[#allocation8_spill] sm:$0xff] %v5610_v22  ;;  %v4011_v45 = vor.u32 %v4761_v27, %v4010_v25  ;;  %v4768_v25 = vld [vmem:[%s7105_s0 + $0x440] sm:$0xf0]  ;;  %v4765_v27 = vld [vmem:[%s7105_s0 + $0x42c] sm:$0xf] }
 0x12c   :  { %v5642_v50 = vpop.f32.mrf.mxu3 }
 0x12e   :  { %v2410_v52 = vpop.f32.mrf.mxu2  ;;  %v2075_v60 = vpop.f32.mrf.mxu0 }
 0x12f   :  { %v5644_v57 = vadd.f32 %v2410_v52, %v2242_v31  ;;  %v2244_v5 = vpop.f32.mrf.mxu1  ;;  %v4758_v31 = vld [vmem:[%s7105_s0 + $0x3f4] sm:$0xf] }
 0x130   :  { %v2245_v6 = vadd.f32 %v2244_v5, %v2075_v60 }
 0x131   :  { %7114 = vst [vmem:[#allocation9_spill] sm:$0xff] %v5644_v57  ;;  %2114 = vmatmul.bf16.gmra.mxu0 %v3983_v55  ;;  %2492 = vmatmul.bf16.gmra.mxu3 %v4215_v56  ;;  %v4015_v55 = vor.u32 %v4758_v31, %v4012_v36  ;;  %v4019_v56 = vor.u32 %v4762_v38, %v4018_v37  ;;  %v4270_v31 = vld [vmem:[%s7105_s0 + $0x5f0] sm:$0xf]  ;;  %v4769_v37 = vld [vmem:[%s7105_s0 + $0x448] sm:$0xf0] }
 0x132   :  { %2283 = vmatmul.bf16.gmra.mxu1 %v3987_v62  ;;  %v4046_v36 = vld [vmem:[%s7105_s0 + $0x430] sm:$0xf] }
 0x133   :  { %2452 = vmatmul.bf16.gmra.mxu2 %v3991_v2  ;;  %v4883_v2 = vld [vmem:[%s7104_s1 + $0xd8] sm:$0xff] }
 0x134   :  { %v5649_v9 = vpop.f32.mrf.mxu3  ;;  %2532 = vmatpush.bf16.msrb.mxu3 %v4883_v2 }
 0x136   :  { %v2413_v10 = vpop.f32.mrf.mxu2  ;;  %v2077_v15 = vpop.f32.mrf.mxu0 }
 0x137   :  { %v5651_v13 = vadd.f32 %v2413_v10, %v2245_v6  ;;  %v2246_v11 = vpop.f32.mrf.mxu1 }
 0x138   :  { %v2247_v20 = vadd.f32 %v2246_v11, %v2077_v15 }
 0x139   :  { %7115 = vst [vmem:[#allocation10_spill] sm:$0xff] %v5651_v13 }
 0x13c   :  { %v5677_v41 = vpop.f32.mrf.mxu3 }
 0x13e   :  { %v2415_v44 = vpop.f32.mrf.mxu2  ;;  %v2080_v52 = vpop.f32.mrf.mxu0 }
 0x13f   :  { %v5679_v49 = vadd.f32 %v2415_v44, %v2247_v20  ;;  %v2249_v60 = vpop.f32.mrf.mxu1  ;;  %v4038_v20 = vld [vmem:[%s7105_s0 + $0x428] sm:$0xf] }
 0x140   :  { %v2250_v62 = vadd.f32 %v2249_v60, %v2080_v52  ;;  %v4047_v60 = vor.u32 %v4769_v37, %v4046_v36  ;;  %v4775_v36 = vld [vmem:[%s7105_s0 + $0x478] sm:$0xf0]  ;;  %v4772_v37 = vld [vmem:[%s7105_s0 + $0x464] sm:$0xf] }
 0x141   :  { %7116 = vst [vmem:[#allocation11_spill] sm:$0xff] %v5679_v49  ;;  %2119 = vmatmul.bf16.gmra.mxu0 %v4011_v45  ;;  %2497 = vmatmul.bf16.gmra.mxu3 %v4243_v46  ;;  %v4039_v45 = vor.u32 %v4768_v25, %v4038_v20  ;;  %v4271_v46 = vor.u32 %v4825_v33, %v4270_v31  ;;  %v4888_v31 = vld [vmem:[%s7104_s1 + $0x100] sm:$0xff] }
 0x142   :  { %2288 = vmatmul.bf16.gmra.mxu1 %v4015_v55  ;;  %v4896_v33 = vld [vmem:[%s7104_s1 + $0x140] sm:$0xff]  ;;  %2704 = vmatpush.bf16.msrb.mxu0 %v4888_v31 }
 0x143   :  { %2457 = vmatmul.bf16.gmra.mxu2 %v4019_v56  ;;  %v4043_v56 = vor.u32 %v4765_v27, %v4040_v35  ;;  %v4066_v35 = vld [vmem:[%s7105_s0 + $0x460] sm:$0xf]  ;;  %2873 = vmatpush.bf16.msrb.mxu1 %v4896_v33 }
 0x144   :  { %v5684_v5 = vpop.f32.mrf.mxu3  ;;  %v4880_v49 = vld [vmem:[%s7104_s1 + $0xc0] sm:$0xff] }
 0x146   :  { %v2418_v6 = vpop.f32.mrf.mxu2  ;;  %v2082_v10 = vpop.f32.mrf.mxu0 }
 0x147   :  { %v5686_v8 = vadd.f32 %v2418_v6, %v2250_v62  ;;  %v2251_v15 = vpop.f32.mrf.mxu1  ;;  %v4882_v6 = vld [vmem:[%s7104_s1 + $0xd0] sm:$0xff] }
 0x148   :  { %v2252_v11 = vadd.f32 %v2251_v15, %v2082_v10  ;;  %2533 = vmatpush.bf16.msrb.mxu3 %v4882_v6 }
 0x149   :  { %7117 = vst [vmem:[#allocation12_spill] sm:$0xff] %v5686_v8 }
 0x14c   :  { %v5712_v38 = vpop.f32.mrf.mxu3 }
 0x14e   :  { %v2420_v44 = vpop.f32.mrf.mxu2  ;;  %v2085_v55 = vpop.f32.mrf.mxu0 }
 0x14f   :  { %v5714_v52 = vadd.f32 %v2420_v44, %v2252_v11  ;;  %v2254_v62 = vpop.f32.mrf.mxu1  ;;  %v4298_v44 = vld [vmem:[%s7105_s0 + $0x628] sm:$0xf] }
 0x150   :  { %v2255_v2 = vadd.f32 %v2254_v62, %v2085_v55  ;;  %v4074_v55 = vld [vmem:[%s7105_s0 + $0x468] sm:$0xf] }
 0x151   :  { %7118 = vst [vmem:[#allocation13_spill] sm:$0xff] %v5714_v52  ;;  %2124 = vmatmul.bf16.gmra.mxu0 %v4039_v45  ;;  %2502 = vmatmul.bf16.gmra.mxu3 %v4271_v46  ;;  %v4832_v45 = vld [vmem:[%s7105_s0 + $0x640] sm:$0xf0]  ;;  %v4068_v46 = vld [vmem:[%s7105_s0 + $0x47c] sm:$0xf0]  ;;  %v4881_v52 = vld [vmem:[%s7104_s1 + $0xc8] sm:$0xff] }
 0x152   :  { %2293 = vmatmul.bf16.gmra.mxu1 %v4043_v56  ;;  %v4776_v56 = vld [vmem:[%s7105_s0 + $0x480] sm:$0xf0]  ;;  %v4299_v6 = vor.u32 %v4832_v45, %v4298_v44  ;;  %2534 = vmatpush.bf16.msrb.mxu3 %v4881_v52  ;;  %v4094_v45 = vld [vmem:[%s7105_s0 + $0x498] sm:$0xf]  ;;  %v4326_v52 = vld [vmem:[%s7105_s0 + $0x660] sm:$0xf] }
 0x153   :  { %2462 = vmatmul.bf16.gmra.mxu2 %v4047_v60  ;;  %v4075_v31 = vor.u32 %v4776_v56, %v4074_v55  ;;  %v4779_v55 = vld [vmem:[%s7105_s0 + $0x49c] sm:$0xf]  ;;  %v4096_v56 = vld [vmem:[%s7105_s0 + $0x4b4] sm:$0xf0] }
 0x154   :  { %v5719_v10 = vpop.f32.mrf.mxu3 }
 0x156   :  { %v2423_v15 = vpop.f32.mrf.mxu2  ;;  %v2087_v11 = vpop.f32.mrf.mxu0  ;;  %2535 = vmatpush.bf16.msrb.mxu3 %v4880_v49  ;;  %v4354_v49 = vld [vmem:[%s7105_s0 + $0x698] sm:$0xf] }
 0x157   :  { %v5721_v20 = vadd.f32 %v2423_v15, %v2255_v2  ;;  %v2256_v25 = vpop.f32.mrf.mxu1  ;;  %v4067_v2 = vor.u32 %v4775_v36, %v4066_v35 }
 0x158   :  { %v2257_v27 = vadd.f32 %v2256_v25, %v2087_v11  ;;  %v4071_v25 = vor.u32 %v4772_v37, %v4068_v46  ;;  %v4782_v46 = vld [vmem:[%s7105_s0 + $0x4b0] sm:$0xf0] }
 0x159   :  { %7119 = vst [vmem:[#allocation14_spill] sm:$0xff] %v5721_v20 }
 0x15c   :  { %v5753_v60 = vpop.f32.mrf.mxu3 }
 0x15e   :  { %v2425_v62 = vpop.f32.mrf.mxu2  ;;  %v2090_v11 = vpop.f32.mrf.mxu0 }
 0x15f   :  { %v5755_v15 = vadd.f32 %v2425_v62, %v2257_v27  ;;  %v2259_v33 = vpop.f32.mrf.mxu1  ;;  %v4102_v62 = vld [vmem:[%s7105_s0 + $0x4a0] sm:$0xf] }
 0x160   :  { %v2260_v20 = vadd.f32 %v2259_v33, %v2090_v11 }
 0x161   :  { %7120 = vst [vmem:[#allocation15_spill] sm:$0xff] %v5755_v15  ;;  %2129 = vmatmul.bf16.gmra.mxu0 %v4067_v2  ;;  %2507 = vmatmul.bf16.gmra.mxu3 %v4299_v6  ;;  %v4783_v2 = vld [vmem:[%s7105_s0 + $0x4b8] sm:$0xf0] }
 0x162   :  { %2298 = vmatmul.bf16.gmra.mxu1 %v4071_v25  ;;  %v4095_v25 = vor.u32 %v4782_v46, %v4094_v45 }
 0x163   :  { %2467 = vmatmul.bf16.gmra.mxu2 %v4075_v31 }
 0x164   :  { %v5760_v8 = vpop.f32.mrf.mxu3 }
 0x166   :  { %v2428_v35 = vpop.f32.mrf.mxu2  ;;  %v2092_v27 = vpop.f32.mrf.mxu0 }
 0x167   :  { %v5762_v36 = vadd.f32 %v2428_v35, %v2260_v20  ;;  %v2261_v44 = vpop.f32.mrf.mxu1  ;;  %v4839_v20 = vld [vmem:[%s7105_s0 + $0x678] sm:$0xf0] }
 0x168   :  { %v2262_v37 = vadd.f32 %v2261_v44, %v2092_v27  ;;  %v4327_v31 = vor.u32 %v4839_v20, %v4326_v52  ;;  %v4099_v27 = vor.u32 %v4779_v55, %v4096_v56  ;;  %v4103_v44 = vor.u32 %v4783_v2, %v4102_v62  ;;  %v4789_v20 = vld [vmem:[%s7105_s0 + $0x4e8] sm:$0xf0]  ;;  %v4786_v56 = vld [vmem:[%s7105_s0 + $0x4d4] sm:$0xf]  ;;  %v4124_v62 = vld [vmem:[%s7105_s0 + $0x4ec] sm:$0xf0] }
 0x169   :  { %7121 = vst [vmem:[#allocation16_spill] sm:$0xff] %v5762_v36  ;;  %v4130_v2 = vld [vmem:[%s7105_s0 + $0x4d8] sm:$0xf] }
 0x16c   :  { %v5788_v6 = vpop.f32.mrf.mxu3 }
 0x16e   :  { %v2430_v11 = vpop.f32.mrf.mxu2  ;;  %v2095_v35 = vpop.f32.mrf.mxu0 }
 0x16f   :  { %v5790_v33 = vadd.f32 %v2430_v11, %v2262_v37  ;;  %v2264_v36 = vpop.f32.mrf.mxu1  ;;  %v4790_v11 = vld [vmem:[%s7105_s0 + $0x4f0] sm:$0xf0] }
 0x170   :  { %v2265_v15 = vadd.f32 %v2264_v36, %v2095_v35  ;;  %v4122_v36 = vld [vmem:[%s7105_s0 + $0x4d0] sm:$0xf] }
 0x171   :  { %7122 = vst [vmem:[#allocation17_spill] sm:$0xff] %v5790_v33  ;;  %2134 = vmatmul.bf16.gmra.mxu0 %v4095_v25  ;;  %2512 = vmatmul.bf16.gmra.mxu3 %v4327_v31  ;;  %v4123_v35 = vor.u32 %v4789_v20, %v4122_v36  ;;  %v4793_v20 = vld [vmem:[%s7105_s0 + $0x50c] sm:$0xf] }
 0x172   :  { %2303 = vmatmul.bf16.gmra.mxu1 %v4099_v27 }
 0x173   :  { %2472 = vmatmul.bf16.gmra.mxu2 %v4103_v44 }
 0x174   :  { %v5795_v13 = vpop.f32.mrf.mxu3 }
 0x176   :  { %v2433_v45 = vpop.f32.mrf.mxu2  ;;  %v2097_v37 = vpop.f32.mrf.mxu0 }
 0x177   :  { %v5797_v46 = vadd.f32 %v2433_v45, %v2265_v15  ;;  %v2266_v52 = vpop.f32.mrf.mxu1  ;;  %v4846_v15 = vld [vmem:[%s7105_s0 + $0x6b0] sm:$0xf0] }
 0x178   :  { %v2267_v55 = vadd.f32 %v2266_v52, %v2097_v37  ;;  %v4355_v27 = vor.u32 %v4846_v15, %v4354_v49  ;;  %v4127_v37 = vor.u32 %v4786_v56, %v4124_v62  ;;  %v4131_v52 = vor.u32 %v4790_v11, %v4130_v2  ;;  %v4797_v56 = vld [vmem:[%s7105_s0 + $0x528] sm:$0xf0] }
 0x179   :  { %7123 = vst [vmem:[#allocation18_spill] sm:$0xff] %v5797_v46 }
 0x17c   :  { %v5823_v25 = vpop.f32.mrf.mxu3 }
 0x17e   :  { %v2435_v31 = vpop.f32.mrf.mxu2  ;;  %v2100_v45 = vpop.f32.mrf.mxu0 }
 0x17f   :  { %v5825_v44 = vadd.f32 %v2435_v31, %v2267_v55  ;;  %v2269_v46 = vpop.f32.mrf.mxu1  ;;  %v4150_v55 = vld [vmem:[%s7105_s0 + $0x508] sm:$0xf] }
 0x180   :  { %v2270_v33 = vadd.f32 %v2269_v46, %v2100_v45  ;;  %v4796_v46 = vld [vmem:[%s7105_s0 + $0x520] sm:$0xf0] }
 0x181   :  { %7124 = vst [vmem:[#allocation19_spill] sm:$0xff] %v5825_v44  ;;  %2139 = vmatmul.bf16.gmra.mxu0 %v4123_v35  ;;  %2517 = vmatmul.bf16.gmra.mxu3 %v4355_v27  ;;  %v4151_v62 = vor.u32 %v4796_v46, %v4150_v55  ;;  %v3516_v46 = vld [vmem:[%s7105_s0 + $0x24] sm:$0xf0] }
 0x182   :  { %2308 = vmatmul.bf16.gmra.mxu1 %v4127_v37 }
 0x183   :  { %2477 = vmatmul.bf16.gmra.mxu2 %v4131_v52 }
 0x184   :  { %v5827_v57 = vpop.f32.mrf.mxu3 }
 0x186   :  { %v2438_v22 = vpop.f32.mrf.mxu2  ;;  %v2102_v43 = vpop.f32.mrf.mxu0 }
 0x187   :  { %v5829_v7 = vadd.f32 %v2438_v22, %v2270_v33  ;;  %v2271_v28 = vpop.f32.mrf.mxu1  ;;  %v4382_v22 = vld [vmem:[%s7105_s0 + $0x6d0] sm:$0xf] }
 0x188   :  { %v2272_v36 = vadd.f32 %v2271_v28, %v2102_v43  ;;  %v4853_v28 = vld [vmem:[%s7105_s0 + $0x6e8] sm:$0xf0]  ;;  %v4152_v43 = vld [vmem:[%s7105_s0 + $0x524] sm:$0xf0]  ;;  %v4158_v33 = vld [vmem:[%s7105_s0 + $0x510] sm:$0xf] }
 0x189   :  { %7125 = vst [vmem:[#allocation20_spill] sm:$0xff] %v5829_v7  ;;  %v4383_v2 = vor.u32 %v4853_v28, %v4382_v22  ;;  %v4155_v35 = vor.u32 %v4793_v20, %v4152_v43  ;;  %v4159_v27 = vor.u32 %v4797_v56, %v4158_v33  ;;  %v3522_v20 = vld [vmem:[%s7105_s0 + $0x10] sm:$0xf]  ;;  %v4634_v22 = vld [vmem:[%s7105_s0 + $0x14] sm:$0xf] }
 0x18a   :  { %v3524_v28 = vld [vmem:[%s7105_s0 + $0x2c] sm:$0xf0] }
 0x18c   :  { %v5855_v49 = vpop.f32.mrf.mxu3 }
 0x18e   :  { %v2440_v15 = vpop.f32.mrf.mxu2  ;;  %v2105_v31 = vpop.f32.mrf.mxu0 }
 0x18f   :  { %v5857_v11 = vadd.f32 %v2440_v15, %v2272_v36  ;;  %v2274_v45 = vpop.f32.mrf.mxu1  ;;  %v4633_v36 = vld [vmem:[%s7105_s0 + $0xc] sm:$0xf] }
 0x190   :  { %v2275_v37 = vadd.f32 %v2274_v45, %v2105_v31  ;;  %v3519_v56 = vor.u32 %v4633_v36, %v3516_v46 }
 0x191   :  { %7126 = vst [vmem:[#allocation21_spill] sm:$0xff] %v5857_v11  ;;  %2144 = vmatmul.bf16.gmra.mxu0 %v4151_v62  ;;  %2522 = vmatmul.bf16.gmra.mxu3 %v4383_v2 }
 0x192   :  { %2313 = vmatmul.bf16.gmra.mxu1 %v4155_v35  ;;  %v3527_v35 = vor.u32 %v4634_v22, %v3524_v28  ;;  %v4645_v22 = vld [vmem:[%s7105_s0 + $0x68] sm:$0xf0] }
 0x193   :  { %2482 = vmatmul.bf16.gmra.mxu2 %v4159_v27  ;;  %v4641_v28 = vld [vmem:[%s7105_s0 + $0x4c] sm:$0xf] }
 0x194   :  { %v5859_v52 = vpop.f32.mrf.mxu3 }
 0x196   :  { %v2443_v7 = vpop.f32.mrf.mxu2  ;;  %v2107_v4 = vpop.f32.mrf.mxu0 }
 0x197   :  { %v5861_v44 = vadd.f32 %v2443_v7, %v2275_v37  ;;  %v2276_v53 = vpop.f32.mrf.mxu1  ;;  %v4637_v7 = vld [vmem:[%s7105_s0 + $0x28] sm:$0xf0]  ;;  %v2320_v37 = vadd.f32 %v5608_v17, %v5328_v16  ;;  %v3550_v16 = vld [vmem:[%s7105_s0 + $0x48] sm:$0xf]  ;;  %v4644_v17 = vld [vmem:[%s7105_s0 + $0x60] sm:$0xf0] }
 0x198   :  { %v2277_v55 = vadd.f32 %v2276_v53, %v2107_v4  ;;  %v3530_v53 = vld [vmem:[%s7105_s0 + $0x18] sm:$0xf]  ;;  %v4638_v4 = vld [vmem:[%s7105_s0 + $0x30] sm:$0xf0]  ;;  %v3523_v15 = vor.u32 %v4637_v7, %v3522_v20 }
 0x199   :  { %7127 = vst [vmem:[#allocation22_spill] sm:$0xff] %v5861_v44  ;;  %v3531_v31 = vor.u32 %v4638_v4, %v3530_v53  ;;  %v4640_v53 = vld [vmem:[%s7105_s0 + $0x44] sm:$0xf]  ;;  %v3544_v4 = vld [vmem:[%s7105_s0 + $0x5c] sm:$0xf0] }
 0x19c   :  { %v5887_v43 = vpop.f32.mrf.mxu3 }
 0x19e   :  { %v2445_v33 = vpop.f32.mrf.mxu2  ;;  %v2110_v2 = vpop.f32.mrf.mxu0 }
 0x19f   :  { %v5889_v62 = vadd.f32 %v2445_v33, %v2277_v55  ;;  %v2279_v27 = vpop.f32.mrf.mxu1  ;;  %v3552_v33 = vld [vmem:[%s7105_s0 + $0x64] sm:$0xf0] }
 0x1a0   :  { %v2280_v45 = vadd.f32 %v2279_v27, %v2110_v2 }
 0x1a1   :  { %2536 = vmatmul.bf16.vlgmr.msrb.gmra.mxu3 %v3519_v56  ;;  %2705 = vmatmul.bf16.vlgmr.msrb.gmra.mxu0 %v3523_v15 }
 0x1a2   :  { %2874 = vmatmul.bf16.vlgmr.msrb.gmra.mxu1 %v3527_v35  ;;  %v3551_v35 = vor.u32 %v4644_v17, %v3550_v16  ;;  %v4647_v17 = vld [vmem:[%s7105_s0 + $0x7c] sm:$0xf] }
 0x1a3   :  { %4600 = vmatmul.msk.bf16.vlgmr.msrb.gmra.mxu2 %vm1924_vm0, %v3531_v31  ;;  %v3547_v31 = vor.u32 %v4640_v53, %v3544_v4 }
 0x1a4   :  { %v2488_v44 = vpop.f32.mrf.mxu3 }
 0x1a5   :  { %v5894_v36 = vadd.f32 %v2488_v44, %v2320_v37  ;;  %v3558_v44 = vld [vmem:[%s7105_s0 + $0x50] sm:$0xf] }
 0x1a6   :  { %v2448_v11 = vpop.f32.mrf.mxu2  ;;  %v2112_v46 = vpop.f32.mrf.mxu0 }
 0x1a7   :  { %7128 = vst [vmem:[#allocation23_spill] sm:$0xff] %v5894_v36  ;;  %v5896_v55 = vadd.f32 %v2448_v11, %v2280_v45  ;;  %v2281_v20 = vpop.f32.mrf.mxu1  ;;  %v2322_v11 = vadd.f32 %v5642_v50, %v5356_v30  ;;  %v3559_v50 = vor.u32 %v4645_v22, %v3558_v44  ;;  %v3555_v45 = vor.u32 %v4641_v28, %v3552_v33  ;;  %v3572_v44 = vld [vmem:[%s7105_s0 + $0x94] sm:$0xf0]  ;;  %v4652_v28 = vld [vmem:[%s7105_s0 + $0xa0] sm:$0xf0] }
 0x1a8   :  { %v2282_v7 = vadd.f32 %v2281_v20, %v2112_v46  ;;  %v2325_v20 = vadd.f32 %v5649_v9, %v5360_v40  ;;  %v3578_v40 = vld [vmem:[%s7105_s0 + $0x80] sm:$0xf]  ;;  %v4651_v9 = vld [vmem:[%s7105_s0 + $0x98] sm:$0xf0]  ;;  %v2327_v22 = vadd.f32 %v5677_v41, %v5388_v54  ;;  %v4648_v33 = vld [vmem:[%s7105_s0 + $0x84] sm:$0xf] }
 0x1ac   :  { %v2490_v56 = vpop.f32.mrf.mxu3 }
 0x1ad   :  { %v5924_v2 = vadd.f32 %v2490_v56, %v2322_v11 }
 0x1ae   :  { %v2450_v15 = vpop.f32.mrf.mxu2  ;;  %v2115_v30 = vpop.f32.mrf.mxu0 }
 0x1af   :  { %v5926_v27 = vadd.f32 %v2450_v15, %v2282_v7  ;;  %v2284_v37 = vpop.f32.mrf.mxu1  ;;  %v3580_v15 = vld [vmem:[%s7105_s0 + $0x9c] sm:$0xf0] }
 0x1b0   :  { %v2285_v46 = vadd.f32 %v2284_v37, %v2115_v30 }
 0x1b1   :  { %2541 = vmatmul.bf16.gmra.mxu3 %v3547_v31  ;;  %2710 = vmatmul.bf16.gmra.mxu0 %v3551_v35 }
 0x1b2   :  { %2879 = vmatmul.bf16.gmra.mxu1 %v3555_v45  ;;  %v3579_v45 = vor.u32 %v4651_v9, %v3578_v40  ;;  %v4654_v9 = vld [vmem:[%s7105_s0 + $0xb4] sm:$0xf] }
 0x1b3   :  { %4601 = vmatmul.msk.bf16.gmra.mxu2 %vm1924_vm0, %v3559_v50  ;;  %v3575_v50 = vor.u32 %v4647_v17, %v3572_v44 }
 0x1b4   :  { %v2493_v36 = vpop.f32.mrf.mxu3 }
 0x1b5   :  { %v5931_v56 = vadd.f32 %v2493_v36, %v2325_v20  ;;  %v3586_v36 = vld [vmem:[%s7105_s0 + $0x88] sm:$0xf] }
 0x1b6   :  { %v2453_v11 = vpop.f32.mrf.mxu2  ;;  %v2117_v7 = vpop.f32.mrf.mxu0  ;;  %v3587_v41 = vor.u32 %v4652_v28, %v3586_v36  ;;  %v3600_v36 = vld [vmem:[%s7105_s0 + $0xcc] sm:$0xf0]  ;;  %v3614_v28 = vld [vmem:[%s7105_s0 + $0xc0] sm:$0xf] }
 0x1b7   :  { %v5933_v53 = vadd.f32 %v2453_v11, %v2285_v46  ;;  %v2286_v4 = vpop.f32.mrf.mxu1  ;;  %v3583_v46 = vor.u32 %v4648_v33, %v3580_v15  ;;  %v2332_v33 = vadd.f32 %v5712_v38, %v5429_v19  ;;  %v4659_v15 = vld [vmem:[%s7105_s0 + $0xd8] sm:$0xf0] }
 0x1b8   :  { %v2287_v16 = vadd.f32 %v2286_v4, %v2117_v7  ;;  %v2330_v7 = vadd.f32 %v5684_v5, %v5392_v0  ;;  %v3606_v0 = vld [vmem:[%s7105_s0 + $0xb8] sm:$0xf]  ;;  %v4658_v5 = vld [vmem:[%s7105_s0 + $0xd0] sm:$0xf0]  ;;  %v3615_v38 = vor.u32 %v4659_v15, %v3614_v28  ;;  %v3628_v28 = vld [vmem:[%s7105_s0 + $0x104] sm:$0xf0] }
 0x1b9   :  { %v3642_v15 = vld [vmem:[%s7105_s0 + $0xf8] sm:$0xf] }
 0x1bc   :  { %v2495_v31 = vpop.f32.mrf.mxu3 }
 0x1bd   :  { %v5961_v30 = vadd.f32 %v2495_v31, %v2327_v22 }
 0x1be   :  { %v2455_v35 = vpop.f32.mrf.mxu2  ;;  %v2120_v54 = vpop.f32.mrf.mxu0 }
 0x1bf   :  { %v5963_v37 = vadd.f32 %v2455_v35, %v2287_v16  ;;  %v2289_v20 = vpop.f32.mrf.mxu1  ;;  %v4655_v35 = vld [vmem:[%s7105_s0 + $0xbc] sm:$0xf] }
 0x1c0   :  { %v2290_v11 = vadd.f32 %v2289_v20, %v2120_v54  ;;  %v3607_v20 = vor.u32 %v4658_v5, %v3606_v0  ;;  %v4661_v5 = vld [vmem:[%s7105_s0 + $0xec] sm:$0xf] }
 0x1c1   :  { %2546 = vmatmul.bf16.gmra.mxu3 %v3575_v50  ;;  %2715 = vmatmul.bf16.gmra.mxu0 %v3579_v45  ;;  %v3608_v50 = vld [vmem:[%s7105_s0 + $0xd4] sm:$0xf0] }
 0x1c2   :  { %2884 = vmatmul.bf16.gmra.mxu1 %v3583_v46  ;;  %v3603_v46 = vor.u32 %v4654_v9, %v3600_v36 }
 0x1c3   :  { %4602 = vmatmul.msk.bf16.gmra.mxu2 %vm1924_vm0, %v3587_v41 }
 0x1c4   :  { %v2498_v4 = vpop.f32.mrf.mxu3 }
 0x1c5   :  { %v5968_v31 = vadd.f32 %v2498_v4, %v2330_v7  ;;  %v3611_v7 = vor.u32 %v4655_v35, %v3608_v50  ;;  %v2337_v35 = vadd.f32 %v5753_v60, %v5461_v47  ;;  %v4666_v50 = vld [vmem:[%s7105_s0 + $0x110] sm:$0xf0] }
 0x1c6   :  { %v2458_v22 = vpop.f32.mrf.mxu2  ;;  %v2122_v16 = vpop.f32.mrf.mxu0  ;;  %v3643_v60 = vor.u32 %v4666_v50, %v3642_v15  ;;  %v3656_v15 = vld [vmem:[%s7105_s0 + $0x13c] sm:$0xf0]  ;;  %v3670_v50 = vld [vmem:[%s7105_s0 + $0x130] sm:$0xf] }
 0x1c7   :  { %v5970_v17 = vadd.f32 %v2458_v22, %v2290_v11  ;;  %v2291_v44 = vpop.f32.mrf.mxu1 }
 0x1c8   :  { %v2292_v40 = vadd.f32 %v2291_v44, %v2122_v16  ;;  %v2335_v16 = vadd.f32 %v5719_v10, %v5433_v29  ;;  %v3634_v29 = vld [vmem:[%s7105_s0 + $0xf0] sm:$0xf]  ;;  %v4665_v10 = vld [vmem:[%s7105_s0 + $0x108] sm:$0xf0] }
 0x1cc   :  { %v2500_v45 = vpop.f32.mrf.mxu3 }
 0x1cd   :  { %v5998_v41 = vadd.f32 %v2500_v45, %v2332_v33 }
 0x1ce   :  { %v2460_v54 = vpop.f32.mrf.mxu2  ;;  %v2125_v19 = vpop.f32.mrf.mxu0 }
 0x1cf   :  { %v6000_v11 = vadd.f32 %v2460_v54, %v2292_v40  ;;  %v2294_v4 = vpop.f32.mrf.mxu1  ;;  %v4662_v54 = vld [vmem:[%s7105_s0 + $0xf4] sm:$0xf] }
 0x1d0   :  { %v2295_v22 = vadd.f32 %v2294_v4, %v2125_v19  ;;  %v3635_v4 = vor.u32 %v4665_v10, %v3634_v29  ;;  %v4668_v10 = vld [vmem:[%s7105_s0 + $0x124] sm:$0xf] }
 0x1d1   :  { %2551 = vmatmul.bf16.gmra.mxu3 %v3603_v46  ;;  %2720 = vmatmul.bf16.gmra.mxu0 %v3607_v20  ;;  %v3636_v46 = vld [vmem:[%s7105_s0 + $0x10c] sm:$0xf0] }
 0x1d2   :  { %2889 = vmatmul.bf16.gmra.mxu1 %v3611_v7  ;;  %v3631_v7 = vor.u32 %v4661_v5, %v3628_v28 }
 0x1d3   :  { %4603 = vmatmul.msk.bf16.gmra.mxu2 %vm1924_vm0, %v3615_v38 }
 0x1d4   :  { %v2503_v44 = vpop.f32.mrf.mxu3 }
 0x1d5   :  { %v6005_v45 = vadd.f32 %v2503_v44, %v2335_v16  ;;  %v3639_v16 = vor.u32 %v4662_v54, %v3636_v46  ;;  %v2342_v54 = vadd.f32 %v5788_v6, %v5493_v12  ;;  %v4673_v46 = vld [vmem:[%s7105_s0 + $0x148] sm:$0xf0] }
 0x1d6   :  { %v2463_v33 = vpop.f32.mrf.mxu2  ;;  %v2127_v40 = vpop.f32.mrf.mxu0  ;;  %v3671_v6 = vor.u32 %v4673_v46, %v3670_v50  ;;  %v3684_v50 = vld [vmem:[%s7105_s0 + $0x174] sm:$0xf0]  ;;  %v3698_v46 = vld [vmem:[%s7105_s0 + $0x168] sm:$0xf] }
 0x1d7   :  { %v6007_v9 = vadd.f32 %v2463_v33, %v2295_v22  ;;  %v2296_v36 = vpop.f32.mrf.mxu1 }
 0x1d8   :  { %v2297_v0 = vadd.f32 %v2296_v36, %v2127_v40  ;;  %v2340_v40 = vadd.f32 %v5760_v8, %v5465_v59  ;;  %v3662_v59 = vld [vmem:[%s7105_s0 + $0x128] sm:$0xf]  ;;  %v4672_v8 = vld [vmem:[%s7105_s0 + $0x140] sm:$0xf0] }
 0x1dc   :  { %v2505_v20 = vpop.f32.mrf.mxu3 }
 0x1dd   :  { %v6035_v38 = vadd.f32 %v2505_v20, %v2337_v35 }
 0x1de   :  { %v2465_v19 = vpop.f32.mrf.mxu2  ;;  %v2130_v47 = vpop.f32.mrf.mxu0 }
 0x1df   :  { %v6037_v22 = vadd.f32 %v2465_v19, %v2297_v0  ;;  %v2299_v44 = vpop.f32.mrf.mxu1  ;;  %v4669_v19 = vld [vmem:[%s7105_s0 + $0x12c] sm:$0xf] }
 0x1e0   :  { %v2300_v33 = vadd.f32 %v2299_v44, %v2130_v47  ;;  %v3663_v44 = vor.u32 %v4672_v8, %v3662_v59  ;;  %v4675_v8 = vld [vmem:[%s7105_s0 + $0x15c] sm:$0xf] }
 0x1e1   :  { %2556 = vmatmul.bf16.gmra.mxu3 %v3631_v7  ;;  %2725 = vmatmul.bf16.gmra.mxu0 %v3635_v4  ;;  %v3664_v7 = vld [vmem:[%s7105_s0 + $0x144] sm:$0xf0] }
 0x1e2   :  { %2894 = vmatmul.bf16.gmra.mxu1 %v3639_v16  ;;  %v3659_v16 = vor.u32 %v4668_v10, %v3656_v15 }
 0x1e3   :  { %4604 = vmatmul.msk.bf16.gmra.mxu2 %vm1924_vm0, %v3643_v60 }
 0x1e4   :  { %v2508_v36 = vpop.f32.mrf.mxu3 }
 0x1e5   :  { %v6042_v20 = vadd.f32 %v2508_v36, %v2340_v40  ;;  %v3667_v40 = vor.u32 %v4669_v19, %v3664_v7  ;;  %v2347_v19 = vadd.f32 %v5823_v25, %v5531_v48  ;;  %v4680_v7 = vld [vmem:[%s7105_s0 + $0x180] sm:$0xf0] }
 0x1e6   :  { %v2468_v35 = vpop.f32.mrf.mxu2  ;;  %v2132_v0 = vpop.f32.mrf.mxu0  ;;  %v3699_v25 = vor.u32 %v4680_v7, %v3698_v46  ;;  %v3718_v46 = vld [vmem:[%s7105_s0 + $0x198] sm:$0xf]  ;;  %v4686_v7 = vld [vmem:[%s7105_s0 + $0x1b0] sm:$0xf0] }
 0x1e7   :  { %v6044_v5 = vadd.f32 %v2468_v35, %v2300_v33  ;;  %v2301_v28 = vpop.f32.mrf.mxu1 }
 0x1e8   :  { %v2302_v29 = vadd.f32 %v2301_v28, %v2132_v0  ;;  %v2345_v0 = vadd.f32 %v5795_v13, %v5497_v26  ;;  %v3690_v26 = vld [vmem:[%s7105_s0 + $0x160] sm:$0xf]  ;;  %v4679_v13 = vld [vmem:[%s7105_s0 + $0x178] sm:$0xf0] }
 0x1ec   :  { %v2510_v4 = vpop.f32.mrf.mxu3 }
 0x1ed   :  { %v6072_v60 = vadd.f32 %v2510_v4, %v2342_v54 }
 0x1ee   :  { %v2470_v47 = vpop.f32.mrf.mxu2  ;;  %v2135_v12 = vpop.f32.mrf.mxu0 }
 0x1ef   :  { %v6074_v33 = vadd.f32 %v2470_v47, %v2302_v29  ;;  %v2304_v36 = vpop.f32.mrf.mxu1  ;;  %v4676_v47 = vld [vmem:[%s7105_s0 + $0x164] sm:$0xf] }
 0x1f0   :  { %v2305_v35 = vadd.f32 %v2304_v36, %v2135_v12  ;;  %v3691_v36 = vor.u32 %v4679_v13, %v3690_v26 }
 0x1f1   :  { %2561 = vmatmul.bf16.gmra.mxu3 %v3659_v16  ;;  %2730 = vmatmul.bf16.gmra.mxu0 %v3663_v44  ;;  %v3692_v16 = vld [vmem:[%s7105_s0 + $0x17c] sm:$0xf0] }
 0x1f2   :  { %2899 = vmatmul.bf16.gmra.mxu1 %v3667_v40  ;;  %v3687_v40 = vor.u32 %v4675_v8, %v3684_v50  ;;  %v4932_v50 = vmov 0.0  }
 0x1f3   :  { %4605 = vmatmul.msk.bf16.gmra.mxu2 %vm1924_vm0, %v3671_v6  ;;  %20 = vst.msk [vmem:[#allocation2] sm:$0xff] %vm19_vm1, %v4932_v50 }
 0x1f4   :  { %v2513_v28 = vpop.f32.mrf.mxu3  ;;  %21 = vst.msk [vmem:[#allocation2 + $0x8] sm:$0xff] %vm19_vm1, %v4932_v50 }
 0x1f5   :  { %v6079_v4 = vadd.f32 %v2513_v28, %v2345_v0  ;;  %v3695_v0 = vor.u32 %v4676_v47, %v3692_v16  ;;  %22 = vst.msk [vmem:[#allocation2 + $0x10] sm:$0xff] %vm19_vm1, %v4932_v50  ;;  %v3726_v47 = vld [vmem:[%s7105_s0 + $0x1a0] sm:$0xf]  ;;  %v4687_v16 = vld [vmem:[%s7105_s0 + $0x1b8] sm:$0xf0] }
 0x1f6   :  { %v2473_v54 = vpop.f32.mrf.mxu2  ;;  %v2137_v29 = vpop.f32.mrf.mxu0  ;;  %23 = vst.msk [vmem:[#allocation2 + $0x18] sm:$0xff] %vm19_vm1, %v4932_v50 }
 0x1f7   :  { %v6081_v10 = vadd.f32 %v2473_v54, %v2305_v35  ;;  %v2306_v15 = vpop.f32.mrf.mxu1  ;;  %24 = vst.msk [vmem:[#allocation2 + $0x20] sm:$0xff] %vm19_vm1, %v4932_v50 }
 0x1f8   :  { %v2307_v59 = vadd.f32 %v2306_v15, %v2137_v29  ;;  %v2350_v29 = vadd.f32 %v5827_v57, %v5538_v1  ;;  %v4682_v1 = vld [vmem:[%s7105_s0 + $0x194] sm:$0xf]  ;;  %v3712_v57 = vld [vmem:[%s7105_s0 + $0x1ac] sm:$0xf0]  ;;  %25 = vst.msk [vmem:[#allocation2 + $0x28] sm:$0xff] %vm19_vm1, %v4932_v50 }
 0x1f9   :  { %26 = vst.msk [vmem:[#allocation2 + $0x30] sm:$0xff] %vm19_vm1, %v4932_v50 }
 0x1fa   :  { %27 = vst.msk [vmem:[#allocation2 + $0x38] sm:$0xff] %vm19_vm1, %v4932_v50 }
 0x1fb   :  { %28 = vst.msk [vmem:[#allocation2 + $0x40] sm:$0xff] %vm19_vm1, %v4932_v50 }
 0x1fc   :  { %v2515_v44 = vpop.f32.mrf.mxu3  ;;  %29 = vst.msk [vmem:[#allocation2 + $0x48] sm:$0xff] %vm19_vm1, %v4932_v50 }
 0x1fd   :  { %v6109_v6 = vadd.f32 %v2515_v44, %v2347_v19  ;;  %30 = vst.msk [vmem:[#allocation2 + $0x50] sm:$0xff] %vm19_vm1, %v4932_v50 }
 0x1fe   :  { %v2475_v12 = vpop.f32.mrf.mxu2  ;;  %v2140_v48 = vpop.f32.mrf.mxu0  ;;  %31 = vst.msk [vmem:[#allocation2 + $0x58] sm:$0xff] %vm19_vm1, %v4932_v50 }
 0x1ff   :  { %v6111_v35 = vadd.f32 %v2475_v12, %v2307_v59  ;;  %v2309_v28 = vpop.f32.mrf.mxu1  ;;  %v2352_v12 = vadd.f32 %v5855_v49, %v5566_v21  ;;  %v3719_v21 = vor.u32 %v4686_v7, %v3718_v46  ;;  %32 = vst.msk [vmem:[#allocation2 + $0x60] sm:$0xff] %vm19_vm1, %v4932_v50 }
 0x200   :  { %v2310_v54 = vadd.f32 %v2309_v28, %v2140_v48  ;;  %v3715_v28 = vor.u32 %v4682_v1, %v3712_v57  ;;  %33 = vst.msk [vmem:[#allocation2 + $0x68] sm:$0xff] %vm19_vm1, %v4932_v50 }
 0x201   :  { %2566 = vmatmul.bf16.gmra.mxu3 %v3687_v40  ;;  %2735 = vmatmul.bf16.gmra.mxu0 %v3691_v36  ;;  %v4683_v40 = vld [vmem:[%s7105_s0 + $0x19c] sm:$0xf]  ;;  %v3720_v36 = vld [vmem:[%s7105_s0 + $0x1b4] sm:$0xf0]  ;;  %34 = vst.msk [vmem:[#allocation2 + $0x70] sm:$0xff] %vm19_vm1, %v4932_v50 }
 0x202   :  { %2904 = vmatmul.bf16.gmra.mxu1 %v3695_v0  ;;  %35 = vst.msk [vmem:[#allocation2 + $0x78] sm:$0xff] %vm19_vm1, %v4932_v50 }
 0x203   :  { %4606 = vmatmul.msk.bf16.gmra.mxu2 %vm1924_vm0, %v3699_v25  ;;  %36 = vst.msk [vmem:[#allocation2 + $0x80] sm:$0xff] %vm19_vm1, %v4932_v50 }
 0x204   :  { %v2518_v15 = vpop.f32.mrf.mxu3  ;;  %37 = vst.msk [vmem:[#allocation2 + $0x88] sm:$0xff] %vm19_vm1, %v4932_v50 }
 0x205   :  { %v6116_v44 = vadd.f32 %v2518_v15, %v2350_v29  ;;  %v3727_v29 = vor.u32 %v4687_v16, %v3726_v47  ;;  %v3723_v15 = vor.u32 %v4683_v40, %v3720_v36  ;;  %v4689_v47 = vld [vmem:[%s7105_s0 + $0x1cc] sm:$0xf]  ;;  %v3740_v16 = vld [vmem:[%s7105_s0 + $0x1e4] sm:$0xf0]  ;;  %38 = vst.msk [vmem:[#allocation2 + $0x90] sm:$0xff] %vm19_vm1, %v4932_v50 }
 0x206   :  { %v2478_v19 = vpop.f32.mrf.mxu2  ;;  %v2142_v8 = vpop.f32.mrf.mxu0  ;;  %v4693_v40 = vld [vmem:[%s7105_s0 + $0x1e8] sm:$0xf0]  ;;  %39 = vst.msk [vmem:[#allocation2 + $0x98] sm:$0xff] %vm19_vm1, %v4932_v50  ;;  %v3754_v36 = vld [vmem:[%s7105_s0 + $0x1d8] sm:$0xf] }
 0x207   :  { %v6118_v59 = vadd.f32 %v2478_v19, %v2310_v54  ;;  %v2311_v26 = vpop.f32.mrf.mxu1  ;;  %40 = vst.msk [vmem:[#allocation2 + $0xa0] sm:$0xff] %vm19_vm1, %v4932_v50 }
 0x208   :  { %v2312_v13 = vadd.f32 %v2311_v26, %v2142_v8  ;;  %v2355_v26 = vadd.f32 %v5859_v52, %v5573_v39  ;;  %41 = vst.msk [vmem:[#allocation2 + $0xa8] sm:$0xff] %vm19_vm1, %v4932_v50 }
 0x209   :  { %42 = vst.msk [vmem:[#allocation2 + $0xb0] sm:$0xff] %vm19_vm1, %v4932_v50 }
 0x20a   :  { %43 = vst.msk [vmem:[#allocation2 + $0xb8] sm:$0xff] %vm19_vm1, %v4932_v50 }
 0x20b   :  { %44 = vst.msk [vmem:[#allocation2 + $0xc0] sm:$0xff] %vm19_vm1, %v4932_v50 }
 0x20c   :  { %v2520_v48 = vpop.f32.mrf.mxu3  ;;  %45 = vst.msk [vmem:[#allocation2 + $0xc8] sm:$0xff] %vm19_vm1, %v4932_v50 }
 0x20d   :  { %v6160_v0 = vadd.f32 %v2520_v48, %v2352_v12  ;;  %v3746_v12 = vld [vmem:[%s7105_s0 + $0x1d0] sm:$0xf]  ;;  %v4694_v48 = vld [vmem:[%s7105_s0 + $0x1f0] sm:$0xf0]  ;;  %46 = vst.msk [vmem:[#allocation2 + $0xd0] sm:$0xff] %vm19_vm1, %v4932_v50 }
 0x20e   :  { %v2480_v25 = vpop.f32.mrf.mxu2  ;;  %v2145_v54 = vpop.f32.mrf.mxu0  ;;  %47 = vst.msk [vmem:[#allocation2 + $0xd8] sm:$0xff] %vm19_vm1, %v4932_v50 }
 0x20f   :  { %7129 = vst [vmem:[#allocation24_spill] sm:$0xff] %v6160_v0  ;;  %v6164_v49 = vadd.f32 %v2480_v25, %v2312_v13  ;;  %v2314_v19 = vpop.f32.mrf.mxu1  ;;  %v2357_v25 = vadd.f32 %v5887_v43, %v5601_v63  ;;  %v3747_v63 = vor.u32 %v4693_v40, %v3746_v12  ;;  %v3768_v40 = vld [vmem:[%s7105_s0 + $0x21c] sm:$0xf0]  ;;  %v341_v0 = vld [vmem:[#allocation2 + $0x8] sm:$0xff] }
 0x210   :  { %v2315_v8 = vadd.f32 %v2314_v19, %v2145_v54  ;;  %v3743_v19 = vor.u32 %v4689_v47, %v3740_v16  ;;  %48 = vst.msk [vmem:[#allocation2 + $0xe0] sm:$0xff] %vm19_vm1, %v4932_v50 }
 0x211   :  { %2571 = vmatmul.bf16.gmra.mxu3 %v3715_v28  ;;  %2740 = vmatmul.bf16.gmra.mxu0 %v3719_v21  ;;  %v4690_v28 = vld [vmem:[%s7105_s0 + $0x1d4] sm:$0xf]  ;;  %v3748_v21 = vld [vmem:[%s7105_s0 + $0x1ec] sm:$0xf0]  ;;  %49 = vst.msk [vmem:[#allocation2 + $0xe8] sm:$0xff] %vm19_vm1, %v4932_v50 }
 0x212   :  { %2909 = vmatmul.bf16.gmra.mxu1 %v3723_v15  ;;  %50 = vst.msk [vmem:[#allocation2 + $0xf0] sm:$0xff] %vm19_vm1, %v4932_v50 }
 0x213   :  { %4607 = vmatmul.msk.bf16.gmra.mxu2 %vm1924_vm0, %v3727_v29  ;;  %51 = vst.msk [vmem:[#allocation2 + $0xf8] sm:$0xff] %vm19_vm1, %v4932_v50 }
 0x214   :  { %v2523_v13 = vpop.f32.mrf.mxu3  ;;  %52 = vst.msk [vmem:[#allocation2 + $0x100] sm:$0xff] %vm19_vm1, %v4932_v50 }
 0x215   :  { %v6183_v57 = vadd.f32 %v2523_v13, %v2355_v26  ;;  %v3755_v26 = vor.u32 %v4694_v48, %v3754_v36  ;;  %v3751_v13 = vor.u32 %v4690_v28, %v3748_v21  ;;  %53 = vst.msk [vmem:[#allocation2 + $0x108] sm:$0xff] %vm19_vm1, %v4932_v50  ;;  %v3774_v48 = vld [vmem:[%s7105_s0 + $0x208] sm:$0xf]  ;;  %v340_v28 = vld [vmem:[#allocation2] sm:$0xff]  ;;  %v3782_v21 = vld [vmem:[%s7105_s0 + $0x210] sm:$0xf] }
 0x216   :  { %v2483_v1 = vpop.f32.mrf.mxu2  ;;  %v2147_v7 = vpop.f32.mrf.mxu0  ;;  %54 = vst.msk [vmem:[#allocation2 + $0x110] sm:$0xff] %vm19_vm1, %v4932_v50 }
 0x217   :  { %7130 = vst [vmem:[#allocation25_spill] sm:$0xff] %v6183_v57  ;;  %v6187_v46 = vadd.f32 %v2483_v1, %v2315_v8  ;;  %v2316_v39 = vpop.f32.mrf.mxu1 }
 0x218   :  { %v2317_v52 = vadd.f32 %v2316_v39, %v2147_v7  ;;  %55 = vst.msk [vmem:[#allocation2 + $0x118] sm:$0xff] %vm19_vm1, %v4932_v50 }
 0x219   :  { %56 = vst.msk [vmem:[#allocation2 + $0x120] sm:$0xff] %vm19_vm1, %v4932_v50 }
 0x21a   :  { %57 = vst.msk [vmem:[#allocation2 + $0x128] sm:$0xff] %vm19_vm1, %v4932_v50 }
 0x21b   :  { %58 = vst.msk [vmem:[#allocation2 + $0x130] sm:$0xff] %vm19_vm1, %v4932_v50 }
 0x21c   :  { %v2525_v54 = vpop.f32.mrf.mxu3  ;;  %59 = vst.msk [vmem:[#allocation2 + $0x138] sm:$0xff] %vm19_vm1, %v4932_v50 }
 0x21d   :  { %v6229_v15 = vadd.f32 %v2525_v54, %v2357_v25  ;;  %v4700_v25 = vld [vmem:[%s7105_s0 + $0x220] sm:$0xf0]  ;;  %v4701_v54 = vld [vmem:[%s7105_s0 + $0x228] sm:$0xf0]  ;;  %60 = vst.msk [vmem:[#allocation2 + $0x140] sm:$0xff] %vm19_vm1, %v4932_v50 }
 0x21e   :  { %v2485_v29 = vpop.f32.mrf.mxu2  ;;  %v2706_v8 = vpop.f32.mrf.mxu0  ;;  %61 = vst.msk [vmem:[#allocation2 + $0x148] sm:$0xff] %vm19_vm1, %v4932_v50 }
 0x21f   :  { %7131 = vst [vmem:[#allocation26_spill] sm:$0xff] %v6229_v15  ;;  %v6233_v43 = vadd.f32 %v2485_v29, %v2317_v52  ;;  %v2875_v1 = vpop.f32.mrf.mxu1 }
 0x220   :  { %62 = vst.msk [vmem:[#allocation2 + $0x150] sm:$0xff] %vm19_vm1, %v4932_v50 }
 0x221   :  { %2576 = vmatmul.bf16.gmra.mxu3 %v3743_v19  ;;  %2745 = vmatmul.bf16.gmra.mxu0 %v3747_v63  ;;  %v4697_v19 = vld [vmem:[%s7105_s0 + $0x20c] sm:$0xf]  ;;  %v3776_v63 = vld [vmem:[%s7105_s0 + $0x224] sm:$0xf0]  ;;  %63 = vst.msk [vmem:[#allocation2 + $0x158] sm:$0xff] %vm19_vm1, %v4932_v50 }
 0x222   :  { %2914 = vmatmul.bf16.gmra.mxu1 %v3751_v13  ;;  %64 = vst.msk [vmem:[#allocation2 + $0x160] sm:$0xff] %vm19_vm1, %v4932_v50 }
 0x223   :  { %4608 = vmatmul.msk.bf16.gmra.mxu2 %vm1924_vm0, %v3755_v26  ;;  %65 = vst.msk [vmem:[#allocation2 + $0x168] sm:$0xff] %vm19_vm1, %v4932_v50 }
 0x224   :  { %v2537_v7 = vpop.f32.mrf.mxu3  ;;  %66 = vst.msk [vmem:[#allocation2 + $0x170] sm:$0xff] %vm19_vm1, %v4932_v50 }
 0x225   :  { %v2538_v39 = vadd.f32 %v2537_v7, %v5330_v18  ;;  %v4696_v18 = vld [vmem:[%s7105_s0 + $0x204] sm:$0xf]  ;;  %v3775_v7 = vor.u32 %v4700_v25, %v3774_v48  ;;  %67 = vst.msk [vmem:[#allocation2 + $0x178] sm:$0xff] %vm19_vm1, %v4932_v50 }
 0x226   :  { %v3044_v52 = vpop.f32.mrf.mxu2  ;;  %v2708_v47 = vpop.f32.mrf.mxu0  ;;  %68 = vst.msk [vmem:[#allocation2 + $0x180] sm:$0xff] %vm19_vm1, %v4932_v50 }
 0x227   :  { %v2707_v16 = vadd.f32 %v2706_v8, %v2538_v39  ;;  %v2877_v12 = vpop.f32.mrf.mxu1  ;;  %69 = vst.msk [vmem:[#allocation2 + $0x188] sm:$0xff] %vm19_vm1, %v4932_v50 }
 0x228   :  { %70 = vst.msk [vmem:[#allocation2 + $0x190] sm:$0xff] %vm19_vm1, %v4932_v50 }
 0x229   :  { %v2876_v36 = vadd.f32 %v2875_v1, %v2707_v16  ;;  %v3771_v1 = vor.u32 %v4696_v18, %v3768_v40  ;;  %v3779_v16 = vor.u32 %v4697_v19, %v3776_v63  ;;  %v4707_v19 = vld [vmem:[%s7105_s0 + $0x258] sm:$0xf0]  ;;  %71 = vst.msk [vmem:[#allocation2 + $0x198] sm:$0xff] %vm19_vm1, %v4932_v50  ;;  %v3810_v63 = vld [vmem:[%s7105_s0 + $0x248] sm:$0xf] }
 0x22a   :  { %72 = vst.msk [vmem:[#allocation2 + $0x1a0] sm:$0xff] %vm19_vm1, %v4932_v50 }
 0x22b   :  { %v3045_v29 = vadd.f32 %v3044_v52, %v2876_v36  ;;  %v3783_v52 = vor.u32 %v4701_v54, %v3782_v21  ;;  %73 = vst.msk [vmem:[#allocation2 + $0x1a8] sm:$0xff] %vm19_vm1, %v4932_v50 }
 0x22c   :  { %v2539_v8 = vpop.f32.mrf.mxu3  ;;  %74 = vst.msk [vmem:[#allocation2 + $0x1b0] sm:$0xff] %vm19_vm1, %v4932_v50 }
 0x22d   :  { %v3204_v26 = vadd.f32 %v3045_v29, %v340_v28  ;;  %v2540_v18 = vadd.f32 %v2539_v8, %v5358_v34  ;;  %v4703_v29 = vld [vmem:[%s7105_s0 + $0x23c] sm:$0xf]  ;;  %v4708_v8 = vld [vmem:[%s7105_s0 + $0x260] sm:$0xf0]  ;;  %75 = vst.msk [vmem:[#allocation2 + $0x1b8] sm:$0xff] %vm19_vm1, %v4932_v50 }
 0x22e   :  { %v3046_v13 = vpop.f32.mrf.mxu2  ;;  %v2711_v39 = vpop.f32.mrf.mxu0  ;;  %76 = vst.msk [vmem:[#allocation2 + $0x1c0] sm:$0xff] %vm19_vm1, %v4932_v50 }
 0x22f   :  { %3269 = vst.msk [vmem:[#allocation2] sm:$0xff] %vm19_vm1, %v3204_v26  ;;  %v2880_v36 = vpop.f32.mrf.mxu1  ;;  %v2709_v21 = vadd.f32 %v2708_v47, %v2540_v18  ;;  %v3802_v47 = vld [vmem:[%s7105_s0 + $0x240] sm:$0xf] }
 0x230   :  { %77 = vst.msk [vmem:[#allocation2 + $0x1c8] sm:$0xff] %vm19_vm1, %v4932_v50 }
 0x231   :  { %2581 = vmatmul.bf16.gmra.mxu3 %v3771_v1  ;;  %2750 = vmatmul.bf16.gmra.mxu0 %v3775_v7  ;;  %v2878_v26 = vadd.f32 %v2877_v12, %v2709_v21  ;;  %v4704_v1 = vld [vmem:[%s7105_s0 + $0x244] sm:$0xf]  ;;  %v3804_v7 = vld [vmem:[%s7105_s0 + $0x25c] sm:$0xf0]  ;;  %v3811_v21 = vor.u32 %v4708_v8, %v3810_v63  ;;  %78 = vst.msk [vmem:[#allocation2 + $0x1d0] sm:$0xff] %vm19_vm1, %v4932_v50 }
 0x232   :  { %2919 = vmatmul.bf16.gmra.mxu1 %v3779_v16  ;;  %v3807_v15 = vor.u32 %v4704_v1, %v3804_v7  ;;  %79 = vst.msk [vmem:[#allocation2 + $0x1d8] sm:$0xff] %vm19_vm1, %v4932_v50  ;;  %v4710_v7 = vld [vmem:[%s7105_s0 + $0x274] sm:$0xf] }
 0x233   :  { %4609 = vmatmul.msk.bf16.gmra.mxu2 %vm1924_vm0, %v3783_v52  ;;  %v3047_v57 = vadd.f32 %v3046_v13, %v2878_v26  ;;  %80 = vst.msk [vmem:[#allocation2 + $0x1e0] sm:$0xff] %vm19_vm1, %v4932_v50  ;;  %v344_v26 = vld [vmem:[#allocation2 + $0x20] sm:$0xff] }
 0x234   :  { %v2542_v40 = vpop.f32.mrf.mxu3  ;;  %81 = vst.msk [vmem:[#allocation2 + $0x1e8] sm:$0xff] %vm19_vm1, %v4932_v50 }
 0x235   :  { %v2543_v48 = vadd.f32 %v2542_v40, %v5362_v42  ;;  %v3796_v42 = vld [vmem:[%s7105_s0 + $0x254] sm:$0xf0]  ;;  %v3803_v40 = vor.u32 %v4707_v19, %v3802_v47  ;;  %v3205_v13 = vadd.f32 %v3047_v57, %v341_v0  ;;  %82 = vst.msk [vmem:[#allocation2 + $0x1f0] sm:$0xff] %vm19_vm1, %v4932_v50 }
 0x236   :  { %v3049_v25 = vpop.f32.mrf.mxu2  ;;  %v2713_v28 = vpop.f32.mrf.mxu0  ;;  %v3799_v12 = vor.u32 %v4703_v29, %v3796_v42  ;;  %v342_v29 = vld [vmem:[#allocation2 + $0x10] sm:$0xff]  ;;  %v343_v47 = vld [vmem:[#allocation2 + $0x18] sm:$0xff]  ;;  %83 = vst.msk [vmem:[#allocation2 + $0x1f8] sm:$0xff] %vm19_vm1, %v4932_v50 }
 0x237   :  { %v2882_v54 = vpop.f32.mrf.mxu1  ;;  %v2712_v34 = vadd.f32 %v2711_v39, %v2543_v48  ;;  %3270 = vst.msk [vmem:[#allocation2 + $0x8] sm:$0xff] %vm19_vm1, %v3205_v13  ;;  %v3830_v50 = vld [vmem:[%s7105_s0 + $0x278] sm:$0xf] }
 0x239   :  { %v2881_v39 = vadd.f32 %v2880_v36, %v2712_v34 }
 0x23c   :  { %v2544_v52 = vpop.f32.mrf.mxu3 }
 0x23d   :  { %v2545_v16 = vadd.f32 %v2544_v52, %v5390_v58  ;;  %v3050_v58 = vadd.f32 %v3049_v25, %v2881_v39  ;;  %v4714_v39 = vld [vmem:[%s7105_s0 + $0x290] sm:$0xf0]  ;;  %v3838_v52 = vld [vmem:[%s7105_s0 + $0x280] sm:$0xf] }
 0x23e   :  { %v3051_v18 = vpop.f32.mrf.mxu2  ;;  %v2716_v48 = vpop.f32.mrf.mxu0 }
 0x23f   :  { %v2714_v36 = vadd.f32 %v2713_v28, %v2545_v16  ;;  %v2885_v34 = vpop.f32.mrf.mxu1  ;;  %v3206_v25 = vadd.f32 %v3050_v58, %v342_v29  ;;  %v3831_v29 = vor.u32 %v4714_v39, %v3830_v50  ;;  %v3852_v39 = vld [vmem:[%s7105_s0 + $0x2c4] sm:$0xf0] }
 0x241   :  { %v2883_v42 = vadd.f32 %v2882_v54, %v2714_v36  ;;  %2586 = vmatmul.bf16.gmra.mxu3 %v3799_v12  ;;  %2755 = vmatmul.bf16.gmra.mxu0 %v3803_v40  ;;  %3271 = vst.msk [vmem:[#allocation2 + $0x10] sm:$0xff] %vm19_vm1, %v3206_v25  ;;  %v4711_v12 = vld [vmem:[%s7105_s0 + $0x27c] sm:$0xf]  ;;  %v3832_v40 = vld [vmem:[%s7105_s0 + $0x294] sm:$0xf0] }
 0x242   :  { %2924 = vmatmul.bf16.gmra.mxu1 %v3807_v15  ;;  %v3835_v13 = vor.u32 %v4711_v12, %v3832_v40  ;;  %v4722_v12 = vld [vmem:[%s7105_s0 + $0x2d0] sm:$0xf0] }
 0x243   :  { %4610 = vmatmul.msk.bf16.gmra.mxu2 %vm1924_vm0, %v3811_v21  ;;  %v3052_v28 = vadd.f32 %v3051_v18, %v2883_v42  ;;  %v4715_v18 = vld [vmem:[%s7105_s0 + $0x298] sm:$0xf0]  ;;  %v4718_v40 = vld [vmem:[%s7105_s0 + $0x2b4] sm:$0xf] }
 0x244   :  { %v2547_v19 = vpop.f32.mrf.mxu3 }
 0x245   :  { %v3207_v54 = vadd.f32 %v3052_v28, %v343_v47  ;;  %v2548_v63 = vadd.f32 %v2547_v19, %v5394_v3  ;;  %v3824_v3 = vld [vmem:[%s7105_s0 + $0x28c] sm:$0xf0]  ;;  %v3839_v47 = vor.u32 %v4715_v18, %v3838_v52  ;;  %v4721_v52 = vld [vmem:[%s7105_s0 + $0x2c8] sm:$0xf0] }
 0x246   :  { %v3054_v8 = vpop.f32.mrf.mxu2  ;;  %v2718_v15 = vpop.f32.mrf.mxu0  ;;  %v3827_v58 = vor.u32 %v4710_v7, %v3824_v3 }
 0x247   :  { %v2717_v0 = vadd.f32 %v2716_v48, %v2548_v63  ;;  %v2887_v57 = vpop.f32.mrf.mxu1  ;;  %3272 = vst.msk [vmem:[#allocation2 + $0x18] sm:$0xff] %vm19_vm1, %v3207_v54  ;;  %v345_v54 = vld [vmem:[#allocation2 + $0x28] sm:$0xff] }
 0x249   :  { %v2886_v1 = vadd.f32 %v2885_v34, %v2717_v0 }
 0x24b   :  { %v3055_v16 = vadd.f32 %v3054_v8, %v2886_v1 }
 0x24c   :  { %v2549_v48 = vpop.f32.mrf.mxu3 }
 0x24d   :  { %v3208_v21 = vadd.f32 %v3055_v16, %v344_v26  ;;  %v2550_v36 = vadd.f32 %v2549_v48, %v5431_v24  ;;  %v3866_v16 = vld [vmem:[%s7105_s0 + $0x2b8] sm:$0xf]  ;;  %v3860_v48 = vld [vmem:[%s7105_s0 + $0x2cc] sm:$0xf0] }
 0x24e   :  { %v3056_v34 = vpop.f32.mrf.mxu2  ;;  %v2721_v42 = vpop.f32.mrf.mxu0 }
 0x24f   :  { %3273 = vst.msk [vmem:[#allocation2 + $0x20] sm:$0xff] %vm19_vm1, %v3208_v21  ;;  %v2719_v28 = vadd.f32 %v2718_v15, %v2550_v36  ;;  %v2890_v25 = vpop.f32.mrf.mxu1  ;;  %v346_v15 = vld [vmem:[#allocation2 + $0x30] sm:$0xff] }
 0x251   :  { %v2888_v19 = vadd.f32 %v2887_v57, %v2719_v28  ;;  %2591 = vmatmul.bf16.gmra.mxu3 %v3827_v58  ;;  %2760 = vmatmul.bf16.gmra.mxu0 %v3831_v29  ;;  %v4717_v57 = vld [vmem:[%s7105_s0 + $0x2ac] sm:$0xf]  ;;  %v3863_v28 = vor.u32 %v4718_v40, %v3860_v48  ;;  %v3888_v40 = vld [vmem:[%s7105_s0 + $0x304] sm:$0xf0] }
 0x252   :  { %2929 = vmatmul.bf16.gmra.mxu1 %v3835_v13  ;;  %v3855_v29 = vor.u32 %v4717_v57, %v3852_v39  ;;  %v3867_v13 = vor.u32 %v4722_v12, %v3866_v16  ;;  %v3880_v39 = vld [vmem:[%s7105_s0 + $0x2fc] sm:$0xf0]  ;;  %v4725_v12 = vld [vmem:[%s7105_s0 + $0x2ec] sm:$0xf] }
 0x253   :  { %4611 = vmatmul.msk.bf16.gmra.mxu2 %vm1924_vm0, %v3839_v47  ;;  %v3057_v63 = vadd.f32 %v3056_v34, %v2888_v19 }
 0x254   :  { %v2552_v8 = vpop.f32.mrf.mxu3 }
 0x255   :  { %v3209_v24 = vadd.f32 %v3057_v63, %v345_v54  ;;  %v2553_v0 = vadd.f32 %v2552_v8, %v5435_v32  ;;  %v3858_v32 = vld [vmem:[%s7105_s0 + $0x2b0] sm:$0xf]  ;;  %v347_v63 = vld [vmem:[#allocation2 + $0x38] sm:$0xff] }
 0x256   :  { %v3059_v26 = vpop.f32.mrf.mxu2  ;;  %v2723_v1 = vpop.f32.mrf.mxu0 }
 0x257   :  { %3274 = vst.msk [vmem:[#allocation2 + $0x28] sm:$0xff] %vm19_vm1, %v3209_v24  ;;  %v2722_v7 = vadd.f32 %v2721_v42, %v2553_v0  ;;  %v2892_v3 = vpop.f32.mrf.mxu1  ;;  %v3859_v42 = vor.u32 %v4721_v52, %v3858_v32  ;;  %v4728_v32 = vld [vmem:[%s7105_s0 + $0x300] sm:$0xf0]  ;;  %v3894_v52 = vld [vmem:[%s7105_s0 + $0x2f0] sm:$0xf] }
 0x259   :  { %v2891_v50 = vadd.f32 %v2890_v25, %v2722_v7 }
 0x25b   :  { %v3060_v18 = vadd.f32 %v3059_v26, %v2891_v50 }
 0x25c   :  { %v2554_v21 = vpop.f32.mrf.mxu3 }
 0x25d   :  { %v3210_v36 = vadd.f32 %v3060_v18, %v346_v15  ;;  %v2555_v34 = vadd.f32 %v2554_v21, %v5463_v51  ;;  %v4729_v18 = vld [vmem:[%s7105_s0 + $0x308] sm:$0xf0] }
 0x25e   :  { %v3061_v58 = vpop.f32.mrf.mxu2  ;;  %v2726_v47 = vpop.f32.mrf.mxu0 }
 0x25f   :  { %3275 = vst.msk [vmem:[#allocation2 + $0x30] sm:$0xff] %vm19_vm1, %v3210_v36  ;;  %v2724_v25 = vadd.f32 %v2723_v1, %v2555_v34  ;;  %v2895_v19 = vpop.f32.mrf.mxu1  ;;  %v348_v1 = vld [vmem:[#allocation2 + $0x40] sm:$0xff] }
 0x261   :  { %v2893_v54 = vadd.f32 %v2892_v3, %v2724_v25  ;;  %2596 = vmatmul.bf16.gmra.mxu3 %v3855_v29  ;;  %2765 = vmatmul.bf16.gmra.mxu0 %v3859_v42  ;;  %v4724_v3 = vld [vmem:[%s7105_s0 + $0x2e4] sm:$0xf] }
 0x262   :  { %2934 = vmatmul.bf16.gmra.mxu1 %v3863_v28 }
 0x263   :  { %4612 = vmatmul.msk.bf16.gmra.mxu2 %vm1924_vm0, %v3867_v13  ;;  %v3062_v8 = vadd.f32 %v3061_v58, %v2893_v54  ;;  %v3883_v58 = vor.u32 %v4724_v3, %v3880_v39  ;;  %v3891_v13 = vor.u32 %v4725_v12, %v3888_v40  ;;  %v349_v54 = vld [vmem:[#allocation2 + $0x48] sm:$0xff]  ;;  %v4735_v3 = vld [vmem:[%s7105_s0 + $0x338] sm:$0xf0]  ;;  %v7132_v40 = vld [vmem:[#allocation3_spill] sm:$0xff] }
 0x264   :  { %v2557_v24 = vpop.f32.mrf.mxu3  ;;  %v3922_v39 = vld [vmem:[%s7105_s0 + $0x328] sm:$0xf] }
 0x265   :  { %v3211_v51 = vadd.f32 %v3062_v8, %v347_v63  ;;  %v2558_v0 = vadd.f32 %v2557_v24, %v5467_v61  ;;  %v3886_v61 = vld [vmem:[%s7105_s0 + $0x2e8] sm:$0xf] }
 0x266   :  { %v3064_v26 = vpop.f32.mrf.mxu2  ;;  %v2728_v7 = vpop.f32.mrf.mxu0  ;;  %v3887_v29 = vor.u32 %v4728_v32, %v3886_v61  ;;  %v4736_v32 = vld [vmem:[%s7105_s0 + $0x340] sm:$0xf0] }
 0x267   :  { %3276 = vst.msk [vmem:[#allocation2 + $0x38] sm:$0xff] %vm19_vm1, %v3211_v51  ;;  %v2727_v15 = vadd.f32 %v2726_v47, %v2558_v0  ;;  %v2897_v50 = vpop.f32.mrf.mxu1  ;;  %v3895_v47 = vor.u32 %v4729_v18, %v3894_v52  ;;  %v4732_v52 = vld [vmem:[%s7105_s0 + $0x324] sm:$0xf] }
 0x269   :  { %v2896_v57 = vadd.f32 %v2895_v19, %v2727_v15 }
 0x26b   :  { %v3065_v16 = vadd.f32 %v3064_v26, %v2896_v57  ;;  %v3908_v57 = vld [vmem:[%s7105_s0 + $0x334] sm:$0xf0] }
 0x26c   :  { %v2559_v48 = vpop.f32.mrf.mxu3 }
 0x26d   :  { %v3212_v21 = vadd.f32 %v3065_v16, %v348_v1  ;;  %v2560_v36 = vadd.f32 %v2559_v48, %v5495_v14  ;;  %v3916_v16 = vld [vmem:[%s7105_s0 + $0x33c] sm:$0xf0] }
 0x26e   :  { %v3066_v34 = vpop.f32.mrf.mxu2  ;;  %v2731_v42 = vpop.f32.mrf.mxu0 }
 0x26f   :  { %3277 = vst.msk [vmem:[#allocation2 + $0x40] sm:$0xff] %vm19_vm1, %v3212_v21  ;;  %v2729_v28 = vadd.f32 %v2728_v7, %v2560_v36  ;;  %v2900_v25 = vpop.f32.mrf.mxu1  ;;  %v350_v7 = vld [vmem:[#allocation2 + $0x50] sm:$0xff] }
 0x271   :  { %v2898_v19 = vadd.f32 %v2897_v50, %v2729_v28  ;;  %2601 = vmatmul.bf16.gmra.mxu3 %v3883_v58  ;;  %2770 = vmatmul.bf16.gmra.mxu0 %v3887_v29  ;;  %v4731_v50 = vld [vmem:[%s7105_s0 + $0x31c] sm:$0xf]  ;;  %v3923_v29 = vor.u32 %v4736_v32, %v3922_v39 }
 0x272   :  { %2939 = vmatmul.bf16.gmra.mxu1 %v3891_v13  ;;  %v3911_v36 = vor.u32 %v4731_v50, %v3908_v57  ;;  %v3936_v50 = vld [vmem:[%s7105_s0 + $0x36c] sm:$0xf0]  ;;  %v3942_v57 = vld [vmem:[%s7105_s0 + $0x358] sm:$0xf]  ;;  %v4739_v32 = vld [vmem:[%s7105_s0 + $0x35c] sm:$0xf] }
 0x273   :  { %4613 = vmatmul.msk.bf16.gmra.mxu2 %vm1924_vm0, %v3895_v47  ;;  %v3067_v63 = vadd.f32 %v3066_v34, %v2898_v19 }
 0x274   :  { %v2562_v8 = vpop.f32.mrf.mxu3 }
 0x275   :  { %v3213_v14 = vadd.f32 %v3067_v63, %v349_v54  ;;  %v2563_v24 = vadd.f32 %v2562_v8, %v5499_v23  ;;  %v3914_v23 = vld [vmem:[%s7105_s0 + $0x320] sm:$0xf]  ;;  %v7133_v8 = vld [vmem:[#allocation4_spill] sm:$0xff] }
 0x276   :  { %v3069_v51 = vpop.f32.mrf.mxu2  ;;  %v2733_v0 = vpop.f32.mrf.mxu0  ;;  %v3915_v34 = vor.u32 %v4735_v3, %v3914_v23  ;;  %v4742_v23 = vld [vmem:[%s7105_s0 + $0x370] sm:$0xf0]  ;;  %v3950_v3 = vld [vmem:[%s7105_s0 + $0x360] sm:$0xf] }
 0x277   :  { %3278 = vst.msk [vmem:[#allocation2 + $0x48] sm:$0xff] %vm19_vm1, %v3213_v14  ;;  %v2732_v26 = vadd.f32 %v2731_v42, %v2563_v24  ;;  %v2902_v15 = vpop.f32.mrf.mxu1  ;;  %v3919_v42 = vor.u32 %v4732_v52, %v3916_v16  ;;  %v3944_v52 = vld [vmem:[%s7105_s0 + $0x374] sm:$0xf0] }
 0x279   :  { %v2901_v1 = vadd.f32 %v2900_v25, %v2732_v26  ;;  %v351_v25 = vld [vmem:[#allocation2 + $0x58] sm:$0xff] }
 0x27b   :  { %v3070_v61 = vadd.f32 %v3069_v51, %v2901_v1 }
 0x27c   :  { %v2564_v18 = vpop.f32.mrf.mxu3 }
 0x27d   :  { %v3214_v12 = vadd.f32 %v3070_v61, %v350_v7  ;;  %v2565_v48 = vadd.f32 %v2564_v18, %v7132_v40  ;;  %v4743_v61 = vld [vmem:[%s7105_s0 + $0x378] sm:$0xf0] }
 0x27e   :  { %v3071_v21 = vpop.f32.mrf.mxu2  ;;  %v2736_v58 = vpop.f32.mrf.mxu0 }
 0x27f   :  { %3279 = vst.msk [vmem:[#allocation2 + $0x50] sm:$0xff] %vm19_vm1, %v3214_v12  ;;  %v2734_v47 = vadd.f32 %v2733_v0, %v2565_v48  ;;  %v2905_v13 = vpop.f32.mrf.mxu1  ;;  %v352_v0 = vld [vmem:[#allocation2 + $0x60] sm:$0xff]  ;;  %v7134_v12 = vld [vmem:[#allocation5_spill] sm:$0xff] }
 0x281   :  { %v2903_v28 = vadd.f32 %v2902_v15, %v2734_v47  ;;  %2606 = vmatmul.bf16.gmra.mxu3 %v3911_v36  ;;  %2775 = vmatmul.bf16.gmra.mxu0 %v3915_v34  ;;  %v4738_v15 = vld [vmem:[%s7105_s0 + $0x354] sm:$0xf]  ;;  %v3943_v36 = vor.u32 %v4742_v23, %v3942_v57  ;;  %v4749_v57 = vld [vmem:[%s7105_s0 + $0x3a8] sm:$0xf0]  ;;  %v3978_v23 = vld [vmem:[%s7105_s0 + $0x398] sm:$0xf] }
 0x282   :  { %2944 = vmatmul.bf16.gmra.mxu1 %v3919_v42 }
 0x283   :  { %4614 = vmatmul.msk.bf16.gmra.mxu2 %vm1924_vm0, %v3923_v29  ;;  %v3072_v19 = vadd.f32 %v3071_v21, %v2903_v28  ;;  %v3939_v21 = vor.u32 %v4738_v15, %v3936_v50  ;;  %v3947_v29 = vor.u32 %v4739_v32, %v3944_v52  ;;  %v353_v28 = vld [vmem:[#allocation2 + $0x68] sm:$0xff]  ;;  %v3970_v50 = vld [vmem:[%s7105_s0 + $0x390] sm:$0xf] }
 0x284   :  { %v2567_v54 = vpop.f32.mrf.mxu3  ;;  %v3964_v15 = vld [vmem:[%s7105_s0 + $0x3a4] sm:$0xf0]  ;;  %v3972_v32 = vld [vmem:[%s7105_s0 + $0x3ac] sm:$0xf0] }
 0x285   :  { %v3215_v63 = vadd.f32 %v3072_v19, %v351_v25  ;;  %v2568_v14 = vadd.f32 %v2567_v54, %v7133_v8 }
 0x286   :  { %v3074_v24 = vpop.f32.mrf.mxu2  ;;  %v2738_v51 = vpop.f32.mrf.mxu0 }
 0x287   :  { %3280 = vst.msk [vmem:[#allocation2 + $0x58] sm:$0xff] %vm19_vm1, %v3215_v63  ;;  %v2737_v26 = vadd.f32 %v2736_v58, %v2568_v14  ;;  %v2907_v7 = vpop.f32.mrf.mxu1  ;;  %v3951_v58 = vor.u32 %v4743_v61, %v3950_v3  ;;  %v7135_v63 = vld [vmem:[#allocation6_spill] sm:$0xff]  ;;  %v4746_v61 = vld [vmem:[%s7105_s0 + $0x394] sm:$0xf] }
 0x289   :  { %v2906_v1 = vadd.f32 %v2905_v13, %v2737_v26 }
 0x28b   :  { %v3075_v39 = vadd.f32 %v3074_v24, %v2906_v1 }
 0x28c   :  { %v2569_v16 = vpop.f32.mrf.mxu3 }
 0x28d   :  { %v3216_v18 = vadd.f32 %v3075_v39, %v352_v0  ;;  %v2570_v40 = vadd.f32 %v2569_v16, %v7134_v12  ;;  %v4750_v39 = vld [vmem:[%s7105_s0 + $0x3b0] sm:$0xf0] }
 0x28e   :  { %v3076_v48 = vpop.f32.mrf.mxu2  ;;  %v2741_v34 = vpop.f32.mrf.mxu0 }
 0x28f   :  { %3281 = vst.msk [vmem:[#allocation2 + $0x60] sm:$0xff] %vm19_vm1, %v3216_v18  ;;  %v2739_v42 = vadd.f32 %v2738_v51, %v2570_v40  ;;  %v2910_v47 = vpop.f32.mrf.mxu1  ;;  %v354_v51 = vld [vmem:[#allocation2 + $0x70] sm:$0xff]  ;;  %v7136_v18 = vld [vmem:[#allocation7_spill] sm:$0xff] }
 0x291   :  { %v2908_v13 = vadd.f32 %v2907_v7, %v2739_v42  ;;  %2611 = vmatmul.bf16.gmra.mxu3 %v3939_v21  ;;  %2780 = vmatmul.bf16.gmra.mxu0 %v3943_v36  ;;  %v4745_v7 = vld [vmem:[%s7105_s0 + $0x38c] sm:$0xf]  ;;  %v3971_v21 = vor.u32 %v4749_v57, %v3970_v50  ;;  %v4756_v50 = vld [vmem:[%s7105_s0 + $0x3e0] sm:$0xf0]  ;;  %v4006_v57 = vld [vmem:[%s7105_s0 + $0x3d0] sm:$0xf] }
 0x292   :  { %2949 = vmatmul.bf16.gmra.mxu1 %v3947_v29 }
 0x293   :  { %4615 = vmatmul.msk.bf16.gmra.mxu2 %vm1924_vm0, %v3951_v58  ;;  %v3077_v25 = vadd.f32 %v3076_v48, %v2908_v13  ;;  %v3967_v48 = vor.u32 %v4745_v7, %v3964_v15  ;;  %v3975_v58 = vor.u32 %v4746_v61, %v3972_v32  ;;  %v355_v13 = vld [vmem:[#allocation2 + $0x78] sm:$0xff]  ;;  %v3992_v7 = vld [vmem:[%s7105_s0 + $0x3dc] sm:$0xf0]  ;;  %v3998_v15 = vld [vmem:[%s7105_s0 + $0x3c8] sm:$0xf] }
 0x294   :  { %v2572_v19 = vpop.f32.mrf.mxu3  ;;  %v4000_v61 = vld [vmem:[%s7105_s0 + $0x3e4] sm:$0xf0] }
 0x295   :  { %v3217_v54 = vadd.f32 %v3077_v25, %v353_v28  ;;  %v2573_v8 = vadd.f32 %v2572_v19, %v7135_v63 }
 0x296   :  { %v3079_v14 = vpop.f32.mrf.mxu2  ;;  %v2743_v24 = vpop.f32.mrf.mxu0 }
 0x297   :  { %3282 = vst.msk [vmem:[#allocation2 + $0x68] sm:$0xff] %vm19_vm1, %v3217_v54  ;;  %v2742_v26 = vadd.f32 %v2741_v34, %v2573_v8  ;;  %v2912_v0 = vpop.f32.mrf.mxu1  ;;  %v3979_v34 = vor.u32 %v4750_v39, %v3978_v23  ;;  %v7137_v54 = vld [vmem:[#allocation8_spill] sm:$0xff] }
 0x298   :  { %v4753_v39 = vld [vmem:[%s7105_s0 + $0x3cc] sm:$0xf] }
 0x299   :  { %v2911_v1 = vadd.f32 %v2910_v47, %v2742_v26 }
 0x29b   :  { %v3080_v3 = vadd.f32 %v3079_v14, %v2911_v1 }
 0x29c   :  { %v2574_v52 = vpop.f32.mrf.mxu3 }
 0x29d   :  { %v3218_v16 = vadd.f32 %v3080_v3, %v354_v51  ;;  %v2575_v12 = vadd.f32 %v2574_v52, %v7136_v18  ;;  %v4757_v3 = vld [vmem:[%s7105_s0 + $0x3e8] sm:$0xf0] }
 0x29e   :  { %v3081_v40 = vpop.f32.mrf.mxu2  ;;  %v2746_v36 = vpop.f32.mrf.mxu0 }
 0x29f   :  { %3283 = vst.msk [vmem:[#allocation2 + $0x70] sm:$0xff] %vm19_vm1, %v3218_v16  ;;  %v2744_v29 = vadd.f32 %v2743_v24, %v2575_v12  ;;  %v2915_v42 = vpop.f32.mrf.mxu1  ;;  %v356_v24 = vld [vmem:[#allocation2 + $0x80] sm:$0xff]  ;;  %v7138_v16 = vld [vmem:[#allocation9_spill] sm:$0xff] }
 0x2a1   :  { %v2913_v47 = vadd.f32 %v2912_v0, %v2744_v29  ;;  %2616 = vmatmul.bf16.gmra.mxu3 %v3967_v48  ;;  %2785 = vmatmul.bf16.gmra.mxu0 %v3971_v21  ;;  %v4752_v0 = vld [vmem:[%s7105_s0 + $0x3c4] sm:$0xf]  ;;  %v3999_v48 = vor.u32 %v4756_v50, %v3998_v15  ;;  %v4763_v15 = vld [vmem:[%s7105_s0 + $0x418] sm:$0xf0]  ;;  %v4034_v50 = vld [vmem:[%s7105_s0 + $0x408] sm:$0xf] }
 0x2a2   :  { %2954 = vmatmul.bf16.gmra.mxu1 %v3975_v58 }
 0x2a3   :  { %4616 = vmatmul.msk.bf16.gmra.mxu2 %vm1924_vm0, %v3979_v34  ;;  %v3082_v28 = vadd.f32 %v3081_v40, %v2913_v47  ;;  %v3995_v40 = vor.u32 %v4752_v0, %v3992_v7  ;;  %v4003_v34 = vor.u32 %v4753_v39, %v4000_v61  ;;  %v357_v47 = vld [vmem:[#allocation2 + $0x88] sm:$0xff]  ;;  %v4020_v0 = vld [vmem:[%s7105_s0 + $0x414] sm:$0xf0]  ;;  %v4026_v7 = vld [vmem:[%s7105_s0 + $0x400] sm:$0xf] }
 0x2a4   :  { %v2577_v25 = vpop.f32.mrf.mxu3  ;;  %v4028_v39 = vld [vmem:[%s7105_s0 + $0x41c] sm:$0xf0] }
 0x2a5   :  { %v3219_v19 = vadd.f32 %v3082_v28, %v355_v13  ;;  %v2578_v63 = vadd.f32 %v2577_v25, %v7137_v54 }
 0x2a6   :  { %v3084_v8 = vpop.f32.mrf.mxu2  ;;  %v2748_v14 = vpop.f32.mrf.mxu0 }
 0x2a7   :  { %3284 = vst.msk [vmem:[#allocation2 + $0x78] sm:$0xff] %vm19_vm1, %v3219_v19  ;;  %v2747_v26 = vadd.f32 %v2746_v36, %v2578_v63  ;;  %v2917_v51 = vpop.f32.mrf.mxu1  ;;  %v4007_v36 = vor.u32 %v4757_v3, %v4006_v57  ;;  %v7139_v19 = vld [vmem:[#allocation10_spill] sm:$0xff]  ;;  %v4760_v3 = vld [vmem:[%s7105_s0 + $0x404] sm:$0xf] }
 0x2a9   :  { %v2916_v1 = vadd.f32 %v2915_v42, %v2747_v26 }
 0x2ab   :  { %v3085_v23 = vadd.f32 %v3084_v8, %v2916_v1 }
 0x2ac   :  { %v2579_v32 = vpop.f32.mrf.mxu3 }
 0x2ad   :  { %v3220_v52 = vadd.f32 %v3085_v23, %v356_v24  ;;  %v2580_v18 = vadd.f32 %v2579_v32, %v7138_v16  ;;  %v4764_v23 = vld [vmem:[%s7105_s0 + $0x420] sm:$0xf0] }
 0x2ae   :  { %v3086_v12 = vpop.f32.mrf.mxu2  ;;  %v2751_v21 = vpop.f32.mrf.mxu0 }
 0x2af   :  { %3285 = vst.msk [vmem:[#allocation2 + $0x80] sm:$0xff] %vm19_vm1, %v3220_v52  ;;  %v2749_v58 = vadd.f32 %v2748_v14, %v2580_v18  ;;  %v2920_v29 = vpop.f32.mrf.mxu1  ;;  %v358_v14 = vld [vmem:[#allocation2 + $0x90] sm:$0xff]  ;;  %v7140_v52 = vld [vmem:[#allocation11_spill] sm:$0xff] }
 0x2b1   :  { %v2918_v42 = vadd.f32 %v2917_v51, %v2749_v58  ;;  %2621 = vmatmul.bf16.gmra.mxu3 %v3995_v40  ;;  %2790 = vmatmul.bf16.gmra.mxu0 %v3999_v48  ;;  %v4759_v51 = vld [vmem:[%s7105_s0 + $0x3fc] sm:$0xf]  ;;  %v4027_v40 = vor.u32 %v4763_v15, %v4026_v7  ;;  %v4770_v7 = vld [vmem:[%s7105_s0 + $0x450] sm:$0xf0]  ;;  %v4062_v15 = vld [vmem:[%s7105_s0 + $0x440] sm:$0xf] }
 0x2b2   :  { %2959 = vmatmul.bf16.gmra.mxu1 %v4003_v34 }
 0x2b3   :  { %4617 = vmatmul.msk.bf16.gmra.mxu2 %vm1924_vm0, %v4007_v36  ;;  %v3087_v13 = vadd.f32 %v3086_v12, %v2918_v42  ;;  %v4023_v12 = vor.u32 %v4759_v51, %v4020_v0  ;;  %v4031_v36 = vor.u32 %v4760_v3, %v4028_v39  ;;  %v359_v42 = vld [vmem:[#allocation2 + $0x98] sm:$0xff]  ;;  %v4048_v51 = vld [vmem:[%s7105_s0 + $0x44c] sm:$0xf0] }
 0x2b4   :  { %v2582_v28 = vpop.f32.mrf.mxu3  ;;  %v4054_v0 = vld [vmem:[%s7105_s0 + $0x438] sm:$0xf] }
 0x2b5   :  { %v3221_v25 = vadd.f32 %v3087_v13, %v357_v47  ;;  %v2583_v54 = vadd.f32 %v2582_v28, %v7139_v19  ;;  %v4056_v3 = vld [vmem:[%s7105_s0 + $0x454] sm:$0xf0] }
 0x2b6   :  { %v3089_v63 = vpop.f32.mrf.mxu2  ;;  %v2753_v8 = vpop.f32.mrf.mxu0 }
 0x2b7   :  { %3286 = vst.msk [vmem:[#allocation2 + $0x88] sm:$0xff] %vm19_vm1, %v3221_v25  ;;  %v2752_v26 = vadd.f32 %v2751_v21, %v2583_v54  ;;  %v2922_v24 = vpop.f32.mrf.mxu1  ;;  %v4035_v21 = vor.u32 %v4764_v23, %v4034_v50  ;;  %v7141_v25 = vld [vmem:[#allocation12_spill] sm:$0xff]  ;;  %v4767_v23 = vld [vmem:[%s7105_s0 + $0x43c] sm:$0xf] }
 0x2b9   :  { %v2921_v1 = vadd.f32 %v2920_v29, %v2752_v26 }
 0x2bb   :  { %v3090_v57 = vadd.f32 %v3089_v63, %v2921_v1 }
 0x2bc   :  { %v2584_v61 = vpop.f32.mrf.mxu3 }
 0x2bd   :  { %v3222_v32 = vadd.f32 %v3090_v57, %v358_v14  ;;  %v2585_v16 = vadd.f32 %v2584_v61, %v7140_v52  ;;  %v4771_v57 = vld [vmem:[%s7105_s0 + $0x458] sm:$0xf0] }
 0x2be   :  { %v3091_v18 = vpop.f32.mrf.mxu2  ;;  %v2756_v48 = vpop.f32.mrf.mxu0 }
 0x2bf   :  { %3287 = vst.msk [vmem:[#allocation2 + $0x90] sm:$0xff] %vm19_vm1, %v3222_v32  ;;  %v2754_v34 = vadd.f32 %v2753_v8, %v2585_v16  ;;  %v2925_v58 = vpop.f32.mrf.mxu1  ;;  %v360_v8 = vld [vmem:[#allocation2 + $0xa0] sm:$0xff]  ;;  %v7142_v32 = vld [vmem:[#allocation13_spill] sm:$0xff] }
 0x2c1   :  { %v2923_v29 = vadd.f32 %v2922_v24, %v2754_v34  ;;  %2626 = vmatmul.bf16.gmra.mxu3 %v4023_v12  ;;  %2795 = vmatmul.bf16.gmra.mxu0 %v4027_v40  ;;  %v4766_v24 = vld [vmem:[%s7105_s0 + $0x434] sm:$0xf]  ;;  %v4055_v12 = vor.u32 %v4770_v7, %v4054_v0  ;;  %v4777_v0 = vld [vmem:[%s7105_s0 + $0x488] sm:$0xf0]  ;;  %v4090_v7 = vld [vmem:[%s7105_s0 + $0x478] sm:$0xf] }
 0x2c2   :  { %2964 = vmatmul.bf16.gmra.mxu1 %v4031_v36 }
 0x2c3   :  { %4618 = vmatmul.msk.bf16.gmra.mxu2 %vm1924_vm0, %v4035_v21  ;;  %v3092_v47 = vadd.f32 %v3091_v18, %v2923_v29  ;;  %v4051_v18 = vor.u32 %v4766_v24, %v4048_v51  ;;  %v4059_v21 = vor.u32 %v4767_v23, %v4056_v3  ;;  %v361_v29 = vld [vmem:[#allocation2 + $0xa8] sm:$0xff]  ;;  %v4082_v51 = vld [vmem:[%s7105_s0 + $0x470] sm:$0xf] }
 0x2c4   :  { %v2587_v13 = vpop.f32.mrf.mxu3  ;;  %v4076_v24 = vld [vmem:[%s7105_s0 + $0x484] sm:$0xf0]  ;;  %v4084_v23 = vld [vmem:[%s7105_s0 + $0x48c] sm:$0xf0] }
 0x2c5   :  { %v3223_v28 = vadd.f32 %v3092_v47, %v359_v42  ;;  %v2588_v19 = vadd.f32 %v2587_v13, %v7141_v25 }
 0x2c6   :  { %v3094_v54 = vpop.f32.mrf.mxu2  ;;  %v2758_v63 = vpop.f32.mrf.mxu0 }
 0x2c7   :  { %3288 = vst.msk [vmem:[#allocation2 + $0x98] sm:$0xff] %vm19_vm1, %v3223_v28  ;;  %v2757_v26 = vadd.f32 %v2756_v48, %v2588_v19  ;;  %v2927_v14 = vpop.f32.mrf.mxu1  ;;  %v4063_v48 = vor.u32 %v4771_v57, %v4062_v15  ;;  %v7143_v28 = vld [vmem:[#allocation14_spill] sm:$0xff]  ;;  %v4774_v57 = vld [vmem:[%s7105_s0 + $0x474] sm:$0xf] }
 0x2c9   :  { %v2926_v1 = vadd.f32 %v2925_v58, %v2757_v26 }
 0x2cb   :  { %v3095_v50 = vadd.f32 %v3094_v54, %v2926_v1 }
 0x2cc   :  { %v2589_v39 = vpop.f32.mrf.mxu3 }
 0x2cd   :  { %v3224_v61 = vadd.f32 %v3095_v50, %v360_v8  ;;  %v2590_v52 = vadd.f32 %v2589_v39, %v7142_v32  ;;  %v4778_v50 = vld [vmem:[%s7105_s0 + $0x490] sm:$0xf0] }
 0x2ce   :  { %v3096_v16 = vpop.f32.mrf.mxu2  ;;  %v2761_v40 = vpop.f32.mrf.mxu0 }
 0x2cf   :  { %3289 = vst.msk [vmem:[#allocation2 + $0xa0] sm:$0xff] %vm19_vm1, %v3224_v61  ;;  %v2759_v36 = vadd.f32 %v2758_v63, %v2590_v52  ;;  %v2930_v34 = vpop.f32.mrf.mxu1  ;;  %v362_v63 = vld [vmem:[#allocation2 + $0xb0] sm:$0xff]  ;;  %v7144_v61 = vld [vmem:[#allocation15_spill] sm:$0xff] }
 0x2d1   :  { %v2928_v58 = vadd.f32 %v2927_v14, %v2759_v36  ;;  %2631 = vmatmul.bf16.gmra.mxu3 %v4051_v18  ;;  %2800 = vmatmul.bf16.gmra.mxu0 %v4055_v12  ;;  %v4773_v14 = vld [vmem:[%s7105_s0 + $0x46c] sm:$0xf]  ;;  %v4083_v18 = vor.u32 %v4777_v0, %v4082_v51  ;;  %v4784_v51 = vld [vmem:[%s7105_s0 + $0x4c0] sm:$0xf0]  ;;  %v4118_v0 = vld [vmem:[%s7105_s0 + $0x4b0] sm:$0xf] }
 0x2d2   :  { %2969 = vmatmul.bf16.gmra.mxu1 %v4059_v21 }
 0x2d3   :  { %4619 = vmatmul.msk.bf16.gmra.mxu2 %vm1924_vm0, %v4063_v48  ;;  %v3097_v42 = vadd.f32 %v3096_v16, %v2928_v58  ;;  %v4079_v16 = vor.u32 %v4773_v14, %v4076_v24  ;;  %v4087_v48 = vor.u32 %v4774_v57, %v4084_v23  ;;  %v363_v58 = vld [vmem:[#allocation2 + $0xb8] sm:$0xff]  ;;  %v4104_v14 = vld [vmem:[%s7105_s0 + $0x4bc] sm:$0xf0]  ;;  %v4110_v24 = vld [vmem:[%s7105_s0 + $0x4a8] sm:$0xf] }
 0x2d4   :  { %v2592_v47 = vpop.f32.mrf.mxu3  ;;  %v4112_v57 = vld [vmem:[%s7105_s0 + $0x4c4] sm:$0xf0] }
 0x2d5   :  { %v3225_v13 = vadd.f32 %v3097_v42, %v361_v29  ;;  %v2593_v25 = vadd.f32 %v2592_v47, %v7143_v28 }
 0x2d6   :  { %v3099_v19 = vpop.f32.mrf.mxu2  ;;  %v2763_v54 = vpop.f32.mrf.mxu0 }
 0x2d7   :  { %3290 = vst.msk [vmem:[#allocation2 + $0xa8] sm:$0xff] %vm19_vm1, %v3225_v13  ;;  %v2762_v26 = vadd.f32 %v2761_v40, %v2593_v25  ;;  %v2932_v8 = vpop.f32.mrf.mxu1  ;;  %v4091_v40 = vor.u32 %v4778_v50, %v4090_v7  ;;  %v7145_v13 = vld [vmem:[#allocation16_spill] sm:$0xff] }
 0x2d8   :  { %v4781_v50 = vld [vmem:[%s7105_s0 + $0x4ac] sm:$0xf] }
 0x2d9   :  { %v2931_v1 = vadd.f32 %v2930_v34, %v2762_v26 }
 0x2db   :  { %v3100_v15 = vadd.f32 %v3099_v19, %v2931_v1 }
 0x2dc   :  { %v2594_v3 = vpop.f32.mrf.mxu3 }
 0x2dd   :  { %v3226_v39 = vadd.f32 %v3100_v15, %v362_v63  ;;  %v2595_v32 = vadd.f32 %v2594_v3, %v7144_v61  ;;  %v4785_v15 = vld [vmem:[%s7105_s0 + $0x4c8] sm:$0xf0] }
 0x2de   :  { %v3101_v52 = vpop.f32.mrf.mxu2  ;;  %v2766_v12 = vpop.f32.mrf.mxu0 }
 0x2df   :  { %3291 = vst.msk [vmem:[#allocation2 + $0xb0] sm:$0xff] %vm19_vm1, %v3226_v39  ;;  %v2764_v21 = vadd.f32 %v2763_v54, %v2595_v32  ;;  %v2935_v36 = vpop.f32.mrf.mxu1  ;;  %v364_v54 = vld [vmem:[#allocation2 + $0xc0] sm:$0xff]  ;;  %v7146_v39 = vld [vmem:[#allocation17_spill] sm:$0xff] }
 0x2e1   :  { %v2933_v34 = vadd.f32 %v2932_v8, %v2764_v21  ;;  %2636 = vmatmul.bf16.gmra.mxu3 %v4079_v16  ;;  %2805 = vmatmul.bf16.gmra.mxu0 %v4083_v18  ;;  %v4780_v8 = vld [vmem:[%s7105_s0 + $0x4a4] sm:$0xf]  ;;  %v4111_v16 = vor.u32 %v4784_v51, %v4110_v24  ;;  %v4791_v24 = vld [vmem:[%s7105_s0 + $0x4f8] sm:$0xf0]  ;;  %v4146_v51 = vld [vmem:[%s7105_s0 + $0x4e8] sm:$0xf] }
 0x2e2   :  { %2974 = vmatmul.bf16.gmra.mxu1 %v4087_v48 }
 0x2e3   :  { %4620 = vmatmul.msk.bf16.gmra.mxu2 %vm1924_vm0, %v4091_v40  ;;  %v3102_v29 = vadd.f32 %v3101_v52, %v2933_v34  ;;  %v4107_v52 = vor.u32 %v4780_v8, %v4104_v14  ;;  %v4115_v40 = vor.u32 %v4781_v50, %v4112_v57  ;;  %v365_v34 = vld [vmem:[#allocation2 + $0xc8] sm:$0xff]  ;;  %v4132_v8 = vld [vmem:[%s7105_s0 + $0x4f4] sm:$0xf0]  ;;  %v4138_v14 = vld [vmem:[%s7105_s0 + $0x4e0] sm:$0xf] }
 0x2e4   :  { %v2597_v42 = vpop.f32.mrf.mxu3  ;;  %v4140_v50 = vld [vmem:[%s7105_s0 + $0x4fc] sm:$0xf0] }
 0x2e5   :  { %v3227_v47 = vadd.f32 %v3102_v29, %v363_v58  ;;  %v2598_v28 = vadd.f32 %v2597_v42, %v7145_v13 }
 0x2e6   :  { %v3104_v25 = vpop.f32.mrf.mxu2  ;;  %v2768_v19 = vpop.f32.mrf.mxu0 }
 0x2e7   :  { %3292 = vst.msk [vmem:[#allocation2 + $0xb8] sm:$0xff] %vm19_vm1, %v3227_v47  ;;  %v2767_v26 = vadd.f32 %v2766_v12, %v2598_v28  ;;  %v2937_v63 = vpop.f32.mrf.mxu1  ;;  %v4119_v12 = vor.u32 %v4785_v15, %v4118_v0  ;;  %v7147_v47 = vld [vmem:[#allocation18_spill] sm:$0xff]  ;;  %v4788_v15 = vld [vmem:[%s7105_s0 + $0x4e4] sm:$0xf] }
 0x2e9   :  { %v2936_v1 = vadd.f32 %v2935_v36, %v2767_v26 }
 0x2eb   :  { %v3105_v7 = vadd.f32 %v3104_v25, %v2936_v1 }
 0x2ec   :  { %v2599_v23 = vpop.f32.mrf.mxu3 }
 0x2ed   :  { %v3228_v3 = vadd.f32 %v3105_v7, %v364_v54  ;;  %v2600_v61 = vadd.f32 %v2599_v23, %v7146_v39  ;;  %v4792_v7 = vld [vmem:[%s7105_s0 + $0x500] sm:$0xf0] }
 0x2ee   :  { %v3106_v32 = vpop.f32.mrf.mxu2  ;;  %v2771_v18 = vpop.f32.mrf.mxu0 }
 0x2ef   :  { %3293 = vst.msk [vmem:[#allocation2 + $0xc0] sm:$0xff] %vm19_vm1, %v3228_v3  ;;  %v2769_v48 = vadd.f32 %v2768_v19, %v2600_v61  ;;  %v2940_v21 = vpop.f32.mrf.mxu1  ;;  %v366_v19 = vld [vmem:[#allocation2 + $0xd0] sm:$0xff]  ;;  %v7148_v3 = vld [vmem:[#allocation19_spill] sm:$0xff] }
 0x2f1   :  { %v2938_v36 = vadd.f32 %v2937_v63, %v2769_v48  ;;  %2641 = vmatmul.bf16.gmra.mxu3 %v4107_v52  ;;  %2810 = vmatmul.bf16.gmra.mxu0 %v4111_v16  ;;  %v4787_v63 = vld [vmem:[%s7105_s0 + $0x4dc] sm:$0xf]  ;;  %v4139_v52 = vor.u32 %v4791_v24, %v4138_v14  ;;  %v4798_v14 = vld [vmem:[%s7105_s0 + $0x530] sm:$0xf0]  ;;  %v4174_v24 = vld [vmem:[%s7105_s0 + $0x520] sm:$0xf] }
 0x2f2   :  { %2979 = vmatmul.bf16.gmra.mxu1 %v4115_v40 }
 0x2f3   :  { %4621 = vmatmul.msk.bf16.gmra.mxu2 %vm1924_vm0, %v4119_v12  ;;  %v3107_v58 = vadd.f32 %v3106_v32, %v2938_v36  ;;  %v4135_v32 = vor.u32 %v4787_v63, %v4132_v8  ;;  %v4143_v12 = vor.u32 %v4788_v15, %v4140_v50  ;;  %v367_v36 = vld [vmem:[#allocation2 + $0xd8] sm:$0xff]  ;;  %v4160_v63 = vld [vmem:[%s7105_s0 + $0x52c] sm:$0xf0] }
 0x2f4   :  { %v2602_v29 = vpop.f32.mrf.mxu3  ;;  %v4166_v8 = vld [vmem:[%s7105_s0 + $0x518] sm:$0xf] }
 0x2f5   :  { %v3229_v42 = vadd.f32 %v3107_v58, %v365_v34  ;;  %v2603_v13 = vadd.f32 %v2602_v29, %v7147_v47  ;;  %v4168_v15 = vld [vmem:[%s7105_s0 + $0x534] sm:$0xf0] }
 0x2f6   :  { %v3109_v28 = vpop.f32.mrf.mxu2  ;;  %v2773_v25 = vpop.f32.mrf.mxu0 }
 0x2f7   :  { %3294 = vst.msk [vmem:[#allocation2 + $0xc8] sm:$0xff] %vm19_vm1, %v3229_v42  ;;  %v2772_v26 = vadd.f32 %v2771_v18, %v2603_v13  ;;  %v2942_v54 = vpop.f32.mrf.mxu1  ;;  %v4147_v18 = vor.u32 %v4792_v7, %v4146_v51  ;;  %v7149_v42 = vld [vmem:[#allocation20_spill] sm:$0xff]  ;;  %v4795_v7 = vld [vmem:[%s7105_s0 + $0x51c] sm:$0xf] }
 0x2f9   :  { %v2941_v1 = vadd.f32 %v2940_v21, %v2772_v26 }
 0x2fb   :  { %v3110_v0 = vadd.f32 %v3109_v28, %v2941_v1 }
 0x2fc   :  { %v2604_v57 = vpop.f32.mrf.mxu3 }
 0x2fd   :  { %v3230_v23 = vadd.f32 %v3110_v0, %v366_v19  ;;  %v2605_v39 = vadd.f32 %v2604_v57, %v7148_v3  ;;  %v4799_v0 = vld [vmem:[%s7105_s0 + $0x538] sm:$0xf0] }
 0x2fe   :  { %v3111_v61 = vpop.f32.mrf.mxu2  ;;  %v2776_v16 = vpop.f32.mrf.mxu0 }
 0x2ff   :  { %3295 = vst.msk [vmem:[#allocation2 + $0xd0] sm:$0xff] %vm19_vm1, %v3230_v23  ;;  %v2774_v40 = vadd.f32 %v2773_v25, %v2605_v39  ;;  %v2945_v48 = vpop.f32.mrf.mxu1  ;;  %v368_v25 = vld [vmem:[#allocation2 + $0xe0] sm:$0xff]  ;;  %v7150_v23 = vld [vmem:[#allocation21_spill] sm:$0xff] }
 0x301   :  { %v2943_v21 = vadd.f32 %v2942_v54, %v2774_v40  ;;  %2646 = vmatmul.bf16.gmra.mxu3 %v4135_v32  ;;  %2815 = vmatmul.bf16.gmra.mxu0 %v4139_v52  ;;  %v4794_v54 = vld [vmem:[%s7105_s0 + $0x514] sm:$0xf]  ;;  %v4167_v32 = vor.u32 %v4798_v14, %v4166_v8  ;;  %v4805_v8 = vld [vmem:[%s7105_s0 + $0x568] sm:$0xf0]  ;;  %v4202_v14 = vld [vmem:[%s7105_s0 + $0x558] sm:$0xf] }
 0x302   :  { %2984 = vmatmul.bf16.gmra.mxu1 %v4143_v12 }
 0x303   :  { %4622 = vmatmul.msk.bf16.gmra.mxu2 %vm1924_vm0, %v4147_v18  ;;  %v3112_v34 = vadd.f32 %v3111_v61, %v2943_v21  ;;  %v4163_v61 = vor.u32 %v4794_v54, %v4160_v63  ;;  %v4171_v18 = vor.u32 %v4795_v7, %v4168_v15  ;;  %v369_v21 = vld [vmem:[#allocation2 + $0xe8] sm:$0xff]  ;;  %v4194_v63 = vld [vmem:[%s7105_s0 + $0x550] sm:$0xf] }
 0x304   :  { %v2607_v58 = vpop.f32.mrf.mxu3  ;;  %v4188_v54 = vld [vmem:[%s7105_s0 + $0x564] sm:$0xf0]  ;;  %v4196_v7 = vld [vmem:[%s7105_s0 + $0x56c] sm:$0xf0] }
 0x305   :  { %v3231_v29 = vadd.f32 %v3112_v34, %v367_v36  ;;  %v2608_v47 = vadd.f32 %v2607_v58, %v7149_v42 }
 0x306   :  { %v3114_v13 = vpop.f32.mrf.mxu2  ;;  %v2778_v28 = vpop.f32.mrf.mxu0 }
 0x307   :  { %3296 = vst.msk [vmem:[#allocation2 + $0xd8] sm:$0xff] %vm19_vm1, %v3231_v29  ;;  %v2777_v26 = vadd.f32 %v2776_v16, %v2608_v47  ;;  %v2947_v19 = vpop.f32.mrf.mxu1  ;;  %v4175_v16 = vor.u32 %v4799_v0, %v4174_v24  ;;  %v7151_v29 = vld [vmem:[#allocation22_spill] sm:$0xff]  ;;  %v4802_v0 = vld [vmem:[%s7105_s0 + $0x554] sm:$0xf] }
 0x309   :  { %v2946_v1 = vadd.f32 %v2945_v48, %v2777_v26 }
 0x30b   :  { %v3115_v51 = vadd.f32 %v3114_v13, %v2946_v1 }
 0x30c   :  { %v2609_v50 = vpop.f32.mrf.mxu3 }
 0x30d   :  { %v3232_v57 = vadd.f32 %v3115_v51, %v368_v25  ;;  %v2610_v3 = vadd.f32 %v2609_v50, %v7150_v23  ;;  %v4806_v51 = vld [vmem:[%s7105_s0 + $0x570] sm:$0xf0] }
 0x30e   :  { %v3116_v39 = vpop.f32.mrf.mxu2  ;;  %v2781_v52 = vpop.f32.mrf.mxu0 }
 0x30f   :  { %3297 = vst.msk [vmem:[#allocation2 + $0xe0] sm:$0xff] %vm19_vm1, %v3232_v57  ;;  %v2779_v12 = vadd.f32 %v2778_v28, %v2610_v3  ;;  %v2950_v40 = vpop.f32.mrf.mxu1  ;;  %v370_v28 = vld [vmem:[#allocation2 + $0xf0] sm:$0xff] }
 0x311   :  { %v2948_v48 = vadd.f32 %v2947_v19, %v2779_v12  ;;  %2651 = vmatmul.bf16.gmra.mxu3 %v4163_v61  ;;  %2820 = vmatmul.bf16.gmra.mxu0 %v4167_v32  ;;  %v4801_v19 = vld [vmem:[%s7105_s0 + $0x54c] sm:$0xf]  ;;  %v4203_v32 = vor.u32 %v4806_v51, %v4202_v14 }
 0x312   :  { %2989 = vmatmul.bf16.gmra.mxu1 %v4171_v18  ;;  %v4191_v3 = vor.u32 %v4801_v19, %v4188_v54  ;;  %v4813_v54 = vld [vmem:[%s7105_s0 + $0x5a8] sm:$0xf0] }
 0x313   :  { %4623 = vmatmul.msk.bf16.gmra.mxu2 %vm1924_vm0, %v4175_v16  ;;  %v3117_v36 = vadd.f32 %v3116_v39, %v2948_v48  ;;  %v4195_v39 = vor.u32 %v4805_v8, %v4194_v63  ;;  %v4809_v63 = vld [vmem:[%s7105_s0 + $0x58c] sm:$0xf]  ;;  %v4224_v8 = vld [vmem:[%s7105_s0 + $0x5a4] sm:$0xf0] }
 0x314   :  { %v2612_v34 = vpop.f32.mrf.mxu3 }
 0x315   :  { %v3233_v58 = vadd.f32 %v3117_v36, %v369_v21  ;;  %v2613_v42 = vadd.f32 %v2612_v34, %v7151_v29 }
 0x316   :  { %v3119_v47 = vpop.f32.mrf.mxu2  ;;  %v2783_v13 = vpop.f32.mrf.mxu0 }
 0x317   :  { %3298 = vst.msk [vmem:[#allocation2 + $0xe8] sm:$0xff] %vm19_vm1, %v3233_v58  ;;  %v2782_v26 = vadd.f32 %v2781_v52, %v2613_v42  ;;  %v2952_v25 = vpop.f32.mrf.mxu1  ;;  %v4199_v52 = vor.u32 %v4802_v0, %v4196_v7 }
 0x319   :  { %v2951_v1 = vadd.f32 %v2950_v40, %v2782_v26  ;;  %v371_v40 = vld [vmem:[#allocation2 + $0xf8] sm:$0xff]  ;;  %v4808_v26 = vld [vmem:[%s7105_s0 + $0x584] sm:$0xf] }
 0x31b   :  { %v3120_v24 = vadd.f32 %v3119_v47, %v2951_v1  ;;  %v372_v47 = vld [vmem:[#allocation2 + $0x100] sm:$0xff]  ;;  %v4230_v1 = vld [vmem:[%s7105_s0 + $0x590] sm:$0xf] }
 0x31c   :  { %v2614_v15 = vpop.f32.mrf.mxu3 }
 0x31d   :  { %v3234_v50 = vadd.f32 %v3120_v24, %v370_v28  ;;  %v2615_v57 = vadd.f32 %v2614_v15, %v5889_v62  ;;  %v4812_v28 = vld [vmem:[%s7105_s0 + $0x5a0] sm:$0xf0] }
 0x31e   :  { %v3121_v23 = vpop.f32.mrf.mxu2  ;;  %v2786_v61 = vpop.f32.mrf.mxu0 }
 0x31f   :  { %3299 = vst.msk [vmem:[#allocation2 + $0xf0] sm:$0xff] %vm19_vm1, %v3234_v50  ;;  %v2784_v16 = vadd.f32 %v2783_v13, %v2615_v57  ;;  %v2955_v18 = vpop.f32.mrf.mxu1  ;;  %v4231_v57 = vor.u32 %v4813_v54, %v4230_v1 }
 0x321   :  { %v2953_v12 = vadd.f32 %v2952_v25, %v2784_v16  ;;  %2656 = vmatmul.bf16.gmra.mxu3 %v4191_v3  ;;  %2825 = vmatmul.bf16.gmra.mxu0 %v4195_v39  ;;  %v4216_v25 = vld [vmem:[%s7105_s0 + $0x59c] sm:$0xf0] }
 0x322   :  { %2994 = vmatmul.bf16.gmra.mxu1 %v4199_v52  ;;  %v4219_v7 = vor.u32 %v4808_v26, %v4216_v25  ;;  %v4816_v26 = vld [vmem:[%s7105_s0 + $0x5c4] sm:$0xf]  ;;  %v4252_v25 = vld [vmem:[%s7105_s0 + $0x5dc] sm:$0xf0] }
 0x323   :  { %4624 = vmatmul.msk.bf16.gmra.mxu2 %vm1924_vm0, %v4203_v32  ;;  %v3122_v48 = vadd.f32 %v3121_v23, %v2953_v12  ;;  %v4227_v23 = vor.u32 %v4809_v63, %v4224_v8  ;;  %v373_v32 = vld [vmem:[#allocation2 + $0x108] sm:$0xff] }
 0x324   :  { %v2617_v21 = vpop.f32.mrf.mxu3 }
 0x325   :  { %v3235_v62 = vadd.f32 %v3122_v48, %v371_v40  ;;  %v2618_v36 = vadd.f32 %v2617_v21, %v5896_v55  ;;  %v4222_v55 = vld [vmem:[%s7105_s0 + $0x588] sm:$0xf] }
 0x326   :  { %v3124_v34 = vpop.f32.mrf.mxu2  ;;  %v2788_v58 = vpop.f32.mrf.mxu0  ;;  %v4223_v15 = vor.u32 %v4812_v28, %v4222_v55 }
 0x327   :  { %3300 = vst.msk [vmem:[#allocation2 + $0xf8] sm:$0xff] %vm19_vm1, %v3235_v62  ;;  %v2787_v29 = vadd.f32 %v2786_v61, %v2618_v36  ;;  %v2957_v42 = vpop.f32.mrf.mxu1  ;;  %v374_v62 = vld [vmem:[#allocation2 + $0x110] sm:$0xff] }
 0x329   :  { %v2956_v13 = vadd.f32 %v2955_v18, %v2787_v29  ;;  %v4819_v29 = vld [vmem:[%s7105_s0 + $0x5d8] sm:$0xf0] }
 0x32b   :  { %v3125_v19 = vadd.f32 %v3124_v34, %v2956_v13  ;;  %v4815_v34 = vld [vmem:[%s7105_s0 + $0x5bc] sm:$0xf]  ;;  %v4820_v13 = vld [vmem:[%s7105_s0 + $0x5e0] sm:$0xf0] }
 0x32c   :  { %v2619_v14 = vpop.f32.mrf.mxu3 }
 0x32d   :  { %v3236_v24 = vadd.f32 %v3125_v19, %v372_v47  ;;  %v2620_v51 = vadd.f32 %v2619_v14, %v5926_v27 }
 0x32e   :  { %v3126_v0 = vpop.f32.mrf.mxu2  ;;  %v2791_v50 = vpop.f32.mrf.mxu0 }
 0x32f   :  { %3301 = vst.msk [vmem:[#allocation2 + $0x100] sm:$0xff] %vm19_vm1, %v3236_v24  ;;  %v2789_v3 = vadd.f32 %v2788_v58, %v2620_v51  ;;  %v2960_v39 = vpop.f32.mrf.mxu1  ;;  %v4244_v58 = vld [vmem:[%s7105_s0 + $0x5d4] sm:$0xf0]  ;;  %v4255_v24 = vor.u32 %v4816_v26, %v4252_v25 }
 0x330   :  { %v4247_v54 = vor.u32 %v4815_v34, %v4244_v58 }
 0x331   :  { %v2958_v61 = vadd.f32 %v2957_v42, %v2789_v3  ;;  %2661 = vmatmul.bf16.gmra.mxu3 %v4219_v7  ;;  %2830 = vmatmul.bf16.gmra.mxu0 %v4223_v15  ;;  %v4258_v42 = vld [vmem:[%s7105_s0 + $0x5c8] sm:$0xf]  ;;  %v375_v15 = vld [vmem:[#allocation2 + $0x118] sm:$0xff] }
 0x332   :  { %2999 = vmatmul.bf16.gmra.mxu1 %v4227_v23  ;;  %v4259_v14 = vor.u32 %v4820_v13, %v4258_v42 }
 0x333   :  { %4625 = vmatmul.msk.bf16.gmra.mxu2 %vm1924_vm0, %v4231_v57  ;;  %v3127_v52 = vadd.f32 %v3126_v0, %v2958_v61 }
 0x334   :  { %v2622_v16 = vpop.f32.mrf.mxu3 }
 0x335   :  { %v3237_v27 = vadd.f32 %v3127_v52, %v373_v32  ;;  %v2623_v18 = vadd.f32 %v2622_v16, %v5933_v53  ;;  %v4250_v53 = vld [vmem:[%s7105_s0 + $0x5c0] sm:$0xf] }
 0x336   :  { %v3129_v12 = vpop.f32.mrf.mxu2  ;;  %v2793_v40 = vpop.f32.mrf.mxu0  ;;  %v4251_v63 = vor.u32 %v4819_v29, %v4250_v53  ;;  %v376_v52 = vld [vmem:[#allocation2 + $0x120] sm:$0xff] }
 0x337   :  { %3302 = vst.msk [vmem:[#allocation2 + $0x108] sm:$0xff] %vm19_vm1, %v3237_v27  ;;  %v2792_v48 = vadd.f32 %v2791_v50, %v2623_v18  ;;  %v2962_v21 = vpop.f32.mrf.mxu1  ;;  %v4822_v27 = vld [vmem:[%s7105_s0 + $0x5f4] sm:$0xf]  ;;  %v4272_v18 = vld [vmem:[%s7105_s0 + $0x60c] sm:$0xf0] }
 0x338   :  { %v4275_v42 = vor.u32 %v4822_v27, %v4272_v18 }
 0x339   :  { %v2961_v36 = vadd.f32 %v2960_v39, %v2792_v48 }
 0x33b   :  { %v3130_v47 = vadd.f32 %v3129_v12, %v2961_v36  ;;  %v4826_v12 = vld [vmem:[%s7105_s0 + $0x610] sm:$0xf0]  ;;  %v4280_v36 = vld [vmem:[%s7105_s0 + $0x614] sm:$0xf0] }
 0x33c   :  { %v2624_v55 = vpop.f32.mrf.mxu3 }
 0x33d   :  { %v3238_v28 = vadd.f32 %v3130_v47, %v374_v62  ;;  %v2625_v1 = vadd.f32 %v2624_v55, %v5963_v37  ;;  %v4823_v62 = vld [vmem:[%s7105_s0 + $0x5fc] sm:$0xf] }
 0x33e   :  { %v3131_v19 = vpop.f32.mrf.mxu2  ;;  %v2796_v8 = vpop.f32.mrf.mxu0  ;;  %v4283_v25 = vor.u32 %v4823_v62, %v4280_v36 }
 0x33f   :  { %3303 = vst.msk [vmem:[#allocation2 + $0x110] sm:$0xff] %vm19_vm1, %v3238_v28  ;;  %v2794_v51 = vadd.f32 %v2793_v40, %v2625_v1  ;;  %v2965_v0 = vpop.f32.mrf.mxu1  ;;  %v4286_v40 = vld [vmem:[%s7105_s0 + $0x600] sm:$0xf] }
 0x341   :  { %v2963_v7 = vadd.f32 %v2962_v21, %v2794_v51  ;;  %2666 = vmatmul.bf16.gmra.mxu3 %v4247_v54  ;;  %2835 = vmatmul.bf16.gmra.mxu0 %v4251_v63  ;;  %v4827_v21 = vld [vmem:[%s7105_s0 + $0x618] sm:$0xf0] }
 0x342   :  { %3004 = vmatmul.bf16.gmra.mxu1 %v4255_v24  ;;  %v4287_v26 = vor.u32 %v4827_v21, %v4286_v40 }
 0x343   :  { %4626 = vmatmul.msk.bf16.gmra.mxu2 %vm1924_vm0, %v4259_v14  ;;  %v3132_v50 = vadd.f32 %v3131_v19, %v2963_v7  ;;  %v377_v19 = vld [vmem:[#allocation2 + $0x128] sm:$0xff]  ;;  %v378_v7 = vld [vmem:[#allocation2 + $0x130] sm:$0xff] }
 0x344   :  { %v2627_v57 = vpop.f32.mrf.mxu3 }
 0x345   :  { %v3239_v37 = vadd.f32 %v3132_v50, %v375_v15  ;;  %v2628_v23 = vadd.f32 %v2627_v57, %v5970_v17  ;;  %v4278_v17 = vld [vmem:[%s7105_s0 + $0x5f8] sm:$0xf]  ;;  %v4829_v50 = vld [vmem:[%s7105_s0 + $0x62c] sm:$0xf]  ;;  %v4300_v57 = vld [vmem:[%s7105_s0 + $0x644] sm:$0xf0] }
 0x346   :  { %v3134_v3 = vpop.f32.mrf.mxu2  ;;  %v2798_v39 = vpop.f32.mrf.mxu0  ;;  %v4279_v47 = vor.u32 %v4826_v12, %v4278_v17  ;;  %v4303_v17 = vor.u32 %v4829_v50, %v4300_v57 }
 0x347   :  { %3304 = vst.msk [vmem:[#allocation2 + $0x118] sm:$0xff] %vm19_vm1, %v3239_v37  ;;  %v2797_v61 = vadd.f32 %v2796_v8, %v2628_v23  ;;  %v2967_v32 = vpop.f32.mrf.mxu1  ;;  %v4833_v37 = vld [vmem:[%s7105_s0 + $0x648] sm:$0xf0]  ;;  %v4314_v23 = vld [vmem:[%s7105_s0 + $0x638] sm:$0xf] }
 0x349   :  { %v2966_v16 = vadd.f32 %v2965_v0, %v2797_v61  ;;  %v4830_v61 = vld [vmem:[%s7105_s0 + $0x634] sm:$0xf] }
 0x34b   :  { %v3135_v48 = vadd.f32 %v3134_v3, %v2966_v16 }
 0x34c   :  { %v2629_v34 = vpop.f32.mrf.mxu3 }
 0x34d   :  { %v3240_v58 = vadd.f32 %v3135_v48, %v376_v52  ;;  %v2630_v53 = vadd.f32 %v2629_v34, %v6000_v11 }
 0x34e   :  { %v3136_v29 = vpop.f32.mrf.mxu2  ;;  %v2801_v13 = vpop.f32.mrf.mxu0 }
 0x34f   :  { %3305 = vst.msk [vmem:[#allocation2 + $0x120] sm:$0xff] %vm19_vm1, %v3240_v58  ;;  %v2799_v55 = vadd.f32 %v2798_v39, %v2630_v53  ;;  %v2970_v28 = vpop.f32.mrf.mxu1  ;;  %v4834_v39 = vld [vmem:[%s7105_s0 + $0x650] sm:$0xf0]  ;;  %v379_v58 = vld [vmem:[#allocation2 + $0x138] sm:$0xff] }
 0x350   :  { %v4315_v48 = vor.u32 %v4834_v39, %v4314_v23 }
 0x351   :  { %v2968_v1 = vadd.f32 %v2967_v32, %v2799_v55  ;;  %2671 = vmatmul.bf16.gmra.mxu3 %v4275_v42  ;;  %2840 = vmatmul.bf16.gmra.mxu0 %v4279_v47  ;;  %v4308_v32 = vld [vmem:[%s7105_s0 + $0x64c] sm:$0xf0]  ;;  %v380_v55 = vld [vmem:[#allocation2 + $0x140] sm:$0xff] }
 0x352   :  { %3009 = vmatmul.bf16.gmra.mxu1 %v4283_v25  ;;  %v4311_v21 = vor.u32 %v4830_v61, %v4308_v32  ;;  %v381_v32 = vld [vmem:[#allocation2 + $0x148] sm:$0xff] }
 0x353   :  { %4627 = vmatmul.msk.bf16.gmra.mxu2 %vm1924_vm0, %v4287_v26  ;;  %v3137_v54 = vadd.f32 %v3136_v29, %v2968_v1  ;;  %v4836_v1 = vld [vmem:[%s7105_s0 + $0x664] sm:$0xf] }
 0x354   :  { %v2632_v63 = vpop.f32.mrf.mxu3 }
 0x355   :  { %v3241_v11 = vadd.f32 %v3137_v54, %v377_v19  ;;  %v2633_v8 = vadd.f32 %v2632_v63, %v6007_v9  ;;  %v4306_v9 = vld [vmem:[%s7105_s0 + $0x630] sm:$0xf]  ;;  %v4328_v19 = vld [vmem:[%s7105_s0 + $0x67c] sm:$0xf0]  ;;  %v4840_v54 = vld [vmem:[%s7105_s0 + $0x680] sm:$0xf0] }
 0x356   :  { %v3139_v14 = vpop.f32.mrf.mxu2  ;;  %v2803_v24 = vpop.f32.mrf.mxu0  ;;  %v4307_v12 = vor.u32 %v4833_v37, %v4306_v9  ;;  %v4342_v63 = vld [vmem:[%s7105_s0 + $0x670] sm:$0xf]  ;;  %v4331_v50 = vor.u32 %v4836_v1, %v4328_v19 }
 0x357   :  { %3306 = vst.msk [vmem:[#allocation2 + $0x128] sm:$0xff] %vm19_vm1, %v3241_v11  ;;  %v2802_v51 = vadd.f32 %v2801_v13, %v2633_v8  ;;  %v2972_v0 = vpop.f32.mrf.mxu1  ;;  %v4841_v8 = vld [vmem:[%s7105_s0 + $0x688] sm:$0xf0] }
 0x358   :  { %v4343_v37 = vor.u32 %v4841_v8, %v4342_v63  ;;  %v383_v8 = vld [vmem:[#allocation2 + $0x158] sm:$0xff] }
 0x359   :  { %v2971_v15 = vadd.f32 %v2970_v28, %v2802_v51 }
 0x35b   :  { %v3140_v3 = vadd.f32 %v3139_v14, %v2971_v15  ;;  %v4837_v14 = vld [vmem:[%s7105_s0 + $0x66c] sm:$0xf] }
 0x35c   :  { %v2634_v52 = vpop.f32.mrf.mxu3 }
 0x35d   :  { %v3242_v16 = vadd.f32 %v3140_v3, %v378_v7  ;;  %v2635_v27 = vadd.f32 %v2634_v52, %v6037_v22 }
 0x35e   :  { %v3141_v18 = vpop.f32.mrf.mxu2  ;;  %v2806_v40 = vpop.f32.mrf.mxu0 }
 0x35f   :  { %3307 = vst.msk [vmem:[#allocation2 + $0x130] sm:$0xff] %vm19_vm1, %v3242_v16  ;;  %v2804_v62 = vadd.f32 %v2803_v24, %v2635_v27  ;;  %v2975_v36 = vpop.f32.mrf.mxu1  ;;  %v4336_v24 = vld [vmem:[%s7105_s0 + $0x684] sm:$0xf0] }
 0x360   :  { %v4339_v23 = vor.u32 %v4837_v14, %v4336_v24 }
 0x361   :  { %v2973_v34 = vadd.f32 %v2972_v0, %v2804_v62  ;;  %2676 = vmatmul.bf16.gmra.mxu3 %v4303_v17  ;;  %2845 = vmatmul.bf16.gmra.mxu0 %v4307_v12  ;;  %v4843_v62 = vld [vmem:[%s7105_s0 + $0x69c] sm:$0xf] }
 0x362   :  { %3014 = vmatmul.bf16.gmra.mxu1 %v4311_v21 }
 0x363   :  { %4628 = vmatmul.msk.bf16.gmra.mxu2 %vm1924_vm0, %v4315_v48  ;;  %v3142_v53 = vadd.f32 %v3141_v18, %v2973_v34  ;;  %v382_v48 = vld [vmem:[#allocation2 + $0x150] sm:$0xff]  ;;  %v4847_v34 = vld [vmem:[%s7105_s0 + $0x6b8] sm:$0xf0] }
 0x364   :  { %v2637_v29 = vpop.f32.mrf.mxu3 }
 0x365   :  { %v3243_v22 = vadd.f32 %v3142_v53, %v379_v58  ;;  %v2638_v42 = vadd.f32 %v2637_v29, %v6044_v5  ;;  %v4334_v5 = vld [vmem:[%s7105_s0 + $0x668] sm:$0xf]  ;;  %v4848_v29 = vld [vmem:[%s7105_s0 + $0x6c0] sm:$0xf0] }
 0x366   :  { %v3144_v47 = vpop.f32.mrf.mxu2  ;;  %v2808_v13 = vpop.f32.mrf.mxu0  ;;  %v4335_v57 = vor.u32 %v4840_v54, %v4334_v5  ;;  %v4370_v58 = vld [vmem:[%s7105_s0 + $0x6a8] sm:$0xf] }
 0x367   :  { %3308 = vst.msk [vmem:[#allocation2 + $0x138] sm:$0xff] %vm19_vm1, %v3243_v22  ;;  %v2807_v26 = vadd.f32 %v2806_v40, %v2638_v42  ;;  %v2977_v25 = vpop.f32.mrf.mxu1  ;;  %v4844_v22 = vld [vmem:[%s7105_s0 + $0x6a4] sm:$0xf]  ;;  %v4364_v42 = vld [vmem:[%s7105_s0 + $0x6bc] sm:$0xf0]  ;;  %v4371_v19 = vor.u32 %v4848_v29, %v4370_v58  ;;  %v385_v58 = vld [vmem:[#allocation2 + $0x168] sm:$0xff] }
 0x368   :  { %v4367_v5 = vor.u32 %v4844_v22, %v4364_v42 }
 0x369   :  { %v2976_v28 = vadd.f32 %v2975_v36, %v2807_v26  ;;  %v4356_v36 = vld [vmem:[%s7105_s0 + $0x6b4] sm:$0xf0] }
 0x36b   :  { %v3145_v11 = vadd.f32 %v3144_v47, %v2976_v28 }
 0x36c   :  { %v2639_v51 = vpop.f32.mrf.mxu3 }
 0x36d   :  { %v3244_v0 = vadd.f32 %v3145_v11, %v380_v55  ;;  %v2640_v7 = vadd.f32 %v2639_v51, %v6074_v33  ;;  %v4359_v55 = vor.u32 %v4843_v62, %v4356_v36 }
 0x36e   :  { %v3146_v15 = vpop.f32.mrf.mxu2  ;;  %v2811_v9 = vpop.f32.mrf.mxu0 }
 0x36f   :  { %3309 = vst.msk [vmem:[#allocation2 + $0x140] sm:$0xff] %vm19_vm1, %v3244_v0  ;;  %v2809_v3 = vadd.f32 %v2808_v13, %v2640_v7  ;;  %v2980_v39 = vpop.f32.mrf.mxu1 }
 0x371   :  { %v2978_v61 = vadd.f32 %v2977_v25, %v2809_v3  ;;  %2681 = vmatmul.bf16.gmra.mxu3 %v4331_v50  ;;  %2850 = vmatmul.bf16.gmra.mxu0 %v4335_v57  ;;  %v384_v57 = vld [vmem:[#allocation2 + $0x160] sm:$0xff]  ;;  %v4854_v3 = vld [vmem:[%s7105_s0 + $0x6f0] sm:$0xf0] }
 0x372   :  { %3019 = vmatmul.bf16.gmra.mxu1 %v4339_v23  ;;  %v4384_v23 = vld [vmem:[%s7105_s0 + $0x6ec] sm:$0xf0] }
 0x373   :  { %4629 = vmatmul.msk.bf16.gmra.mxu2 %vm1924_vm0, %v4343_v37  ;;  %v3147_v52 = vadd.f32 %v3146_v15, %v2978_v61  ;;  %v4850_v37 = vld [vmem:[%s7105_s0 + $0x6d4] sm:$0xf] }
 0x374   :  { %v2642_v16 = vpop.f32.mrf.mxu3 }
 0x375   :  { %v3245_v33 = vadd.f32 %v3147_v52, %v381_v32  ;;  %v2643_v27 = vadd.f32 %v2642_v16, %v6081_v10  ;;  %v4362_v10 = vld [vmem:[%s7105_s0 + $0x6a0] sm:$0xf]  ;;  %v4855_v32 = vld [vmem:[%s7105_s0 + $0x6f8] sm:$0xf0]  ;;  %v4392_v16 = vld [vmem:[%s7105_s0 + $0x6f4] sm:$0xf0] }
 0x376   :  { %v3149_v18 = vpop.f32.mrf.mxu2  ;;  %v2813_v17 = vpop.f32.mrf.mxu0  ;;  %v4363_v28 = vor.u32 %v4847_v34, %v4362_v10  ;;  %v4851_v52 = vld [vmem:[%s7105_s0 + $0x6dc] sm:$0xf] }
 0x377   :  { %3310 = vst.msk [vmem:[#allocation2 + $0x148] sm:$0xff] %vm19_vm1, %v3245_v33  ;;  %v2812_v12 = vadd.f32 %v2811_v9, %v2643_v27  ;;  %v2982_v40 = vpop.f32.mrf.mxu1  ;;  %v4395_v62 = vor.u32 %v4851_v52, %v4392_v16 }
 0x379   :  { %v2981_v21 = vadd.f32 %v2980_v39, %v2812_v12  ;;  %v4398_v39 = vld [vmem:[%s7105_s0 + $0x6e0] sm:$0xf]  ;;  %v4387_v12 = vor.u32 %v4850_v37, %v4384_v23 }
 0x37a   :  { %v388_v37 = vld [vmem:[#allocation2 + $0x180] sm:$0xff] }
 0x37b   :  { %v3150_v53 = vadd.f32 %v3149_v18, %v2981_v21  ;;  %v4399_v21 = vor.u32 %v4855_v32, %v4398_v39 }
 0x37c   :  { %v2644_v47 = vpop.f32.mrf.mxu3 }
 0x37d   :  { %v3246_v13 = vadd.f32 %v3150_v53, %v382_v48  ;;  %v2645_v26 = vadd.f32 %v2644_v47, %v6111_v35 }
 0x37e   :  { %v3151_v25 = vpop.f32.mrf.mxu2  ;;  %v2816_v1 = vpop.f32.mrf.mxu0 }
 0x37f   :  { %3311 = vst.msk [vmem:[#allocation2 + $0x150] sm:$0xff] %vm19_vm1, %v3246_v13  ;;  %v2814_v54 = vadd.f32 %v2813_v17, %v2645_v26  ;;  %v2985_v63 = vpop.f32.mrf.mxu1 }
 0x381   :  { %v2983_v11 = vadd.f32 %v2982_v40, %v2814_v54  ;;  %2686 = vmatmul.bf16.gmra.mxu3 %v4359_v55  ;;  %2855 = vmatmul.bf16.gmra.mxu0 %v4363_v28  ;;  %v386_v55 = vld [vmem:[#allocation2 + $0x170] sm:$0xff] }
 0x382   :  { %3024 = vmatmul.bf16.gmra.mxu1 %v4367_v5 }
 0x383   :  { %4630 = vmatmul.msk.bf16.gmra.mxu2 %vm1924_vm0, %v4371_v19  ;;  %v3152_v14 = vadd.f32 %v3151_v25, %v2983_v11 }
 0x384   :  { %v2647_v24 = vpop.f32.mrf.mxu3 }
 0x385   :  { %v3247_v35 = vadd.f32 %v3152_v14, %v383_v8  ;;  %v2648_v51 = vadd.f32 %v2647_v24, %v6118_v59  ;;  %v4390_v59 = vld [vmem:[%s7105_s0 + $0x6d8] sm:$0xf] }
 0x386   :  { %v3154_v0 = vpop.f32.mrf.mxu2  ;;  %v2818_v7 = vpop.f32.mrf.mxu0  ;;  %v4391_v40 = vor.u32 %v4854_v3, %v4390_v59  ;;  %v387_v14 = vld [vmem:[#allocation2 + $0x178] sm:$0xff] }
 0x387   :  { %3312 = vst.msk [vmem:[#allocation2 + $0x158] sm:$0xff] %vm19_vm1, %v3247_v35  ;;  %v2817_v15 = vadd.f32 %v2816_v1, %v2648_v51  ;;  %v2987_v50 = vpop.f32.mrf.mxu1 }
 0x389   :  { %v2986_v9 = vadd.f32 %v2985_v63, %v2817_v15 }
 0x38b   :  { %v3155_v61 = vadd.f32 %v3154_v0, %v2986_v9  ;;  %v7152_v0 = vld [vmem:[#allocation23_spill] sm:$0xff] }
 0x38c   :  { %v2649_v33 = vpop.f32.mrf.mxu3 }
 0x38d   :  { %v3248_v27 = vadd.f32 %v3155_v61, %v384_v57  ;;  %v2650_v18 = vadd.f32 %v2649_v33, %v6164_v49 }
 0x38e   :  { %v3156_v17 = vpop.f32.mrf.mxu2  ;;  %v2821_v48 = vpop.f32.mrf.mxu0 }
 0x38f   :  { %3313 = vst.msk [vmem:[#allocation2 + $0x160] sm:$0xff] %vm19_vm1, %v3248_v27  ;;  %v2819_v36 = vadd.f32 %v2818_v7, %v2650_v18  ;;  %v2990_v10 = vpop.f32.mrf.mxu1  ;;  %v389_v27 = vld [vmem:[#allocation2 + $0x188] sm:$0xff] }
 0x391   :  { %v2988_v34 = vadd.f32 %v2987_v50, %v2819_v36  ;;  %2691 = vmatmul.bf16.gmra.mxu3 %v4387_v12  ;;  %2860 = vmatmul.bf16.gmra.mxu0 %v4391_v40  ;;  %v3384_v36 = vld [vmem:[#allocation2 + $0x100] sm:$0xff] }
 0x392   :  { %3029 = vmatmul.bf16.gmra.mxu1 %v4395_v62  ;;  %v3336_v62 = vld [vmem:[#allocation2] sm:$0xff] }
 0x393   :  { %4631 = vmatmul.msk.bf16.gmra.mxu2 %vm1924_vm0, %v4399_v21  ;;  %v3157_v53 = vadd.f32 %v3156_v17, %v2988_v34  ;;  %v3352_v17 = vld [vmem:[#allocation2 + $0x80] sm:$0xff] }
 0x394   :  { %v2652_v29 = vpop.f32.mrf.mxu3 }
 0x395   :  { %v3249_v49 = vadd.f32 %v3157_v53, %v385_v58  ;;  %v2653_v22 = vadd.f32 %v2652_v29, %v6187_v46  ;;  %v6994_v53 = vld [vmem:[%s7106_s2] ss:$0 sm:$0xff] }
 0x396   :  { %v3159_v42 = vpop.f32.mrf.mxu2  ;;  %v2823_v47 = vpop.f32.mrf.mxu0 }
 0x397   :  { %3314 = vst.msk [vmem:[#allocation2 + $0x168] sm:$0xff] %vm19_vm1, %v3249_v49  ;;  %v2822_v13 = vadd.f32 %v2821_v48, %v2653_v22  ;;  %v2992_v26 = vpop.f32.mrf.mxu1 }
 0x399   :  { %v2991_v25 = vadd.f32 %v2990_v10, %v2822_v13 }
 0x39b   :  { %v3160_v28 = vadd.f32 %v3159_v42, %v2991_v25 }
 0x39c   :  { %v2654_v1 = vpop.f32.mrf.mxu3 }
 0x39d   :  { %v3250_v19 = vadd.f32 %v3160_v28, %v386_v55  ;;  %v2655_v5 = vadd.f32 %v2654_v1, %v6233_v43 }
 0x39e   :  { %v3161_v54 = vpop.f32.mrf.mxu2  ;;  %v2826_v63 = vpop.f32.mrf.mxu0 }
 0x39f   :  { %3315 = vst.msk [vmem:[#allocation2 + $0x170] sm:$0xff] %vm19_vm1, %v3250_v19  ;;  %v2824_v11 = vadd.f32 %v2823_v47, %v2655_v5  ;;  %v2995_v8 = vpop.f32.mrf.mxu1  ;;  %v390_v47 = vld [vmem:[#allocation2 + $0x190] sm:$0xff]  ;;  %v3337_v5 = vld [vmem:[#allocation2 + $0x8] sm:$0xff] }
 0x3a1   :  { %v2993_v46 = vadd.f32 %v2992_v26, %v2824_v11  ;;  %v3353_v26 = vld [vmem:[#allocation2 + $0x88] sm:$0xff] }
 0x3a3   :  { %v3162_v24 = vadd.f32 %v3161_v54, %v2993_v46  ;;  %v3385_v54 = vld [vmem:[#allocation2 + $0x108] sm:$0xff] }
 0x3a4   :  { %v2657_v35 = vpop.f32.mrf.mxu3 }
 0x3a5   :  { %v3251_v51 = vadd.f32 %v3162_v24, %v387_v14  ;;  %v2658_v7 = vadd.f32 %v2657_v35, %v7152_v0  ;;  %v391_v0 = vld [vmem:[#allocation2 + $0x198] sm:$0xff] }
 0x3a6   :  { %v3164_v15 = vpop.f32.mrf.mxu2  ;;  %v2828_v50 = vpop.f32.mrf.mxu0 }
 0x3a7   :  { %3316 = vst.msk [vmem:[#allocation2 + $0x178] sm:$0xff] %vm19_vm1, %v3251_v51  ;;  %v2827_v57 = vadd.f32 %v2826_v63, %v2658_v7  ;;  %v2997_v9 = vpop.f32.mrf.mxu1 }
 0x3a9   :  { %v2996_v43 = vadd.f32 %v2995_v8, %v2827_v57  ;;  %v3369_v8 = vmax.f32 %v3337_v5, %v3353_v26  ;;  %v3356_v26 = vld [vmem:[#allocation2 + $0xa0] sm:$0xff] }
 0x3aa   :  { %v3340_v5 = vld [vmem:[#allocation2 + $0x20] sm:$0xff] }
 0x3ab   :  { %v3165_v23 = vadd.f32 %v3164_v15, %v2996_v43 }
 0x3ac   :  { %v2659_v59 = vpop.f32.mrf.mxu3 }
 0x3ad   :  { %v3252_v3 = vadd.f32 %v3165_v23, %v388_v37  ;;  %v2660_v39 = vadd.f32 %v2659_v59, %v5924_v2  ;;  %v3368_v2 = vmax.f32 %v3336_v62, %v3352_v17  ;;  %v3338_v59 = vld [vmem:[#allocation2 + $0x10] sm:$0xff] }
 0x3ae   :  { %v3166_v61 = vpop.f32.mrf.mxu2  ;;  %v2831_v32 = vpop.f32.mrf.mxu0 }
 0x3af   :  { %3317 = vst.msk [vmem:[#allocation2 + $0x180] sm:$0xff] %vm19_vm1, %v3252_v3  ;;  %v2829_v52 = vadd.f32 %v2828_v50, %v2660_v39  ;;  %v3000_v16 = vpop.f32.mrf.mxu1  ;;  %v3354_v50 = vld [vmem:[#allocation2 + $0x90] sm:$0xff] }
 0x3b0   :  { %v3386_v3 = vld [vmem:[#allocation2 + $0x110] sm:$0xff] }
 0x3b1   :  { %v2998_v33 = vadd.f32 %v2997_v9, %v2829_v52  ;;  %v3370_v52 = vmax.f32 %v3338_v59, %v3354_v50  ;;  %v3389_v59 = vld [vmem:[#allocation2 + $0x128] sm:$0xff] }
 0x3b3   :  { %v3167_v18 = vadd.f32 %v3166_v61, %v2998_v33 }
 0x3b4   :  { %v2662_v12 = vpop.f32.mrf.mxu3 }
 0x3b5   :  { %v3253_v40 = vadd.f32 %v3167_v18, %v389_v27  ;;  %v2663_v48 = vadd.f32 %v2662_v12, %v5931_v56  ;;  %v392_v18 = vld [vmem:[#allocation2 + $0x1a0] sm:$0xff] }
 0x3b6   :  { %v3169_v21 = vpop.f32.mrf.mxu2  ;;  %v3400_v10 = vld [vmem:[#allocation2 + $0x180] sm:$0xff]  ;;  %v2833_v34 = vpop.f32.mrf.mxu0 }
 0x3b7   :  { %v3416_v58 = vmax.f32 %v3384_v36, %v3400_v10  ;;  %3318 = vst.msk [vmem:[#allocation2 + $0x188] sm:$0xff] %vm19_vm1, %v3253_v40  ;;  %v2832_v29 = vadd.f32 %v2831_v32, %v2663_v48  ;;  %v3002_v49 = vpop.f32.mrf.mxu1  ;;  %v3355_v40 = vld [vmem:[#allocation2 + $0x98] sm:$0xff] }
 0x3b9   :  { %v3432_v22 = vmax.f32 %v3368_v2, %v3416_v58  ;;  %v3001_v42 = vadd.f32 %v3000_v16, %v2832_v29  ;;  %v3387_v2 = vld [vmem:[#allocation2 + $0x118] sm:$0xff] }
 0x3bb   :  { %v3452_v56 = vadd.f32 %v6994_v53, %v3432_v22  ;;  %v3170_v13 = vadd.f32 %v3169_v21, %v3001_v42 }
 0x3bc   :  { %v2664_v25 = vpop.f32.mrf.mxu3 }
 0x3bd   :  { %v3468_v55 = vmax.f32 %v3452_v56, 0.0  ;;  %v3254_v28 = vadd.f32 %v3170_v13, %v390_v47  ;;  %v2665_v1 = vadd.f32 %v2664_v25, %v5961_v30 }
 0x3be   :  { %v3171_v19 = vpop.f32.mrf.mxu2  ;;  %v3401_v63 = vld [vmem:[#allocation2 + $0x188] sm:$0xff]  ;;  %v2836_v11 = vpop.f32.mrf.mxu0 }
 0x3bf   :  { %3484 = vst.msk [vmem:[%s7107_s3] sm:$0xff] %vm19_vm1, %v3468_v55  ;;  %v3417_v46 = vmax.f32 %v3385_v54, %v3401_v63  ;;  %v2834_v14 = vadd.f32 %v2833_v34, %v2665_v1  ;;  %v3005_v24 = vpop.f32.mrf.mxu1  ;;  %v3339_v34 = vld [vmem:[#allocation2 + $0x18] sm:$0xff]  ;;  %v3388_v54 = vld [vmem:[#allocation2 + $0x120] sm:$0xff] }
 0x3c0   :  { %3319 = vst.msk [vmem:[#allocation2 + $0x190] sm:$0xff] %vm19_vm1, %v3254_v28  ;;  %v3371_v22 = vmax.f32 %v3339_v34, %v3355_v40  ;;  %v3390_v34 = vld [vmem:[#allocation2 + $0x130] sm:$0xff] }
 0x3c1   :  { %v3433_v35 = vmax.f32 %v3369_v8, %v3417_v46  ;;  %v3003_v51 = vadd.f32 %v3002_v49, %v2834_v14  ;;  %v3372_v46 = vmax.f32 %v3340_v5, %v3356_v26  ;;  %v3359_v26 = vld [vmem:[#allocation2 + $0xb8] sm:$0xff] }
 0x3c2   :  { %v3343_v5 = vld [vmem:[#allocation2 + $0x38] sm:$0xff] }
 0x3c3   :  { %v3453_v30 = vadd.f32 %v6994_v53, %v3433_v35  ;;  %v3172_v7 = vadd.f32 %v3171_v19, %v3003_v51 }
 0x3c4   :  { %v2667_v15 = vpop.f32.mrf.mxu3 }
 0x3c5   :  { %v3469_v57 = vmax.f32 %v3453_v30, 0.0  ;;  %v3255_v9 = vadd.f32 %v3172_v7, %v391_v0  ;;  %v2668_v43 = vadd.f32 %v2667_v15, %v5968_v31  ;;  %v3357_v15 = vld [vmem:[#allocation2 + $0xa8] sm:$0xff] }
 0x3c6   :  { %v3174_v37 = vpop.f32.mrf.mxu2  ;;  %v2838_v23 = vpop.f32.mrf.mxu0 }
 0x3c7   :  { %3485 = vst.msk [vmem:[%s7107_s3 + $0x8] sm:$0xff] %vm19_vm1, %v3469_v57  ;;  %v3402_v39 = vld [vmem:[#allocation2 + $0x190] sm:$0xff]  ;;  %v2837_v61 = vadd.f32 %v2836_v11, %v2668_v43  ;;  %v3007_v32 = vpop.f32.mrf.mxu1 }
 0x3c8   :  { %v3418_v16 = vmax.f32 %v3386_v3, %v3402_v39  ;;  %3320 = vst.msk [vmem:[#allocation2 + $0x198] sm:$0xff] %vm19_vm1, %v3255_v9 }
 0x3c9   :  { %v3006_v33 = vadd.f32 %v3005_v24, %v2837_v61 }
 0x3ca   :  { %v3434_v27 = vmax.f32 %v3370_v52, %v3418_v16 }
 0x3cb   :  { %v3175_v31 = vadd.f32 %v3174_v37, %v3006_v33 }
 0x3cc   :  { %v3454_v17 = vadd.f32 %v6994_v53, %v3434_v27  ;;  %v2669_v12 = vpop.f32.mrf.mxu3 }
 0x3cd   :  { %v3256_v48 = vadd.f32 %v3175_v31, %v392_v18  ;;  %v2670_v21 = vadd.f32 %v2669_v12, %v5998_v41  ;;  %v393_v41 = vld [vmem:[#allocation2 + $0x1a8] sm:$0xff]  ;;  %v395_v18 = vld [vmem:[#allocation2 + $0x1b8] sm:$0xff]  ;;  %v3358_v12 = vld [vmem:[#allocation2 + $0xb0] sm:$0xff] }
 0x3ce   :  { %v3176_v62 = vpop.f32.mrf.mxu2  ;;  %v3470_v36 = vmax.f32 %v3454_v17, 0.0  ;;  %v2841_v10 = vpop.f32.mrf.mxu0 }
 0x3cf   :  { %v3403_v58 = vld [vmem:[#allocation2 + $0x198] sm:$0xff]  ;;  %3321 = vst.msk [vmem:[#allocation2 + $0x1a0] sm:$0xff] %vm19_vm1, %v3256_v48  ;;  %v2839_v29 = vadd.f32 %v2838_v23, %v2670_v21  ;;  %v3010_v49 = vpop.f32.mrf.mxu1  ;;  %v3341_v23 = vld [vmem:[#allocation2 + $0x28] sm:$0xff] }
 0x3d0   :  { %3486 = vst.msk [vmem:[%s7107_s3 + $0x10] sm:$0xff] %vm19_vm1, %v3470_v36  ;;  %v3419_v42 = vmax.f32 %v3387_v2, %v3403_v58  ;;  %v3373_v61 = vmax.f32 %v3341_v23, %v3357_v15 }
 0x3d1   :  { %v3008_v47 = vadd.f32 %v3007_v32, %v2839_v29 }
 0x3d2   :  { %v3435_v56 = vmax.f32 %v3371_v22, %v3419_v42 }
 0x3d3   :  { %v3177_v13 = vadd.f32 %v3176_v62, %v3008_v47 }
 0x3d4   :  { %v3455_v25 = vadd.f32 %v6994_v53, %v3435_v56  ;;  %v2672_v55 = vpop.f32.mrf.mxu3  ;;  %v396_v56 = vld [vmem:[#allocation2 + $0x1c0] sm:$0xff] }
 0x3d5   :  { %v3257_v28 = vadd.f32 %v3177_v13, %v393_v41  ;;  %v2673_v1 = vadd.f32 %v2672_v55, %v6005_v45  ;;  %v394_v45 = vld [vmem:[#allocation2 + $0x1b0] sm:$0xff] }
 0x3d6   :  { %v3179_v19 = vpop.f32.mrf.mxu2  ;;  %v3471_v63 = vmax.f32 %v3455_v25, 0.0  ;;  %v3404_v11 = vld [vmem:[#allocation2 + $0x1a0] sm:$0xff]  ;;  %v2843_v8 = vpop.f32.mrf.mxu0 }
 0x3d7   :  { %v3420_v14 = vmax.f32 %v3388_v54, %v3404_v11  ;;  %3322 = vst.msk [vmem:[#allocation2 + $0x1a8] sm:$0xff] %vm19_vm1, %v3257_v28  ;;  %v2842_v24 = vadd.f32 %v2841_v10, %v2673_v1  ;;  %v3012_v35 = vpop.f32.mrf.mxu1  ;;  %v3342_v10 = vld [vmem:[#allocation2 + $0x30] sm:$0xff]  ;;  %v3391_v54 = vld [vmem:[#allocation2 + $0x138] sm:$0xff] }
 0x3d8   :  { %3487 = vst.msk [vmem:[%s7107_s3 + $0x18] sm:$0xff] %vm19_vm1, %v3471_v63 }
 0x3d9   :  { %v3436_v51 = vmax.f32 %v3372_v46, %v3420_v14  ;;  %v3011_v0 = vadd.f32 %v3010_v49, %v2842_v24  ;;  %v3374_v49 = vmax.f32 %v3342_v10, %v3358_v12  ;;  %v3375_v46 = vmax.f32 %v3343_v5, %v3359_v26  ;;  %v3346_v26 = vld [vmem:[#allocation2 + $0x50] sm:$0xff] }
 0x3db   :  { %v3456_v30 = vadd.f32 %v6994_v53, %v3436_v51  ;;  %v3180_v7 = vadd.f32 %v3179_v19, %v3011_v0  ;;  %v3360_v0 = vld [vmem:[#allocation2 + $0xc0] sm:$0xff] }
 0x3dc   :  { %v2674_v50 = vpop.f32.mrf.mxu3 }
 0x3dd   :  { %v3472_v57 = vmax.f32 %v3456_v30, 0.0  ;;  %v3258_v9 = vadd.f32 %v3180_v7, %v394_v45  ;;  %v2675_v43 = vadd.f32 %v2674_v50, %v6035_v38 }
 0x3de   :  { %v3181_v37 = vpop.f32.mrf.mxu2  ;;  %v3405_v3 = vld [vmem:[#allocation2 + $0x1a8] sm:$0xff]  ;;  %v2846_v39 = vpop.f32.mrf.mxu0 }
 0x3df   :  { %3488 = vst.msk [vmem:[%s7107_s3 + $0x20] sm:$0xff] %vm19_vm1, %v3472_v57  ;;  %v3421_v32 = vmax.f32 %v3389_v59, %v3405_v3  ;;  %v2844_v52 = vadd.f32 %v2843_v8, %v2675_v43  ;;  %v3015_v16 = vpop.f32.mrf.mxu1  ;;  %v3344_v57 = vld [vmem:[#allocation2 + $0x40] sm:$0xff] }
 0x3e0   :  { %3323 = vst.msk [vmem:[#allocation2 + $0x1b0] sm:$0xff] %vm19_vm1, %v3258_v9  ;;  %v3392_v9 = vld [vmem:[#allocation2 + $0x140] sm:$0xff]  ;;  %v3376_v59 = vmax.f32 %v3344_v57, %v3360_v0 }
 0x3e1   :  { %v3437_v33 = vmax.f32 %v3373_v61, %v3421_v32  ;;  %v3013_v27 = vadd.f32 %v3012_v35, %v2844_v52 }
 0x3e3   :  { %v3457_v38 = vadd.f32 %v6994_v53, %v3437_v33  ;;  %v3182_v31 = vadd.f32 %v3181_v37, %v3013_v27  ;;  %v3361_v27 = vld [vmem:[#allocation2 + $0xc8] sm:$0xff] }
 0x3e4   :  { %v2677_v17 = vpop.f32.mrf.mxu3 }
 0x3e5   :  { %v3473_v40 = vmax.f32 %v3457_v38, 0.0  ;;  %v3259_v48 = vadd.f32 %v3182_v31, %v395_v18  ;;  %v2678_v21 = vadd.f32 %v2677_v17, %v6042_v20 }
 0x3e6   :  { %v3184_v62 = vpop.f32.mrf.mxu2  ;;  %v2848_v36 = vpop.f32.mrf.mxu0 }
 0x3e7   :  { %3489 = vst.msk [vmem:[%s7107_s3 + $0x28] sm:$0xff] %vm19_vm1, %v3473_v40  ;;  %v3406_v2 = vld [vmem:[#allocation2 + $0x1b0] sm:$0xff]  ;;  %v2847_v58 = vadd.f32 %v2846_v39, %v2678_v21  ;;  %v3017_v29 = vpop.f32.mrf.mxu1  ;;  %v3345_v40 = vld [vmem:[#allocation2 + $0x48] sm:$0xff] }
 0x3e8   :  { %v3422_v22 = vmax.f32 %v3390_v34, %v3406_v2  ;;  %3324 = vst.msk [vmem:[#allocation2 + $0x1b8] sm:$0xff] %vm19_vm1, %v3259_v48  ;;  %v3393_v48 = vld [vmem:[#allocation2 + $0x148] sm:$0xff] }
 0x3e9   :  { %v3016_v42 = vadd.f32 %v3015_v16, %v2847_v58 }
 0x3ea   :  { %v3438_v47 = vmax.f32 %v3374_v49, %v3422_v22 }
 0x3eb   :  { %v3185_v20 = vadd.f32 %v3184_v62, %v3016_v42  ;;  %v3377_v62 = vmax.f32 %v3345_v40, %v3361_v27  ;;  %v3396_v27 = vld [vmem:[#allocation2 + $0x160] sm:$0xff] }
 0x3ec   :  { %v3458_v41 = vadd.f32 %v6994_v53, %v3438_v47  ;;  %v2679_v13 = vpop.f32.mrf.mxu3  ;;  %v3362_v47 = vld [vmem:[#allocation2 + $0xd0] sm:$0xff] }
 0x3ed   :  { %v3260_v25 = vadd.f32 %v3185_v20, %v396_v56  ;;  %v2680_v55 = vadd.f32 %v2679_v13, %v6072_v60  ;;  %v397_v60 = vld [vmem:[#allocation2 + $0x1c8] sm:$0xff] }
 0x3ee   :  { %v3186_v28 = vpop.f32.mrf.mxu2  ;;  %v3474_v1 = vmax.f32 %v3458_v41, 0.0  ;;  %v2851_v19 = vpop.f32.mrf.mxu0 }
 0x3ef   :  { %v3407_v63 = vld [vmem:[#allocation2 + $0x1b8] sm:$0xff]  ;;  %3325 = vst.msk [vmem:[#allocation2 + $0x1c0] sm:$0xff] %vm19_vm1, %v3260_v25  ;;  %v2849_v11 = vadd.f32 %v2848_v36, %v2680_v55  ;;  %v3020_v8 = vpop.f32.mrf.mxu1  ;;  %v3394_v25 = vld [vmem:[#allocation2 + $0x150] sm:$0xff] }
 0x3f0   :  { %3490 = vst.msk [vmem:[%s7107_s3 + $0x30] sm:$0xff] %vm19_vm1, %v3474_v1  ;;  %v3423_v14 = vmax.f32 %v3391_v54, %v3407_v63  ;;  %v3378_v1 = vmax.f32 %v3346_v26, %v3362_v47  ;;  %v400_v63 = vld [vmem:[#allocation2 + $0x1e0] sm:$0xff]  ;;  %v3397_v47 = vld [vmem:[#allocation2 + $0x168] sm:$0xff] }
 0x3f1   :  { %v3018_v24 = vadd.f32 %v3017_v29, %v2849_v11  ;;  %v399_v29 = vld [vmem:[#allocation2 + $0x1d8] sm:$0xff] }
 0x3f2   :  { %v3439_v35 = vmax.f32 %v3375_v46, %v3423_v14 }
 0x3f3   :  { %v3187_v51 = vadd.f32 %v3186_v28, %v3018_v24  ;;  %v3363_v24 = vld [vmem:[#allocation2 + $0xd8] sm:$0xff] }
 0x3f4   :  { %v3459_v45 = vadd.f32 %v6994_v53, %v3439_v35  ;;  %v2682_v30 = vpop.f32.mrf.mxu3 }
 0x3f5   :  { %v3261_v7 = vadd.f32 %v3187_v51, %v397_v60  ;;  %v2683_v15 = vadd.f32 %v2682_v30, %v6079_v4  ;;  %v398_v4 = vld [vmem:[#allocation2 + $0x1d0] sm:$0xff]  ;;  %v7153_v60 = vld [vmem:[#allocation24_spill] sm:$0xff]  ;;  %v3347_v30 = vld [vmem:[#allocation2 + $0x58] sm:$0xff] }
 0x3f6   :  { %v3189_v50 = vpop.f32.mrf.mxu2  ;;  %v3475_v43 = vmax.f32 %v3459_v45, 0.0  ;;  %v3408_v37 = vld [vmem:[#allocation2 + $0x1c0] sm:$0xff]  ;;  %v2853_v23 = vpop.f32.mrf.mxu0  ;;  %v3379_v57 = vmax.f32 %v3347_v30, %v3363_v24  ;;  %v3351_v30 = vld [vmem:[#allocation2 + $0x78] sm:$0xff] }
 0x3f7   :  { %v3424_v3 = vmax.f32 %v3392_v9, %v3408_v37  ;;  %3326 = vst.msk [vmem:[#allocation2 + $0x1c8] sm:$0xff] %vm19_vm1, %v3261_v7  ;;  %v2852_v39 = vadd.f32 %v2851_v19, %v2683_v15  ;;  %v3022_v61 = vpop.f32.mrf.mxu1  ;;  %v3395_v7 = vld [vmem:[#allocation2 + $0x158] sm:$0xff] }
 0x3f8   :  { %3491 = vst.msk [vmem:[%s7107_s3 + $0x38] sm:$0xff] %vm19_vm1, %v3475_v43 }
 0x3f9   :  { %v3440_v32 = vmax.f32 %v3376_v59, %v3424_v3  ;;  %v3021_v52 = vadd.f32 %v3020_v8, %v2852_v39  ;;  %v3364_v3 = vld [vmem:[#allocation2 + $0xe0] sm:$0xff] }
 0x3fb   :  { %v3460_v16 = vadd.f32 %v6994_v53, %v3440_v32  ;;  %v3190_v33 = vadd.f32 %v3189_v50, %v3021_v52 }
 0x3fc   :  { %v2684_v18 = vpop.f32.mrf.mxu3 }
 0x3fd   :  { %v3476_v38 = vmax.f32 %v3460_v16, 0.0  ;;  %v3262_v31 = vadd.f32 %v3190_v33, %v398_v4  ;;  %v2685_v17 = vadd.f32 %v2684_v18, %v6109_v6  ;;  %v7154_v4 = vld [vmem:[#allocation25_spill] sm:$0xff]  ;;  %v3348_v33 = vld [vmem:[#allocation2 + $0x60] sm:$0xff] }
 0x3fe   :  { %v3191_v12 = vpop.f32.mrf.mxu2  ;;  %v3409_v21 = vld [vmem:[#allocation2 + $0x1c8] sm:$0xff]  ;;  %v2856_v34 = vpop.f32.mrf.mxu0 }
 0x3ff   :  { %3492 = vst.msk [vmem:[%s7107_s3 + $0x40] sm:$0xff] %vm19_vm1, %v3476_v38  ;;  %v3425_v36 = vmax.f32 %v3393_v48, %v3409_v21  ;;  %v2854_v10 = vadd.f32 %v2853_v23, %v2685_v17  ;;  %v3025_v49 = vpop.f32.mrf.mxu1  ;;  %v401_v23 = vld [vmem:[#allocation2 + $0x1e8] sm:$0xff]  ;;  %v3380_v17 = vmax.f32 %v3348_v33, %v3364_v3 }
 0x400   :  { %3327 = vst.msk [vmem:[#allocation2 + $0x1d0] sm:$0xff] %vm19_vm1, %v3262_v31 }
 0x401   :  { %v3441_v2 = vmax.f32 %v3377_v62, %v3425_v36  ;;  %v3023_v58 = vadd.f32 %v3022_v61, %v2854_v10  ;;  %v402_v36 = vld [vmem:[#allocation2 + $0x1f0] sm:$0xff] }
 0x403   :  { %v3461_v6 = vadd.f32 %v6994_v53, %v3441_v2  ;;  %v3192_v22 = vadd.f32 %v3191_v12, %v3023_v58  ;;  %v3365_v2 = vld [vmem:[#allocation2 + $0xe8] sm:$0xff] }
 0x404   :  { %v2687_v42 = vpop.f32.mrf.mxu3 }
 0x405   :  { %v3477_v56 = vmax.f32 %v3461_v6, 0.0  ;;  %v3263_v20 = vadd.f32 %v3192_v22, %v399_v29  ;;  %v2688_v41 = vadd.f32 %v2687_v42, %v6116_v44  ;;  %v7155_v6 = vld [vmem:[#allocation26_spill] sm:$0xff]  ;;  %v3349_v42 = vld [vmem:[#allocation2 + $0x68] sm:$0xff] }
 0x406   :  { %v3194_v13 = vpop.f32.mrf.mxu2  ;;  %v2858_v11 = vpop.f32.mrf.mxu0 }
 0x407   :  { %3493 = vst.msk [vmem:[%s7107_s3 + $0x48] sm:$0xff] %vm19_vm1, %v3477_v56  ;;  %v3410_v55 = vld [vmem:[#allocation2 + $0x1d0] sm:$0xff]  ;;  %v2857_v28 = vadd.f32 %v2856_v34, %v2688_v41  ;;  %v3027_v46 = vpop.f32.mrf.mxu1  ;;  %v3381_v41 = vmax.f32 %v3349_v42, %v3365_v2 }
 0x408   :  { %v3426_v19 = vmax.f32 %v3394_v25, %v3410_v55  ;;  %3328 = vst.msk [vmem:[#allocation2 + $0x1d8] sm:$0xff] %vm19_vm1, %v3263_v20 }
 0x409   :  { %v3026_v5 = vadd.f32 %v3025_v49, %v2857_v28 }
 0x40a   :  { %v3442_v54 = vmax.f32 %v3378_v1, %v3426_v19  ;;  %v403_v1 = vld [vmem:[#allocation2 + $0x1f8] sm:$0xff] }
 0x40b   :  { %v3195_v8 = vadd.f32 %v3194_v13, %v3026_v5 }
 0x40c   :  { %v3462_v44 = vadd.f32 %v6994_v53, %v3442_v54  ;;  %v2689_v14 = vpop.f32.mrf.mxu3 }
 0x40d   :  { %v3264_v35 = vadd.f32 %v3195_v8, %v400_v63  ;;  %v2690_v51 = vadd.f32 %v2689_v14, %v7153_v60  ;;  %v3366_v63 = vld [vmem:[#allocation2 + $0xf0] sm:$0xff] }
 0x40e   :  { %v3478_v0 = vmax.f32 %v3462_v44, 0.0  ;;  %v3196_v45 = vpop.f32.mrf.mxu2  ;;  %v2861_v61 = vpop.f32.mrf.mxu0  ;;  %v3350_v44 = vld [vmem:[#allocation2 + $0x70] sm:$0xff] }
 0x40f   :  { %v3411_v15 = vld [vmem:[#allocation2 + $0x1d8] sm:$0xff]  ;;  %3329 = vst.msk [vmem:[#allocation2 + $0x1e0] sm:$0xff] %vm19_vm1, %v3264_v35  ;;  %v2859_v50 = vadd.f32 %v2858_v11, %v2690_v51  ;;  %v3030_v31 = vpop.f32.mrf.mxu1  ;;  %v3382_v24 = vmax.f32 %v3350_v44, %v3366_v63 }
 0x410   :  { %3494 = vst.msk [vmem:[%s7107_s3 + $0x50] sm:$0xff] %vm19_vm1, %v3478_v0  ;;  %v3427_v9 = vmax.f32 %v3395_v7, %v3411_v15  ;;  %v3367_v0 = vld [vmem:[#allocation2 + $0xf8] sm:$0xff] }
 0x411   :  { %v3028_v43 = vadd.f32 %v3027_v46, %v2859_v50  ;;  %v3398_v46 = vld [vmem:[#allocation2 + $0x170] sm:$0xff]  ;;  %v3399_v7 = vld [vmem:[#allocation2 + $0x178] sm:$0xff]  ;;  %v3383_v50 = vmax.f32 %v3351_v30, %v3367_v0 }
 0x412   :  { %v3443_v37 = vmax.f32 %v3379_v57, %v3427_v9 }
 0x413   :  { %v3197_v59 = vadd.f32 %v3196_v45, %v3028_v43 }
 0x414   :  { %v3463_v39 = vadd.f32 %v6994_v53, %v3443_v37  ;;  %v2692_v32 = vpop.f32.mrf.mxu3 }
 0x415   :  { %v3265_v52 = vadd.f32 %v3197_v59, %v401_v23  ;;  %v2693_v16 = vadd.f32 %v2692_v32, %v7154_v4 }
 0x416   :  { %v3479_v18 = vmax.f32 %v3463_v39, 0.0  ;;  %v3412_v38 = vld [vmem:[#allocation2 + $0x1e0] sm:$0xff]  ;;  %v3199_v48 = vpop.f32.mrf.mxu2  ;;  %v2863_v20 = vpop.f32.mrf.mxu0 }
 0x417   :  { %v3428_v12 = vmax.f32 %v3396_v27, %v3412_v38  ;;  %3330 = vst.msk [vmem:[#allocation2 + $0x1e8] sm:$0xff] %vm19_vm1, %v3265_v52  ;;  %v2862_v40 = vadd.f32 %v2861_v61, %v2693_v16  ;;  %v3032_v25 = vpop.f32.mrf.mxu1 }
 0x418   :  { %3495 = vst.msk [vmem:[%s7107_s3 + $0x58] sm:$0xff] %vm19_vm1, %v3479_v18 }
 0x419   :  { %v3444_v21 = vmax.f32 %v3380_v17, %v3428_v12  ;;  %v3031_v62 = vadd.f32 %v3030_v31, %v2862_v40 }
 0x41b   :  { %v3464_v10 = vadd.f32 %v6994_v53, %v3444_v21  ;;  %v3200_v34 = vadd.f32 %v3199_v48, %v3031_v62 }
 0x41c   :  { %v2694_v58 = vpop.f32.mrf.mxu3 }
 0x41d   :  { %v3480_v29 = vmax.f32 %v3464_v10, 0.0  ;;  %v3266_v49 = vadd.f32 %v3200_v34, %v402_v36  ;;  %v2695_v22 = vadd.f32 %v2694_v58, %v7155_v6 }
 0x41e   :  { %v3413_v56 = vld [vmem:[#allocation2 + $0x1e8] sm:$0xff]  ;;  %v3201_v19 = vpop.f32.mrf.mxu2 }
 0x41f   :  { %3496 = vst.msk [vmem:[%s7107_s3 + $0x60] sm:$0xff] %vm19_vm1, %v3480_v29  ;;  %v3429_v13 = vmax.f32 %v3397_v47, %v3413_v56  ;;  %v2864_v26 = vadd.f32 %v2863_v20, %v2695_v22 }
 0x420   :  { %3331 = vst.msk [vmem:[#allocation2 + $0x1f0] sm:$0xff] %vm19_vm1, %v3266_v49 }
 0x421   :  { %v3445_v55 = vmax.f32 %v3381_v41, %v3429_v13  ;;  %v3033_v28 = vadd.f32 %v3032_v25, %v2864_v26 }
 0x423   :  { %v3465_v5 = vadd.f32 %v6994_v53, %v3445_v55  ;;  %v3202_v54 = vadd.f32 %v3201_v19, %v3033_v28 }
 0x425   :  { %v3481_v11 = vmax.f32 %v3465_v5, 0.0  ;;  %v3267_v8 = vadd.f32 %v3202_v54, %v403_v1 }
 0x427   :  { %3497 = vst.msk [vmem:[%s7107_s3 + $0x68] sm:$0xff] %vm19_vm1, %v3481_v11  ;;  %v3414_v14 = vld [vmem:[#allocation2 + $0x1f0] sm:$0xff] }
 0x428   :  { %v3430_v35 = vmax.f32 %v3398_v46, %v3414_v14  ;;  %3332 = vst.msk [vmem:[#allocation2 + $0x1f8] sm:$0xff] %vm19_vm1, %v3267_v8 }
 0x42a   :  { %v3446_v60 = vmax.f32 %v3382_v24, %v3430_v35 }
 0x42c   :  { %v3466_v51 = vadd.f32 %v6994_v53, %v3446_v60 }
 0x42e   :  { %v3482_v45 = vmax.f32 %v3466_v51, 0.0 }
 0x42f   :  { %v3415_v15 = vld [vmem:[#allocation2 + $0x1f8] sm:$0xff] }
 0x430   :  { %3498 = vst.msk [vmem:[%s7107_s3 + $0x70] sm:$0xff] %vm19_vm1, %v3482_v45  ;;  %v3431_v57 = vmax.f32 %v3399_v7, %v3415_v15 }
 0x432   :  { %v3447_v9 = vmax.f32 %v3383_v50, %v3431_v57 }
 0x434   :  { %v3467_v43 = vadd.f32 %v6994_v53, %v3447_v9 }
 0x436   :  { %v3483_v37 = vmax.f32 %v3467_v43, 0.0 }
 0x438   :  { %3499 = vst.msk [vmem:[%s7107_s3 + $0x78] sm:$0xff] %vm19_vm1, %v3483_v37 }

// kernel: cnn_forward.7
= control target key start
LH: loop header
LB: loop body
LE: loop exit
PB: predicated region body
PF: predicated region fallthrough
CT: control target
= control target key end

     0   :  { %vm1483_vm0 = vcmask 523264   ;;  %s4425_s1 = inlined_call_operand.vmem [shape: bf16[1600,128], index: 1, kind: input, shape index: {}]   ;;  %s4426_s0 = inlined_call_operand.vmem [shape: bf16[4,32,1600], index: 0, kind: input, shape index: {}]   ;;  %s4427_s2 = inlined_call_operand.vmem [shape: f32[1,128], index: 2, kind: input, shape index: {}]   ;;  %s4428_s3 = inlined_call_operand.vmem [shape: f32[32,128], index: 3, kind: output, shape index: {}]  }
   0x1   :  { %v3163_v0 = vld [vmem:[%s4425_s1 + $0x38] sm:$0xff]  ;;  %v3162_v1 = vld [vmem:[%s4425_s1 + $0x30] sm:$0xff]  ;;  %v3161_v2 = vld [vmem:[%s4425_s1 + $0x28] sm:$0xff] }
   0x2   :  { %3256 = vmatpush.bf16.msra.mxu1 %v3163_v0  ;;  %3257 = vmatpush.bf16.msra.mxu2 %v3163_v0  ;;  %v3160_v3 = vld [vmem:[%s4425_s1 + $0x20] sm:$0xff]  ;;  %v3159_v4 = vld [vmem:[%s4425_s1 + $0x18] sm:$0xff]  ;;  %v3158_v5 = vld [vmem:[%s4425_s1 + $0x10] sm:$0xff] }
   0x3   :  { %3258 = vmatpush.bf16.msra.mxu3 %v3163_v0  ;;  %1508 = vmatpush.bf16.msra.mxu0 %v3163_v0  ;;  %v3157_v6 = vld [vmem:[%s4425_s1 + $0x8] sm:$0xff]  ;;  %v3156_v7 = vld [vmem:[%s4425_s1] sm:$0xff]  ;;  %v2334_v8 = vld [vmem:[%s4426_s0 + $0xd0] sm:$0xf] }
   0x4   :  { %v3084_v9 = vld [vmem:[%s4426_s0 + $0x100] sm:$0xf0]  ;;  %v2438_v10 = vld [vmem:[%s4426_s0 + $0x1a0] sm:$0xf]  ;;  %v3110_v11 = vld [vmem:[%s4426_s0 + $0x1d0] sm:$0xf0] }
   0x5   :  { %v2542_v12 = vld [vmem:[%s4426_s0 + $0x270] sm:$0xf]  ;;  %v3136_v13 = vld [vmem:[%s4426_s0 + $0x2a0] sm:$0xf0]  ;;  %v2230_v14 = vld [vmem:[%s4426_s0] sm:$0xf]  ;;  %v2335_v18 = vor.u32 %v3084_v9, %v2334_v8  ;;  %v2439_v19 = vor.u32 %v3110_v11, %v2438_v10 }
   0x6   :  { %3259 = vmatpush.bf16.msra.mxu1 %v3162_v1  ;;  %3260 = vmatpush.bf16.msra.mxu2 %v3162_v1  ;;  %v3058_v15 = vld [vmem:[%s4426_s0 + $0x30] sm:$0xf0]  ;;  %v3179_v16 = vld [vmem:[%s4425_s1 + $0xb8] sm:$0xff]  ;;  %v2543_v20 = vor.u32 %v3136_v13, %v2542_v12  ;;  %v3177_v28 = vld [vmem:[%s4425_s1 + $0xa8] sm:$0xff] }
   0x7   :  { %3261 = vmatpush.bf16.msra.mxu3 %v3162_v1  ;;  %1509 = vmatpush.bf16.msra.mxu0 %v3162_v1  ;;  %v3171_v17 = vld [vmem:[%s4425_s1 + $0x78] sm:$0xff]  ;;  %v2231_v21 = vor.u32 %v3058_v15, %v2230_v14  ;;  %v3178_v24 = vld [vmem:[%s4425_s1 + $0xb0] sm:$0xff]  ;;  %v3169_v29 = vld [vmem:[%s4425_s1 + $0x68] sm:$0xff] }
   0x8   :  { %v3187_v22 = vld [vmem:[%s4425_s1 + $0xf8] sm:$0xff]  ;;  %v3170_v25 = vld [vmem:[%s4425_s1 + $0x70] sm:$0xff]  ;;  %v3185_v30 = vld [vmem:[%s4425_s1 + $0xe8] sm:$0xff] }
   0x9   :  { %v3195_v23 = vld [vmem:[%s4425_s1 + $0x138] sm:$0xff]  ;;  %v3186_v26 = vld [vmem:[%s4425_s1 + $0xf0] sm:$0xff]  ;;  %v3193_v31 = vld [vmem:[%s4425_s1 + $0x128] sm:$0xff] }
   0xa   :  { %3262 = vmatpush.bf16.msra.mxu1 %v3161_v2  ;;  %3263 = vmatpush.bf16.msra.mxu2 %v3161_v2  ;;  %v3194_v27 = vld [vmem:[%s4425_s1 + $0x130] sm:$0xff]  ;;  %v3176_v32 = vld [vmem:[%s4425_s1 + $0xa0] sm:$0xff]  ;;  %v2386_v36 = vld [vmem:[%s4426_s0 + $0x138] sm:$0xf] }
   0xb   :  { %3264 = vmatpush.bf16.msra.mxu3 %v3161_v2  ;;  %1510 = vmatpush.bf16.msra.mxu0 %v3161_v2  ;;  %v3168_v33 = vld [vmem:[%s4425_s1 + $0x60] sm:$0xff]  ;;  %v3097_v37 = vld [vmem:[%s4426_s0 + $0x168] sm:$0xf0]  ;;  %v2490_v38 = vld [vmem:[%s4426_s0 + $0x208] sm:$0xf] }
   0xc   :  { %v3184_v34 = vld [vmem:[%s4425_s1 + $0xe0] sm:$0xff]  ;;  %v3123_v39 = vld [vmem:[%s4426_s0 + $0x238] sm:$0xf0]  ;;  %v2594_v40 = vld [vmem:[%s4426_s0 + $0x2d8] sm:$0xf]  ;;  %v2387_v46 = vor.u32 %v3097_v37, %v2386_v36 }
   0xd   :  { %v3192_v35 = vld [vmem:[%s4425_s1 + $0x120] sm:$0xff]  ;;  %v3149_v41 = vld [vmem:[%s4426_s0 + $0x308] sm:$0xf0]  ;;  %v2282_v42 = vld [vmem:[%s4426_s0 + $0x68] sm:$0xf]  ;;  %v2491_v47 = vor.u32 %v3123_v39, %v2490_v38 }
   0xe   :  { %3265 = vmatpush.bf16.msra.mxu1 %v3160_v3  ;;  %3266 = vmatpush.bf16.msra.mxu2 %v3160_v3  ;;  %v3071_v43 = vld [vmem:[%s4426_s0 + $0x98] sm:$0xf0]  ;;  %v2595_v48 = vor.u32 %v3149_v41, %v2594_v40  ;;  %v3174_v52 = vld [vmem:[%s4425_s1 + $0x90] sm:$0xff]  ;;  %v3173_v56 = vld [vmem:[%s4425_s1 + $0x88] sm:$0xff] }
   0xf   :  { %3267 = vmatpush.bf16.msra.mxu3 %v3160_v3  ;;  %1511 = vmatpush.bf16.msra.mxu0 %v3160_v3  ;;  %v3175_v44 = vld [vmem:[%s4425_s1 + $0x98] sm:$0xff]  ;;  %v2283_v49 = vor.u32 %v3071_v43, %v2282_v42  ;;  %v3166_v53 = vld [vmem:[%s4425_s1 + $0x50] sm:$0xff]  ;;  %v3165_v57 = vld [vmem:[%s4425_s1 + $0x48] sm:$0xff] }
  0x10   :  { %v3167_v45 = vld [vmem:[%s4425_s1 + $0x58] sm:$0xff]  ;;  %v3182_v54 = vld [vmem:[%s4425_s1 + $0xd0] sm:$0xff]  ;;  %v3181_v58 = vld [vmem:[%s4425_s1 + $0xc8] sm:$0xff] }
  0x11   :  { %v3183_v50 = vld [vmem:[%s4425_s1 + $0xd8] sm:$0xff]  ;;  %v3190_v55 = vld [vmem:[%s4425_s1 + $0x110] sm:$0xff]  ;;  %v3189_v59 = vld [vmem:[%s4425_s1 + $0x108] sm:$0xff] }
  0x12   :  { %3268 = vmatpush.bf16.msra.mxu1 %v3159_v4  ;;  %3269 = vmatpush.bf16.msra.mxu2 %v3159_v4  ;;  %v3191_v51 = vld [vmem:[%s4425_s1 + $0x118] sm:$0xff]  ;;  %v3172_v60 = vld [vmem:[%s4425_s1 + $0x80] sm:$0xff]  ;;  %v2246_v8 = vld [vmem:[%s4426_s0 + $0x10] sm:$0xf] }
  0x13   :  { %3270 = vmatpush.bf16.msra.mxu3 %v3159_v4  ;;  %1512 = vmatpush.bf16.msra.mxu0 %v3159_v4  ;;  %v3164_v61 = vld [vmem:[%s4425_s1 + $0x40] sm:$0xff]  ;;  %v2232_v1 = vld [vmem:[%s4426_s0 + $0x34] sm:$0xf0]  ;;  %v2238_v4 = vld [vmem:[%s4426_s0 + $0x8] sm:$0xf] }
  0x14   :  { %v3052_v62 = vld [vmem:[%s4426_s0 + $0x4] sm:$0xf]  ;;  %v3211_v2 = vld [vmem:[%s4425_s1 + $0x1b8] sm:$0xff]  ;;  %v3078_v40 = vld [vmem:[%s4426_s0 + $0xd4] sm:$0xf] }
  0x15   :  { %v3180_v63 = vld [vmem:[%s4425_s1 + $0xc0] sm:$0xff]  ;;  %v3203_v3 = vld [vmem:[%s4425_s1 + $0x178] sm:$0xff]  ;;  %v2235_v12 = vor.u32 %v3052_v62, %v2232_v1  ;;  %v2336_v41 = vld [vmem:[%s4426_s0 + $0x104] sm:$0xf0] }
  0x16   :  { %3271 = vmatpush.bf16.msra.mxu1 %v3158_v5  ;;  %3272 = vmatpush.bf16.msra.mxu2 %v3158_v5  ;;  %v3188_v0 = vld [vmem:[%s4425_s1 + $0x100] sm:$0xff]  ;;  %v3219_v10 = vld [vmem:[%s4425_s1 + $0x1f8] sm:$0xff]  ;;  %v3085_v43 = vld [vmem:[%s4426_s0 + $0x108] sm:$0xf0] }
  0x17   :  { %3273 = vmatpush.bf16.msra.mxu3 %v3158_v5  ;;  %1513 = vmatpush.bf16.msra.mxu0 %v3158_v5  ;;  %v3059_v5 = vld [vmem:[%s4426_s0 + $0x38] sm:$0xf0]  ;;  %v3060_v9 = vld [vmem:[%s4426_s0 + $0x40] sm:$0xf0]  ;;  %v2342_v42 = vld [vmem:[%s4426_s0 + $0xd8] sm:$0xf] }
  0x18   :  { %v3227_v11 = vld [vmem:[%s4425_s1 + $0x238] sm:$0xff]  ;;  %v2239_v13 = vor.u32 %v3059_v5, %v2238_v4  ;;  %v2247_v15 = vor.u32 %v3060_v9, %v2246_v8  ;;  %v3208_v36 = vld [vmem:[%s4425_s1 + $0x1a0] sm:$0xff]  ;;  %v2402_v62 = vld [vmem:[%s4426_s0 + $0x148] sm:$0xf] }
  0x19   :  { %v3216_v37 = vld [vmem:[%s4425_s1 + $0x1e0] sm:$0xff]  ;;  %v3206_v4 = vld [vmem:[%s4425_s1 + $0x190] sm:$0xff]  ;;  %v2440_v9 = vld [vmem:[%s4426_s0 + $0x1d4] sm:$0xf0] }
  0x1a   :  { %3274 = vmatpush.bf16.msra.mxu1 %v3157_v6  ;;  %3275 = vmatpush.bf16.msra.mxu2 %v3157_v6  ;;  %v3200_v38 = vld [vmem:[%s4425_s1 + $0x160] sm:$0xff]  ;;  %v3214_v5 = vld [vmem:[%s4425_s1 + $0x1d0] sm:$0xff] }
  0x1b   :  { %3276 = vmatpush.bf16.msra.mxu3 %v3157_v6  ;;  %1514 = vmatpush.bf16.msra.mxu0 %v3157_v6  ;;  %v3053_v6 = vld [vmem:[%s4426_s0 + $0xc] sm:$0xf]  ;;  %v3224_v39 = vld [vmem:[%s4425_s1 + $0x220] sm:$0xff] }
  0x1c   :  { %v3104_v8 = vld [vmem:[%s4426_s0 + $0x1a4] sm:$0xf] }
  0x1e   :  { %3277 = vmatpush.bf16.msra.mxu1 %v3156_v7  ;;  %3278 = vmatpush.bf16.msra.mxu2 %v3156_v7 }
  0x1f   :  { %3279 = vmatpush.bf16.msra.mxu3 %v3156_v7  ;;  %1515 = vmatpush.bf16.msra.mxu0 %v3156_v7  ;;  %v2240_v7 = vld [vmem:[%s4426_s0 + $0x3c] sm:$0xf0] }
  0x20   :  { %v2243_v14 = vor.u32 %v3053_v6, %v2240_v7  ;;  %v3198_v6 = vld [vmem:[%s4425_s1 + $0x150] sm:$0xff] }
  0x21   :  { %1526 = vmatmul.bf16.vlgmr.msra.gmra.mxu1 %v2335_v18  ;;  %1536 = vmatmul.bf16.vlgmr.msra.gmra.mxu2 %v2439_v19  ;;  %v3218_v18 = vld [vmem:[%s4425_s1 + $0x1f0] sm:$0xff] }
  0x22   :  { %1606 = vmatpush.bf16.msrb.mxu2 %v3179_v16  ;;  %1557 = vmatpush.bf16.msrb.mxu1 %v3171_v17  ;;  %v3210_v16 = vld [vmem:[%s4425_s1 + $0x1b0] sm:$0xff] }
  0x23   :  { %1546 = vmatmul.bf16.vlgmr.msra.gmra.mxu3 %v2543_v20  ;;  %1516 = vmatmul.bf16.vlgmr.msra.gmra.mxu0 %v2231_v21  ;;  %v3202_v17 = vld [vmem:[%s4425_s1 + $0x170] sm:$0xff]  ;;  %v3209_v20 = vld [vmem:[%s4425_s1 + $0x1a8] sm:$0xff] }
  0x24   :  { %1655 = vmatpush.bf16.msrb.mxu3 %v3187_v22  ;;  %1704 = vmatpush.bf16.msrb.mxu0 %v3195_v23  ;;  %v3226_v19 = vld [vmem:[%s4425_s1 + $0x230] sm:$0xff]  ;;  %v3201_v21 = vld [vmem:[%s4425_s1 + $0x168] sm:$0xff] }
  0x25   :  { %v3217_v22 = vld [vmem:[%s4425_s1 + $0x1e8] sm:$0xff]  ;;  %v3222_v7 = vld [vmem:[%s4425_s1 + $0x210] sm:$0xff] }
  0x26   :  { %1607 = vmatpush.bf16.msrb.mxu2 %v3178_v24  ;;  %1558 = vmatpush.bf16.msrb.mxu1 %v3170_v25  ;;  %v3225_v23 = vld [vmem:[%s4425_s1 + $0x228] sm:$0xff]  ;;  %v2284_v25 = vld [vmem:[%s4426_s0 + $0x9c] sm:$0xf0] }
  0x27   :  { %v3065_v24 = vld [vmem:[%s4426_s0 + $0x6c] sm:$0xf] }
  0x28   :  { %1656 = vmatpush.bf16.msrb.mxu3 %v3186_v26  ;;  %1705 = vmatpush.bf16.msrb.mxu0 %v3194_v27  ;;  %v2290_v26 = vld [vmem:[%s4426_s0 + $0x70] sm:$0xf]  ;;  %v3072_v27 = vld [vmem:[%s4426_s0 + $0xa0] sm:$0xf0] }
  0x2a   :  { %1608 = vmatpush.bf16.msrb.mxu2 %v3177_v28  ;;  %1559 = vmatpush.bf16.msrb.mxu1 %v3169_v29  ;;  %v3066_v28 = vld [vmem:[%s4426_s0 + $0x74] sm:$0xf]  ;;  %v2292_v29 = vld [vmem:[%s4426_s0 + $0xa4] sm:$0xf0] }
  0x2c   :  { %1657 = vmatpush.bf16.msrb.mxu3 %v3185_v30  ;;  %1706 = vmatpush.bf16.msrb.mxu0 %v3193_v31  ;;  %v2298_v30 = vld [vmem:[%s4426_s0 + $0x78] sm:$0xf]  ;;  %v3073_v31 = vld [vmem:[%s4426_s0 + $0xa8] sm:$0xf0] }
  0x2e   :  { %1609 = vmatpush.bf16.msrb.mxu2 %v3176_v32  ;;  %1560 = vmatpush.bf16.msrb.mxu1 %v3168_v33  ;;  %v2287_v32 = vor.u32 %v3065_v24, %v2284_v25  ;;  %v2291_v33 = vor.u32 %v3072_v27, %v2290_v26  ;;  %v3117_v24 = vld [vmem:[%s4426_s0 + $0x20c] sm:$0xf]  ;;  %v2492_v25 = vld [vmem:[%s4426_s0 + $0x23c] sm:$0xf0]  ;;  %v2498_v26 = vld [vmem:[%s4426_s0 + $0x210] sm:$0xf] }
  0x2f   :  { %v3124_v27 = vld [vmem:[%s4426_s0 + $0x240] sm:$0xf0] }
  0x30   :  { %1658 = vmatpush.bf16.msrb.mxu3 %v3184_v34  ;;  %1707 = vmatpush.bf16.msrb.mxu0 %v3192_v35  ;;  %v2295_v34 = vor.u32 %v3066_v28, %v2292_v29  ;;  %v2299_v35 = vor.u32 %v3073_v31, %v2298_v30  ;;  %v3118_v28 = vld [vmem:[%s4426_s0 + $0x214] sm:$0xf]  ;;  %v2500_v29 = vld [vmem:[%s4426_s0 + $0x244] sm:$0xf0]  ;;  %v2506_v30 = vld [vmem:[%s4426_s0 + $0x218] sm:$0xf] }
  0x31   :  { %1531 = vmatmul.bf16.gmra.mxu1 %v2387_v46  ;;  %1541 = vmatmul.bf16.gmra.mxu2 %v2491_v47  ;;  %v2350_v46 = vld [vmem:[%s4426_s0 + $0xe0] sm:$0xf]  ;;  %v3086_v47 = vld [vmem:[%s4426_s0 + $0x110] sm:$0xf0]  ;;  %v3125_v31 = vld [vmem:[%s4426_s0 + $0x248] sm:$0xf0] }
  0x32   :  { %1610 = vmatpush.bf16.msrb.mxu2 %v3175_v44  ;;  %1561 = vmatpush.bf16.msrb.mxu1 %v3167_v45  ;;  %v3079_v44 = vld [vmem:[%s4426_s0 + $0xdc] sm:$0xf]  ;;  %v2344_v45 = vld [vmem:[%s4426_s0 + $0x10c] sm:$0xf0] }
  0x33   :  { %1551 = vmatmul.bf16.gmra.mxu3 %v2595_v48  ;;  %1521 = vmatmul.bf16.gmra.mxu0 %v2283_v49  ;;  %v2339_v48 = vor.u32 %v3078_v40, %v2336_v41  ;;  %v2343_v49 = vor.u32 %v3085_v43, %v2342_v42  ;;  %v3130_v40 = vld [vmem:[%s4426_s0 + $0x274] sm:$0xf]  ;;  %v2544_v41 = vld [vmem:[%s4426_s0 + $0x2a4] sm:$0xf0]  ;;  %v2550_v42 = vld [vmem:[%s4426_s0 + $0x278] sm:$0xf] }
  0x34   :  { %1659 = vmatpush.bf16.msrb.mxu3 %v3183_v50  ;;  %1708 = vmatpush.bf16.msrb.mxu0 %v3191_v51  ;;  %v2347_v50 = vor.u32 %v3079_v44, %v2344_v45  ;;  %v2351_v51 = vor.u32 %v3086_v47, %v2350_v46  ;;  %v3137_v43 = vld [vmem:[%s4426_s0 + $0x2a8] sm:$0xf0]  ;;  %v3131_v44 = vld [vmem:[%s4426_s0 + $0x27c] sm:$0xf]  ;;  %v2552_v45 = vld [vmem:[%s4426_s0 + $0x2ac] sm:$0xf0] }
  0x35   :  { %v2558_v46 = vld [vmem:[%s4426_s0 + $0x280] sm:$0xf]  ;;  %v3138_v47 = vld [vmem:[%s4426_s0 + $0x2b0] sm:$0xf0] }
  0x36   :  { %1611 = vmatpush.bf16.msrb.mxu2 %v3174_v52  ;;  %1562 = vmatpush.bf16.msrb.mxu1 %v3166_v53  ;;  %v3207_v52 = vld [vmem:[%s4425_s1 + $0x198] sm:$0xff] }
  0x37   :  { %v3215_v53 = vld [vmem:[%s4425_s1 + $0x1d8] sm:$0xff] }
  0x38   :  { %1660 = vmatpush.bf16.msrb.mxu3 %v3182_v54  ;;  %1709 = vmatpush.bf16.msrb.mxu0 %v3190_v55  ;;  %v3199_v54 = vld [vmem:[%s4425_s1 + $0x158] sm:$0xff] }
  0x39   :  { %v3223_v55 = vld [vmem:[%s4425_s1 + $0x218] sm:$0xff] }
  0x3a   :  { %1612 = vmatpush.bf16.msrb.mxu2 %v3173_v56  ;;  %1563 = vmatpush.bf16.msrb.mxu1 %v3165_v57  ;;  %v3091_v56 = vld [vmem:[%s4426_s0 + $0x13c] sm:$0xf]  ;;  %v2388_v57 = vld [vmem:[%s4426_s0 + $0x16c] sm:$0xf0] }
  0x3c   :  { %1661 = vmatpush.bf16.msrb.mxu3 %v3181_v58  ;;  %1710 = vmatpush.bf16.msrb.mxu0 %v3189_v59  ;;  %v2394_v58 = vld [vmem:[%s4426_s0 + $0x140] sm:$0xf]  ;;  %v3098_v59 = vld [vmem:[%s4426_s0 + $0x170] sm:$0xf0] }
  0x3d   :  { %v2395_v1 = vor.u32 %v3098_v59, %v2394_v58 }
  0x3e   :  { %1613 = vmatpush.bf16.msrb.mxu2 %v3172_v60  ;;  %1564 = vmatpush.bf16.msrb.mxu1 %v3164_v61  ;;  %v3092_v60 = vld [vmem:[%s4426_s0 + $0x144] sm:$0xf]  ;;  %v2396_v61 = vld [vmem:[%s4426_s0 + $0x174] sm:$0xf0] }
  0x40   :  { %1662 = vmatpush.bf16.msrb.mxu3 %v3180_v63  ;;  %1711 = vmatpush.bf16.msrb.mxu0 %v3188_v0  ;;  %v3099_v63 = vld [vmem:[%s4426_s0 + $0x178] sm:$0xf0]  ;;  %v2391_v0 = vor.u32 %v3091_v56, %v2388_v57 }
  0x41   :  { %1565 = vmatmul.bf16.vlgmr.msrb.gmra.mxu1 %v2235_v12  ;;  %1614 = vmatmul.bf16.vlgmr.msrb.gmra.mxu2 %v2239_v13  ;;  %v3105_v12 = vld [vmem:[%s4426_s0 + $0x1ac] sm:$0xf]  ;;  %v2448_v13 = vld [vmem:[%s4426_s0 + $0x1dc] sm:$0xf0] }
  0x42   :  { %1802 = vmatpush.bf16.msra.mxu2 %v3211_v2  ;;  %1753 = vmatpush.bf16.msra.mxu1 %v3203_v3  ;;  %v2399_v2 = vor.u32 %v3092_v60, %v2396_v61  ;;  %v2403_v3 = vor.u32 %v3099_v63, %v2402_v62  ;;  %v3235_v60 = vld [vmem:[%s4425_s1 + $0x278] sm:$0xff]  ;;  %v2596_v63 = vld [vmem:[%s4426_s0 + $0x30c] sm:$0xf0] }
  0x43   :  { %1663 = vmatmul.bf16.vlgmr.msrb.gmra.mxu3 %v2243_v14  ;;  %1712 = vmatmul.bf16.vlgmr.msrb.gmra.mxu0 %v2247_v15  ;;  %v2454_v14 = vld [vmem:[%s4426_s0 + $0x1b0] sm:$0xf]  ;;  %v3112_v15 = vld [vmem:[%s4426_s0 + $0x1e0] sm:$0xf0]  ;;  %v3255_v61 = vld [vmem:[%s4425_s1 + $0x318] sm:$0xff] }
  0x44   :  { %1851 = vmatpush.bf16.msra.mxu3 %v3219_v10  ;;  %1900 = vmatpush.bf16.msra.mxu0 %v3227_v11  ;;  %v2446_v10 = vld [vmem:[%s4426_s0 + $0x1a8] sm:$0xf]  ;;  %v3111_v11 = vld [vmem:[%s4426_s0 + $0x1d8] sm:$0xf0] }
  0x45   :  { %v3143_v62 = vld [vmem:[%s4426_s0 + $0x2dc] sm:$0xf] }
  0x46   :  { %1803 = vmatpush.bf16.msra.mxu2 %v3210_v16  ;;  %1754 = vmatpush.bf16.msra.mxu1 %v3202_v17  ;;  %v2443_v16 = vor.u32 %v3104_v8, %v2440_v9  ;;  %v2447_v17 = vor.u32 %v3111_v11, %v2446_v10  ;;  %v2599_v8 = vor.u32 %v3143_v62, %v2596_v63 }
  0x48   :  { %1852 = vmatpush.bf16.msra.mxu3 %v3218_v18  ;;  %1901 = vmatpush.bf16.msra.mxu0 %v3226_v19  ;;  %v2451_v18 = vor.u32 %v3105_v12, %v2448_v13  ;;  %v2455_v19 = vor.u32 %v3112_v15, %v2454_v14  ;;  %v3242_v14 = vld [vmem:[%s4425_s1 + $0x2b0] sm:$0xff] }
  0x49   :  { %v3250_v15 = vld [vmem:[%s4425_s1 + $0x2f0] sm:$0xff] }
  0x4a   :  { %1804 = vmatpush.bf16.msra.mxu2 %v3209_v20  ;;  %1755 = vmatpush.bf16.msra.mxu1 %v3201_v21  ;;  %v3205_v20 = vld [vmem:[%s4425_s1 + $0x188] sm:$0xff] }
  0x4b   :  { %v3213_v21 = vld [vmem:[%s4425_s1 + $0x1c8] sm:$0xff] }
  0x4c   :  { %1853 = vmatpush.bf16.msra.mxu3 %v3217_v22  ;;  %1902 = vmatpush.bf16.msra.mxu0 %v3225_v23  ;;  %v3197_v22 = vld [vmem:[%s4425_s1 + $0x148] sm:$0xff] }
  0x4d   :  { %v3221_v23 = vld [vmem:[%s4425_s1 + $0x208] sm:$0xff] }
  0x4e   :  { %1805 = vmatpush.bf16.msra.mxu2 %v3208_v36  ;;  %1756 = vmatpush.bf16.msra.mxu1 %v3200_v38  ;;  %v3204_v36 = vld [vmem:[%s4425_s1 + $0x180] sm:$0xff] }
  0x4f   :  { %v3196_v38 = vld [vmem:[%s4425_s1 + $0x140] sm:$0xff] }
  0x50   :  { %1854 = vmatpush.bf16.msra.mxu3 %v3216_v37  ;;  %1903 = vmatpush.bf16.msra.mxu0 %v3224_v39  ;;  %v3212_v37 = vld [vmem:[%s4425_s1 + $0x1c0] sm:$0xff] }
  0x51   :  { %1570 = vmatmul.bf16.gmra.mxu1 %v2287_v32  ;;  %1619 = vmatmul.bf16.gmra.mxu2 %v2291_v33  ;;  %v2495_v32 = vor.u32 %v3117_v24, %v2492_v25  ;;  %v2499_v33 = vor.u32 %v3124_v27, %v2498_v26  ;;  %v3220_v39 = vld [vmem:[%s4425_s1 + $0x200] sm:$0xff]  ;;  %v3061_v24 = vld [vmem:[%s4426_s0 + $0x48] sm:$0xf0]  ;;  %v3055_v25 = vld [vmem:[%s4426_s0 + $0x1c] sm:$0xf] }
  0x52   :  { %1806 = vmatpush.bf16.msra.mxu2 %v3207_v52  ;;  %1757 = vmatpush.bf16.msra.mxu1 %v3199_v54  ;;  %v2559_v52 = vor.u32 %v3138_v47, %v2558_v46  ;;  %v3243_v54 = vld [vmem:[%s4425_s1 + $0x2b8] sm:$0xff]  ;;  %v2256_v26 = vld [vmem:[%s4426_s0 + $0x4c] sm:$0xf0]  ;;  %v2262_v27 = vld [vmem:[%s4426_s0 + $0x20] sm:$0xf] }
  0x53   :  { %1668 = vmatmul.bf16.gmra.mxu3 %v2295_v34  ;;  %1717 = vmatmul.bf16.gmra.mxu0 %v2299_v35  ;;  %v2503_v34 = vor.u32 %v3118_v28, %v2500_v29  ;;  %v2507_v35 = vor.u32 %v3125_v31, %v2506_v30  ;;  %v3062_v28 = vld [vmem:[%s4426_s0 + $0x50] sm:$0xf0]  ;;  %v3233_v47 = vld [vmem:[%s4425_s1 + $0x268] sm:$0xff] }
  0x54   :  { %1855 = vmatpush.bf16.msra.mxu3 %v3215_v53  ;;  %1904 = vmatpush.bf16.msra.mxu0 %v3223_v55  ;;  %v3251_v55 = vld [vmem:[%s4425_s1 + $0x2f8] sm:$0xff] }
  0x56   :  { %1807 = vmatpush.bf16.msra.mxu2 %v3206_v4  ;;  %1758 = vmatpush.bf16.msra.mxu1 %v3198_v6  ;;  %v2610_v4 = vld [vmem:[%s4426_s0 + $0x2e8] sm:$0xf] }
  0x58   :  { %1856 = vmatpush.bf16.msra.mxu3 %v3214_v5  ;;  %1905 = vmatpush.bf16.msra.mxu0 %v3222_v7  ;;  %v3151_v5 = vld [vmem:[%s4426_s0 + $0x318] sm:$0xf0] }
  0x59   :  { %v2611_v12 = vor.u32 %v3151_v5, %v2610_v4 }
  0x5a   :  { %1808 = vmatpush.bf16.msra.mxu2 %v3205_v20  ;;  %1759 = vmatpush.bf16.msra.mxu1 %v3197_v22  ;;  %v3234_v20 = vld [vmem:[%s4425_s1 + $0x270] sm:$0xff]  ;;  %v2248_v22 = vld [vmem:[%s4426_s0 + $0x44] sm:$0xf0] }
  0x5c   :  { %1857 = vmatpush.bf16.msra.mxu3 %v3213_v21  ;;  %1906 = vmatpush.bf16.msra.mxu0 %v3221_v23  ;;  %v3054_v21 = vld [vmem:[%s4426_s0 + $0x14] sm:$0xf]  ;;  %v2254_v23 = vld [vmem:[%s4426_s0 + $0x18] sm:$0xf] }
  0x5d   :  { %v2251_v31 = vor.u32 %v3054_v21, %v2248_v22 }
  0x5e   :  { %1809 = vmatpush.bf16.msra.mxu2 %v3204_v36  ;;  %1760 = vmatpush.bf16.msra.mxu1 %v3196_v38  ;;  %v3241_v38 = vld [vmem:[%s4425_s1 + $0x2a8] sm:$0xff] }
  0x60   :  { %1858 = vmatpush.bf16.msra.mxu3 %v3212_v37  ;;  %1907 = vmatpush.bf16.msra.mxu0 %v3220_v39  ;;  %v3249_v39 = vld [vmem:[%s4425_s1 + $0x2e8] sm:$0xff] }
  0x61   :  { %1575 = vmatmul.bf16.gmra.mxu1 %v2339_v48  ;;  %1624 = vmatmul.bf16.gmra.mxu2 %v2343_v49  ;;  %v2547_v48 = vor.u32 %v3130_v40, %v2544_v41  ;;  %v2551_v49 = vor.u32 %v3137_v43, %v2550_v42 }
  0x62   :  { %1998 = vmatpush.bf16.msrb.mxu2 %v3243_v54  ;;  %1949 = vmatpush.bf16.msrb.mxu1 %v3235_v60  ;;  %v3074_v54 = vld [vmem:[%s4426_s0 + $0xb0] sm:$0xf0]  ;;  %v2314_v60 = vld [vmem:[%s4426_s0 + $0x88] sm:$0xf] }
  0x63   :  { %1673 = vmatmul.bf16.gmra.mxu3 %v2347_v50  ;;  %1722 = vmatmul.bf16.gmra.mxu0 %v2351_v51  ;;  %v2555_v51 = vor.u32 %v3131_v44, %v2552_v45 }
  0x64   :  { %2047 = vmatpush.bf16.msrb.mxu3 %v3251_v55  ;;  %2100 = vmatpush.bf16.msrb.mxu0 %v3255_v61  ;;  %v3068_v55 = vld [vmem:[%s4426_s0 + $0x84] sm:$0xf]  ;;  %v3075_v61 = vld [vmem:[%s4426_s0 + $0xb8] sm:$0xf0] }
  0x65   :  { %v2315_v5 = vor.u32 %v3075_v61, %v2314_v60 }
  0x66   :  { %1999 = vmatpush.bf16.msrb.mxu2 %v3242_v14  ;;  %1950 = vmatpush.bf16.msrb.mxu1 %v3234_v20  ;;  %v3240_v14 = vld [vmem:[%s4425_s1 + $0x2a0] sm:$0xff] }
  0x68   :  { %2048 = vmatpush.bf16.msrb.mxu3 %v3250_v15  ;;  %v3248_v15 = vld [vmem:[%s4425_s1 + $0x2e0] sm:$0xff] }
  0x6a   :  { %2000 = vmatpush.bf16.msrb.mxu2 %v3241_v38  ;;  %1951 = vmatpush.bf16.msrb.mxu1 %v3233_v47 }
  0x6c   :  { %2049 = vmatpush.bf16.msrb.mxu3 %v3249_v39 }
  0x6e   :  { %2001 = vmatpush.bf16.msrb.mxu2 %v3240_v14 }
  0x70   :  { %2050 = vmatpush.bf16.msrb.mxu3 %v3248_v15 }
  0x71   :  { %1580 = vmatmul.bf16.gmra.mxu1 %v2391_v0  ;;  %1629 = vmatmul.bf16.gmra.mxu2 %v2395_v1  ;;  %v2602_v0 = vld [vmem:[%s4426_s0 + $0x2e0] sm:$0xf]  ;;  %v3150_v1 = vld [vmem:[%s4426_s0 + $0x310] sm:$0xf0] }
  0x72   :  { %v2603_v9 = vor.u32 %v3150_v1, %v2602_v0 }
  0x73   :  { %1678 = vmatmul.bf16.gmra.mxu3 %v2399_v2  ;;  %1727 = vmatmul.bf16.gmra.mxu0 %v2403_v3  ;;  %v3144_v2 = vld [vmem:[%s4426_s0 + $0x2e4] sm:$0xf]  ;;  %v2604_v3 = vld [vmem:[%s4426_s0 + $0x314] sm:$0xf0] }
  0x74   :  { %v2607_v11 = vor.u32 %v3144_v2, %v2604_v3 }
  0x81   :  { %1585 = vmatmul.bf16.gmra.mxu1 %v2443_v16  ;;  %1634 = vmatmul.bf16.gmra.mxu2 %v2447_v17 }
  0x83   :  { %1683 = vmatmul.bf16.gmra.mxu3 %v2451_v18  ;;  %1732 = vmatmul.bf16.gmra.mxu0 %v2455_v19 }
  0x91   :  { %1590 = vmatmul.bf16.gmra.mxu1 %v2495_v32  ;;  %1639 = vmatmul.bf16.gmra.mxu2 %v2499_v33  ;;  %v2255_v32 = vor.u32 %v3061_v24, %v2254_v23 }
  0x93   :  { %1688 = vmatmul.bf16.gmra.mxu3 %v2503_v34  ;;  %1737 = vmatmul.bf16.gmra.mxu0 %v2507_v35  ;;  %v2259_v34 = vor.u32 %v3055_v25, %v2256_v26  ;;  %v2263_v35 = vor.u32 %v3062_v28, %v2262_v27  ;;  %v3232_v26 = vld [vmem:[%s4425_s1 + $0x260] sm:$0xff]  ;;  %v2352_v28 = vld [vmem:[%s4426_s0 + $0x114] sm:$0xf0] }
  0x94   :  { %v3080_v27 = vld [vmem:[%s4426_s0 + $0xe4] sm:$0xf]  ;;  %1952 = vmatpush.bf16.msrb.mxu1 %v3232_v26 }
  0x9e   :  { %v3733_v50 = vpop.f32.mrf.mxu1 }
  0xa0   :  { %v1517_v53 = vpop.f32.mrf.mxu0 }
  0xa1   :  { %1595 = vmatmul.bf16.gmra.mxu1 %v2547_v48  ;;  %1644 = vmatmul.bf16.gmra.mxu2 %v2551_v49  ;;  %v3254_v48 = vld [vmem:[%s4425_s1 + $0x310] sm:$0xff]  ;;  %v3067_v49 = vld [vmem:[%s4426_s0 + $0x7c] sm:$0xf] }
  0xa2   :  { %2101 = vmatpush.bf16.msrb.mxu0 %v3254_v48 }
  0xa3   :  { %1693 = vmatmul.bf16.gmra.mxu3 %v2555_v51  ;;  %1742 = vmatmul.bf16.gmra.mxu0 %v2559_v52  ;;  %v2300_v51 = vld [vmem:[%s4426_s0 + $0xac] sm:$0xf0] }
  0xa4   :  { %v3741_v56 = vpop.f32.mrf.mxu2  ;;  %v2303_v1 = vor.u32 %v3067_v49, %v2300_v51  ;;  %v3239_v49 = vld [vmem:[%s4425_s1 + $0x298] sm:$0xff] }
  0xa5   :  { %v3247_v51 = vld [vmem:[%s4425_s1 + $0x2d8] sm:$0xff]  ;;  %2002 = vmatpush.bf16.msrb.mxu2 %v3239_v49 }
  0xa6   :  { %v3743_v57 = vpop.f32.mrf.mxu3  ;;  %v3745_v58 = vpop.f32.mrf.mxu1  ;;  %2051 = vmatpush.bf16.msrb.mxu3 %v3247_v51 }
  0xa8   :  { %v3747_v59 = vpop.f32.mrf.mxu0 }
  0xac   :  { %v3779_v6 = vpop.f32.mrf.mxu2 }
  0xae   :  { %v3781_v7 = vpop.f32.mrf.mxu3  ;;  %v3783_v10 = vpop.f32.mrf.mxu1 }
  0xb0   :  { %v3785_v13 = vpop.f32.mrf.mxu0 }
  0xb1   :  { %1600 = vmatmul.bf16.gmra.mxu1 %v2599_v8  ;;  %1649 = vmatmul.bf16.gmra.mxu2 %v2603_v9 }
  0xb3   :  { %1698 = vmatmul.bf16.gmra.mxu3 %v2607_v11  ;;  %1747 = vmatmul.bf16.gmra.mxu0 %v2611_v12 }
  0xb4   :  { %v3793_v16 = vpop.f32.mrf.mxu2 }
  0xb6   :  { %v3795_v17 = vpop.f32.mrf.mxu3  ;;  %v3797_v18 = vpop.f32.mrf.mxu1 }
  0xb8   :  { %v3799_v19 = vpop.f32.mrf.mxu0 }
  0xbc   :  { %v3828_v29 = vpop.f32.mrf.mxu2 }
  0xbe   :  { %v3830_v30 = vpop.f32.mrf.mxu3  ;;  %v1566_v33 = vpop.f32.mrf.mxu1 }
  0xbf   :  { %v1567_v36 = vadd.f32 %v1566_v33, %v1517_v53  ;;  %v2306_v53 = vld [vmem:[%s4426_s0 + $0x80] sm:$0xf]  ;;  %v3081_v33 = vld [vmem:[%s4426_s0 + $0xec] sm:$0xf] }
  0xc0   :  { %v1713_v37 = vpop.f32.mrf.mxu0  ;;  %v2307_v2 = vor.u32 %v3074_v54, %v2306_v53 }
  0xc1   :  { %1761 = vmatmul.bf16.vlgmr.msra.gmra.mxu1 %v2251_v31  ;;  %1810 = vmatmul.bf16.vlgmr.msra.gmra.mxu2 %v2255_v32  ;;  %v3087_v32 = vld [vmem:[%s4426_s0 + $0x118] sm:$0xf0] }
  0xc3   :  { %1859 = vmatmul.bf16.vlgmr.msra.gmra.mxu3 %v2259_v34  ;;  %1908 = vmatmul.bf16.vlgmr.msra.gmra.mxu0 %v2263_v35  ;;  %v2360_v34 = vld [vmem:[%s4426_s0 + $0x11c] sm:$0xf0]  ;;  %v2366_v35 = vld [vmem:[%s4426_s0 + $0xf0] sm:$0xf] }
  0xc4   :  { %v1615_v40 = vpop.f32.mrf.mxu2 }
  0xc5   :  { %v1616_v41 = vadd.f32 %v1615_v40, %v1567_v36  ;;  %v3088_v36 = vld [vmem:[%s4426_s0 + $0x120] sm:$0xf0]  ;;  %v2355_v40 = vor.u32 %v3080_v27, %v2352_v28  ;;  %v3238_v28 = vld [vmem:[%s4425_s1 + $0x290] sm:$0xff] }
  0xc6   :  { %v1664_v42 = vpop.f32.mrf.mxu3  ;;  %v1568_v43 = vpop.f32.mrf.mxu1  ;;  %2003 = vmatpush.bf16.msrb.mxu2 %v3238_v28 }
  0xc7   :  { %v1665_v44 = vadd.f32 %v1664_v42, %v1616_v41  ;;  %v1569_v45 = vadd.f32 %v1568_v43, %v3747_v59  ;;  %v2308_v59 = vld [vmem:[%s4426_s0 + $0xb4] sm:$0xf0]  ;;  %v2363_v43 = vor.u32 %v3081_v33, %v2360_v34 }
  0xc8   :  { %v1715_v46 = vpop.f32.mrf.mxu0  ;;  %v2311_v4 = vor.u32 %v3068_v55, %v2308_v59 }
  0xc9   :  { %v3851_v52 = vadd.f32 %v1713_v37, %v1665_v44  ;;  %v2367_v44 = vor.u32 %v3088_v36, %v2366_v35 }
  0xcc   :  { %v1617_v62 = vpop.f32.mrf.mxu2 }
  0xcd   :  { %v1618_v63 = vadd.f32 %v1617_v62, %v1569_v45  ;;  %v3231_v62 = vld [vmem:[%s4425_s1 + $0x258] sm:$0xff] }
  0xce   :  { %v1666_v0 = vpop.f32.mrf.mxu3  ;;  %v1571_v3 = vpop.f32.mrf.mxu1  ;;  %1953 = vmatpush.bf16.msrb.mxu1 %v3231_v62 }
  0xcf   :  { %v1667_v8 = vadd.f32 %v1666_v0, %v1618_v63  ;;  %v1572_v9 = vadd.f32 %v1571_v3, %v3785_v13  ;;  %v3253_v63 = vld [vmem:[%s4425_s1 + $0x308] sm:$0xff]  ;;  %v3100_v3 = vld [vmem:[%s4426_s0 + $0x180] sm:$0xf0] }
  0xd0   :  { %v1718_v11 = vpop.f32.mrf.mxu0  ;;  %v3093_v0 = vld [vmem:[%s4426_s0 + $0x14c] sm:$0xf]  ;;  %2102 = vmatpush.bf16.msrb.mxu0 %v3253_v63 }
  0xd1   :  { %1766 = vmatmul.bf16.gmra.mxu1 %v2303_v1  ;;  %1815 = vmatmul.bf16.gmra.mxu2 %v2307_v2  ;;  %v3872_v12 = vadd.f32 %v1715_v46, %v1667_v8  ;;  %v2404_v1 = vld [vmem:[%s4426_s0 + $0x17c] sm:$0xf0]  ;;  %v2410_v2 = vld [vmem:[%s4426_s0 + $0x150] sm:$0xf]  ;;  %v2418_v8 = vld [vmem:[%s4426_s0 + $0x158] sm:$0xf] }
  0xd2   :  { %v3237_v63 = vld [vmem:[%s4425_s1 + $0x288] sm:$0xff] }
  0xd3   :  { %1864 = vmatmul.bf16.gmra.mxu3 %v2311_v4  ;;  %1913 = vmatmul.bf16.gmra.mxu0 %v2315_v5  ;;  %v3094_v4 = vld [vmem:[%s4426_s0 + $0x154] sm:$0xf]  ;;  %v2412_v5 = vld [vmem:[%s4426_s0 + $0x184] sm:$0xf0] }
  0xd4   :  { %v1620_v20 = vpop.f32.mrf.mxu2  ;;  %2004 = vmatpush.bf16.msrb.mxu2 %v3237_v63  ;;  %v3140_v63 = vld [vmem:[%s4426_s0 + $0x2c0] sm:$0xf0] }
  0xd5   :  { %v1621_v21 = vadd.f32 %v1620_v20, %v1572_v9  ;;  %v3101_v9 = vld [vmem:[%s4426_s0 + $0x188] sm:$0xf0]  ;;  %v2407_v20 = vor.u32 %v3093_v0, %v2404_v1 }
  0xd6   :  { %v1669_v13 = vpop.f32.mrf.mxu3  ;;  %v1573_v22 = vpop.f32.mrf.mxu1  ;;  %v3245_v0 = vld [vmem:[%s4425_s1 + $0x2c8] sm:$0xff] }
  0xd7   :  { %v1670_v23 = vadd.f32 %v1669_v13, %v1621_v21  ;;  %v1574_v24 = vadd.f32 %v1573_v22, %v3799_v19  ;;  %v2358_v19 = vld [vmem:[%s4426_s0 + $0xe8] sm:$0xf]  ;;  %v2411_v21 = vor.u32 %v3100_v3, %v2410_v2  ;;  %v2415_v22 = vor.u32 %v3094_v4, %v2412_v5 }
  0xd8   :  { %v1720_v25 = vpop.f32.mrf.mxu0  ;;  %v2359_v41 = vor.u32 %v3087_v32, %v2358_v19  ;;  %v3246_v19 = vld [vmem:[%s4425_s1 + $0x2d0] sm:$0xff] }
  0xd9   :  { %v3890_v31 = vadd.f32 %v1718_v11, %v1670_v23  ;;  %v2419_v23 = vor.u32 %v3101_v9, %v2418_v8  ;;  %2052 = vmatpush.bf16.msrb.mxu3 %v3246_v19 }
  0xdc   :  { %v1622_v37 = vpop.f32.mrf.mxu2 }
  0xdd   :  { %v1623_v38 = vadd.f32 %v1622_v37, %v1574_v24  ;;  %2053 = vmatpush.bf16.msrb.mxu3 %v3245_v0 }
  0xde   :  { %v1671_v39 = vpop.f32.mrf.mxu3  ;;  %v1576_v42 = vpop.f32.mrf.mxu1 }
  0xdf   :  { %v1672_v45 = vadd.f32 %v1671_v39, %v1623_v38  ;;  %v1577_v46 = vadd.f32 %v1576_v42, %v3733_v50  ;;  %v3230_v38 = vld [vmem:[%s4425_s1 + $0x250] sm:$0xff]  ;;  %v3113_v42 = vld [vmem:[%s4426_s0 + $0x1e8] sm:$0xf0] }
  0xe0   :  { %v1723_v47 = vpop.f32.mrf.mxu0  ;;  %v3106_v39 = vld [vmem:[%s4426_s0 + $0x1b4] sm:$0xf]  ;;  %1954 = vmatpush.bf16.msrb.mxu1 %v3230_v38 }
  0xe1   :  { %1771 = vmatmul.bf16.gmra.mxu1 %v2355_v40  ;;  %1820 = vmatmul.bf16.gmra.mxu2 %v2359_v41  ;;  %v3911_v48 = vadd.f32 %v1720_v25, %v1672_v45  ;;  %v2456_v40 = vld [vmem:[%s4426_s0 + $0x1e4] sm:$0xf0]  ;;  %v2470_v45 = vld [vmem:[%s4426_s0 + $0x1c0] sm:$0xf] }
  0xe3   :  { %1869 = vmatmul.bf16.gmra.mxu3 %v2363_v43  ;;  %1918 = vmatmul.bf16.gmra.mxu0 %v2367_v44  ;;  %v3107_v43 = vld [vmem:[%s4426_s0 + $0x1bc] sm:$0xf]  ;;  %v2464_v44 = vld [vmem:[%s4426_s0 + $0x1ec] sm:$0xf0] }
  0xe4   :  { %v1625_v53 = vpop.f32.mrf.mxu2 }
  0xe5   :  { %v1626_v54 = vadd.f32 %v1625_v53, %v1577_v46  ;;  %v3114_v46 = vld [vmem:[%s4426_s0 + $0x1f0] sm:$0xf0]  ;;  %v2459_v53 = vor.u32 %v3106_v39, %v2456_v40  ;;  %v3236_v39 = vld [vmem:[%s4425_s1 + $0x280] sm:$0xff] }
  0xe6   :  { %v1674_v50 = vpop.f32.mrf.mxu3  ;;  %v1578_v55 = vpop.f32.mrf.mxu1  ;;  %v3244_v40 = vld [vmem:[%s4425_s1 + $0x2c0] sm:$0xff]  ;;  %2005 = vmatpush.bf16.msrb.mxu2 %v3236_v39 }
  0xe7   :  { %v1675_v59 = vadd.f32 %v1674_v50, %v1626_v54  ;;  %v1579_v60 = vadd.f32 %v1578_v55, %v3745_v58  ;;  %v2467_v55 = vor.u32 %v3107_v43, %v2464_v44  ;;  %2054 = vmatpush.bf16.msrb.mxu3 %v3244_v40 }
  0xe8   :  { %v1725_v61 = vpop.f32.mrf.mxu0 }
  0xe9   :  { %v3932_v58 = vadd.f32 %v1723_v47, %v1675_v59  ;;  %v2471_v59 = vor.u32 %v3114_v46, %v2470_v45 }
  0xec   :  { %v1627_v11 = vpop.f32.mrf.mxu2 }
  0xed   :  { %v1628_v14 = vadd.f32 %v1627_v11, %v1579_v60  ;;  %v3229_v11 = vld [vmem:[%s4425_s1 + $0x248] sm:$0xff] }
  0xee   :  { %v1676_v15 = vpop.f32.mrf.mxu3  ;;  %v1581_v13 = vpop.f32.mrf.mxu1  ;;  %1955 = vmatpush.bf16.msrb.mxu1 %v3229_v11 }
  0xef   :  { %v1677_v24 = vadd.f32 %v1676_v15, %v1628_v14  ;;  %v1582_v25 = vadd.f32 %v1581_v13, %v3783_v10  ;;  %v3252_v14 = vld [vmem:[%s4425_s1 + $0x300] sm:$0xff]  ;;  %v2508_v15 = vld [vmem:[%s4426_s0 + $0x24c] sm:$0xf0]  ;;  %v3126_v13 = vld [vmem:[%s4426_s0 + $0x250] sm:$0xf0] }
  0xf0   :  { %v1728_v26 = vpop.f32.mrf.mxu0  ;;  %2103 = vmatpush.bf16.msrb.mxu0 %v3252_v14 }
  0xf1   :  { %1776 = vmatmul.bf16.gmra.mxu1 %v2407_v20  ;;  %1825 = vmatmul.bf16.gmra.mxu2 %v2411_v21  ;;  %v3953_v27 = vadd.f32 %v1725_v61, %v1677_v24  ;;  %v2514_v21 = vld [vmem:[%s4426_s0 + $0x220] sm:$0xf]  ;;  %v2516_v24 = vld [vmem:[%s4426_s0 + $0x254] sm:$0xf0] }
  0xf3   :  { %1874 = vmatmul.bf16.gmra.mxu3 %v2415_v22  ;;  %1923 = vmatmul.bf16.gmra.mxu0 %v2419_v23  ;;  %v3120_v22 = vld [vmem:[%s4426_s0 + $0x224] sm:$0xf] }
  0xf4   :  { %v1630_v32 = vpop.f32.mrf.mxu2 }
  0xf5   :  { %v1631_v33 = vadd.f32 %v1630_v32, %v1582_v25  ;;  %v2522_v25 = vld [vmem:[%s4426_s0 + $0x228] sm:$0xf] }
  0xf6   :  { %v1679_v10 = vpop.f32.mrf.mxu3  ;;  %v1583_v34 = vpop.f32.mrf.mxu1 }
  0xf7   :  { %v1680_v35 = vadd.f32 %v1679_v10, %v1631_v33  ;;  %v1584_v36 = vadd.f32 %v1583_v34, %v3797_v18  ;;  %v2462_v18 = vld [vmem:[%s4426_s0 + $0x1b8] sm:$0xf]  ;;  %v2515_v10 = vor.u32 %v3126_v13, %v2514_v21 }
  0xf8   :  { %v1730_v37 = vpop.f32.mrf.mxu0  ;;  %v2463_v54 = vor.u32 %v3113_v42, %v2462_v18 }
  0xf9   :  { %v3971_v41 = vadd.f32 %v1728_v26, %v1680_v35  ;;  %v3127_v26 = vld [vmem:[%s4426_s0 + $0x258] sm:$0xf0]  ;;  %v2519_v35 = vor.u32 %v3120_v22, %v2516_v24 }
  0xfc   :  { %v1632_v47 = vpop.f32.mrf.mxu2 }
  0xfd   :  { %v1633_v49 = vadd.f32 %v1632_v47, %v1584_v36 }
  0xfe   :  { %v1681_v51 = vpop.f32.mrf.mxu3  ;;  %v1586_v50 = vpop.f32.mrf.mxu1 }
  0xff   :  { %v1682_v60 = vadd.f32 %v1681_v51, %v1633_v49  ;;  %v1587_v1 = vadd.f32 %v1586_v50, %v3741_v56  ;;  %v3119_v56 = vld [vmem:[%s4426_s0 + $0x21c] sm:$0xf]  ;;  %v3228_v49 = vld [vmem:[%s4425_s1 + $0x240] sm:$0xff] }
 0x100   :  { %v1733_v61 = vpop.f32.mrf.mxu0  ;;  %v2511_v33 = vor.u32 %v3119_v56, %v2508_v15  ;;  %v3132_v51 = vld [vmem:[%s4426_s0 + $0x284] sm:$0xf]  ;;  %1956 = vmatpush.bf16.msrb.mxu1 %v3228_v49  ;;  %v3139_v50 = vld [vmem:[%s4426_s0 + $0x2b8] sm:$0xf0] }
 0x101   :  { %1781 = vmatmul.bf16.gmra.mxu1 %v2459_v53  ;;  %1830 = vmatmul.bf16.gmra.mxu2 %v2463_v54  ;;  %v3991_v62 = vadd.f32 %v1730_v37, %v1682_v60  ;;  %v2566_v54 = vld [vmem:[%s4426_s0 + $0x288] sm:$0xf]  ;;  %v2568_v60 = vld [vmem:[%s4426_s0 + $0x2bc] sm:$0xf0] }
 0x103   :  { %1879 = vmatmul.bf16.gmra.mxu3 %v2467_v55  ;;  %1928 = vmatmul.bf16.gmra.mxu0 %v2471_v59  ;;  %v3133_v55 = vld [vmem:[%s4426_s0 + $0x28c] sm:$0xf] }
 0x104   :  { %v1635_v2 = vpop.f32.mrf.mxu2 }
 0x105   :  { %v1636_v3 = vadd.f32 %v1635_v2, %v1587_v1 }
 0x106   :  { %v1684_v4 = vpop.f32.mrf.mxu3  ;;  %v1588_v5 = vpop.f32.mrf.mxu1 }
 0x107   :  { %v1685_v8 = vadd.f32 %v1684_v4, %v1636_v3  ;;  %v1589_v23 = vadd.f32 %v1588_v5, %v3779_v6  ;;  %v2523_v6 = vor.u32 %v3127_v26, %v2522_v25  ;;  %v2567_v4 = vor.u32 %v3139_v50, %v2566_v54  ;;  %v3145_v25 = vld [vmem:[%s4426_s0 + $0x2ec] sm:$0xf]  ;;  %v2612_v26 = vld [vmem:[%s4426_s0 + $0x31c] sm:$0xf0] }
 0x108   :  { %v1735_v9 = vpop.f32.mrf.mxu0  ;;  %v2615_v39 = vor.u32 %v3145_v25, %v2612_v26 }
 0x109   :  { %v4012_v20 = vadd.f32 %v1733_v61, %v1685_v8  ;;  %v2574_v61 = vld [vmem:[%s4426_s0 + $0x290] sm:$0xf]  ;;  %v2571_v8 = vor.u32 %v3133_v55, %v2568_v60  ;;  %v3056_v55 = vld [vmem:[%s4426_s0 + $0x24] sm:$0xf] }
 0x10c   :  { %v1637_v28 = vpop.f32.mrf.mxu2 }
 0x10d   :  { %v1638_v19 = vadd.f32 %v1637_v28, %v1589_v23 }
 0x10e   :  { %v1686_v32 = vpop.f32.mrf.mxu3  ;;  %v1591_v34 = vpop.f32.mrf.mxu1 }
 0x10f   :  { %v1687_v36 = vadd.f32 %v1686_v32, %v1638_v19  ;;  %v1592_v18 = vadd.f32 %v1591_v34, %v3793_v16  ;;  %v2560_v16 = vld [vmem:[%s4426_s0 + $0x2b4] sm:$0xf0]  ;;  %v3152_v19 = vld [vmem:[%s4426_s0 + $0x320] sm:$0xf0]  ;;  %v3146_v32 = vld [vmem:[%s4426_s0 + $0x2f4] sm:$0xf] }
 0x110   :  { %v1738_v37 = vpop.f32.mrf.mxu0  ;;  %v2563_v3 = vor.u32 %v3132_v51, %v2560_v16  ;;  %v2626_v34 = vld [vmem:[%s4426_s0 + $0x2f8] sm:$0xf] }
 0x111   :  { %1786 = vmatmul.bf16.gmra.mxu1 %v2511_v33  ;;  %1835 = vmatmul.bf16.gmra.mxu2 %v2515_v10  ;;  %v4033_v38 = vadd.f32 %v1735_v9, %v1687_v36  ;;  %v2620_v10 = vld [vmem:[%s4426_s0 + $0x324] sm:$0xf0] }
 0x113   :  { %1884 = vmatmul.bf16.gmra.mxu3 %v2519_v35  ;;  %1933 = vmatmul.bf16.gmra.mxu0 %v2523_v6  ;;  %v3153_v35 = vld [vmem:[%s4426_s0 + $0x328] sm:$0xf0] }
 0x114   :  { %v1640_v42 = vpop.f32.mrf.mxu2 }
 0x115   :  { %v1641_v43 = vadd.f32 %v1640_v42, %v1592_v18  ;;  %v2623_v42 = vor.u32 %v3146_v32, %v2620_v10 }
 0x116   :  { %v1689_v44 = vpop.f32.mrf.mxu3  ;;  %v1593_v45 = vpop.f32.mrf.mxu1 }
 0x117   :  { %v1690_v46 = vadd.f32 %v1689_v44, %v1641_v43  ;;  %v1594_v59 = vadd.f32 %v1593_v45, %v3828_v29  ;;  %v2575_v29 = vor.u32 %v3140_v63, %v2574_v61  ;;  %v3063_v61 = vld [vmem:[%s4426_s0 + $0x58] sm:$0xf0]  ;;  %v3057_v63 = vld [vmem:[%s4426_s0 + $0x2c] sm:$0xf] }
 0x118   :  { %v1740_v47 = vpop.f32.mrf.mxu0 }
 0x119   :  { %v4051_v53 = vadd.f32 %v1738_v37, %v1690_v46 }
 0x11c   :  { %v1642_v0 = vpop.f32.mrf.mxu2 }
 0x11d   :  { %v1643_v1 = vadd.f32 %v1642_v0, %v1594_v59  ;;  %v2264_v59 = vld [vmem:[%s4426_s0 + $0x54] sm:$0xf0] }
 0x11e   :  { %v1691_v2 = vpop.f32.mrf.mxu3  ;;  %v1596_v5 = vpop.f32.mrf.mxu1 }
 0x11f   :  { %v1692_v9 = vadd.f32 %v1691_v2, %v1643_v1  ;;  %v1597_v56 = vadd.f32 %v1596_v5, %v3743_v57  ;;  %v2618_v57 = vld [vmem:[%s4426_s0 + $0x2f0] sm:$0xf]  ;;  %v2272_v1 = vld [vmem:[%s4426_s0 + $0x5c] sm:$0xf0] }
 0x120   :  { %v1743_v11 = vpop.f32.mrf.mxu0  ;;  %v2619_v40 = vor.u32 %v3152_v19, %v2618_v57  ;;  %v2278_v2 = vld [vmem:[%s4426_s0 + $0x30] sm:$0xf] }
 0x121   :  { %1791 = vmatmul.bf16.gmra.mxu1 %v2563_v3  ;;  %1840 = vmatmul.bf16.gmra.mxu2 %v2567_v4  ;;  %v4072_v14 = vadd.f32 %v1740_v47, %v1692_v9  ;;  %v3064_v3 = vld [vmem:[%s4426_s0 + $0x60] sm:$0xf0] }
 0x123   :  { %1889 = vmatmul.bf16.gmra.mxu3 %v2571_v8  ;;  %1938 = vmatmul.bf16.gmra.mxu0 %v2575_v29  ;;  %v2267_v29 = vor.u32 %v3056_v55, %v2264_v59 }
 0x124   :  { %v1645_v15 = vpop.f32.mrf.mxu2 }
 0x125   :  { %v1646_v21 = vadd.f32 %v1645_v15, %v1597_v56  ;;  %v2275_v56 = vor.u32 %v3057_v63, %v2272_v1 }
 0x126   :  { %v1694_v13 = vpop.f32.mrf.mxu3  ;;  %v1598_v22 = vpop.f32.mrf.mxu1 }
 0x127   :  { %v1695_v23 = vadd.f32 %v1694_v13, %v1646_v21  ;;  %v1599_v33 = vadd.f32 %v1598_v22, %v3781_v7  ;;  %v2627_v7 = vor.u32 %v3153_v35, %v2626_v34  ;;  %v2322_v34 = vld [vmem:[%s4426_s0 + $0x90] sm:$0xf]  ;;  %v3076_v35 = vld [vmem:[%s4426_s0 + $0xc0] sm:$0xf0] }
 0x128   :  { %v1745_v24 = vpop.f32.mrf.mxu0 }
 0x129   :  { %v4081_v28 = vadd.f32 %v1743_v11, %v1695_v23 }
 0x12c   :  { %v1647_v6 = vpop.f32.mrf.mxu2 }
 0x12d   :  { %v1648_v36 = vadd.f32 %v1647_v6, %v1599_v33  ;;  %v2316_v33 = vld [vmem:[%s4426_s0 + $0xbc] sm:$0xf0]  ;;  %v2324_v6 = vld [vmem:[%s4426_s0 + $0xc4] sm:$0xf0] }
 0x12e   :  { %v1696_v37 = vpop.f32.mrf.mxu3  ;;  %v1601_v18 = vpop.f32.mrf.mxu1 }
 0x12f   :  { %v1697_v43 = vadd.f32 %v1696_v37, %v1648_v36  ;;  %v1602_v46 = vadd.f32 %v1601_v18, %v3795_v17  ;;  %v2270_v17 = vld [vmem:[%s4426_s0 + $0x28] sm:$0xf]  ;;  %v2330_v36 = vld [vmem:[%s4426_s0 + $0x98] sm:$0xf]  ;;  %v3077_v37 = vld [vmem:[%s4426_s0 + $0xc8] sm:$0xf0] }
 0x130   :  { %v1748_v44 = vpop.f32.mrf.mxu0  ;;  %v2271_v9 = vor.u32 %v3063_v61, %v2270_v17 }
 0x131   :  { %1796 = vmatmul.bf16.gmra.mxu1 %v2615_v39  ;;  %1845 = vmatmul.bf16.gmra.mxu2 %v2619_v40  ;;  %v4102_v45 = vadd.f32 %v1745_v24, %v1697_v43 }
 0x133   :  { %1894 = vmatmul.bf16.gmra.mxu3 %v2623_v42  ;;  %1943 = vmatmul.bf16.gmra.mxu0 %v2627_v7  ;;  %v2323_v7 = vor.u32 %v3076_v35, %v2322_v34 }
 0x134   :  { %v1650_v47 = vpop.f32.mrf.mxu2 }
 0x135   :  { %v1651_v49 = vadd.f32 %v1650_v47, %v1602_v46  ;;  %v2331_v46 = vor.u32 %v3077_v37, %v2330_v36  ;;  %v2426_v36 = vld [vmem:[%s4426_s0 + $0x160] sm:$0xf]  ;;  %v3102_v37 = vld [vmem:[%s4426_s0 + $0x190] sm:$0xf0] }
 0x136   :  { %v1699_v51 = vpop.f32.mrf.mxu3  ;;  %v1603_v16 = vpop.f32.mrf.mxu1 }
 0x137   :  { %v1700_v54 = vadd.f32 %v1699_v51, %v1651_v49  ;;  %v1604_v0 = vadd.f32 %v1603_v16, %v3830_v30  ;;  %v2279_v30 = vor.u32 %v3064_v3, %v2278_v2  ;;  %v2374_v2 = vld [vmem:[%s4426_s0 + $0xf8] sm:$0xf]  ;;  %v3089_v3 = vld [vmem:[%s4426_s0 + $0x128] sm:$0xf0] }
 0x138   :  { %v1750_v50 = vpop.f32.mrf.mxu0 }
 0x139   :  { %v4111_v60 = vadd.f32 %v1748_v44, %v1700_v54 }
 0x13c   :  { %v1652_v4 = vpop.f32.mrf.mxu2 }
 0x13d   :  { %v1653_v5 = vadd.f32 %v1652_v4, %v1604_v0  ;;  %v2368_v0 = vld [vmem:[%s4426_s0 + $0x124] sm:$0xf0]  ;;  %v2376_v4 = vld [vmem:[%s4426_s0 + $0x12c] sm:$0xf0] }
 0x13e   :  { %v1701_v8 = vpop.f32.mrf.mxu3  ;;  %v1762_v11 = vpop.f32.mrf.mxu1 }
 0x13f   :  { %v1702_v15 = vadd.f32 %v1701_v8, %v1653_v5  ;;  %v1763_v21 = vadd.f32 %v1762_v11, %v3851_v52  ;;  %v3069_v52 = vld [vmem:[%s4426_s0 + $0x8c] sm:$0xf]  ;;  %v2382_v5 = vld [vmem:[%s4426_s0 + $0x100] sm:$0xf]  ;;  %v3090_v8 = vld [vmem:[%s4426_s0 + $0x130] sm:$0xf0] }
 0x140   :  { %v1909_v13 = vpop.f32.mrf.mxu0  ;;  %v2319_v42 = vor.u32 %v3069_v52, %v2316_v33 }
 0x141   :  { %1957 = vmatmul.bf16.vlgmr.msrb.gmra.mxu1 %v2267_v29  ;;  %2006 = vmatmul.bf16.vlgmr.msrb.gmra.mxu2 %v2271_v9  ;;  %v4133_v22 = vadd.f32 %v1750_v50, %v1702_v15 }
 0x143   :  { %2055 = vmatmul.bf16.vlgmr.msrb.gmra.mxu3 %v2275_v56  ;;  %3044 = vmatmul.msk.bf16.vlgmr.msrb.gmra.mxu0 %vm1483_vm0, %v2279_v30  ;;  %v2375_v30 = vor.u32 %v3089_v3, %v2374_v2 }
 0x144   :  { %v1811_v23 = vpop.f32.mrf.mxu2 }
 0x145   :  { %v1812_v24 = vadd.f32 %v1811_v23, %v1763_v21 }
 0x146   :  { %v1860_v25 = vpop.f32.mrf.mxu3  ;;  %v1764_v26 = vpop.f32.mrf.mxu1 }
 0x147   :  { %v1861_v57 = vadd.f32 %v1860_v25, %v1812_v24  ;;  %v1765_v19 = vadd.f32 %v1764_v26, %v3872_v12  ;;  %v3070_v12 = vld [vmem:[%s4426_s0 + $0x94] sm:$0xf] }
 0x148   :  { %v1911_v32 = vpop.f32.mrf.mxu0  ;;  %v2327_v44 = vor.u32 %v3070_v12, %v2324_v6  ;;  %v2420_v12 = vld [vmem:[%s4426_s0 + $0x18c] sm:$0xf0] }
 0x149   :  { %v4143_v10 = vadd.f32 %v1909_v13, %v1861_v57  ;;  %v2383_v13 = vor.u32 %v3090_v8, %v2382_v5  ;;  %v2478_v5 = vld [vmem:[%s4426_s0 + $0x1c8] sm:$0xf]  ;;  %v3115_v8 = vld [vmem:[%s4426_s0 + $0x1f8] sm:$0xf0] }
 0x14c   :  { %v1813_v39 = vpop.f32.mrf.mxu2 }
 0x14d   :  { %v1814_v40 = vadd.f32 %v1813_v39, %v1765_v19  ;;  %v2428_v39 = vld [vmem:[%s4426_s0 + $0x194] sm:$0xf0] }
 0x14e   :  { %v1862_v18 = vpop.f32.mrf.mxu3  ;;  %v1767_v43 = vpop.f32.mrf.mxu1 }
 0x14f   :  { %v1863_v47 = vadd.f32 %v1862_v18, %v1814_v40  ;;  %v1768_v49 = vadd.f32 %v1767_v43, %v3890_v31  ;;  %v3082_v31 = vld [vmem:[%s4426_s0 + $0xf4] sm:$0xf]  ;;  %v2434_v40 = vld [vmem:[%s4426_s0 + $0x168] sm:$0xf]  ;;  %v3103_v18 = vld [vmem:[%s4426_s0 + $0x198] sm:$0xf0] }
 0x150   :  { %v1914_v51 = vpop.f32.mrf.mxu0  ;;  %v2371_v56 = vor.u32 %v3082_v31, %v2368_v0 }
 0x151   :  { %1962 = vmatmul.bf16.gmra.mxu1 %v2319_v42  ;;  %2011 = vmatmul.bf16.gmra.mxu2 %v2323_v7  ;;  %v4164_v16 = vadd.f32 %v1911_v32, %v1863_v47 }
 0x153   :  { %2060 = vmatmul.bf16.gmra.mxu3 %v2327_v44  ;;  %3045 = vmatmul.msk.bf16.gmra.mxu0 %vm1483_vm0, %v2331_v46  ;;  %v2427_v46 = vor.u32 %v3102_v37, %v2426_v36 }
 0x154   :  { %v1816_v54 = vpop.f32.mrf.mxu2 }
 0x155   :  { %v1817_v50 = vadd.f32 %v1816_v54, %v1768_v49 }
 0x156   :  { %v1865_v55 = vpop.f32.mrf.mxu3  ;;  %v1769_v59 = vpop.f32.mrf.mxu1 }
 0x157   :  { %v1866_v17 = vadd.f32 %v1865_v55, %v1817_v50  ;;  %v1770_v61 = vadd.f32 %v1769_v59, %v3911_v48  ;;  %v3083_v48 = vld [vmem:[%s4426_s0 + $0xfc] sm:$0xf] }
 0x158   :  { %v1916_v63 = vpop.f32.mrf.mxu0  ;;  %v2379_v21 = vor.u32 %v3083_v48, %v2376_v4  ;;  %v2472_v48 = vld [vmem:[%s4426_s0 + $0x1f4] sm:$0xf0] }
 0x159   :  { %v4174_v1 = vadd.f32 %v1914_v51, %v1866_v17  ;;  %v2435_v51 = vor.u32 %v3103_v18, %v2434_v40  ;;  %v2530_v40 = vld [vmem:[%s4426_s0 + $0x230] sm:$0xf]  ;;  %v3128_v18 = vld [vmem:[%s4426_s0 + $0x260] sm:$0xf0] }
 0x15c   :  { %v1818_v29 = vpop.f32.mrf.mxu2 }
 0x15d   :  { %v1819_v9 = vadd.f32 %v1818_v29, %v1770_v61  ;;  %v2480_v29 = vld [vmem:[%s4426_s0 + $0x1fc] sm:$0xf0] }
 0x15e   :  { %v1867_v11 = vpop.f32.mrf.mxu3  ;;  %v1772_v15 = vpop.f32.mrf.mxu1 }
 0x15f   :  { %v1868_v23 = vadd.f32 %v1867_v11, %v1819_v9  ;;  %v1773_v24 = vadd.f32 %v1772_v15, %v3932_v58  ;;  %v3095_v58 = vld [vmem:[%s4426_s0 + $0x15c] sm:$0xf]  ;;  %v2486_v9 = vld [vmem:[%s4426_s0 + $0x1d0] sm:$0xf]  ;;  %v3116_v11 = vld [vmem:[%s4426_s0 + $0x200] sm:$0xf0] }
 0x160   :  { %v1919_v25 = vpop.f32.mrf.mxu0  ;;  %v2423_v44 = vor.u32 %v3095_v58, %v2420_v12 }
 0x161   :  { %1967 = vmatmul.bf16.gmra.mxu1 %v2371_v56  ;;  %2016 = vmatmul.bf16.gmra.mxu2 %v2375_v30  ;;  %v4195_v26 = vadd.f32 %v1916_v63, %v1868_v23 }
 0x163   :  { %2065 = vmatmul.bf16.gmra.mxu3 %v2379_v21  ;;  %3046 = vmatmul.msk.bf16.gmra.mxu0 %vm1483_vm0, %v2383_v13  ;;  %v2479_v13 = vor.u32 %v3115_v8, %v2478_v5 }
 0x164   :  { %v1821_v57 = vpop.f32.mrf.mxu2 }
 0x165   :  { %v1822_v19 = vadd.f32 %v1821_v57, %v1773_v24 }
 0x166   :  { %v1870_v32 = vpop.f32.mrf.mxu3  ;;  %v1774_v52 = vpop.f32.mrf.mxu1 }
 0x167   :  { %v1871_v33 = vadd.f32 %v1870_v32, %v1822_v19  ;;  %v1775_v34 = vadd.f32 %v1774_v52, %v3953_v27  ;;  %v3096_v27 = vld [vmem:[%s4426_s0 + $0x164] sm:$0xf] }
 0x168   :  { %v1921_v35 = vpop.f32.mrf.mxu0  ;;  %v2431_v49 = vor.u32 %v3096_v27, %v2428_v39  ;;  %v2524_v27 = vld [vmem:[%s4426_s0 + $0x25c] sm:$0xf0] }
 0x169   :  { %v4205_v6 = vadd.f32 %v1919_v25, %v1871_v33  ;;  %v2487_v25 = vor.u32 %v3116_v11, %v2486_v9  ;;  %v2582_v9 = vld [vmem:[%s4426_s0 + $0x298] sm:$0xf]  ;;  %v3141_v11 = vld [vmem:[%s4426_s0 + $0x2c8] sm:$0xf0] }
 0x16c   :  { %v1823_v42 = vpop.f32.mrf.mxu2 }
 0x16d   :  { %v1824_v7 = vadd.f32 %v1823_v42, %v1775_v34  ;;  %v2532_v42 = vld [vmem:[%s4426_s0 + $0x264] sm:$0xf0] }
 0x16e   :  { %v1872_v43 = vpop.f32.mrf.mxu3  ;;  %v1777_v47 = vpop.f32.mrf.mxu1 }
 0x16f   :  { %v1873_v54 = vadd.f32 %v1872_v43, %v1824_v7  ;;  %v1778_v50 = vadd.f32 %v1777_v47, %v3971_v41  ;;  %v3108_v41 = vld [vmem:[%s4426_s0 + $0x1c4] sm:$0xf]  ;;  %v2538_v7 = vld [vmem:[%s4426_s0 + $0x238] sm:$0xf]  ;;  %v3129_v43 = vld [vmem:[%s4426_s0 + $0x268] sm:$0xf0] }
 0x170   :  { %v1924_v55 = vpop.f32.mrf.mxu0  ;;  %v2475_v21 = vor.u32 %v3108_v41, %v2472_v48 }
 0x171   :  { %1972 = vmatmul.bf16.gmra.mxu1 %v2423_v44  ;;  %2021 = vmatmul.bf16.gmra.mxu2 %v2427_v46  ;;  %v4226_v59 = vadd.f32 %v1921_v35, %v1873_v54 }
 0x173   :  { %2070 = vmatmul.bf16.gmra.mxu3 %v2431_v49  ;;  %3047 = vmatmul.msk.bf16.gmra.mxu0 %vm1483_vm0, %v2435_v51  ;;  %v2531_v51 = vor.u32 %v3128_v18, %v2530_v40 }
 0x174   :  { %v1826_v17 = vpop.f32.mrf.mxu2 }
 0x175   :  { %v1827_v61 = vadd.f32 %v1826_v17, %v1778_v50 }
 0x176   :  { %v1875_v63 = vpop.f32.mrf.mxu3  ;;  %v1779_v31 = vpop.f32.mrf.mxu1 }
 0x177   :  { %v1876_v0 = vadd.f32 %v1875_v63, %v1827_v61  ;;  %v1780_v2 = vadd.f32 %v1779_v31, %v3991_v62  ;;  %v3109_v62 = vld [vmem:[%s4426_s0 + $0x1cc] sm:$0xf] }
 0x178   :  { %v1926_v3 = vpop.f32.mrf.mxu0  ;;  %v2483_v24 = vor.u32 %v3109_v62, %v2480_v29  ;;  %v2576_v62 = vld [vmem:[%s4426_s0 + $0x2c4] sm:$0xf0] }
 0x179   :  { %v4236_v4 = vadd.f32 %v1924_v55, %v1876_v0  ;;  %v2539_v55 = vor.u32 %v3129_v43, %v2538_v7  ;;  %v2634_v7 = vld [vmem:[%s4426_s0 + $0x300] sm:$0xf]  ;;  %v3154_v43 = vld [vmem:[%s4426_s0 + $0x330] sm:$0xf0] }
 0x17c   :  { %v1828_v56 = vpop.f32.mrf.mxu2 }
 0x17d   :  { %v1829_v30 = vadd.f32 %v1828_v56, %v1780_v2  ;;  %v2584_v56 = vld [vmem:[%s4426_s0 + $0x2cc] sm:$0xf0] }
 0x17e   :  { %v1877_v15 = vpop.f32.mrf.mxu3  ;;  %v1782_v23 = vpop.f32.mrf.mxu1 }
 0x17f   :  { %v1878_v57 = vadd.f32 %v1877_v15, %v1829_v30  ;;  %v1783_v19 = vadd.f32 %v1782_v23, %v4012_v20  ;;  %v3121_v20 = vld [vmem:[%s4426_s0 + $0x22c] sm:$0xf]  ;;  %v2590_v30 = vld [vmem:[%s4426_s0 + $0x2a0] sm:$0xf]  ;;  %v3142_v15 = vld [vmem:[%s4426_s0 + $0x2d0] sm:$0xf0] }
 0x180   :  { %v1929_v32 = vpop.f32.mrf.mxu0  ;;  %v2527_v49 = vor.u32 %v3121_v20, %v2524_v27 }
 0x181   :  { %1977 = vmatmul.bf16.gmra.mxu1 %v2475_v21  ;;  %2026 = vmatmul.bf16.gmra.mxu2 %v2479_v13  ;;  %v4257_v52 = vadd.f32 %v1926_v3, %v1878_v57 }
 0x183   :  { %2075 = vmatmul.bf16.gmra.mxu3 %v2483_v24  ;;  %3048 = vmatmul.msk.bf16.gmra.mxu0 %vm1483_vm0, %v2487_v25  ;;  %v2583_v25 = vor.u32 %v3141_v11, %v2582_v9 }
 0x184   :  { %v1831_v33 = vpop.f32.mrf.mxu2 }
 0x185   :  { %v1832_v34 = vadd.f32 %v1831_v33, %v1783_v19 }
 0x186   :  { %v1880_v35 = vpop.f32.mrf.mxu3  ;;  %v1784_v58 = vpop.f32.mrf.mxu1 }
 0x187   :  { %v1881_v12 = vadd.f32 %v1880_v35, %v1832_v34  ;;  %v1785_v36 = vadd.f32 %v1784_v58, %v4033_v38  ;;  %v3122_v38 = vld [vmem:[%s4426_s0 + $0x234] sm:$0xf] }
 0x188   :  { %v1931_v37 = vpop.f32.mrf.mxu0  ;;  %v2535_v50 = vor.u32 %v3122_v38, %v2532_v42  ;;  %v2628_v38 = vld [vmem:[%s4426_s0 + $0x32c] sm:$0xf0] }
 0x189   :  { %v4267_v39 = vadd.f32 %v1929_v32, %v1881_v12  ;;  %v2591_v32 = vor.u32 %v3142_v15, %v2590_v30 }
 0x18c   :  { %v1833_v44 = vpop.f32.mrf.mxu2 }
 0x18d   :  { %v1834_v46 = vadd.f32 %v1833_v44, %v1785_v36  ;;  %v2636_v44 = vld [vmem:[%s4426_s0 + $0x334] sm:$0xf0] }
 0x18e   :  { %v1882_v47 = vpop.f32.mrf.mxu3  ;;  %v1787_v54 = vpop.f32.mrf.mxu1 }
 0x18f   :  { %v1883_v17 = vadd.f32 %v1882_v47, %v1834_v46  ;;  %v1788_v61 = vadd.f32 %v1787_v54, %v4051_v53  ;;  %v3134_v53 = vld [vmem:[%s4426_s0 + $0x294] sm:$0xf]  ;;  %v2642_v46 = vld [vmem:[%s4426_s0 + $0x308] sm:$0xf]  ;;  %v3155_v47 = vld [vmem:[%s4426_s0 + $0x338] sm:$0xf0] }
 0x190   :  { %v1934_v63 = vpop.f32.mrf.mxu0  ;;  %v2579_v24 = vor.u32 %v3134_v53, %v2576_v62 }
 0x191   :  { %1982 = vmatmul.bf16.gmra.mxu1 %v2527_v49  ;;  %2031 = vmatmul.bf16.gmra.mxu2 %v2531_v51  ;;  %v4288_v31 = vadd.f32 %v1931_v37, %v1883_v17 }
 0x193   :  { %2080 = vmatmul.bf16.gmra.mxu3 %v2535_v50  ;;  %3049 = vmatmul.msk.bf16.gmra.mxu0 %vm1483_vm0, %v2539_v55  ;;  %v2635_v55 = vor.u32 %v3154_v43, %v2634_v7 }
 0x194   :  { %v1836_v0 = vpop.f32.mrf.mxu2 }
 0x195   :  { %v1837_v2 = vadd.f32 %v1836_v0, %v1788_v61 }
 0x196   :  { %v1885_v3 = vpop.f32.mrf.mxu3  ;;  %v1789_v41 = vpop.f32.mrf.mxu1 }
 0x197   :  { %v1886_v48 = vadd.f32 %v1885_v3, %v1837_v2  ;;  %v1790_v5 = vadd.f32 %v1789_v41, %v4072_v14  ;;  %v3135_v14 = vld [vmem:[%s4426_s0 + $0x29c] sm:$0xf] }
 0x198   :  { %v1936_v8 = vpop.f32.mrf.mxu0  ;;  %v2587_v19 = vor.u32 %v3135_v14, %v2584_v56 }
 0x199   :  { %v4298_v29 = vadd.f32 %v1934_v63, %v1886_v48  ;;  %v2643_v63 = vor.u32 %v3155_v47, %v2642_v46 }
 0x19c   :  { %v1838_v21 = vpop.f32.mrf.mxu2 }
 0x19d   :  { %v1839_v13 = vadd.f32 %v1838_v21, %v1790_v5 }
 0x19e   :  { %v1887_v23 = vpop.f32.mrf.mxu3  ;;  %v1792_v57 = vpop.f32.mrf.mxu1 }
 0x19f   :  { %v1888_v33 = vadd.f32 %v1887_v23, %v1839_v13  ;;  %v1793_v34 = vadd.f32 %v1792_v57, %v4081_v28  ;;  %v3147_v28 = vld [vmem:[%s4426_s0 + $0x2fc] sm:$0xf] }
 0x1a0   :  { %v1939_v35 = vpop.f32.mrf.mxu0  ;;  %v2631_v50 = vor.u32 %v3147_v28, %v2628_v38 }
 0x1a1   :  { %1987 = vmatmul.bf16.gmra.mxu1 %v2579_v24  ;;  %2036 = vmatmul.bf16.gmra.mxu2 %v2583_v25  ;;  %v4319_v58 = vadd.f32 %v1936_v8, %v1888_v33 }
 0x1a3   :  { %2085 = vmatmul.bf16.gmra.mxu3 %v2587_v19  ;;  %3050 = vmatmul.msk.bf16.gmra.mxu0 %vm1483_vm0, %v2591_v32 }
 0x1a4   :  { %v1841_v12 = vpop.f32.mrf.mxu2 }
 0x1a5   :  { %v1842_v36 = vadd.f32 %v1841_v12, %v1793_v34 }
 0x1a6   :  { %v1890_v37 = vpop.f32.mrf.mxu3  ;;  %v1794_v20 = vpop.f32.mrf.mxu1 }
 0x1a7   :  { %v1891_v27 = vadd.f32 %v1890_v37, %v1842_v36  ;;  %v1795_v40 = vadd.f32 %v1794_v20, %v4102_v45  ;;  %v3148_v45 = vld [vmem:[%s4426_s0 + $0x304] sm:$0xf] }
 0x1a8   :  { %v1941_v18 = vpop.f32.mrf.mxu0  ;;  %v2639_v61 = vor.u32 %v3148_v45, %v2636_v44 }
 0x1a9   :  { %v4329_v42 = vadd.f32 %v1939_v35, %v1891_v27 }
 0x1ac   :  { %v1843_v49 = vpop.f32.mrf.mxu2 }
 0x1ad   :  { %v1844_v51 = vadd.f32 %v1843_v49, %v1795_v40 }
 0x1ae   :  { %v1892_v54 = vpop.f32.mrf.mxu3  ;;  %v1797_v17 = vpop.f32.mrf.mxu1 }
 0x1af   :  { %v1893_v0 = vadd.f32 %v1892_v54, %v1844_v51  ;;  %v1798_v2 = vadd.f32 %v1797_v17, %v4111_v60 }
 0x1b0   :  { %v1944_v3 = vpop.f32.mrf.mxu0 }
 0x1b1   :  { %1992 = vmatmul.bf16.gmra.mxu1 %v2631_v50  ;;  %2041 = vmatmul.bf16.gmra.mxu2 %v2635_v55  ;;  %v4350_v41 = vadd.f32 %v1941_v18, %v1893_v0 }
 0x1b3   :  { %2090 = vmatmul.bf16.gmra.mxu3 %v2639_v61  ;;  %3051 = vmatmul.msk.bf16.gmra.mxu0 %vm1483_vm0, %v2643_v63 }
 0x1b4   :  { %v1846_v48 = vpop.f32.mrf.mxu2 }
 0x1b5   :  { %v1847_v5 = vadd.f32 %v1846_v48, %v1798_v2 }
 0x1b6   :  { %v1895_v8 = vpop.f32.mrf.mxu3  ;;  %v1799_v53 = vpop.f32.mrf.mxu1 }
 0x1b7   :  { %v1896_v62 = vadd.f32 %v1895_v8, %v1847_v5  ;;  %v1800_v9 = vadd.f32 %v1799_v53, %v4133_v22 }
 0x1b8   :  { %v1946_v11 = vpop.f32.mrf.mxu0 }
 0x1b9   :  { %v4354_v14 = vadd.f32 %v1944_v3, %v1896_v62 }
 0x1bc   :  { %v1848_v56 = vpop.f32.mrf.mxu2 }
 0x1bd   :  { %v1849_v60 = vadd.f32 %v1848_v56, %v1800_v9 }
 0x1be   :  { %v1897_v30 = vpop.f32.mrf.mxu3  ;;  %v1958_v15 = vpop.f32.mrf.mxu1 }
 0x1bf   :  { %v1898_v21 = vadd.f32 %v1897_v30, %v1849_v60  ;;  %v1959_v13 = vadd.f32 %v1958_v15, %v4143_v10 }
 0x1c0   :  { %v2105_v23 = vpop.f32.mrf.mxu0 }
 0x1c1   :  { %v4357_v24 = vadd.f32 %v1946_v11, %v1898_v21 }
 0x1c4   :  { %v2007_v25 = vpop.f32.mrf.mxu2 }
 0x1c5   :  { %v2008_v57 = vadd.f32 %v2007_v25, %v1959_v13 }
 0x1c6   :  { %v2056_v19 = vpop.f32.mrf.mxu3  ;;  %v1960_v32 = vpop.f32.mrf.mxu1 }
 0x1c7   :  { %v2057_v33 = vadd.f32 %v2056_v19, %v2008_v57  ;;  %v1961_v22 = vadd.f32 %v1960_v32, %v4164_v16 }
 0x1c8   :  { %v2107_v34 = vpop.f32.mrf.mxu0 }
 0x1c9   :  { %v4360_v35 = vadd.f32 %v2105_v23, %v2057_v33 }
 0x1cc   :  { %v2009_v12 = vpop.f32.mrf.mxu2 }
 0x1cd   :  { %v2010_v36 = vadd.f32 %v2009_v12, %v1961_v22 }
 0x1ce   :  { %v2058_v37 = vpop.f32.mrf.mxu3  ;;  %v1963_v20 = vpop.f32.mrf.mxu1 }
 0x1cf   :  { %v2059_v27 = vadd.f32 %v2058_v37, %v2010_v36  ;;  %v1964_v10 = vadd.f32 %v1963_v20, %v4174_v1 }
 0x1d0   :  { %v2110_v40 = vpop.f32.mrf.mxu0 }
 0x1d1   :  { %v4363_v18 = vadd.f32 %v2107_v34, %v2059_v27 }
 0x1d4   :  { %v2012_v28 = vpop.f32.mrf.mxu2 }
 0x1d5   :  { %v2013_v38 = vadd.f32 %v2012_v28, %v1964_v10 }
 0x1d6   :  { %v2061_v7 = vpop.f32.mrf.mxu3  ;;  %v1965_v43 = vpop.f32.mrf.mxu1 }
 0x1d7   :  { %v2062_v45 = vadd.f32 %v2061_v7, %v2013_v38  ;;  %v1966_v16 = vadd.f32 %v1965_v43, %v4195_v26 }
 0x1d8   :  { %v2112_v44 = vpop.f32.mrf.mxu0 }
 0x1d9   :  { %v4366_v46 = vadd.f32 %v2110_v40, %v2062_v45 }
 0x1dc   :  { %v2014_v47 = vpop.f32.mrf.mxu2 }
 0x1dd   :  { %v2015_v49 = vadd.f32 %v2014_v47, %v1966_v16 }
 0x1de   :  { %v2063_v51 = vpop.f32.mrf.mxu3  ;;  %v1968_v54 = vpop.f32.mrf.mxu1 }
 0x1df   :  { %v2064_v50 = vadd.f32 %v2063_v51, %v2015_v49  ;;  %v1969_v1 = vadd.f32 %v1968_v54, %v4205_v6 }
 0x1e0   :  { %v2115_v55 = vpop.f32.mrf.mxu0 }
 0x1e1   :  { %v4369_v17 = vadd.f32 %v2112_v44, %v2064_v50 }
 0x1e4   :  { %v2017_v61 = vpop.f32.mrf.mxu2 }
 0x1e5   :  { %v2018_v63 = vadd.f32 %v2017_v61, %v1969_v1 }
 0x1e6   :  { %v2066_v0 = vpop.f32.mrf.mxu3  ;;  %v1970_v2 = vpop.f32.mrf.mxu1 }
 0x1e7   :  { %v2067_v3 = vadd.f32 %v2066_v0, %v2018_v63  ;;  %v1971_v26 = vadd.f32 %v1970_v2, %v4226_v59 }
 0x1e8   :  { %v2117_v48 = vpop.f32.mrf.mxu0 }
 0x1e9   :  { %v4372_v5 = vadd.f32 %v2115_v55, %v2067_v3 }
 0x1eb   :  { %v2188_v8 = vmax.f32 %v4360_v35, %v4372_v5 }
 0x1ec   :  { %v2019_v53 = vpop.f32.mrf.mxu2 }
 0x1ed   :  { %v2020_v62 = vadd.f32 %v2019_v53, %v1971_v26 }
 0x1ee   :  { %v2068_v9 = vpop.f32.mrf.mxu3  ;;  %v1973_v6 = vpop.f32.mrf.mxu1 }
 0x1ef   :  { %v2069_v11 = vadd.f32 %v2068_v9, %v2020_v62  ;;  %v1974_v56 = vadd.f32 %v1973_v6, %v4236_v4 }
 0x1f0   :  { %v2120_v60 = vpop.f32.mrf.mxu0 }
 0x1f1   :  { %v4377_v30 = vadd.f32 %v2117_v48, %v2069_v11 }
 0x1f3   :  { %v2189_v15 = vmax.f32 %v4363_v18, %v4377_v30 }
 0x1f4   :  { %v2022_v59 = vpop.f32.mrf.mxu2 }
 0x1f5   :  { %v2023_v21 = vadd.f32 %v2022_v59, %v1974_v56 }
 0x1f6   :  { %v2071_v13 = vpop.f32.mrf.mxu3  ;;  %v1975_v23 = vpop.f32.mrf.mxu1 }
 0x1f7   :  { %v2072_v25 = vadd.f32 %v2071_v13, %v2023_v21  ;;  %v1976_v57 = vadd.f32 %v1975_v23, %v4257_v52 }
 0x1f8   :  { %v2122_v19 = vpop.f32.mrf.mxu0 }
 0x1f9   :  { %v4382_v32 = vadd.f32 %v2120_v60, %v2072_v25 }
 0x1fb   :  { %v2190_v33 = vmax.f32 %v4366_v46, %v4382_v32 }
 0x1fc   :  { %v2024_v4 = vpop.f32.mrf.mxu2 }
 0x1fd   :  { %v2025_v22 = vadd.f32 %v2024_v4, %v1976_v57 }
 0x1fe   :  { %v2073_v34 = vpop.f32.mrf.mxu3  ;;  %v1978_v35 = vpop.f32.mrf.mxu1 }
 0x1ff   :  { %v2074_v12 = vadd.f32 %v2073_v34, %v2025_v22  ;;  %v1979_v50 = vadd.f32 %v1978_v35, %v4267_v39  ;;  %v3280_v39 = vld [vmem:[%s4427_s2] ss:$0 sm:$0xff] }
 0x200   :  { %v2125_v36 = vpop.f32.mrf.mxu0 }
 0x201   :  { %v4386_v37 = vadd.f32 %v2122_v19, %v2074_v12 }
 0x203   :  { %v2191_v20 = vmax.f32 %v4369_v17, %v4386_v37 }
 0x204   :  { %v2027_v27 = vpop.f32.mrf.mxu2 }
 0x205   :  { %v2028_v1 = vadd.f32 %v2027_v27, %v1979_v50 }
 0x206   :  { %v2076_v10 = vpop.f32.mrf.mxu3  ;;  %v1980_v52 = vpop.f32.mrf.mxu1 }
 0x207   :  { %v2077_v0 = vadd.f32 %v2076_v10, %v2028_v1  ;;  %v1981_v48 = vadd.f32 %v1980_v52, %v4288_v31 }
 0x208   :  { %v2127_v40 = vpop.f32.mrf.mxu0 }
 0x209   :  { %v2126_v53 = vadd.f32 %v2125_v36, %v2077_v0 }
 0x20c   :  { %v2029_v28 = vpop.f32.mrf.mxu2 }
 0x20d   :  { %v2030_v62 = vadd.f32 %v2029_v28, %v1981_v48 }
 0x20e   :  { %v2078_v38 = vpop.f32.mrf.mxu3  ;;  %v1983_v7 = vpop.f32.mrf.mxu1 }
 0x20f   :  { %v2079_v60 = vadd.f32 %v2078_v38, %v2030_v62  ;;  %v1984_v31 = vadd.f32 %v1983_v7, %v4298_v29 }
 0x210   :  { %v2130_v43 = vpop.f32.mrf.mxu0 }
 0x211   :  { %v2128_v19 = vadd.f32 %v2127_v40, %v2079_v60 }
 0x214   :  { %v2032_v45 = vpop.f32.mrf.mxu2 }
 0x215   :  { %v2033_v4 = vadd.f32 %v2032_v45, %v1984_v31 }
 0x216   :  { %v2081_v16 = vpop.f32.mrf.mxu3  ;;  %v1985_v44 = vpop.f32.mrf.mxu1 }
 0x217   :  { %v1986_v52 = vadd.f32 %v1985_v44, %v4319_v58 }
 0x218   :  { %v4390_v47 = vpop.f32.mrf.mxu0 }
 0x21c   :  { %v2034_v49 = vpop.f32.mrf.mxu2 }
 0x21d   :  { %v2035_v45 = vadd.f32 %v2034_v49, %v1986_v52 }
 0x21e   :  { %v2083_v51 = vpop.f32.mrf.mxu3  ;;  %v1988_v54 = vpop.f32.mrf.mxu1 }
 0x21f   :  { %v1989_v61 = vadd.f32 %v1988_v54, %v4329_v42 }
 0x220   :  { %v2135_v55 = vpop.f32.mrf.mxu0 }
 0x224   :  { %v2037_v63 = vpop.f32.mrf.mxu2 }
 0x225   :  { %v2038_v2 = vadd.f32 %v2037_v63, %v1989_v61 }
 0x226   :  { %v2086_v3 = vpop.f32.mrf.mxu3  ;;  %v1990_v26 = vpop.f32.mrf.mxu1 }
 0x227   :  { %v2087_v5 = vadd.f32 %v2086_v3, %v2038_v2  ;;  %v1991_v11 = vadd.f32 %v1990_v26, %v4350_v41 }
 0x228   :  { %v2137_v56 = vpop.f32.mrf.mxu0 }
 0x229   :  { %v2136_v9 = vadd.f32 %v2135_v55, %v2087_v5 }
 0x22b   :  { %v2200_v6 = vmax.f32 %v2126_v53, %v2136_v9 }
 0x22c   :  { %v2039_v42 = vpop.f32.mrf.mxu2 }
 0x22d   :  { %v2204_v59 = vmax.f32 %v2188_v8, %v2200_v6  ;;  %v2040_v21 = vadd.f32 %v2039_v42, %v1991_v11  ;;  %v2082_v8 = vadd.f32 %v2081_v16, %v2033_v4 }
 0x22e   :  { %v2088_v13 = vpop.f32.mrf.mxu3  ;;  %v1993_v23 = vpop.f32.mrf.mxu1 }
 0x22f   :  { %v2212_v25 = vadd.f32 %v3280_v39, %v2204_v59  ;;  %v2089_v57 = vadd.f32 %v2088_v13, %v2040_v21  ;;  %v1994_v35 = vadd.f32 %v1993_v23, %v4354_v14  ;;  %v2131_v7 = vadd.f32 %v2130_v43, %v2082_v8 }
 0x230   :  { %v2140_v10 = vpop.f32.mrf.mxu0 }
 0x231   :  { %v2216_v22 = vmax.f32 %v2212_v25, 0.0  ;;  %v2138_v34 = vadd.f32 %v2137_v56, %v2089_v57 }
 0x233   :  { %2220 = vst [vmem:[%s4428_s3] sm:$0xff] %v2216_v22  ;;  %v2201_v41 = vmax.f32 %v2128_v19, %v2138_v34 }
 0x234   :  { %v2042_v12 = vpop.f32.mrf.mxu2 }
 0x235   :  { %v2205_v36 = vmax.f32 %v2189_v15, %v2201_v41  ;;  %v2043_v29 = vadd.f32 %v2042_v12, %v1994_v35  ;;  %v2084_v15 = vadd.f32 %v2083_v51, %v2035_v45 }
 0x236   :  { %v2091_v27 = vpop.f32.mrf.mxu3  ;;  %v1995_v38 = vpop.f32.mrf.mxu1 }
 0x237   :  { %v2213_v40 = vadd.f32 %v3280_v39, %v2205_v36  ;;  %v2092_v28 = vadd.f32 %v2091_v27, %v2043_v29  ;;  %v1996_v18 = vadd.f32 %v1995_v38, %v4357_v24  ;;  %v2133_v55 = vadd.f32 %v4390_v47, %v2084_v15 }
 0x238   :  { %v2142_v49 = vpop.f32.mrf.mxu0 }
 0x239   :  { %v2217_v54 = vmax.f32 %v2213_v40, 0.0  ;;  %v2141_v50 = vadd.f32 %v2140_v10, %v2092_v28 }
 0x23b   :  { %2221 = vst [vmem:[%s4428_s3 + $0x8] sm:$0xff] %v2217_v54  ;;  %v2202_v14 = vmax.f32 %v2131_v7, %v2141_v50 }
 0x23c   :  { %v2044_v30 = vpop.f32.mrf.mxu2 }
 0x23d   :  { %v2206_v58 = vmax.f32 %v2190_v33, %v2202_v14  ;;  %v2045_v16 = vadd.f32 %v2044_v30, %v1996_v18 }
 0x23e   :  { %v2093_v44 = vpop.f32.mrf.mxu3 }
 0x23f   :  { %v2214_v1 = vadd.f32 %v3280_v39, %v2206_v58  ;;  %v2094_v43 = vadd.f32 %v2093_v44, %v2045_v16 }
 0x241   :  { %v2218_v61 = vmax.f32 %v2214_v1, 0.0  ;;  %v2143_v63 = vadd.f32 %v2142_v49, %v2094_v43 }
 0x243   :  { %2222 = vst [vmem:[%s4428_s3 + $0x10] sm:$0xff] %v2218_v61  ;;  %v2203_v24 = vmax.f32 %v2133_v55, %v2143_v63 }
 0x245   :  { %v2207_v51 = vmax.f32 %v2191_v20, %v2203_v24 }
 0x247   :  { %v2215_v46 = vadd.f32 %v3280_v39, %v2207_v51 }
 0x249   :  { %v2219_v32 = vmax.f32 %v2215_v46, 0.0 }
 0x24b   :  { %2223 = vst [vmem:[%s4428_s3 + $0x18] sm:$0xff] %v2219_v32 }

// kernel: cnn_forward.8
= control target key start
LH: loop header
LB: loop body
LE: loop exit
PB: predicated region body
PF: predicated region fallthrough
CT: control target
= control target key end

     0   :  { %s2050_s12 = smov 0   ;;  %s2052_s13 = smov 0   ;;  %s2486_s0 = inlined_call_operand.vmem [shape: bf16[4,16,3200], index: 0, kind: input, shape index: {}]   ;;  %s2487_s1 = inlined_call_operand.vmem [shape: bf16[3200,256], index: 1, kind: input, shape index: {}]   ;;  %s2488_s2 = inlined_call_operand.vmem [shape: f32[1,256], index: 2, kind: input, shape index: {}]   ;;  %s2489_s3 = inlined_call_operand.vmem [shape: f32[16,256], index: 3, kind: output, shape index: {}]  }
   0x1   :  { %s2054_s14 = smov 0   ;;  %s2056_s15 = smov 0  }
   0x2   :  { %s2058_s16 = smov 0  }
   0x3 LB: > { %s22_s17 = sadd.s32 1, %s2023_s15  ;;  %p41_p1 = scmp.ne.s32.totalorder %s2015_s13, %s2011_s12  ;;  %s2027_s16 = sphi %s2058_s16, %s13_s16   ;;  %s2023_s15 = sphi %s2056_s15, %s2493_s15   ;;  %s2019_s14 = sphi %s2054_s14, %s2492_s14   ;;  %s2015_s13 = sphi %s2052_s13, %s2491_s13   ;;  %s2011_s12 = sphi %s2050_s12, %s2490_s12  }
   0x4   : > { %p23_p0 = scmp.ge.s32.totalorder %s22_s17, 5  ;;  %p42_p2 = scmp.eq.s32.totalorder %s2027_s16, 0 }
   0x5   : > { %s34_s19 = sadd.s32 1, %s2015_s13  ;;  %p1401_p5 = scmp.ge.s32.totalorder %s2027_s16, 5 }
   0x6   : > { %s2495_s17 = smov (%p23_p0, %s22_s17), 0  ;;  %p43_p3 = por %p42_p2, %p41_p1 }
   0x7   : > { %s30_s18 = ssub.s32 %s2023_s15, %s2495_s17  ;;  %143 = sbr.rel (%p1401_p5) target bundleno = 41 (0x29), region = 20 }
   0x8   : > { %p32_p4 = scmp.eq.s32.totalorder %s30_s18, 0 }
   0xa   : > { %s2085_s20 = scalar_select %p32_p4, %s2015_s13, %s34_s19  }
   0xc   : > { %146 = sbr.rel (!%p43_p3) target bundleno = 41 (0x29), region = 24  ;;  %s148_s21 = sand.u32 (%p43_p3), 1, %s2015_s13  }
   0xd   : > { %s1828_s22 = smul.u32 (%p43_p3), 20, %s2023_s15 }
   0xe   : > { %s1946_s23 = smul.u32 (%p43_p3), 160, %s148_s21 }
   0xf   : > { %s2093_s26 = scalar_lea.vmem (%p43_p3), %s2486_s0, %s1828_s22 }
  0x10   : > { %v171_v0 = vld [vmem:[%s2093_s26] sm:$0xff] (%p43_p3)  ;;  %v173_v1 = vld [vmem:[%s2093_s26 + $0x8] sm:$0xff] (%p43_p3)  ;;  %s2098_s27 = scalar_lea.vmem (%p43_p3), [#allocation3], %s1946_s23  ;;  %v181_v5 = vld [vmem:[%s2093_s26 + $0xd0] sm:$0xff] (%p43_p3) }
  0x11   : > { %v175_v2 = vld [vmem:[%s2093_s26 + $0x64] sm:$0xff]  ;;  %172 = vst [vmem:[%s2098_s27] sm:$0xff] %v171_v0  ;;  %v177_v3 = vld [vmem:[%s2093_s26 + $0x6c] sm:$0xff]  ;;  %v185_v7 = vld [vmem:[%s2093_s26 + $0x134] sm:$0xff] }
  0x12   : > { %174 = vst [vmem:[%s2098_s27 + $0x8] sm:$0xff] %v173_v1  ;;  %v179_v4 = vld [vmem:[%s2093_s26 + $0xc8] sm:$0xff]  ;;  %v187_v8 = vld [vmem:[%s2093_s26 + $0x190] sm:$0xff]  ;;  %v189_v9 = vld [vmem:[%s2093_s26 + $0x198] sm:$0xff] }
  0x13   : > { %176 = vst [vmem:[%s2098_s27 + $0x14] sm:$0xff] %v175_v2  ;;  %v183_v6 = vld [vmem:[%s2093_s26 + $0x12c] sm:$0xff]  ;;  %v191_v10 = vld [vmem:[%s2093_s26 + $0x1f4] sm:$0xff]  ;;  %v193_v11 = vld [vmem:[%s2093_s26 + $0x1fc] sm:$0xff] }
  0x14   : > { %178 = vst [vmem:[%s2098_s27 + $0x1c] sm:$0xff] %v177_v3  ;;  %v195_v12 = vld [vmem:[%s2093_s26 + $0x258] sm:$0xff]  ;;  %v197_v13 = vld [vmem:[%s2093_s26 + $0x260] sm:$0xff]  ;;  %v1403_v16 = vld [vmem:[%s2093_s26 + $0x10] sm:$0xf] }
  0x15   : > { %180 = vst [vmem:[%s2098_s27 + $0x28] sm:$0xff] %v179_v4  ;;  %v199_v14 = vld [vmem:[%s2093_s26 + $0x2bc] sm:$0xff]  ;;  %v201_v15 = vld [vmem:[%s2093_s26 + $0x2c4] sm:$0xff]  ;;  %v1405_v17 = vld [vmem:[%s2093_s26 + $0x74] sm:$0xf] }
  0x16   : > { %182 = vst [vmem:[%s2098_s27 + $0x30] sm:$0xff] %v181_v5  ;;  %v1407_v18 = vld [vmem:[%s2093_s26 + $0xd8] sm:$0xf]  ;;  %v1409_v19 = vld [vmem:[%s2093_s26 + $0x13c] sm:$0xf] }
  0x17   : > { %184 = vst [vmem:[%s2098_s27 + $0x3c] sm:$0xff] %v183_v6  ;;  %v1411_v20 = vld [vmem:[%s2093_s26 + $0x1a0] sm:$0xf]  ;;  %v1413_v21 = vld [vmem:[%s2093_s26 + $0x204] sm:$0xf] }
  0x18   : > { %186 = vst [vmem:[%s2098_s27 + $0x44] sm:$0xff] %v185_v7  ;;  %v1415_v22 = vld [vmem:[%s2093_s26 + $0x268] sm:$0xf]  ;;  %v1417_v23 = vld [vmem:[%s2093_s26 + $0x2cc] sm:$0xf] }
  0x19   : > { %188 = vst [vmem:[%s2098_s27 + $0x50] sm:$0xff] %v187_v8 }
  0x1a   : > { %190 = vst [vmem:[%s2098_s27 + $0x58] sm:$0xff] %v189_v9 }
  0x1b   : > { %192 = vst [vmem:[%s2098_s27 + $0x64] sm:$0xff] %v191_v10 }
  0x1c   : > { %194 = vst [vmem:[%s2098_s27 + $0x6c] sm:$0xff] %v193_v11 }
  0x1d   : > { %196 = vst [vmem:[%s2098_s27 + $0x78] sm:$0xff] %v195_v12 }
  0x1e   : > { %198 = vst [vmem:[%s2098_s27 + $0x80] sm:$0xff] %v197_v13 }
  0x1f   : > { %200 = vst [vmem:[%s2098_s27 + $0x8c] sm:$0xff] %v199_v14 }
  0x20   : > { %202 = vst [vmem:[%s2098_s27 + $0x94] sm:$0xff] %v201_v15 }
  0x21   : > { %1404 = vst [vmem:[%s2098_s27 + $0x10] sm:$0xf] %v1403_v16 }
  0x22   : > { %1406 = vst [vmem:[%s2098_s27 + $0x24] sm:$0xf] %v1405_v17 }
  0x23   : > { %1408 = vst [vmem:[%s2098_s27 + $0x38] sm:$0xf] %v1407_v18 }
  0x24   : > { %1410 = vst [vmem:[%s2098_s27 + $0x4c] sm:$0xf] %v1409_v19 }
  0x25   : > { %1412 = vst [vmem:[%s2098_s27 + $0x60] sm:$0xf] %v1411_v20 }
  0x26   : > { %1414 = vst [vmem:[%s2098_s27 + $0x74] sm:$0xf] %v1413_v21 }
  0x27   : > { %1416 = vst [vmem:[%s2098_s27 + $0x88] sm:$0xf] %v1415_v22 }
  0x28   : > { %1418 = vst [vmem:[%s2098_s27 + $0x9c] sm:$0xf] %v1417_v23 }
  0x29 PF: > { %p1419_p6 = scmp.ge.s32.totalorder %s2027_s16, 1  ;;  %p241_p7 = scmp.lt.s32.totalorder %s2027_s16, 6 }
  0x2b   : > { %p242_p8 = pnand %p1419_p6, %p241_p7 }
  0x2c   : > { %s248_s28 = sand.u32 (!%p242_p8), 1, %s2011_s12   ;;  %s280_s29 = smul.u32 (!%p242_p8), 80, %s2019_s14 }
  0x2d   : > { %245 = sbr.rel (%p242_p8) target bundleno = 417 (0x1a1), region = 54  ;;  %p1422_p10 = scmp.ne.s32.totalorder (!%p242_p8), %s2019_s14, 0 }
  0x2e   : > { %s1947_s30 = smul.u32 (!%p242_p8), 160, %s248_s28  ;;  %p281_p9 = scmp.lt.s32.totalorder (!%p242_p8), %s280_s29, 399 }
  0x30   : > { %s2154_s8 = scalar_lea.vmem (!%p242_p8), [#allocation3], %s1947_s30 }
  0x32   : > { %s2497_s29 = smov (!%p281_p9, %s280_s29), 399  ;;  %297 = sbr.rel (%p1422_p10) target bundleno = 72 (0x48), region = 62 }
  0x33   : > { %s1829_s4 = sshll.u32 %s2497_s29, 3 }
  0x34   : > { %s2152_s7 = scalar_lea.vmem %s2487_s1, %s1829_s4 }
  0x37   : > { %v2029_v24 = vmov 0.0  }
  0x38   : > { %298 = vst [vmem:[#allocation2 + $0x30] sm:$0xff] %v2029_v24 }
  0x39   : > { %299 = vst [vmem:[#allocation2] sm:$0xff] %v2029_v24 }
  0x3a   : > { %300 = vst [vmem:[#allocation2 + $0x58] sm:$0xff] %v2029_v24 }
  0x3b   : > { %301 = vst [vmem:[#allocation2 + $0x18] sm:$0xff] %v2029_v24 }
  0x3c   : > { %302 = vst [vmem:[#allocation2 + $0x50] sm:$0xff] %v2029_v24 }
  0x3d   : > { %303 = vst [vmem:[#allocation2 + $0x68] sm:$0xff] %v2029_v24 }
  0x3e   : > { %304 = vst [vmem:[#allocation2 + $0x8] sm:$0xff] %v2029_v24 }
  0x3f   : > { %305 = vst [vmem:[#allocation2 + $0x48] sm:$0xff] %v2029_v24 }
  0x40   : > { %306 = vst [vmem:[#allocation2 + $0x40] sm:$0xff] %v2029_v24 }
  0x41   : > { %307 = vst [vmem:[#allocation2 + $0x20] sm:$0xff] %v2029_v24 }
  0x42   : > { %308 = vst [vmem:[#allocation2 + $0x10] sm:$0xff] %v2029_v24 }
  0x43   : > { %309 = vst [vmem:[#allocation2 + $0x38] sm:$0xff] %v2029_v24 }
  0x44   : > { %310 = vst [vmem:[#allocation2 + $0x60] sm:$0xff] %v2029_v24 }
  0x45   : > { %311 = vst [vmem:[#allocation2 + $0x70] sm:$0xff] %v2029_v24 }
  0x46   : > { %312 = vst [vmem:[#allocation2 + $0x78] sm:$0xff] %v2029_v24 }
  0x47   : > { %313 = vst [vmem:[#allocation2 + $0x28] sm:$0xff] %v2029_v24 }
  0x48 PF: > { %v1561_v25 = vld [vmem:[%s2152_s7 + $0x70] sm:$0xf]  ;;  %v1865_v26 = vld [vmem:[%s2152_s7 + $0x74] sm:$0xf0]  ;;  %v1553_v30 = vld [vmem:[%s2152_s7 + $0x60] sm:$0xf] }
  0x49   : > { %v1625_v27 = vld [vmem:[%s2152_s7 + $0xf0] sm:$0xf]  ;;  %v1562_v28 = vor.u32 %v1865_v26, %v1561_v25  ;;  %v1881_v29 = vld [vmem:[%s2152_s7 + $0xf4] sm:$0xf0]  ;;  %v1863_v31 = vld [vmem:[%s2152_s7 + $0x64] sm:$0xf0] }
  0x4a   : > { %v1626_v32 = vor.u32 %v1881_v29, %v1625_v27  ;;  %v1617_v33 = vld [vmem:[%s2152_s7 + $0xe0] sm:$0xf]  ;;  %v1879_v34 = vld [vmem:[%s2152_s7 + $0xe4] sm:$0xf0]  ;;  %v1554_v35 = vor.u32 %v1863_v31, %v1553_v30  ;;  %v1545_v37 = vld [vmem:[%s2152_s7 + $0x50] sm:$0xf] }
  0x4b   : > { %1930 = vmatpush.bf16.msra.mxu2 %v1562_v28  ;;  %938 = vmatpush.bf16.msra.mxu0 %v1562_v28  ;;  %v1618_v36 = vor.u32 %v1879_v34, %v1617_v33  ;;  %v1861_v38 = vld [vmem:[%s2152_s7 + $0x54] sm:$0xf0]  ;;  %v1609_v39 = vld [vmem:[%s2152_s7 + $0xd0] sm:$0xf]  ;;  %v1537_v43 = vld [vmem:[%s2152_s7 + $0x40] sm:$0xf] }
  0x4c   : > { %1938 = vmatpush.bf16.msra.mxu3 %v1626_v32  ;;  %967 = vmatpush.bf16.msra.mxu1 %v1626_v32  ;;  %v1877_v40 = vld [vmem:[%s2152_s7 + $0xd4] sm:$0xf0]  ;;  %v1546_v41 = vor.u32 %v1861_v38, %v1545_v37  ;;  %v1859_v44 = vld [vmem:[%s2152_s7 + $0x44] sm:$0xf0]  ;;  %v1601_v45 = vld [vmem:[%s2152_s7 + $0xc0] sm:$0xf] }
  0x4d   : > { %v1610_v42 = vor.u32 %v1877_v40, %v1609_v39  ;;  %v1875_v46 = vld [vmem:[%s2152_s7 + $0xc4] sm:$0xf0]  ;;  %v1538_v47 = vor.u32 %v1859_v44, %v1537_v43  ;;  %v1529_v49 = vld [vmem:[%s2152_s7 + $0x30] sm:$0xf]  ;;  %v1857_v50 = vld [vmem:[%s2152_s7 + $0x34] sm:$0xf0] }
  0x4e   : > { %v1602_v48 = vor.u32 %v1875_v46, %v1601_v45  ;;  %v1593_v51 = vld [vmem:[%s2152_s7 + $0xb0] sm:$0xf]  ;;  %v1873_v52 = vld [vmem:[%s2152_s7 + $0xb4] sm:$0xf0]  ;;  %v1530_v53 = vor.u32 %v1857_v50, %v1529_v49  ;;  %v1521_v55 = vld [vmem:[%s2152_s7 + $0x20] sm:$0xf] }
  0x4f   : > { %1931 = vmatpush.bf16.msra.mxu2 %v1554_v35  ;;  %939 = vmatpush.bf16.msra.mxu0 %v1554_v35  ;;  %v1594_v54 = vor.u32 %v1873_v52, %v1593_v51  ;;  %v1855_v56 = vld [vmem:[%s2152_s7 + $0x24] sm:$0xf0]  ;;  %v1585_v57 = vld [vmem:[%s2152_s7 + $0xa0] sm:$0xf]  ;;  %v1513_v61 = vld [vmem:[%s2152_s7 + $0x10] sm:$0xf] }
  0x50   : > { %1939 = vmatpush.bf16.msra.mxu3 %v1618_v36  ;;  %968 = vmatpush.bf16.msra.mxu1 %v1618_v36  ;;  %v1871_v58 = vld [vmem:[%s2152_s7 + $0xa4] sm:$0xf0]  ;;  %v1522_v59 = vor.u32 %v1855_v56, %v1521_v55  ;;  %v1853_v62 = vld [vmem:[%s2152_s7 + $0x14] sm:$0xf0]  ;;  %v1577_v63 = vld [vmem:[%s2152_s7 + $0x90] sm:$0xf] }
  0x51   : > { %v1586_v60 = vor.u32 %v1871_v58, %v1585_v57  ;;  %v1869_v0 = vld [vmem:[%s2152_s7 + $0x94] sm:$0xf0]  ;;  %v1514_v1 = vor.u32 %v1853_v62, %v1513_v61  ;;  %v1505_v2 = vld [vmem:[%s2152_s7] sm:$0xf]  ;;  %v1851_v4 = vld [vmem:[%s2152_s7 + $0x4] sm:$0xf0] }
  0x52   : > { %v1578_v3 = vor.u32 %v1869_v0, %v1577_v63  ;;  %v1569_v5 = vld [vmem:[%s2152_s7 + $0x80] sm:$0xf]  ;;  %v1867_v6 = vld [vmem:[%s2152_s7 + $0x84] sm:$0xf0]  ;;  %v1465_v7 = vld [vmem:[%s2154_s8 + $0x50] sm:$0xf]  ;;  %v1506_v15 = vor.u32 %v1851_v4, %v1505_v2 }
  0x53   : > { %1932 = vmatpush.bf16.msra.mxu2 %v1546_v41  ;;  %940 = vmatpush.bf16.msra.mxu0 %v1546_v41  ;;  %v1842_v8 = vld [vmem:[%s2154_s8 + $0x60] sm:$0xf0]  ;;  %v1689_v9 = vld [vmem:[%s2152_s7 + $0x170] sm:$0xf]  ;;  %v1840_v10 = vld [vmem:[%s2154_s8 + $0x54] sm:$0xf]  ;;  %v1570_v19 = vor.u32 %v1867_v6, %v1569_v5 }
  0x54   : > { %1940 = vmatpush.bf16.msra.mxu3 %v1610_v42  ;;  %969 = vmatpush.bf16.msra.mxu1 %v1610_v42  ;;  %v1467_v11 = vld [vmem:[%s2154_s8 + $0x64] sm:$0xf0]  ;;  %v1897_v12 = vld [vmem:[%s2152_s7 + $0x174] sm:$0xf0]  ;;  %v1753_v13 = vld [vmem:[%s2152_s7 + $0x1f0] sm:$0xf]  ;;  %v2206_v28 = vor.u32 %v1842_v8, %v1465_v7 }
  0x55   : > { %v1913_v14 = vld [vmem:[%s2152_s7 + $0x1f4] sm:$0xf0]  ;;  %v1425_v16 = vld [vmem:[%s2154_s8] sm:$0xf]  ;;  %v1832_v17 = vld [vmem:[%s2154_s8 + $0x10] sm:$0xf0]  ;;  %v1690_v23 = vor.u32 %v1897_v12, %v1689_v9  ;;  %v2213_v33 = vor.u32 %v1840_v10, %v1467_v11 }
  0x56   : > { %v1830_v18 = vld [vmem:[%s2154_s8 + $0x4] sm:$0xf]  ;;  %v1427_v20 = vld [vmem:[%s2154_s8 + $0x14] sm:$0xf0]  ;;  %v1817_v21 = vld [vmem:[%s2152_s7 + $0x270] sm:$0xf]  ;;  %v1754_v24 = vor.u32 %v1913_v14, %v1753_v13  ;;  %v2208_v29 = vor.u32 %v1832_v17, %v1425_v16 }
  0x57   : > { %1933 = vmatpush.bf16.msra.mxu2 %v1538_v47  ;;  %941 = vmatpush.bf16.msra.mxu0 %v1538_v47  ;;  %v1929_v22 = vld [vmem:[%s2152_s7 + $0x274] sm:$0xf0]  ;;  %v1681_v25 = vld [vmem:[%s2152_s7 + $0x160] sm:$0xf]  ;;  %v1864_v26 = vld [vmem:[%s2152_s7 + $0x74] sm:$0xf]  ;;  %v2215_v34 = vor.u32 %v1830_v18, %v1427_v20 }
  0x58   : > { %1941 = vmatpush.bf16.msra.mxu3 %v1602_v48  ;;  %970 = vmatpush.bf16.msra.mxu1 %v1602_v48  ;;  %v1563_v27 = vld [vmem:[%s2152_s7 + $0x78] sm:$0xf0]  ;;  %v1895_v30 = vld [vmem:[%s2152_s7 + $0x164] sm:$0xf0]  ;;  %v1745_v31 = vld [vmem:[%s2152_s7 + $0x1e0] sm:$0xf]  ;;  %v1818_v35 = vor.u32 %v1929_v22, %v1817_v21 }
  0x59   : > { %v1911_v32 = vld [vmem:[%s2152_s7 + $0x1e4] sm:$0xf0]  ;;  %v1566_v36 = vor.u32 %v1864_v26, %v1563_v27  ;;  %v1809_v37 = vld [vmem:[%s2152_s7 + $0x260] sm:$0xf]  ;;  %v1682_v39 = vor.u32 %v1895_v30, %v1681_v25  ;;  %v1673_v41 = vld [vmem:[%s2152_s7 + $0x150] sm:$0xf] }
  0x5a   : > { %v1927_v38 = vld [vmem:[%s2152_s7 + $0x264] sm:$0xf0]  ;;  %v1746_v40 = vor.u32 %v1911_v32, %v1745_v31  ;;  %v1862_v42 = vld [vmem:[%s2152_s7 + $0x64] sm:$0xf]  ;;  %v1555_v43 = vld [vmem:[%s2152_s7 + $0x68] sm:$0xf0] }
  0x5b   : > { %1934 = vmatpush.bf16.msra.mxu2 %v1530_v53  ;;  %942 = vmatpush.bf16.msra.mxu0 %v1530_v53  ;;  %v1893_v44 = vld [vmem:[%s2152_s7 + $0x154] sm:$0xf0]  ;;  %v1737_v45 = vld [vmem:[%s2152_s7 + $0x1d0] sm:$0xf]  ;;  %v1810_v47 = vor.u32 %v1927_v38, %v1809_v37  ;;  %v1558_v48 = vor.u32 %v1862_v42, %v1555_v43  ;;  %v1665_v53 = vld [vmem:[%s2152_s7 + $0x140] sm:$0xf] }
  0x5c   : > { %1942 = vmatpush.bf16.msra.mxu3 %v1594_v54  ;;  %971 = vmatpush.bf16.msra.mxu1 %v1594_v54  ;;  %v1909_v46 = vld [vmem:[%s2152_s7 + $0x1d4] sm:$0xf0]  ;;  %v1801_v49 = vld [vmem:[%s2152_s7 + $0x250] sm:$0xf]  ;;  %v1674_v51 = vor.u32 %v1893_v44, %v1673_v41  ;;  %v1860_v54 = vld [vmem:[%s2152_s7 + $0x54] sm:$0xf] }
  0x5d   : > { %v1925_v50 = vld [vmem:[%s2152_s7 + $0x254] sm:$0xf0]  ;;  %v1738_v52 = vor.u32 %v1909_v46, %v1737_v45  ;;  %v1547_v55 = vld [vmem:[%s2152_s7 + $0x58] sm:$0xf0]  ;;  %v1891_v56 = vld [vmem:[%s2152_s7 + $0x144] sm:$0xf0] }
  0x5e   : > { %v1729_v57 = vld [vmem:[%s2152_s7 + $0x1c0] sm:$0xf]  ;;  %v1907_v58 = vld [vmem:[%s2152_s7 + $0x1c4] sm:$0xf0]  ;;  %v1666_v63 = vor.u32 %v1891_v56, %v1665_v53  ;;  %v1847_v2 = vld [vmem:[%s2154_s8 + $0x88] sm:$0xf0] }
  0x5f   : > { %1935 = vmatpush.bf16.msra.mxu2 %v1522_v59  ;;  %943 = vmatpush.bf16.msra.mxu0 %v1522_v59  ;;  %v1802_v59 = vor.u32 %v1925_v50, %v1801_v49  ;;  %v1793_v61 = vld [vmem:[%s2152_s7 + $0x240] sm:$0xf]  ;;  %v1923_v62 = vld [vmem:[%s2152_s7 + $0x244] sm:$0xf0]  ;;  %v1730_v0 = vor.u32 %v1907_v58, %v1729_v57  ;;  %v1858_v4 = vld [vmem:[%s2152_s7 + $0x44] sm:$0xf] }
  0x60   : > { %1943 = vmatpush.bf16.msra.mxu3 %v1586_v60  ;;  %972 = vmatpush.bf16.msra.mxu1 %v1586_v60  ;;  %v1550_v60 = vor.u32 %v1860_v54, %v1547_v55  ;;  %v1539_v5 = vld [vmem:[%s2152_s7 + $0x48] sm:$0xf0]  ;;  %v1845_v6 = vld [vmem:[%s2154_s8 + $0x7c] sm:$0xf]  ;;  %v1487_v7 = vld [vmem:[%s2154_s8 + $0x8c] sm:$0xf0]  ;;  %v1794_v14 = vor.u32 %v1923_v62, %v1793_v61 }
  0x61   : > { %v1889_v8 = vld [vmem:[%s2152_s7 + $0x134] sm:$0xf0]  ;;  %v1721_v9 = vld [vmem:[%s2152_s7 + $0x1b0] sm:$0xf]  ;;  %v1445_v11 = vld [vmem:[%s2154_s8 + $0x28] sm:$0xf]  ;;  %v2265_v31 = vor.u32 %v1845_v6, %v1487_v7 }
  0x62   : > { %v1905_v10 = vld [vmem:[%s2152_s7 + $0x1b4] sm:$0xf0]  ;;  %v1837_v12 = vld [vmem:[%s2154_s8 + $0x38] sm:$0xf0]  ;;  %v1835_v13 = vld [vmem:[%s2154_s8 + $0x2c] sm:$0xf] }
  0x63   : > { %1936 = vmatpush.bf16.msra.mxu2 %v1514_v1  ;;  %944 = vmatpush.bf16.msra.mxu0 %v1514_v1  ;;  %v1485_v1 = vld [vmem:[%s2154_s8 + $0x78] sm:$0xf]  ;;  %v1447_v16 = vld [vmem:[%s2154_s8 + $0x3c] sm:$0xf0]  ;;  %v1785_v17 = vld [vmem:[%s2152_s7 + $0x230] sm:$0xf]  ;;  %v1722_v20 = vor.u32 %v1905_v10, %v1721_v9  ;;  %v2260_v25 = vor.u32 %v1837_v12, %v1445_v11 }
  0x64   : > { %1944 = vmatpush.bf16.msra.mxu3 %v1578_v3  ;;  %973 = vmatpush.bf16.msra.mxu1 %v1578_v3  ;;  %v1657_v3 = vld [vmem:[%s2152_s7 + $0x130] sm:$0xf]  ;;  %v1921_v18 = vld [vmem:[%s2152_s7 + $0x234] sm:$0xf0]  ;;  %v1649_v21 = vld [vmem:[%s2152_s7 + $0x120] sm:$0xf]  ;;  %v2267_v32 = vor.u32 %v1835_v13, %v1447_v16 }
  0x65   : > { %v1856_v22 = vld [vmem:[%s2152_s7 + $0x34] sm:$0xf]  ;;  %v1887_v26 = vld [vmem:[%s2152_s7 + $0x124] sm:$0xf0]  ;;  %v1713_v27 = vld [vmem:[%s2152_s7 + $0x1a0] sm:$0xf] }
  0x66   : > { %v1903_v30 = vld [vmem:[%s2152_s7 + $0x1a4] sm:$0xf0]  ;;  %v1777_v37 = vld [vmem:[%s2152_s7 + $0x220] sm:$0xf]  ;;  %v1641_v41 = vld [vmem:[%s2152_s7 + $0x110] sm:$0xf] }
  0x67   : > { %1937 = vmatpush.bf16.msra.mxu2 %v1506_v15  ;;  %945 = vmatpush.bf16.msra.mxu0 %v1506_v15  ;;  %v1542_v15 = vor.u32 %v1858_v4, %v1539_v5  ;;  %v1919_v38 = vld [vmem:[%s2152_s7 + $0x224] sm:$0xf0]  ;;  %v1854_v42 = vld [vmem:[%s2152_s7 + $0x24] sm:$0xf]  ;;  %v1523_v43 = vld [vmem:[%s2152_s7 + $0x28] sm:$0xf0] }
  0x68   : > { %1945 = vmatpush.bf16.msra.mxu3 %v1570_v19  ;;  %974 = vmatpush.bf16.msra.mxu1 %v1570_v19  ;;  %v1658_v19 = vor.u32 %v1889_v8, %v1657_v3  ;;  %v1885_v44 = vld [vmem:[%s2152_s7 + $0x114] sm:$0xf0]  ;;  %v1705_v45 = vld [vmem:[%s2152_s7 + $0x190] sm:$0xf]  ;;  %v1883_v54 = vld [vmem:[%s2152_s7 + $0x104] sm:$0xf0] }
  0x69   : > { %v1901_v46 = vld [vmem:[%s2152_s7 + $0x194] sm:$0xf0]  ;;  %v1769_v49 = vld [vmem:[%s2152_s7 + $0x210] sm:$0xf]  ;;  %v1852_v55 = vld [vmem:[%s2152_s7 + $0x14] sm:$0xf] }
  0x6a   : > { %956 = vmatmul.bf16.vlgmr.msra.gmra.mxu2 %v2206_v28  ;;  %946 = vmatmul.bf16.vlgmr.msra.gmra.mxu0 %v2208_v29  ;;  %v1917_v50 = vld [vmem:[%s2152_s7 + $0x214] sm:$0xf0]  ;;  %v1706_v53 = vor.u32 %v1901_v46, %v1705_v45  ;;  %v1515_v56 = vld [vmem:[%s2152_s7 + $0x18] sm:$0xf0]  ;;  %v1697_v57 = vld [vmem:[%s2152_s7 + $0x180] sm:$0xf] }
  0x6b   : > { %996 = vmatpush.bf16.msrb.mxu2 %v1690_v23  ;;  %985 = vmatmul.bf16.vlgmr.msra.gmra.mxu3 %v2213_v33  ;;  %v1531_v23 = vld [vmem:[%s2152_s7 + $0x38] sm:$0xf0]  ;;  %v1899_v58 = vld [vmem:[%s2152_s7 + $0x184] sm:$0xf0]  ;;  %v1896_v61 = vld [vmem:[%s2152_s7 + $0x174] sm:$0xf] }
  0x6c   : > { %1025 = vmatpush.bf16.msrb.mxu3 %v1754_v24  ;;  %975 = vmatmul.bf16.vlgmr.msra.gmra.mxu1 %v2215_v34  ;;  %v2258_v24 = vor.u32 %v1847_v2, %v1485_v1  ;;  %v1691_v62 = vld [vmem:[%s2152_s7 + $0x178] sm:$0xf0]  ;;  %v1761_v1 = vld [vmem:[%s2152_s7 + $0x200] sm:$0xf]  ;;  %v1915_v2 = vld [vmem:[%s2152_s7 + $0x204] sm:$0xf0]  ;;  %v1698_v4 = vor.u32 %v1899_v58, %v1697_v57 }
  0x6d   : > { %1054 = vmatpush.bf16.msrb.mxu0 %v1818_v35  ;;  %1083 = vmatpush.bf16.msrb.mxu1 %v1566_v36  ;;  %v1786_v35 = vor.u32 %v1921_v18, %v1785_v17  ;;  %v1534_v36 = vor.u32 %v1856_v22, %v1531_v23  ;;  %v1433_v5 = vld [vmem:[%s2154_s8 + $0x8] sm:$0xf]  ;;  %v1833_v6 = vld [vmem:[%s2154_s8 + $0x18] sm:$0xf0]  ;;  %v1850_v7 = vld [vmem:[%s2152_s7 + $0x4] sm:$0xf]  ;;  %v1694_v11 = vor.u32 %v1896_v61, %v1691_v62 }
  0x6e   : > { %v1507_v8 = vld [vmem:[%s2152_s7 + $0x8] sm:$0xf0]  ;;  %v1912_v9 = vld [vmem:[%s2152_s7 + $0x1f4] sm:$0xf]  ;;  %v1755_v12 = vld [vmem:[%s2152_s7 + $0x1f8] sm:$0xf0]  ;;  %v1762_v18 = vor.u32 %v1915_v2, %v1761_v1 }
  0x6f   : > { %997 = vmatpush.bf16.msrb.mxu2 %v1682_v39  ;;  %v1650_v39 = vor.u32 %v1887_v26, %v1649_v21  ;;  %v1928_v13 = vld [vmem:[%s2152_s7 + $0x274] sm:$0xf]  ;;  %v1894_v16 = vld [vmem:[%s2152_s7 + $0x164] sm:$0xf]  ;;  %v1683_v17 = vld [vmem:[%s2152_s7 + $0x168] sm:$0xf0] }
  0x70   : > { %1026 = vmatpush.bf16.msrb.mxu3 %v1746_v40  ;;  %v1714_v40 = vor.u32 %v1903_v30, %v1713_v27  ;;  %v1441_v21 = vld [vmem:[%s2154_s8 + $0x10] sm:$0xf]  ;;  %v1834_v22 = vld [vmem:[%s2154_s8 + $0x20] sm:$0xf0]  ;;  %v1619_v26 = vld [vmem:[%s2152_s7 + $0xe8] sm:$0xf0]  ;;  %v1758_v27 = vor.u32 %v1912_v9, %v1755_v12 }
  0x71   : > { %1055 = vmatpush.bf16.msrb.mxu0 %v1810_v47  ;;  %1084 = vmatpush.bf16.msrb.mxu1 %v1558_v48  ;;  %v1778_v47 = vor.u32 %v1919_v38, %v1777_v37  ;;  %v1526_v48 = vor.u32 %v1854_v42, %v1523_v43  ;;  %v1878_v23 = vld [vmem:[%s2152_s7 + $0xe4] sm:$0xf]  ;;  %v1686_v37 = vor.u32 %v1894_v16, %v1683_v17  ;;  %v1747_v38 = vld [vmem:[%s2152_s7 + $0x1e8] sm:$0xf0]  ;;  %v1892_v43 = vld [vmem:[%s2152_s7 + $0x154] sm:$0xf] }
  0x72   : > { %v2319_v42 = vor.u32 %v1834_v22, %v1441_v21  ;;  %v1622_v45 = vor.u32 %v1878_v23, %v1619_v26  ;;  %v1876_v46 = vld [vmem:[%s2152_s7 + $0xd4] sm:$0xf]  ;;  %v1874_v58 = vld [vmem:[%s2152_s7 + $0xc4] sm:$0xf]  ;;  %v1839_v21 = vld [vmem:[%s2154_s8 + $0x48] sm:$0xf0] }
  0x73   : > { %998 = vmatpush.bf16.msrb.mxu2 %v1674_v51  ;;  %v1633_v51 = vld [vmem:[%s2152_s7 + $0x100] sm:$0xf]  ;;  %v1906_v62 = vld [vmem:[%s2152_s7 + $0x1c4] sm:$0xf]  ;;  %v1888_v2 = vld [vmem:[%s2152_s7 + $0x134] sm:$0xf] }
  0x74   : > { %1027 = vmatpush.bf16.msrb.mxu3 %v1738_v52  ;;  %v1642_v52 = vor.u32 %v1885_v44, %v1641_v41  ;;  %v1634_v3 = vor.u32 %v1883_v54, %v1633_v51  ;;  %v1675_v44 = vld [vmem:[%s2152_s7 + $0x158] sm:$0xf0]  ;;  %v1922_v1 = vld [vmem:[%s2152_s7 + $0x244] sm:$0xf]  ;;  %v1836_v16 = vld [vmem:[%s2154_s8 + $0x34] sm:$0xf] }
  0x75   : > { %1056 = vmatpush.bf16.msrb.mxu0 %v1802_v59  ;;  %1085 = vmatpush.bf16.msrb.mxu1 %v1550_v60  ;;  %v1880_v59 = vld [vmem:[%s2152_s7 + $0xf4] sm:$0xf]  ;;  %v1627_v60 = vld [vmem:[%s2152_s7 + $0xf8] sm:$0xf0]  ;;  %v1678_v51 = vor.u32 %v1892_v43, %v1675_v44  ;;  %v1886_v17 = vld [vmem:[%s2152_s7 + $0x124] sm:$0xf] }
  0x76   : > { %v1630_v10 = vor.u32 %v1880_v59, %v1627_v60  ;;  %v1803_v54 = vld [vmem:[%s2152_s7 + $0x258] sm:$0xf0]  ;;  %v1603_v59 = vld [vmem:[%s2152_s7 + $0xc8] sm:$0xf0]  ;;  %v1870_v23 = vld [vmem:[%s2152_s7 + $0xa4] sm:$0xf] }
  0x77   : > { %999 = vmatpush.bf16.msrb.mxu2 %v1666_v63  ;;  %v1770_v63 = vor.u32 %v1917_v50, %v1769_v49  ;;  %v1908_v50 = vld [vmem:[%s2152_s7 + $0x1d4] sm:$0xf]  ;;  %v1587_v26 = vld [vmem:[%s2152_s7 + $0xa8] sm:$0xf0]  ;;  %v1579_v44 = vld [vmem:[%s2152_s7 + $0x98] sm:$0xf0] }
  0x78   : > { %1028 = vmatpush.bf16.msrb.mxu3 %v1730_v0  ;;  %v1518_v0 = vor.u32 %v1852_v55, %v1515_v56  ;;  %v1890_v55 = vld [vmem:[%s2152_s7 + $0x144] sm:$0xf]  ;;  %v1667_v56 = vld [vmem:[%s2152_s7 + $0x148] sm:$0xf0]  ;;  %v1868_v43 = vld [vmem:[%s2152_s7 + $0x94] sm:$0xf] }
  0x79   : > { %1057 = vmatpush.bf16.msrb.mxu0 %v1794_v14  ;;  %1086 = vmatpush.bf16.msrb.mxu1 %v1542_v15  ;;  %v1819_v14 = vld [vmem:[%s2152_s7 + $0x278] sm:$0xf0]  ;;  %v1831_v15 = vld [vmem:[%s2154_s8 + $0xc] sm:$0xf]  ;;  %p1823_p11 = scmp.ne.s32.totalorder %s2019_s14, 4 }
  0x7a   : > { %961 = vmatmul.bf16.gmra.mxu2 %v2258_v24  ;;  %951 = vmatmul.bf16.gmra.mxu0 %v2260_v25  ;;  %v1822_v30 = vor.u32 %v1928_v13, %v1819_v14  ;;  %v1723_v13 = vld [vmem:[%s2152_s7 + $0x1b8] sm:$0xf0]  ;;  %v1920_v14 = vld [vmem:[%s2152_s7 + $0x234] sm:$0xf] }
  0x7b   : > { %1000 = vmatpush.bf16.msrb.mxu2 %v1658_v19  ;;  %990 = vmatmul.bf16.gmra.mxu3 %v2265_v31  ;;  %v1435_v19 = vld [vmem:[%s2154_s8 + $0x1c] sm:$0xf0] }
  0x7c   : > { %1029 = vmatpush.bf16.msrb.mxu3 %v1722_v20  ;;  %980 = vmatmul.bf16.gmra.mxu1 %v2267_v32  ;;  %v1510_v20 = vor.u32 %v1850_v7, %v1507_v8  ;;  %v2317_v41 = vor.u32 %v1831_v15, %v1435_v19  ;;  %v1872_v7 = vld [vmem:[%s2152_s7 + $0xb4] sm:$0xf]  ;;  %v1595_v8 = vld [vmem:[%s2152_s7 + $0xb8] sm:$0xf0]  ;;  %v1455_v19 = vld [vmem:[%s2154_s8 + $0x44] sm:$0xf0] }
  0x7d   : > { %1058 = vmatpush.bf16.msrb.mxu0 %v1786_v35  ;;  %1087 = vmatpush.bf16.msrb.mxu1 %v1534_v36  ;;  %v1910_v35 = vld [vmem:[%s2152_s7 + $0x1e4] sm:$0xf]  ;;  %v2312_v36 = vor.u32 %v1833_v6, %v1433_v5  ;;  %v1453_v5 = vld [vmem:[%s2154_s8 + $0x30] sm:$0xf]  ;;  %v1787_v15 = vld [vmem:[%s2152_s7 + $0x238] sm:$0xf0]  ;;  %v1598_v22 = vor.u32 %v1872_v7, %v1595_v8 }
  0x7e   : > { %v1838_v6 = vld [vmem:[%s2154_s8 + $0x40] sm:$0xf0]  ;;  %v1475_v7 = vld [vmem:[%s2154_s8 + $0x6c] sm:$0xf0]  ;;  %v1481_v8 = vld [vmem:[%s2154_s8 + $0x60] sm:$0xf] }
  0x7f   : > { %1001 = vmatpush.bf16.msrb.mxu2 %v1650_v39  ;;  %v1926_v39 = vld [vmem:[%s2152_s7 + $0x264] sm:$0xf] }
  0x80   : > { %1030 = vmatpush.bf16.msrb.mxu3 %v1714_v40  ;;  %v1811_v40 = vld [vmem:[%s2152_s7 + $0x268] sm:$0xf0] }
  0x81   : > { %1059 = vmatpush.bf16.msrb.mxu0 %v1778_v47  ;;  %1088 = vmatpush.bf16.msrb.mxu1 %v1526_v48  ;;  %v1611_v47 = vld [vmem:[%s2152_s7 + $0xd8] sm:$0xf0]  ;;  %v1750_v48 = vor.u32 %v1910_v35, %v1747_v38  ;;  %v1814_v49 = vor.u32 %v1926_v39, %v1811_v40  ;;  %v2359_v35 = vor.u32 %v1838_v6, %v1453_v5 }
  0x82   : > { %v1614_v57 = vor.u32 %v1876_v46, %v1611_v47  ;;  %v2361_v38 = vor.u32 %v1836_v16, %v1455_v19  ;;  %v1590_v40 = vor.u32 %v1870_v23, %v1587_v26  ;;  %v1582_v46 = vor.u32 %v1868_v43, %v1579_v44  ;;  %v1643_v47 = vld [vmem:[%s2152_s7 + $0x118] sm:$0xf0]  ;;  %v1493_v16 = vld [vmem:[%s2154_s8 + $0x80] sm:$0xf]  ;;  %v1495_v19 = vld [vmem:[%s2154_s8 + $0x94] sm:$0xf0] }
  0x83   : > { %1002 = vmatpush.bf16.msrb.mxu2 %v1642_v52  ;;  %v1739_v52 = vld [vmem:[%s2152_s7 + $0x1d8] sm:$0xf0] }
  0x84   : > { %1031 = vmatpush.bf16.msrb.mxu3 %v1706_v53  ;;  %v1924_v53 = vld [vmem:[%s2152_s7 + $0x254] sm:$0xf]  ;;  %v1742_v60 = vor.u32 %v1908_v50, %v1739_v52  ;;  %v1918_v52 = vld [vmem:[%s2152_s7 + $0x224] sm:$0xf]  ;;  %v1841_v5 = vld [vmem:[%s2154_s8 + $0x5c] sm:$0xf] }
  0x85   : > { %1060 = vmatpush.bf16.msrb.mxu0 %v1770_v63  ;;  %1089 = vmatpush.bf16.msrb.mxu1 %v1518_v0  ;;  %v1806_v61 = vor.u32 %v1924_v53, %v1803_v54  ;;  %v1670_v63 = vor.u32 %v1890_v55, %v1667_v56  ;;  %v1731_v0 = vld [vmem:[%s2152_s7 + $0x1c8] sm:$0xf0]  ;;  %v1866_v54 = vld [vmem:[%s2152_s7 + $0x84] sm:$0xf] }
  0x86   : > { %v1734_v9 = vor.u32 %v1906_v62, %v1731_v0  ;;  %v1779_v53 = vld [vmem:[%s2152_s7 + $0x228] sm:$0xf0]  ;;  %v1771_v0 = vld [vmem:[%s2152_s7 + $0x218] sm:$0xf0] }
  0x87   : > { %1003 = vmatpush.bf16.msrb.mxu2 %v1634_v3  ;;  %v1659_v3 = vld [vmem:[%s2152_s7 + $0x138] sm:$0xf0]  ;;  %v1782_v55 = vor.u32 %v1918_v52, %v1779_v53  ;;  %v1571_v56 = vld [vmem:[%s2152_s7 + $0x88] sm:$0xf0] }
  0x88   : > { %1032 = vmatpush.bf16.msrb.mxu3 %v1698_v4  ;;  %v1606_v4 = vor.u32 %v1874_v58, %v1603_v59  ;;  %v1662_v12 = vor.u32 %v1888_v2, %v1659_v3  ;;  %v1900_v59 = vld [vmem:[%s2152_s7 + $0x194] sm:$0xf]  ;;  %v1574_v62 = vor.u32 %v1866_v54, %v1571_v56  ;;  %v1473_v3 = vld [vmem:[%s2154_s8 + $0x58] sm:$0xf] }
  0x89   : > { %1061 = vmatpush.bf16.msrb.mxu0 %v1762_v18  ;;  %1090 = vmatpush.bf16.msrb.mxu1 %v1510_v20  ;;  %v1651_v18 = vld [vmem:[%s2152_s7 + $0x128] sm:$0xf0]  ;;  %v1461_v20 = vld [vmem:[%s2154_s8 + $0x38] sm:$0xf] }
  0x8a   : > { %1004 = vmatmul.bf16.vlgmr.msrb.gmra.mxu2 %v2312_v36  ;;  %v2363_v39 = vor.u32 %v1839_v21, %v1461_v20  ;;  %v1501_v20 = vld [vmem:[%s2154_s8 + $0x88] sm:$0xf]  ;;  %v1849_v21 = vld [vmem:[%s2154_s8 + $0x98] sm:$0xf0] }
  0x8b   : > { %1112 = vmatpush.bf16.msra.mxu2 %v1630_v10  ;;  %1033 = vmatmul.bf16.vlgmr.msrb.gmra.mxu3 %v2317_v41  ;;  %v1502_v26 = vor.u32 %v1849_v21, %v1501_v20 }
  0x8c   : > { %1141 = vmatpush.bf16.msra.mxu3 %v1694_v11  ;;  %1062 = vmatmul.bf16.vlgmr.msrb.gmra.mxu0 %v2319_v42  ;;  %v1904_v11 = vld [vmem:[%s2152_s7 + $0x1b4] sm:$0xf] }
  0x8d   : > { %1170 = vmatpush.bf16.msra.mxu0 %v1758_v27  ;;  %1199 = vmatpush.bf16.msra.mxu1 %v1822_v30  ;;  %v1726_v27 = vor.u32 %v1904_v11, %v1723_v13  ;;  %v1790_v30 = vor.u32 %v1920_v14, %v1787_v15  ;;  %v1478_v11 = vor.u32 %v1841_v5, %v1475_v7  ;;  %v1914_v13 = vld [vmem:[%s2152_s7 + $0x204] sm:$0xf]  ;;  %v1763_v14 = vld [vmem:[%s2152_s7 + $0x208] sm:$0xf0]  ;;  %v342_v5 = vld [vmem:[#allocation2 + $0x50] sm:$0xff] }
  0x8e   : > { %1091 = vmatmul.bf16.vlgmr.msrb.gmra.mxu1 %v2208_v29  ;;  %v1795_v29 = vld [vmem:[%s2152_s7 + $0x248] sm:$0xf0]  ;;  %v1766_v15 = vor.u32 %v1914_v13, %v1763_v14 }
  0x8f   : > { %1113 = vmatpush.bf16.msra.mxu2 %v1622_v45  ;;  %v1798_v10 = vor.u32 %v1922_v1, %v1795_v29  ;;  %v1884_v45 = vld [vmem:[%s2152_s7 + $0x114] sm:$0xf]  ;;  %v1898_v1 = vld [vmem:[%s2152_s7 + $0x184] sm:$0xf]  ;;  %v1699_v29 = vld [vmem:[%s2152_s7 + $0x188] sm:$0xf0] }
  0x90   : > { %1142 = vmatpush.bf16.msra.mxu3 %v1686_v37  ;;  %v1654_v37 = vor.u32 %v1886_v17, %v1651_v18  ;;  %v1646_v50 = vor.u32 %v1884_v45, %v1643_v47  ;;  %v1702_v6 = vor.u32 %v1898_v1, %v1699_v29  ;;  %v1848_v17 = vld [vmem:[%s2154_s8 + $0x90] sm:$0xf0]  ;;  %v1846_v18 = vld [vmem:[%s2154_s8 + $0x84] sm:$0xf] }
  0x91   : > { %1171 = vmatpush.bf16.msra.mxu0 %v1750_v48  ;;  %1200 = vmatpush.bf16.msra.mxu1 %v1814_v49  ;;  %v1902_v48 = vld [vmem:[%s2152_s7 + $0x1a4] sm:$0xf]  ;;  %v1715_v49 = vld [vmem:[%s2152_s7 + $0x1a8] sm:$0xf0]  ;;  %v1498_v23 = vor.u32 %v1846_v18, %v1495_v19 }
  0x93   : > { %1114 = vmatpush.bf16.msra.mxu2 %v1614_v57  ;;  %v1882_v57 = vld [vmem:[%s2152_s7 + $0x104] sm:$0xf] }
  0x94   : > { %1143 = vmatpush.bf16.msra.mxu3 %v1678_v51  ;;  %v1718_v51 = vor.u32 %v1902_v48, %v1715_v49 }
  0x95   : > { %1172 = vmatpush.bf16.msra.mxu0 %v1742_v60  ;;  %1201 = vmatpush.bf16.msra.mxu1 %v1806_v61  ;;  %v1707_v60 = vld [vmem:[%s2152_s7 + $0x198] sm:$0xf0]  ;;  %v1916_v61 = vld [vmem:[%s2152_s7 + $0x214] sm:$0xf] }
  0x96   : > { %v1774_v2 = vor.u32 %v1916_v61, %v1771_v0 }
  0x97   : > { %1115 = vmatpush.bf16.msra.mxu2 %v1606_v4  ;;  %v1843_v4 = vld [vmem:[%s2154_s8 + $0x68] sm:$0xf0] }
  0x98   : > { %1144 = vmatpush.bf16.msra.mxu3 %v1670_v63  ;;  %v1710_v63 = vor.u32 %v1900_v59, %v1707_v60  ;;  %v340_v60 = vld [vmem:[#allocation2 + $0x58] sm:$0xff] }
  0x99   : > { %1173 = vmatpush.bf16.msra.mxu0 %v1734_v9  ;;  %1202 = vmatpush.bf16.msra.mxu1 %v1798_v10  ;;  %v1844_v9 = vld [vmem:[%s2154_s8 + $0x70] sm:$0xf0]  ;;  %v1474_v10 = vor.u32 %v1843_v4, %v1473_v3 }
  0x9a   : > { %1009 = vmatmul.bf16.gmra.mxu2 %v2359_v35 }
  0x9b   : > { %1116 = vmatpush.bf16.msra.mxu2 %v1598_v22  ;;  %1038 = vmatmul.bf16.gmra.mxu3 %v2361_v38  ;;  %v1494_v22 = vor.u32 %v1848_v17, %v1493_v16 }
  0x9c   : > { %1145 = vmatpush.bf16.msra.mxu3 %v1662_v12  ;;  %1067 = vmatmul.bf16.gmra.mxu0 %v2363_v39  ;;  %v1482_v12 = vor.u32 %v1844_v9, %v1481_v8 }
  0x9d   : > { %1174 = vmatpush.bf16.msra.mxu0 %v1726_v27  ;;  %1203 = vmatpush.bf16.msra.mxu1 %v1790_v30 }
  0x9e   : > { %1096 = vmatmul.bf16.gmra.mxu1 %v2260_v25  ;;  %v1635_v25 = vld [vmem:[%s2152_s7 + $0x108] sm:$0xf0] }
  0x9f   : > { %1117 = vmatpush.bf16.msra.mxu2 %v1590_v40  ;;  %v1638_v58 = vor.u32 %v1882_v57, %v1635_v25 }
  0xa0   : > { %1146 = vmatpush.bf16.msra.mxu3 %v1654_v37 }
  0xa1   : > { %1175 = vmatpush.bf16.msra.mxu0 %v1718_v51  ;;  %1204 = vmatpush.bf16.msra.mxu1 %v1782_v55  ;;  %v338_v51 = vld [vmem:[#allocation2 + $0x30] sm:$0xff] }
  0xa3   : > { %1118 = vmatpush.bf16.msra.mxu2 %v1582_v46 }
  0xa4   : > { %1147 = vmatpush.bf16.msra.mxu3 %v1646_v50 }
  0xa5   : > { %1176 = vmatpush.bf16.msra.mxu0 %v1710_v63  ;;  %1205 = vmatpush.bf16.msra.mxu1 %v1774_v2 }
  0xa7   : > { %1119 = vmatpush.bf16.msra.mxu2 %v1574_v62 }
  0xa8   : > { %1148 = vmatpush.bf16.msra.mxu3 %v1638_v58 }
  0xa9   : > { %1177 = vmatpush.bf16.msra.mxu0 %v1702_v6  ;;  %1206 = vmatpush.bf16.msra.mxu1 %v1766_v15  ;;  %v344_v15 = vld [vmem:[#allocation2 + $0x8] sm:$0xff] }
  0xaa   : > { %1014 = vmatmul.bf16.gmra.mxu2 %v1474_v10 }
  0xab   : > { %1043 = vmatmul.bf16.gmra.mxu3 %v1478_v11 }
  0xac   : > { %1072 = vmatmul.bf16.gmra.mxu0 %v1482_v12 }
  0xae   : > { %1101 = vmatmul.bf16.gmra.mxu1 %v2206_v28 }
  0xba   : > { %1019 = vmatmul.bf16.gmra.mxu2 %v1494_v22 }
  0xbb   : > { %1048 = vmatmul.bf16.gmra.mxu3 %v1498_v23 }
  0xbc   : > { %1077 = vmatmul.bf16.gmra.mxu0 %v1502_v26 }
  0xbe   : > { %1106 = vmatmul.bf16.gmra.mxu1 %v2258_v24 }
  0xca   : > { %1120 = vmatmul.bf16.vlgmr.msra.gmra.mxu2 %v2215_v34 }
  0xcb   : > { %1149 = vmatmul.bf16.vlgmr.msra.gmra.mxu3 %v2312_v36 }
  0xcc   : > { %1178 = vmatmul.bf16.vlgmr.msra.gmra.mxu0 %v2317_v41 }
  0xce   : > { %1207 = vmatmul.bf16.vlgmr.msra.gmra.mxu1 %v2319_v42 }
  0xda   : > { %1125 = vmatmul.bf16.gmra.mxu2 %v2267_v32 }
  0xdb   : > { %1154 = vmatmul.bf16.gmra.mxu3 %v2359_v35 }
  0xdc   : > { %1183 = vmatmul.bf16.gmra.mxu0 %v2361_v38 }
  0xde   : > { %1212 = vmatmul.bf16.gmra.mxu1 %v2363_v39 }
  0xe7   : > { %v947_v28 = vpop.f32.mrf.mxu0 }
  0xe9   : > { %v976_v27 = vpop.f32.mrf.mxu1 }
  0xea   : > { %1130 = vmatmul.bf16.gmra.mxu2 %v2213_v33  ;;  %v977_v46 = vadd.f32 %v976_v27, %v947_v28  ;;  %v346_v28 = vld [vmem:[#allocation2 + $0x40] sm:$0xff] }
  0xeb   : > { %1159 = vmatmul.bf16.gmra.mxu3 %v1474_v10 }
  0xec   : > { %1188 = vmatmul.bf16.gmra.mxu0 %v1478_v11 }
  0xed   : > { %v957_v34 = vpop.f32.mrf.mxu2 }
  0xee   : > { %1217 = vmatmul.bf16.gmra.mxu1 %v1482_v12  ;;  %v986_v24 = vpop.f32.mrf.mxu3 }
  0xef   : > { %v949_v36 = vpop.f32.mrf.mxu0  ;;  %v987_v18 = vadd.f32 %v986_v24, %v957_v34 }
  0xf1   : > { %v978_v41 = vpop.f32.mrf.mxu1 }
  0xf2   : > { %v979_v54 = vadd.f32 %v978_v41, %v949_v36 }
  0xf5   : > { %v2412_v42 = vpop.f32.mrf.mxu2 }
  0xf6   : > { %v2414_v32 = vpop.f32.mrf.mxu3 }
  0xf7   : > { %v952_v30 = vpop.f32.mrf.mxu0  ;;  %v989_v41 = vadd.f32 %v2414_v32, %v2412_v42 }
  0xf9   : > { %v981_v35 = vpop.f32.mrf.mxu1 }
  0xfa   : > { %1135 = vmatmul.bf16.gmra.mxu2 %v2265_v31  ;;  %v982_v63 = vadd.f32 %v981_v35, %v952_v30 }
  0xfb   : > { %1164 = vmatmul.bf16.gmra.mxu3 %v1494_v22 }
  0xfc   : > { %1193 = vmatmul.bf16.gmra.mxu0 %v1498_v23 }
  0xfd   : > { %v2417_v37 = vpop.f32.mrf.mxu2 }
  0xfe   : > { %1222 = vmatmul.bf16.gmra.mxu1 %v1502_v26  ;;  %v2419_v33 = vpop.f32.mrf.mxu3 }
  0xff   : > { %v954_v38 = vpop.f32.mrf.mxu0 }
 0x101   : > { %v983_v39 = vpop.f32.mrf.mxu1 }
 0x102   : > { %v984_v8 = vadd.f32 %v983_v39, %v954_v38 }
 0x105   : > { %v2421_v40 = vpop.f32.mrf.mxu2 }
 0x106   : > { %v2423_v43 = vpop.f32.mrf.mxu3 }
 0x109   : > { %v1063_v44 = vpop.f32.mrf.mxu0 }
 0x10b   : > { %v2425_v45 = vpop.f32.mrf.mxu1 }
 0x10d   : > { %v1005_v47 = vpop.f32.mrf.mxu2 }
 0x10e   : > { %v1006_v48 = vadd.f32 %v1005_v47, %v977_v46  ;;  %v1034_v31 = vpop.f32.mrf.mxu3 }
 0x110   : > { %v1035_v49 = vadd.f32 %v1034_v31, %v1006_v48  ;;  %v992_v48 = vadd.f32 %v2419_v33, %v2417_v37 }
 0x111   : > { %v1065_v50 = vpop.f32.mrf.mxu0 }
 0x112   : > { %v1064_v53 = vadd.f32 %v1063_v44, %v1035_v49  ;;  %v348_v44 = vld [vmem:[#allocation2 + $0x10] sm:$0xff] }
 0x113   : > { %v2427_v52 = vpop.f32.mrf.mxu1 }
 0x114   : > { %v1228_v55 = vadd.f32 %v1064_v53, %v338_v51  ;;  %v350_v53 = vld [vmem:[#allocation2 + $0x60] sm:$0xff] }
 0x115   : > { %v1007_v56 = vpop.f32.mrf.mxu2 }
 0x116   : > { %1244 = vst [vmem:[#allocation2 + $0x30] sm:$0xff] %v1228_v55  ;;  %v1008_v57 = vadd.f32 %v1007_v56, %v979_v54  ;;  %v1036_v25 = vpop.f32.mrf.mxu3  ;;  %v994_v56 = vadd.f32 %v2423_v43, %v2421_v40  ;;  %v339_v43 = vld [vmem:[#allocation2] sm:$0xff] }
 0x118   : > { %v1037_v58 = vadd.f32 %v1036_v25, %v1008_v57 }
 0x119   : > { %v1068_v59 = vpop.f32.mrf.mxu0 }
 0x11a   : > { %v1066_v62 = vadd.f32 %v1065_v50, %v1037_v58 }
 0x11b   : > { %v2429_v61 = vpop.f32.mrf.mxu1 }
 0x11c   : > { %v1230_v0 = vadd.f32 %v1066_v62, %v340_v60  ;;  %v352_v60 = vld [vmem:[#allocation2 + $0x78] sm:$0xff] }
 0x11d   : > { %v1010_v1 = vpop.f32.mrf.mxu2 }
 0x11e   : > { %1246 = vst [vmem:[#allocation2 + $0x58] sm:$0xff] %v1230_v0  ;;  %v1011_v29 = vadd.f32 %v1010_v1, %v982_v63  ;;  %v1039_v2 = vpop.f32.mrf.mxu3 }
 0x120   : > { %v1040_v3 = vadd.f32 %v1039_v2, %v1011_v29 }
 0x121   : > { %v1070_v4 = vpop.f32.mrf.mxu0 }
 0x122   : > { %v1069_v7 = vadd.f32 %v1068_v59, %v1040_v3 }
 0x123   : > { %v2431_v6 = vpop.f32.mrf.mxu1 }
 0x124   : > { %v1232_v9 = vadd.f32 %v1069_v7, %v342_v5 }
 0x125   : > { %v1012_v10 = vpop.f32.mrf.mxu2 }
 0x126   : > { %1248 = vst [vmem:[#allocation2 + $0x50] sm:$0xff] %v1232_v9  ;;  %v1013_v11 = vadd.f32 %v1012_v10, %v984_v8  ;;  %v1041_v12 = vpop.f32.mrf.mxu3 }
 0x128   : > { %v1042_v13 = vadd.f32 %v1041_v12, %v1013_v11 }
 0x129   : > { %v1073_v14 = vpop.f32.mrf.mxu0 }
 0x12a   : > { %v1071_v17 = vadd.f32 %v1070_v4, %v1042_v13 }
 0x12b   : > { %v2433_v16 = vpop.f32.mrf.mxu1 }
 0x12c   : > { %v1234_v19 = vadd.f32 %v1071_v17, %v344_v15  ;;  %v341_v17 = vld [vmem:[#allocation2 + $0x18] sm:$0xff] }
 0x12d   : > { %v1015_v20 = vpop.f32.mrf.mxu2 }
 0x12e   : > { %1250 = vst [vmem:[#allocation2 + $0x8] sm:$0xff] %v1234_v19  ;;  %v1016_v21 = vadd.f32 %v1015_v20, %v987_v18  ;;  %v1044_v22 = vpop.f32.mrf.mxu3 }
 0x130   : > { %v1045_v23 = vadd.f32 %v1044_v22, %v1016_v21 }
 0x131   : > { %v1075_v26 = vpop.f32.mrf.mxu0 }
 0x132   : > { %v1074_v36 = vadd.f32 %v1073_v14, %v1045_v23 }
 0x133   : > { %v2435_v27 = vpop.f32.mrf.mxu1 }
 0x134   : > { %v1236_v30 = vadd.f32 %v1074_v36, %v346_v28  ;;  %v343_v28 = vld [vmem:[#allocation2 + $0x68] sm:$0xff] }
 0x135   : > { %v1017_v35 = vpop.f32.mrf.mxu2 }
 0x136   : > { %1252 = vst [vmem:[#allocation2 + $0x40] sm:$0xff] %v1236_v30  ;;  %v1018_v38 = vadd.f32 %v1017_v35, %v989_v41  ;;  %v1046_v39 = vpop.f32.mrf.mxu3 }
 0x138   : > { %v1047_v34 = vadd.f32 %v1046_v39, %v1018_v38 }
 0x139   : > { %v1078_v24 = vpop.f32.mrf.mxu0 }
 0x13a   : > { %v1076_v47 = vadd.f32 %v1075_v26, %v1047_v34 }
 0x13b   : > { %v2439_v46 = vpop.f32.mrf.mxu1 }
 0x13c   : > { %v1238_v31 = vadd.f32 %v1076_v47, %v348_v44 }
 0x13d   : > { %v1020_v49 = vpop.f32.mrf.mxu2 }
 0x13e   : > { %1254 = vst [vmem:[#allocation2 + $0x10] sm:$0xff] %v1238_v31  ;;  %v1021_v50 = vadd.f32 %v1020_v49, %v992_v48  ;;  %v1049_v51 = vpop.f32.mrf.mxu3 }
 0x140   : > { %v1050_v42 = vadd.f32 %v1049_v51, %v1021_v50 }
 0x141   : > { %v1080_v32 = vpop.f32.mrf.mxu0 }
 0x142   : > { %v1079_v55 = vadd.f32 %v1078_v24, %v1050_v42  ;;  %v345_v24 = vld [vmem:[#allocation2 + $0x48] sm:$0xff] }
 0x143   : > { %v2443_v54 = vpop.f32.mrf.mxu1 }
 0x144   : > { %v1240_v57 = vadd.f32 %v1079_v55, %v350_v53 }
 0x145   : > { %v1022_v25 = vpop.f32.mrf.mxu2 }
 0x146   : > { %1256 = vst [vmem:[#allocation2 + $0x60] sm:$0xff] %v1240_v57  ;;  %v1023_v58 = vadd.f32 %v1022_v25, %v994_v56  ;;  %v1051_v59 = vpop.f32.mrf.mxu3 }
 0x148   : > { %v1052_v37 = vadd.f32 %v1051_v59, %v1023_v58 }
 0x149   : > { %v1179_v33 = vpop.f32.mrf.mxu0 }
 0x14a   : > { %v1081_v63 = vadd.f32 %v1080_v32, %v1052_v37  ;;  %v347_v32 = vld [vmem:[#allocation2 + $0x20] sm:$0xff] }
 0x14b   : > { %v1208_v62 = vpop.f32.mrf.mxu1 }
 0x14c   : > { %v1242_v0 = vadd.f32 %v1081_v63, %v352_v60 }
 0x14d   : > { %v1121_v1 = vpop.f32.mrf.mxu2 }
 0x14e   : > { %1258 = vst [vmem:[#allocation2 + $0x78] sm:$0xff] %v1242_v0  ;;  %v1122_v29 = vadd.f32 %v1121_v1, %v2425_v45  ;;  %v1150_v2 = vpop.f32.mrf.mxu3 }
 0x150   : > { %v1151_v3 = vadd.f32 %v1150_v2, %v1122_v29 }
 0x151   : > { %v1181_v4 = vpop.f32.mrf.mxu0 }
 0x152   : > { %v1180_v40 = vadd.f32 %v1179_v33, %v1151_v3  ;;  %v349_v33 = vld [vmem:[#allocation2 + $0x38] sm:$0xff] }
 0x153   : > { %v1210_v5 = vpop.f32.mrf.mxu1 }
 0x154   : > { %v1209_v7 = vadd.f32 %v1208_v62, %v1180_v40 }
 0x155   : > { %v1123_v8 = vpop.f32.mrf.mxu2 }
 0x156   : > { %v1229_v9 = vadd.f32 %v1209_v7, %v339_v43  ;;  %v1124_v10 = vadd.f32 %v1123_v8, %v2427_v52  ;;  %v1152_v11 = vpop.f32.mrf.mxu3 }
 0x158   : > { %1245 = vst [vmem:[#allocation2] sm:$0xff] %v1229_v9  ;;  %v1153_v12 = vadd.f32 %v1152_v11, %v1124_v10 }
 0x159   : > { %v1184_v13 = vpop.f32.mrf.mxu0 }
 0x15a   : > { %v1182_v15 = vadd.f32 %v1181_v4, %v1153_v12  ;;  %v351_v4 = vld [vmem:[#allocation2 + $0x70] sm:$0xff]  ;;  %v353_v12 = vld [vmem:[#allocation2 + $0x28] sm:$0xff] }
 0x15b   : > { %v1213_v14 = vpop.f32.mrf.mxu1 }
 0x15c   : > { %v1211_v18 = vadd.f32 %v1210_v5, %v1182_v15 }
 0x15d   : > { %v1126_v45 = vpop.f32.mrf.mxu2 }
 0x15e   : > { %v1231_v19 = vadd.f32 %v1211_v18, %v341_v17  ;;  %v1127_v20 = vadd.f32 %v1126_v45, %v2429_v61  ;;  %v1155_v21 = vpop.f32.mrf.mxu3 }
 0x160   : > { %1247 = vst [vmem:[#allocation2 + $0x18] sm:$0xff] %v1231_v19  ;;  %v1156_v22 = vadd.f32 %v1155_v21, %v1127_v20 }
 0x161   : > { %v1186_v23 = vpop.f32.mrf.mxu0 }
 0x162   : > { %v1185_v26 = vadd.f32 %v1184_v13, %v1156_v22 }
 0x163   : > { %v1215_v36 = vpop.f32.mrf.mxu1 }
 0x164   : > { %v1214_v52 = vadd.f32 %v1213_v14, %v1185_v26 }
 0x165   : > { %v1128_v41 = vpop.f32.mrf.mxu2 }
 0x166   : > { %v1233_v30 = vadd.f32 %v1214_v52, %v343_v28  ;;  %v1129_v35 = vadd.f32 %v1128_v41, %v2431_v6  ;;  %v1157_v38 = vpop.f32.mrf.mxu3 }
 0x168   : > { %1249 = vst [vmem:[#allocation2 + $0x68] sm:$0xff] %v1233_v30  ;;  %v1158_v39 = vadd.f32 %v1157_v38, %v1129_v35 }
 0x169   : > { %v1189_v44 = vpop.f32.mrf.mxu0 }
 0x16a   : > { %v1187_v34 = vadd.f32 %v1186_v23, %v1158_v39 }
 0x16b   : > { %v1218_v61 = vpop.f32.mrf.mxu1 }
 0x16c   : > { %v1216_v47 = vadd.f32 %v1215_v36, %v1187_v34 }
 0x16d   : > { %v1131_v48 = vpop.f32.mrf.mxu2 }
 0x16e   : > { %v1235_v31 = vadd.f32 %v1216_v47, %v345_v24  ;;  %v1132_v49 = vadd.f32 %v1131_v48, %v2433_v16  ;;  %v1160_v50 = vpop.f32.mrf.mxu3 }
 0x170   : > { %1251 = vst [vmem:[#allocation2 + $0x48] sm:$0xff] %v1235_v31  ;;  %v1161_v51 = vadd.f32 %v1160_v50, %v1132_v49 }
 0x171   : > { %v1191_v55 = vpop.f32.mrf.mxu0 }
 0x172   : > { %v1190_v42 = vadd.f32 %v1189_v44, %v1161_v51 }
 0x173   : > { %v1220_v58 = vpop.f32.mrf.mxu1 }
 0x174   : > { %v1219_v53 = vadd.f32 %v1218_v61, %v1190_v42 }
 0x175   : > { %v1133_v6 = vpop.f32.mrf.mxu2 }
 0x176   : > { %v1237_v56 = vadd.f32 %v1219_v53, %v347_v32  ;;  %v1134_v57 = vadd.f32 %v1133_v6, %v2435_v27  ;;  %v1162_v25 = vpop.f32.mrf.mxu3 }
 0x178   : > { %1253 = vst [vmem:[#allocation2 + $0x20] sm:$0xff] %v1237_v56  ;;  %v1163_v59 = vadd.f32 %v1162_v25, %v1134_v57 }
 0x179   : > { %v1194_v1 = vpop.f32.mrf.mxu0 }
 0x17a   : > { %v1192_v37 = vadd.f32 %v1191_v55, %v1163_v59 }
 0x17b   : > { %v1223_v2 = vpop.f32.mrf.mxu1 }
 0x17c   : > { %v1221_v60 = vadd.f32 %v1220_v58, %v1192_v37 }
 0x17d   : > { %v1136_v62 = vpop.f32.mrf.mxu2 }
 0x17e   : > { %v1239_v16 = vadd.f32 %v1221_v60, %v349_v33  ;;  %v1137_v63 = vadd.f32 %v1136_v62, %v2439_v46  ;;  %v1165_v0 = vpop.f32.mrf.mxu3 }
 0x180   : > { %1255 = vst [vmem:[#allocation2 + $0x38] sm:$0xff] %v1239_v16  ;;  %v1166_v29 = vadd.f32 %v1165_v0, %v1137_v63 }
 0x181   : > { %v1196_v9 = vpop.f32.mrf.mxu0 }
 0x182   : > { %v1195_v3 = vadd.f32 %v1194_v1, %v1166_v29 }
 0x183   : > { %v1225_v11 = vpop.f32.mrf.mxu1 }
 0x184   : > { %v1224_v5 = vadd.f32 %v1223_v2, %v1195_v3 }
 0x185   : > { %v1138_v27 = vpop.f32.mrf.mxu2 }
 0x186   : > { %v1241_v40 = vadd.f32 %v1224_v5, %v351_v4  ;;  %v1139_v43 = vadd.f32 %v1138_v27, %v2443_v54  ;;  %v1167_v7 = vpop.f32.mrf.mxu3 }
 0x188   : > { %1257 = vst [vmem:[#allocation2 + $0x70] sm:$0xff] %v1241_v40  ;;  %v1168_v8 = vadd.f32 %v1167_v7, %v1139_v43 }
 0x18a   : > { %v1197_v10 = vadd.f32 %v1196_v9, %v1168_v8 }
 0x18c   : > { %v1226_v46 = vadd.f32 %v1225_v11, %v1197_v10  ;;  %1263 = sbr.rel (%p1823_p11) target bundleno = 417 (0x1a1), region = 66 }
 0x18e   : > { %v1243_v13 = vadd.f32 %v1226_v46, %v353_v12 }
 0x190   : > { %1259 = vst [vmem:[#allocation2 + $0x28] sm:$0xff] %v1243_v13 }
 0x191   : > { %v1264_v14 = vld [vmem:[#allocation2 + $0x30] sm:$0xff]  ;;  %v1276_v17 = vld [vmem:[#allocation2 + $0x40] sm:$0xff]  ;;  %v1269_v22 = vld [vmem:[#allocation2 + $0x68] sm:$0xff] }
 0x192   : > { %v1268_v15 = vld [vmem:[#allocation2 + $0x50] sm:$0xff]  ;;  %v1280_v45 = vld [vmem:[#allocation2 + $0x60] sm:$0xff]  ;;  %v1266_v41 = vld [vmem:[#allocation2 + $0x58] sm:$0xff] }
 0x193   : > { %v1272_v18 = vmax.f32 %v1264_v14, %v1268_v15  ;;  %v1292_v54 = vld [vmem:[%s2488_s2] sm:$0x3]  ;;  %v1284_v20 = vmax.f32 %v1276_v17, %v1280_v45  ;;  %v1281_v26 = vld [vmem:[#allocation2 + $0x70] sm:$0xff]  ;;  %v1270_v30 = vld [vmem:[#allocation2 + $0x8] sm:$0xff] }
 0x194   : > { %v1265_v19 = vld [vmem:[#allocation2] sm:$0xff]  ;;  %v1294_v21 = vperm.slane %v1292_v54, 0  ;;  %v1295_v52 = vperm.slane %v1292_v54, 1  ;;  %v1278_v35 = vld [vmem:[#allocation2 + $0x10] sm:$0xff]  ;;  %v1274_v39 = vmax.f32 %v1266_v41, %v1270_v30  ;;  %v1282_v34 = vld [vmem:[#allocation2 + $0x78] sm:$0xff] }
 0x195   : > { %v1277_v23 = vld [vmem:[#allocation2 + $0x20] sm:$0xff]  ;;  %v1273_v28 = vmax.f32 %v1265_v19, %v1269_v22  ;;  %v1288_v38 = vmax.f32 %v1272_v18, %v1284_v20  ;;  %v1267_v24 = vld [vmem:[#allocation2 + $0x18] sm:$0xff]  ;;  %v1271_v44 = vld [vmem:[#allocation2 + $0x48] sm:$0xff]  ;;  %v1286_v61 = vmax.f32 %v1278_v35, %v1282_v34 }
 0x196   : > { %v1285_v36 = vmax.f32 %v1277_v23, %v1281_v26  ;;  %v1275_v48 = vmax.f32 %v1267_v24, %v1271_v44  ;;  %v1279_v31 = vld [vmem:[#allocation2 + $0x38] sm:$0xff] }
 0x197   : > { %v1283_v49 = vld [vmem:[#allocation2 + $0x28] sm:$0xff]  ;;  %v1298_v50 = vadd.f32 %v1294_v21, %v1288_v38  ;;  %v1290_v32 = vmax.f32 %v1274_v39, %v1286_v61 }
 0x198   : > { %v1289_v47 = vmax.f32 %v1273_v28, %v1285_v36  ;;  %v1287_v51 = vmax.f32 %v1279_v31, %v1283_v49 }
 0x199   : > { %v1302_v53 = vmax.f32 %v1298_v50, 0.0  ;;  %v1300_v56 = vadd.f32 %v1294_v21, %v1290_v32 }
 0x19a   : > { %v1299_v42 = vadd.f32 %v1295_v52, %v1289_v47  ;;  %v1291_v55 = vmax.f32 %v1275_v48, %v1287_v51 }
 0x19b   : > { %1306 = vst [vmem:[%s2489_s3] sm:$0xff] %v1302_v53  ;;  %v1304_v25 = vmax.f32 %v1300_v56, 0.0 }
 0x19c   : > { %v1303_v6 = vmax.f32 %v1299_v42, 0.0  ;;  %v1301_v57 = vadd.f32 %v1295_v52, %v1291_v55 }
 0x19d   : > { %1308 = vst [vmem:[%s2489_s3 + $0x10] sm:$0xff] %v1304_v25 }
 0x19e   : > { %1307 = vst [vmem:[%s2489_s3 + $0x8] sm:$0xff] %v1303_v6  ;;  %v1305_v58 = vmax.f32 %v1301_v57, 0.0 }
 0x1a0   : > { %1309 = vst [vmem:[%s2489_s3 + $0x18] sm:$0xff] %v1305_v58 }
 0x1a1 PF: > { %s13_s16 = sadd.s32 1, %s2027_s16   ;;  %s2490_s12 = smov %s2015_s13 }
 0x1a2   : > { %p10_p12 = scmp.ge.s32.totalorder %s13_s16, 7   ;;  %s2491_s13 = smov %s2085_s20 }
 0x1a3   : > { %s2492_s14 = smov %s2023_s15  ;;  %s2493_s15 = smov %s2495_s17 }
 0x1a4   :  { %12 = sbr.rel (!%p10_p12) target bundleno = 3 (0x3), region = 110 }

// kernel: cnn_forward.9
= control target key start
LH: loop header
LB: loop body
LE: loop exit
PB: predicated region body
PF: predicated region fallthrough
CT: control target
= control target key end

     0   :  { %s3418_s12 = smov 0   ;;  %s3420_s13 = smov 0   ;;  %s4337_s0 = inlined_call_operand.vmem [shape: bf16[4,16,6400], index: 0, kind: input, shape index: {}]   ;;  %s4338_s1 = inlined_call_operand.vmem [shape: bf16[6400,256], index: 1, kind: input, shape index: {}]   ;;  %s4339_s2 = inlined_call_operand.vmem [shape: f32[1,256], index: 2, kind: input, shape index: {}]   ;;  %s4340_s3 = inlined_call_operand.vmem [shape: f32[16,256], index: 3, kind: output, shape index: {}]  }
   0x1   :  { %s3422_s14 = smov 0   ;;  %s3424_s15 = smov 0  }
   0x2   :  { %s3426_s16 = smov 0  }
   0x3 LB: > { %s22_s17 = sadd.s32 1, %s3391_s15  ;;  %p41_p1 = scmp.ne.s32.totalorder %s3383_s13, %s3379_s12  ;;  %s3395_s16 = sphi %s3426_s16, %s13_s16   ;;  %s3391_s15 = sphi %s3424_s15, %s4344_s15   ;;  %s3387_s14 = sphi %s3422_s14, %s4343_s14   ;;  %s3383_s13 = sphi %s3420_s13, %s4342_s13   ;;  %s3379_s12 = sphi %s3418_s12, %s4341_s12  }
   0x4   : > { %p23_p0 = scmp.ge.s32.totalorder %s22_s17, 5  ;;  %p42_p2 = scmp.eq.s32.totalorder %s3395_s16, 0 }
   0x5   : > { %s34_s19 = sadd.s32 1, %s3383_s13  ;;  %p2301_p5 = scmp.ge.s32.totalorder %s3395_s16, 5 }
   0x6   : > { %s4346_s17 = smov (%p23_p0, %s22_s17), 0  ;;  %p43_p3 = por %p42_p2, %p41_p1 }
   0x7   : > { %s30_s18 = ssub.s32 %s3391_s15, %s4346_s17  ;;  %143 = sbr.rel (%p2301_p5) target bundleno = 57 (0x39), region = 20 }
   0x8   : > { %p32_p4 = scmp.eq.s32.totalorder %s30_s18, 0 }
   0xa   : > { %s3453_s20 = scalar_select %p32_p4, %s3383_s13, %s34_s19  }
   0xc   : > { %146 = sbr.rel (!%p43_p3) target bundleno = 57 (0x39), region = 24  ;;  %s148_s21 = sand.u32 (%p43_p3), 1, %s3383_s13  }
   0xd   : > { %s3112_s22 = smul.u32 (%p43_p3), 40, %s3391_s15 }
   0xe   : > { %s3314_s23 = smul.u32 (%p43_p3), 320, %s148_s21 }
   0xf   : > { %s3461_s26 = scalar_lea.vmem (%p43_p3), %s4337_s0, %s3112_s22 }
  0x10   : > { %v169_v0 = vld [vmem:[%s3461_s26] sm:$0xff] (%p43_p3)  ;;  %v171_v1 = vld [vmem:[%s3461_s26 + $0x8] sm:$0xff] (%p43_p3)  ;;  %v173_v2 = vld [vmem:[%s3461_s26 + $0x10] sm:$0xff] (%p43_p3)  ;;  %s3466_s27 = scalar_lea.vmem (%p43_p3), [#allocation3], %s3314_s23 }
  0x11   : > { %170 = vst [vmem:[%s3466_s27] sm:$0xff] %v169_v0  ;;  %v175_v3 = vld [vmem:[%s3461_s26 + $0x18] sm:$0xff]  ;;  %v177_v4 = vld [vmem:[%s3461_s26 + $0x20] sm:$0xff]  ;;  %v179_v5 = vld [vmem:[%s3461_s26 + $0xc8] sm:$0xff] }
  0x12   : > { %172 = vst [vmem:[%s3466_s27 + $0x8] sm:$0xff] %v171_v1  ;;  %v181_v6 = vld [vmem:[%s3461_s26 + $0xd0] sm:$0xff]  ;;  %v183_v7 = vld [vmem:[%s3461_s26 + $0xd8] sm:$0xff]  ;;  %v185_v8 = vld [vmem:[%s3461_s26 + $0xe0] sm:$0xff] }
  0x13   : > { %174 = vst [vmem:[%s3466_s27 + $0x10] sm:$0xff] %v173_v2  ;;  %v187_v9 = vld [vmem:[%s3461_s26 + $0xe8] sm:$0xff]  ;;  %v189_v10 = vld [vmem:[%s3461_s26 + $0x190] sm:$0xff]  ;;  %v191_v11 = vld [vmem:[%s3461_s26 + $0x198] sm:$0xff] }
  0x14   : > { %176 = vst [vmem:[%s3466_s27 + $0x18] sm:$0xff] %v175_v3  ;;  %v193_v12 = vld [vmem:[%s3461_s26 + $0x1a0] sm:$0xff]  ;;  %v195_v13 = vld [vmem:[%s3461_s26 + $0x1a8] sm:$0xff]  ;;  %v197_v14 = vld [vmem:[%s3461_s26 + $0x1b0] sm:$0xff] }
  0x15   : > { %178 = vst [vmem:[%s3466_s27 + $0x20] sm:$0xff] %v177_v4  ;;  %v199_v15 = vld [vmem:[%s3461_s26 + $0x258] sm:$0xff]  ;;  %v201_v16 = vld [vmem:[%s3461_s26 + $0x260] sm:$0xff]  ;;  %v203_v17 = vld [vmem:[%s3461_s26 + $0x268] sm:$0xff] }
  0x16   : > { %180 = vst [vmem:[%s3466_s27 + $0x28] sm:$0xff] %v179_v5  ;;  %v205_v18 = vld [vmem:[%s3461_s26 + $0x270] sm:$0xff]  ;;  %v207_v19 = vld [vmem:[%s3461_s26 + $0x278] sm:$0xff]  ;;  %v209_v20 = vld [vmem:[%s3461_s26 + $0x320] sm:$0xff] }
  0x17   : > { %182 = vst [vmem:[%s3466_s27 + $0x30] sm:$0xff] %v181_v6  ;;  %v211_v21 = vld [vmem:[%s3461_s26 + $0x328] sm:$0xff]  ;;  %v213_v22 = vld [vmem:[%s3461_s26 + $0x330] sm:$0xff]  ;;  %v215_v23 = vld [vmem:[%s3461_s26 + $0x338] sm:$0xff] }
  0x18   : > { %184 = vst [vmem:[%s3466_s27 + $0x38] sm:$0xff] %v183_v7  ;;  %v217_v24 = vld [vmem:[%s3461_s26 + $0x340] sm:$0xff]  ;;  %v219_v25 = vld [vmem:[%s3461_s26 + $0x3e8] sm:$0xff]  ;;  %v221_v26 = vld [vmem:[%s3461_s26 + $0x3f0] sm:$0xff] }
  0x19   : > { %186 = vst [vmem:[%s3466_s27 + $0x40] sm:$0xff] %v185_v8  ;;  %v223_v27 = vld [vmem:[%s3461_s26 + $0x3f8] sm:$0xff]  ;;  %v225_v28 = vld [vmem:[%s3461_s26 + $0x400] sm:$0xff]  ;;  %v227_v29 = vld [vmem:[%s3461_s26 + $0x408] sm:$0xff] }
  0x1a   : > { %188 = vst [vmem:[%s3466_s27 + $0x48] sm:$0xff] %v187_v9  ;;  %v229_v30 = vld [vmem:[%s3461_s26 + $0x4b0] sm:$0xff]  ;;  %v231_v31 = vld [vmem:[%s3461_s26 + $0x4b8] sm:$0xff]  ;;  %v233_v32 = vld [vmem:[%s3461_s26 + $0x4c0] sm:$0xff] }
  0x1b   : > { %190 = vst [vmem:[%s3466_s27 + $0x50] sm:$0xff] %v189_v10  ;;  %v235_v33 = vld [vmem:[%s3461_s26 + $0x4c8] sm:$0xff]  ;;  %v237_v34 = vld [vmem:[%s3461_s26 + $0x4d0] sm:$0xff]  ;;  %v239_v35 = vld [vmem:[%s3461_s26 + $0x578] sm:$0xff] }
  0x1c   : > { %192 = vst [vmem:[%s3466_s27 + $0x58] sm:$0xff] %v191_v11  ;;  %v241_v36 = vld [vmem:[%s3461_s26 + $0x580] sm:$0xff]  ;;  %v243_v37 = vld [vmem:[%s3461_s26 + $0x588] sm:$0xff]  ;;  %v245_v38 = vld [vmem:[%s3461_s26 + $0x590] sm:$0xff] }
  0x1d   : > { %194 = vst [vmem:[%s3466_s27 + $0x60] sm:$0xff] %v193_v12  ;;  %v247_v39 = vld [vmem:[%s3461_s26 + $0x598] sm:$0xff] }
  0x1e   : > { %196 = vst [vmem:[%s3466_s27 + $0x68] sm:$0xff] %v195_v13 }
  0x1f   : > { %198 = vst [vmem:[%s3466_s27 + $0x70] sm:$0xff] %v197_v14 }
  0x20   : > { %200 = vst [vmem:[%s3466_s27 + $0x78] sm:$0xff] %v199_v15 }
  0x21   : > { %202 = vst [vmem:[%s3466_s27 + $0x80] sm:$0xff] %v201_v16 }
  0x22   : > { %204 = vst [vmem:[%s3466_s27 + $0x88] sm:$0xff] %v203_v17 }
  0x23   : > { %206 = vst [vmem:[%s3466_s27 + $0x90] sm:$0xff] %v205_v18 }
  0x24   : > { %208 = vst [vmem:[%s3466_s27 + $0x98] sm:$0xff] %v207_v19 }
  0x25   : > { %210 = vst [vmem:[%s3466_s27 + $0xa0] sm:$0xff] %v209_v20 }
  0x26   : > { %212 = vst [vmem:[%s3466_s27 + $0xa8] sm:$0xff] %v211_v21 }
  0x27   : > { %214 = vst [vmem:[%s3466_s27 + $0xb0] sm:$0xff] %v213_v22 }
  0x28   : > { %216 = vst [vmem:[%s3466_s27 + $0xb8] sm:$0xff] %v215_v23 }
  0x29   : > { %218 = vst [vmem:[%s3466_s27 + $0xc0] sm:$0xff] %v217_v24 }
  0x2a   : > { %220 = vst [vmem:[%s3466_s27 + $0xc8] sm:$0xff] %v219_v25 }
  0x2b   : > { %222 = vst [vmem:[%s3466_s27 + $0xd0] sm:$0xff] %v221_v26 }
  0x2c   : > { %224 = vst [vmem:[%s3466_s27 + $0xd8] sm:$0xff] %v223_v27 }
  0x2d   : > { %226 = vst [vmem:[%s3466_s27 + $0xe0] sm:$0xff] %v225_v28 }
  0x2e   : > { %228 = vst [vmem:[%s3466_s27 + $0xe8] sm:$0xff] %v227_v29 }
  0x2f   : > { %230 = vst [vmem:[%s3466_s27 + $0xf0] sm:$0xff] %v229_v30 }
  0x30   : > { %232 = vst [vmem:[%s3466_s27 + $0xf8] sm:$0xff] %v231_v31 }
  0x31   : > { %234 = vst [vmem:[%s3466_s27 + $0x100] sm:$0xff] %v233_v32 }
  0x32   : > { %236 = vst [vmem:[%s3466_s27 + $0x108] sm:$0xff] %v235_v33 }
  0x33   : > { %238 = vst [vmem:[%s3466_s27 + $0x110] sm:$0xff] %v237_v34 }
  0x34   : > { %240 = vst [vmem:[%s3466_s27 + $0x118] sm:$0xff] %v239_v35 }
  0x35   : > { %242 = vst [vmem:[%s3466_s27 + $0x120] sm:$0xff] %v241_v36 }
  0x36   : > { %244 = vst [vmem:[%s3466_s27 + $0x128] sm:$0xff] %v243_v37 }
  0x37   : > { %246 = vst [vmem:[%s3466_s27 + $0x130] sm:$0xff] %v245_v38 }
  0x38   : > { %248 = vst [vmem:[%s3466_s27 + $0x138] sm:$0xff] %v247_v39 }
  0x39 PF: > { %p2303_p6 = scmp.ge.s32.totalorder %s3395_s16, 1  ;;  %p263_p7 = scmp.lt.s32.totalorder %s3395_s16, 6 }
  0x3b   : > { %p264_p8 = pnand %p2303_p6, %p263_p7 }
  0x3c   : > { %s270_s28 = sand.u32 (!%p264_p8), 1, %s3379_s12   ;;  %s302_s29 = smul.u32 (!%p264_p8), 160, %s3387_s14 }
  0x3d   : > { %267 = sbr.rel (%p264_p8) target bundleno = 591 (0x24f), region = 51  ;;  %p2306_p10 = scmp.ne.s32.totalorder (!%p264_p8), %s3387_s14, 0 }
  0x3e   : > { %s3315_s30 = smul.u32 (!%p264_p8), 320, %s270_s28  ;;  %p303_p9 = scmp.lt.s32.totalorder (!%p264_p8), %s302_s29, 799 }
  0x40   : > { %s3554_s8 = scalar_lea.vmem (!%p264_p8), [#allocation3], %s3315_s30 }
  0x42   : > { %s4348_s29 = smov (!%p303_p9, %s302_s29), 799  ;;  %319 = sbr.rel (%p2306_p10) target bundleno = 88 (0x58), region = 59 }
  0x43   : > { %s3113_s4 = sshll.u32 %s4348_s29, 3 }
  0x44   : > { %s3552_s7 = scalar_lea.vmem %s4338_s1, %s3113_s4 }
  0x47   : > { %v3397_v40 = vmov 0.0  }
  0x48   : > { %320 = vst [vmem:[#allocation2 + $0x30] sm:$0xff] %v3397_v40 }
  0x49   : > { %321 = vst [vmem:[#allocation2] sm:$0xff] %v3397_v40 }
  0x4a   : > { %322 = vst [vmem:[#allocation2 + $0x58] sm:$0xff] %v3397_v40 }
  0x4b   : > { %323 = vst [vmem:[#allocation2 + $0x18] sm:$0xff] %v3397_v40 }
  0x4c   : > { %324 = vst [vmem:[#allocation2 + $0x50] sm:$0xff] %v3397_v40 }
  0x4d   : > { %325 = vst [vmem:[#allocation2 + $0x68] sm:$0xff] %v3397_v40 }
  0x4e   : > { %326 = vst [vmem:[#allocation2 + $0x8] sm:$0xff] %v3397_v40 }
  0x4f   : > { %327 = vst [vmem:[#allocation2 + $0x48] sm:$0xff] %v3397_v40 }
  0x50   : > { %328 = vst [vmem:[#allocation2 + $0x40] sm:$0xff] %v3397_v40 }
  0x51   : > { %329 = vst [vmem:[#allocation2 + $0x20] sm:$0xff] %v3397_v40 }
  0x52   : > { %330 = vst [vmem:[#allocation2 + $0x10] sm:$0xff] %v3397_v40 }
  0x53   : > { %331 = vst [vmem:[#allocation2 + $0x38] sm:$0xff] %v3397_v40 }
  0x54   : > { %332 = vst [vmem:[#allocation2 + $0x60] sm:$0xff] %v3397_v40 }
  0x55   : > { %333 = vst [vmem:[#allocation2 + $0x70] sm:$0xff] %v3397_v40 }
  0x56   : > { %334 = vst [vmem:[#allocation2 + $0x78] sm:$0xff] %v3397_v40 }
  0x57   : > { %335 = vst [vmem:[#allocation2 + $0x28] sm:$0xff] %v3397_v40 }
  0x58 PF: > { %v2525_v41 = vld [vmem:[%s3552_s7 + $0x70] sm:$0xf]  ;;  %v3169_v42 = vld [vmem:[%s3552_s7 + $0x74] sm:$0xf0]  ;;  %v2517_v52 = vld [vmem:[%s3552_s7 + $0x60] sm:$0xf] }
  0x59   : > { %v2589_v43 = vld [vmem:[%s3552_s7 + $0xf0] sm:$0xf]  ;;  %v2526_v44 = vor.u32 %v3169_v42, %v2525_v41  ;;  %v3185_v45 = vld [vmem:[%s3552_s7 + $0xf4] sm:$0xf0]  ;;  %v3167_v54 = vld [vmem:[%s3552_s7 + $0x64] sm:$0xf0] }
  0x5a   : > { %v2653_v46 = vld [vmem:[%s3552_s7 + $0x170] sm:$0xf]  ;;  %v3201_v47 = vld [vmem:[%s3552_s7 + $0x174] sm:$0xf0]  ;;  %v2590_v48 = vor.u32 %v3185_v45, %v2589_v43  ;;  %v2581_v55 = vld [vmem:[%s3552_s7 + $0xe0] sm:$0xf]  ;;  %v2518_v57 = vor.u32 %v3167_v54, %v2517_v52 }
  0x5b   : > { %v2654_v49 = vor.u32 %v3201_v47, %v2653_v46  ;;  %v2717_v50 = vld [vmem:[%s3552_s7 + $0x1f0] sm:$0xf]  ;;  %v3217_v51 = vld [vmem:[%s3552_s7 + $0x1f4] sm:$0xf0]  ;;  %1552 = vmatpush.bf16.msra.mxu0 %v2526_v44  ;;  %v3183_v56 = vld [vmem:[%s3552_s7 + $0xe4] sm:$0xf0] }
  0x5c   : > { %v2718_v53 = vor.u32 %v3217_v51, %v2717_v50  ;;  %1581 = vmatpush.bf16.msra.mxu1 %v2590_v48  ;;  %v2582_v58 = vor.u32 %v3183_v56, %v2581_v55  ;;  %v2645_v59 = vld [vmem:[%s3552_s7 + $0x160] sm:$0xf]  ;;  %v3199_v60 = vld [vmem:[%s3552_s7 + $0x164] sm:$0xf0]  ;;  %v2509_v0 = vld [vmem:[%s3552_s7 + $0x50] sm:$0xf] }
  0x5d   : > { %1610 = vmatpush.bf16.msra.mxu2 %v2654_v49  ;;  %v2709_v61 = vld [vmem:[%s3552_s7 + $0x1e0] sm:$0xf]  ;;  %v2646_v62 = vor.u32 %v3199_v60, %v2645_v59  ;;  %v3215_v63 = vld [vmem:[%s3552_s7 + $0x1e4] sm:$0xf0]  ;;  %v3165_v1 = vld [vmem:[%s3552_s7 + $0x54] sm:$0xf0] }
  0x5e   : > { %1639 = vmatpush.bf16.msra.mxu3 %v2718_v53  ;;  %v2710_v2 = vor.u32 %v3215_v63, %v2709_v61  ;;  %v2573_v3 = vld [vmem:[%s3552_s7 + $0xd0] sm:$0xf]  ;;  %v3181_v4 = vld [vmem:[%s3552_s7 + $0xd4] sm:$0xf0]  ;;  %v2510_v6 = vor.u32 %v3165_v1, %v2509_v0  ;;  %v2501_v12 = vld [vmem:[%s3552_s7 + $0x40] sm:$0xf] }
  0x5f   : > { %v2637_v5 = vld [vmem:[%s3552_s7 + $0x150] sm:$0xf]  ;;  %1553 = vmatpush.bf16.msra.mxu0 %v2518_v57  ;;  %v3197_v7 = vld [vmem:[%s3552_s7 + $0x154] sm:$0xf0]  ;;  %v2574_v10 = vor.u32 %v3181_v4, %v2573_v3  ;;  %v3163_v13 = vld [vmem:[%s3552_s7 + $0x44] sm:$0xf0] }
  0x60   : > { %v2701_v8 = vld [vmem:[%s3552_s7 + $0x1d0] sm:$0xf]  ;;  %v3213_v9 = vld [vmem:[%s3552_s7 + $0x1d4] sm:$0xf0]  ;;  %1582 = vmatpush.bf16.msra.mxu1 %v2582_v58  ;;  %v2638_v11 = vor.u32 %v3197_v7, %v2637_v5  ;;  %v2565_v14 = vld [vmem:[%s3552_s7 + $0xc0] sm:$0xf]  ;;  %v2502_v21 = vor.u32 %v3163_v13, %v2501_v12 }
  0x61   : > { %1611 = vmatpush.bf16.msra.mxu2 %v2646_v62  ;;  %v2702_v15 = vor.u32 %v3213_v9, %v2701_v8  ;;  %v3179_v16 = vld [vmem:[%s3552_s7 + $0xc4] sm:$0xf0]  ;;  %v2629_v17 = vld [vmem:[%s3552_s7 + $0x140] sm:$0xf]  ;;  %v2493_v24 = vld [vmem:[%s3552_s7 + $0x30] sm:$0xf] }
  0x62   : > { %1640 = vmatpush.bf16.msra.mxu3 %v2710_v2  ;;  %v3195_v18 = vld [vmem:[%s3552_s7 + $0x144] sm:$0xf0]  ;;  %v2693_v19 = vld [vmem:[%s3552_s7 + $0x1c0] sm:$0xf]  ;;  %v2566_v22 = vor.u32 %v3179_v16, %v2565_v14  ;;  %v3161_v25 = vld [vmem:[%s3552_s7 + $0x34] sm:$0xf0] }
  0x63   : > { %v3211_v20 = vld [vmem:[%s3552_s7 + $0x1c4] sm:$0xf0]  ;;  %1554 = vmatpush.bf16.msra.mxu0 %v2510_v6  ;;  %v2630_v23 = vor.u32 %v3195_v18, %v2629_v17  ;;  %v2557_v26 = vld [vmem:[%s3552_s7 + $0xb0] sm:$0xf]  ;;  %v3177_v28 = vld [vmem:[%s3552_s7 + $0xb4] sm:$0xf0]  ;;  %v2494_v33 = vor.u32 %v3161_v25, %v2493_v24 }
  0x64   : > { %1583 = vmatpush.bf16.msra.mxu1 %v2574_v10  ;;  %v2694_v27 = vor.u32 %v3211_v20, %v2693_v19  ;;  %v2621_v29 = vld [vmem:[%s3552_s7 + $0x130] sm:$0xf]  ;;  %v3193_v30 = vld [vmem:[%s3552_s7 + $0x134] sm:$0xf0]  ;;  %v2558_v34 = vor.u32 %v3177_v28, %v2557_v26  ;;  %v2485_v36 = vld [vmem:[%s3552_s7 + $0x20] sm:$0xf] }
  0x65   : > { %1612 = vmatpush.bf16.msra.mxu2 %v2638_v11  ;;  %v2685_v31 = vld [vmem:[%s3552_s7 + $0x1b0] sm:$0xf]  ;;  %v3209_v32 = vld [vmem:[%s3552_s7 + $0x1b4] sm:$0xf0]  ;;  %v2622_v35 = vor.u32 %v3193_v30, %v2621_v29  ;;  %v3159_v37 = vld [vmem:[%s3552_s7 + $0x24] sm:$0xf0] }
  0x66   : > { %1641 = vmatpush.bf16.msra.mxu3 %v2702_v15  ;;  %v2549_v38 = vld [vmem:[%s3552_s7 + $0xa0] sm:$0xf]  ;;  %v2686_v39 = vor.u32 %v3209_v32, %v2685_v31  ;;  %v3175_v40 = vld [vmem:[%s3552_s7 + $0xa4] sm:$0xf0]  ;;  %v2486_v45 = vor.u32 %v3159_v37, %v2485_v36  ;;  %v2477_v48 = vld [vmem:[%s3552_s7 + $0x10] sm:$0xf] }
  0x67   : > { %1555 = vmatpush.bf16.msra.mxu0 %v2502_v21  ;;  %v2613_v41 = vld [vmem:[%s3552_s7 + $0x120] sm:$0xf]  ;;  %v3191_v42 = vld [vmem:[%s3552_s7 + $0x124] sm:$0xf0]  ;;  %v2550_v46 = vor.u32 %v3175_v40, %v2549_v38  ;;  %v3157_v49 = vld [vmem:[%s3552_s7 + $0x14] sm:$0xf0] }
  0x68   : > { %1584 = vmatpush.bf16.msra.mxu1 %v2566_v22  ;;  %v2677_v43 = vld [vmem:[%s3552_s7 + $0x1a0] sm:$0xf]  ;;  %v3207_v44 = vld [vmem:[%s3552_s7 + $0x1a4] sm:$0xf0]  ;;  %v2614_v47 = vor.u32 %v3191_v42, %v2613_v41  ;;  %v2541_v50 = vld [vmem:[%s3552_s7 + $0x90] sm:$0xf]  ;;  %v2478_v58 = vor.u32 %v3157_v49, %v2477_v48 }
  0x69   : > { %1613 = vmatpush.bf16.msra.mxu2 %v2630_v23  ;;  %v2678_v51 = vor.u32 %v3207_v44, %v2677_v43  ;;  %v3173_v52 = vld [vmem:[%s3552_s7 + $0x94] sm:$0xf0]  ;;  %v2605_v53 = vld [vmem:[%s3552_s7 + $0x110] sm:$0xf]  ;;  %v2469_v57 = vld [vmem:[%s3552_s7] sm:$0xf] }
  0x6a   : > { %1642 = vmatpush.bf16.msra.mxu3 %v2694_v27  ;;  %v3189_v54 = vld [vmem:[%s3552_s7 + $0x114] sm:$0xf0]  ;;  %v2669_v55 = vld [vmem:[%s3552_s7 + $0x190] sm:$0xf]  ;;  %v3155_v59 = vld [vmem:[%s3552_s7 + $0x4] sm:$0xf0]  ;;  %v2542_v62 = vor.u32 %v3173_v52, %v2541_v50 }
  0x6b   : > { %1556 = vmatpush.bf16.msra.mxu0 %v2494_v33  ;;  %v3205_v56 = vld [vmem:[%s3552_s7 + $0x194] sm:$0xf0]  ;;  %v2533_v60 = vld [vmem:[%s3552_s7 + $0x80] sm:$0xf]  ;;  %v3171_v61 = vld [vmem:[%s3552_s7 + $0x84] sm:$0xf0]  ;;  %v2606_v63 = vor.u32 %v3189_v54, %v2605_v53  ;;  %v2470_v11 = vor.u32 %v3155_v59, %v2469_v57 }
  0x6c   : > { %1585 = vmatpush.bf16.msra.mxu1 %v2558_v34  ;;  %v2597_v0 = vld [vmem:[%s3552_s7 + $0x100] sm:$0xf]  ;;  %v3187_v1 = vld [vmem:[%s3552_s7 + $0x104] sm:$0xf0]  ;;  %v2670_v3 = vor.u32 %v3205_v56, %v2669_v55  ;;  %v3114_v7 = vld [vmem:[%s3554_s8 + $0x4] sm:$0xf]  ;;  %v2534_v15 = vor.u32 %v3171_v61, %v2533_v60 }
  0x6d   : > { %1614 = vmatpush.bf16.msra.mxu2 %v2622_v35  ;;  %v2661_v2 = vld [vmem:[%s3552_s7 + $0x180] sm:$0xf]  ;;  %v3203_v4 = vld [vmem:[%s3552_s7 + $0x184] sm:$0xf0]  ;;  %v2311_v8 = vld [vmem:[%s3554_s8 + $0x28] sm:$0xf0]  ;;  %v2598_v16 = vor.u32 %v3187_v1, %v2597_v0 }
  0x6e   : > { %1643 = vmatpush.bf16.msra.mxu3 %v2686_v39  ;;  %v2309_v5 = vld [vmem:[%s3554_s8] sm:$0xf]  ;;  %v3119_v6 = vld [vmem:[%s3554_s8 + $0x24] sm:$0xf0]  ;;  %v2909_v9 = vld [vmem:[%s3552_s7 + $0x370] sm:$0xf]  ;;  %v2662_v20 = vor.u32 %v3203_v4, %v2661_v2  ;;  %v3641_v30 = vor.u32 %v3114_v7, %v2311_v8 }
  0x6f   : > { %1557 = vmatpush.bf16.msra.mxu0 %v2486_v45  ;;  %v3265_v10 = vld [vmem:[%s3552_s7 + $0x374] sm:$0xf0]  ;;  %v2317_v12 = vld [vmem:[%s3554_s8 + $0x8] sm:$0xf]  ;;  %v2973_v13 = vld [vmem:[%s3552_s7 + $0x3f0] sm:$0xf]  ;;  %v3636_v25 = vor.u32 %v3119_v6, %v2309_v5 }
  0x70   : > { %1586 = vmatpush.bf16.msra.mxu1 %v2550_v46  ;;  %v3281_v14 = vld [vmem:[%s3552_s7 + $0x3f4] sm:$0xf0]  ;;  %v3120_v17 = vld [vmem:[%s3554_s8 + $0x2c] sm:$0xf0]  ;;  %v3115_v18 = vld [vmem:[%s3554_s8 + $0xc] sm:$0xf]  ;;  %v2910_v21 = vor.u32 %v3265_v10, %v2909_v9 }
  0x71   : > { %1615 = vmatpush.bf16.msra.mxu2 %v2614_v47  ;;  %v2319_v19 = vld [vmem:[%s3554_s8 + $0x30] sm:$0xf0]  ;;  %v2781_v22 = vld [vmem:[%s3552_s7 + $0x270] sm:$0xf]  ;;  %v3233_v23 = vld [vmem:[%s3552_s7 + $0x274] sm:$0xf0]  ;;  %v2974_v26 = vor.u32 %v3281_v14, %v2973_v13  ;;  %v3643_v31 = vor.u32 %v3120_v17, %v2317_v12 }
  0x72   : > { %1644 = vmatpush.bf16.msra.mxu3 %v2678_v51  ;;  %v2845_v24 = vld [vmem:[%s3552_s7 + $0x2f0] sm:$0xf]  ;;  %v3249_v27 = vld [vmem:[%s3552_s7 + $0x2f4] sm:$0xf0]  ;;  %v2901_v28 = vld [vmem:[%s3552_s7 + $0x360] sm:$0xf]  ;;  %v3647_v34 = vor.u32 %v3115_v18, %v2319_v19  ;;  %v2782_v35 = vor.u32 %v3233_v23, %v2781_v22 }
  0x73   : > { %1558 = vmatpush.bf16.msra.mxu0 %v2478_v58  ;;  %v3263_v29 = vld [vmem:[%s3552_s7 + $0x364] sm:$0xf0]  ;;  %v2965_v32 = vld [vmem:[%s3552_s7 + $0x3e0] sm:$0xf]  ;;  %v2846_v36 = vor.u32 %v3249_v27, %v2845_v24  ;;  %v2893_v43 = vld [vmem:[%s3552_s7 + $0x350] sm:$0xf] }
  0x74   : > { %1587 = vmatpush.bf16.msra.mxu1 %v2542_v62  ;;  %v3279_v33 = vld [vmem:[%s3552_s7 + $0x3e4] sm:$0xf0]  ;;  %v2902_v37 = vor.u32 %v3263_v29, %v2901_v28  ;;  %v2773_v38 = vld [vmem:[%s3552_s7 + $0x260] sm:$0xf]  ;;  %v3261_v44 = vld [vmem:[%s3552_s7 + $0x354] sm:$0xf0] }
  0x75   : > { %1616 = vmatpush.bf16.msra.mxu2 %v2606_v63  ;;  %v3231_v39 = vld [vmem:[%s3552_s7 + $0x264] sm:$0xf0]  ;;  %v2837_v40 = vld [vmem:[%s3552_s7 + $0x2e0] sm:$0xf]  ;;  %v2966_v41 = vor.u32 %v3279_v33, %v2965_v32  ;;  %v2957_v45 = vld [vmem:[%s3552_s7 + $0x3d0] sm:$0xf]  ;;  %v2894_v49 = vor.u32 %v3261_v44, %v2893_v43 }
  0x76   : > { %1645 = vmatpush.bf16.msra.mxu3 %v2670_v3  ;;  %v3247_v42 = vld [vmem:[%s3552_s7 + $0x2e4] sm:$0xf0]  ;;  %v3277_v46 = vld [vmem:[%s3552_s7 + $0x3d4] sm:$0xf0]  ;;  %v2774_v47 = vor.u32 %v3231_v39, %v2773_v38  ;;  %v2765_v50 = vld [vmem:[%s3552_s7 + $0x250] sm:$0xf] }
  0x77   : > { %1559 = vmatpush.bf16.msra.mxu0 %v2470_v11  ;;  %v2838_v48 = vor.u32 %v3247_v42, %v2837_v40  ;;  %v3229_v51 = vld [vmem:[%s3552_s7 + $0x254] sm:$0xf0]  ;;  %v2829_v52 = vld [vmem:[%s3552_s7 + $0x2d0] sm:$0xf]  ;;  %v2958_v53 = vor.u32 %v3277_v46, %v2957_v45  ;;  %v2885_v55 = vld [vmem:[%s3552_s7 + $0x340] sm:$0xf] }
  0x78   : > { %1588 = vmatpush.bf16.msra.mxu1 %v2534_v15  ;;  %v3245_v54 = vld [vmem:[%s3552_s7 + $0x2d4] sm:$0xf0]  ;;  %v3259_v56 = vld [vmem:[%s3552_s7 + $0x344] sm:$0xf0]  ;;  %v2949_v57 = vld [vmem:[%s3552_s7 + $0x3c0] sm:$0xf]  ;;  %v2766_v59 = vor.u32 %v3229_v51, %v2765_v50 }
  0x79   : > { %1617 = vmatpush.bf16.msra.mxu2 %v2598_v16  ;;  %v3275_v58 = vld [vmem:[%s3552_s7 + $0x3c4] sm:$0xf0]  ;;  %v2349_v60 = vld [vmem:[%s3554_s8 + $0x50] sm:$0xf]  ;;  %v3129_v61 = vld [vmem:[%s3554_s8 + $0x74] sm:$0xf0]  ;;  %v2830_v62 = vor.u32 %v3245_v54, %v2829_v52  ;;  %v2886_v63 = vor.u32 %v3259_v56, %v2885_v55 }
  0x7a   : > { %1646 = vmatpush.bf16.msra.mxu3 %v2662_v20  ;;  %1560 = vmatmul.bf16.vlgmr.msra.gmra.mxu0 %v3636_v25  ;;  %v2757_v0 = vld [vmem:[%s3552_s7 + $0x240] sm:$0xf]  ;;  %v3227_v1 = vld [vmem:[%s3552_s7 + $0x244] sm:$0xf0]  ;;  %v3124_v3 = vld [vmem:[%s3554_s8 + $0x54] sm:$0xf]  ;;  %v2950_v5 = vor.u32 %v3275_v58, %v2949_v57 }
  0x7b   : > { %1589 = vmatmul.bf16.vlgmr.msra.gmra.mxu1 %v3641_v30  ;;  %1668 = vmatpush.bf16.msrb.mxu0 %v2782_v35  ;;  %v2821_v2 = vld [vmem:[%s3552_s7 + $0x2c0] sm:$0xf]  ;;  %v2351_v4 = vld [vmem:[%s3554_s8 + $0x78] sm:$0xf0]  ;;  %v3243_v6 = vld [vmem:[%s3552_s7 + $0x2c4] sm:$0xf0]  ;;  %v2758_v15 = vor.u32 %v3227_v1, %v2757_v0 }
  0x7c   : > { %1618 = vmatmul.bf16.vlgmr.msra.gmra.mxu2 %v3643_v31  ;;  %1697 = vmatpush.bf16.msrb.mxu1 %v2846_v36  ;;  %v2877_v7 = vld [vmem:[%s3552_s7 + $0x330] sm:$0xf]  ;;  %v3257_v8 = vld [vmem:[%s3552_s7 + $0x334] sm:$0xf0]  ;;  %v3130_v12 = vld [vmem:[%s3554_s8 + $0x7c] sm:$0xf0]  ;;  %v2822_v16 = vor.u32 %v3243_v6, %v2821_v2  ;;  %v3693_v27 = vor.u32 %v3124_v3, %v2351_v4 }
  0x7d   : > { %1726 = vmatpush.bf16.msrb.mxu2 %v2910_v21  ;;  %1647 = vmatmul.bf16.vlgmr.msra.gmra.mxu3 %v3647_v34  ;;  %v2357_v9 = vld [vmem:[%s3554_s8 + $0x58] sm:$0xf]  ;;  %v2941_v10 = vld [vmem:[%s3552_s7 + $0x3b0] sm:$0xf]  ;;  %v3125_v13 = vld [vmem:[%s3554_s8 + $0x5c] sm:$0xf]  ;;  %v2878_v17 = vor.u32 %v3257_v8, %v2877_v7  ;;  %v3688_v21 = vor.u32 %v3129_v61, %v2349_v60 }
  0x7e   : > { %1755 = vmatpush.bf16.msrb.mxu3 %v2974_v26  ;;  %v3273_v11 = vld [vmem:[%s3552_s7 + $0x3b4] sm:$0xf0]  ;;  %v2359_v14 = vld [vmem:[%s3554_s8 + $0x80] sm:$0xf0]  ;;  %v2749_v18 = vld [vmem:[%s3552_s7 + $0x230] sm:$0xf]  ;;  %v3695_v28 = vor.u32 %v3130_v12, %v2357_v9 }
  0x7f   : > { %1669 = vmatpush.bf16.msrb.mxu0 %v2774_v47  ;;  %v3225_v19 = vld [vmem:[%s3552_s7 + $0x234] sm:$0xf0]  ;;  %v2813_v20 = vld [vmem:[%s3552_s7 + $0x2b0] sm:$0xf]  ;;  %v2942_v22 = vor.u32 %v3273_v11, %v2941_v10  ;;  %v2869_v24 = vld [vmem:[%s3552_s7 + $0x320] sm:$0xf]  ;;  %v3699_v33 = vor.u32 %v3125_v13, %v2359_v14 }
  0x80   : > { %1698 = vmatpush.bf16.msrb.mxu1 %v2838_v48  ;;  %v3241_v23 = vld [vmem:[%s3552_s7 + $0x2b4] sm:$0xf0]  ;;  %v3255_v26 = vld [vmem:[%s3552_s7 + $0x324] sm:$0xf0]  ;;  %v2933_v29 = vld [vmem:[%s3552_s7 + $0x3a0] sm:$0xf]  ;;  %v2750_v35 = vor.u32 %v3225_v19, %v2749_v18 }
  0x81   : > { %1727 = vmatpush.bf16.msrb.mxu2 %v2902_v37  ;;  %v3271_v32 = vld [vmem:[%s3552_s7 + $0x3a4] sm:$0xf0]  ;;  %v2814_v36 = vor.u32 %v3241_v23, %v2813_v20  ;;  %v2870_v37 = vor.u32 %v3255_v26, %v2869_v24  ;;  %v2741_v38 = vld [vmem:[%s3552_s7 + $0x220] sm:$0xf]  ;;  %v2861_v44 = vld [vmem:[%s3552_s7 + $0x310] sm:$0xf] }
  0x82   : > { %1756 = vmatpush.bf16.msrb.mxu3 %v2966_v41  ;;  %v3223_v39 = vld [vmem:[%s3552_s7 + $0x224] sm:$0xf0]  ;;  %v2934_v40 = vor.u32 %v3271_v32, %v2933_v29  ;;  %v2805_v41 = vld [vmem:[%s3552_s7 + $0x2a0] sm:$0xf]  ;;  %v3253_v45 = vld [vmem:[%s3552_s7 + $0x314] sm:$0xf0] }
  0x83   : > { %1670 = vmatpush.bf16.msrb.mxu0 %v2766_v59  ;;  %v3239_v42 = vld [vmem:[%s3552_s7 + $0x2a4] sm:$0xf0]  ;;  %v2742_v43 = vor.u32 %v3223_v39, %v2741_v38  ;;  %v2733_v46 = vld [vmem:[%s3552_s7 + $0x210] sm:$0xf]  ;;  %v2862_v48 = vor.u32 %v3253_v45, %v2861_v44  ;;  %v3269_v51 = vld [vmem:[%s3552_s7 + $0x394] sm:$0xf0] }
  0x84   : > { %1699 = vmatpush.bf16.msrb.mxu1 %v2830_v62  ;;  %v2806_v47 = vor.u32 %v3239_v42, %v2805_v41  ;;  %v2925_v50 = vld [vmem:[%s3552_s7 + $0x390] sm:$0xf]  ;;  %v3237_v54 = vld [vmem:[%s3552_s7 + $0x294] sm:$0xf0]  ;;  %v2853_v55 = vld [vmem:[%s3552_s7 + $0x300] sm:$0xf] }
  0x85   : > { %1728 = vmatpush.bf16.msrb.mxu2 %v2894_v49  ;;  %v3221_v49 = vld [vmem:[%s3552_s7 + $0x214] sm:$0xf0]  ;;  %v2926_v52 = vor.u32 %v3269_v51, %v2925_v50  ;;  %v3251_v56 = vld [vmem:[%s3552_s7 + $0x304] sm:$0xf0]  ;;  %v2917_v58 = vld [vmem:[%s3552_s7 + $0x380] sm:$0xf] }
  0x86   : > { %1757 = vmatpush.bf16.msrb.mxu3 %v2958_v53  ;;  %v2797_v53 = vld [vmem:[%s3552_s7 + $0x290] sm:$0xf]  ;;  %v2734_v57 = vor.u32 %v3221_v49, %v2733_v46  ;;  %v3267_v59 = vld [vmem:[%s3552_s7 + $0x384] sm:$0xf0]  ;;  %v2854_v61 = vor.u32 %v3251_v56, %v2853_v55  ;;  %v2725_v62 = vld [vmem:[%s3552_s7 + $0x200] sm:$0xf] }
  0x87   : > { %1671 = vmatpush.bf16.msrb.mxu0 %v2758_v15  ;;  %v2798_v60 = vor.u32 %v3237_v54, %v2797_v53  ;;  %v2918_v0 = vor.u32 %v3267_v59, %v2917_v58  ;;  %v2789_v1 = vld [vmem:[%s3552_s7 + $0x280] sm:$0xf]  ;;  %v3235_v2 = vld [vmem:[%s3552_s7 + $0x284] sm:$0xf0]  ;;  %v2391_v6 = vld [vmem:[%s3554_s8 + $0xc8] sm:$0xf0] }
  0x88   : > { %1700 = vmatpush.bf16.msrb.mxu1 %v2822_v16  ;;  %v2389_v3 = vld [vmem:[%s3554_s8 + $0xa0] sm:$0xf]  ;;  %v3139_v4 = vld [vmem:[%s3554_s8 + $0xc4] sm:$0xf0]  ;;  %v3140_v8 = vld [vmem:[%s3554_s8 + $0xcc] sm:$0xf0]  ;;  %v2790_v12 = vor.u32 %v3235_v2, %v2789_v1 }
  0x89   : > { %1729 = vmatpush.bf16.msrb.mxu2 %v2886_v63  ;;  %v3219_v63 = vld [vmem:[%s3552_s7 + $0x204] sm:$0xf0]  ;;  %v3135_v10 = vld [vmem:[%s3554_s8 + $0xac] sm:$0xf]  ;;  %v2399_v11 = vld [vmem:[%s3554_s8 + $0xd0] sm:$0xf0]  ;;  %v3733_v13 = vor.u32 %v3139_v4, %v2389_v3 }
  0x8a   : > { %1758 = vmatpush.bf16.msrb.mxu3 %v2950_v5  ;;  %1565 = vmatmul.bf16.gmra.mxu0 %v3688_v21  ;;  %v3134_v5 = vld [vmem:[%s3554_s8 + $0xa4] sm:$0xf]  ;;  %v2397_v7 = vld [vmem:[%s3554_s8 + $0xa8] sm:$0xf]  ;;  %v2726_v9 = vor.u32 %v3219_v63, %v2725_v62  ;;  %v3739_v16 = vor.u32 %v3135_v10, %v2399_v11  ;;  %v2527_v18 = vld [vmem:[%s3552_s7 + $0x78] sm:$0xf0] }
  0x8b   : > { %1594 = vmatmul.bf16.gmra.mxu1 %v3693_v27  ;;  %1672 = vmatpush.bf16.msrb.mxu0 %v2750_v35  ;;  %v3735_v14 = vor.u32 %v3134_v5, %v2391_v6  ;;  %v3737_v15 = vor.u32 %v3140_v8, %v2397_v7  ;;  %v3037_v19 = vld [vmem:[%s3552_s7 + $0x470] sm:$0xf]  ;;  %v3184_v23 = vld [vmem:[%s3552_s7 + $0xf4] sm:$0xf]  ;;  %v2591_v24 = vld [vmem:[%s3552_s7 + $0xf8] sm:$0xf0] }
  0x8c   : > { %1623 = vmatmul.bf16.gmra.mxu2 %v3695_v28  ;;  %1701 = vmatpush.bf16.msrb.mxu1 %v2814_v36  ;;  %v2594_v29 = vor.u32 %v3184_v23, %v2591_v24  ;;  %v3101_v32 = vld [vmem:[%s3552_s7 + $0x4f0] sm:$0xf]  ;;  %v3313_v35 = vld [vmem:[%s3552_s7 + $0x4f4] sm:$0xf0]  ;;  %v3166_v36 = vld [vmem:[%s3552_s7 + $0x64] sm:$0xf] }
  0x8d   : > { %1730 = vmatpush.bf16.msrb.mxu2 %v2878_v17  ;;  %1652 = vmatmul.bf16.gmra.mxu3 %v3699_v33  ;;  %v3168_v17 = vld [vmem:[%s3552_s7 + $0x74] sm:$0xf]  ;;  %v2519_v38 = vld [vmem:[%s3552_s7 + $0x68] sm:$0xf0]  ;;  %v3029_v39 = vld [vmem:[%s3552_s7 + $0x460] sm:$0xf] }
  0x8e   : > { %1759 = vmatpush.bf16.msrb.mxu3 %v2942_v22  ;;  %v2530_v20 = vor.u32 %v3168_v17, %v2527_v18  ;;  %v3297_v22 = vld [vmem:[%s3552_s7 + $0x474] sm:$0xf0]  ;;  %v2522_v41 = vor.u32 %v3166_v36, %v2519_v38  ;;  %v2583_v44 = vld [vmem:[%s3552_s7 + $0xe8] sm:$0xf0]  ;;  %v3093_v45 = vld [vmem:[%s3552_s7 + $0x4e0] sm:$0xf] }
  0x8f   : > { %1673 = vmatpush.bf16.msrb.mxu0 %v2742_v43  ;;  %v3038_v26 = vor.u32 %v3297_v22, %v3037_v19  ;;  %v3182_v43 = vld [vmem:[%s3552_s7 + $0xe4] sm:$0xf]  ;;  %v2429_v49 = vld [vmem:[%s3554_s8 + $0xf0] sm:$0xf]  ;;  %v3149_v50 = vld [vmem:[%s3554_s8 + $0x114] sm:$0xf0] }
  0x90   : > { %1702 = vmatpush.bf16.msrb.mxu1 %v2806_v47  ;;  %v2586_v46 = vor.u32 %v3182_v43, %v2583_v44  ;;  %v3311_v47 = vld [vmem:[%s3552_s7 + $0x4e4] sm:$0xf0]  ;;  %v3144_v51 = vld [vmem:[%s3554_s8 + $0xf4] sm:$0xf]  ;;  %v2437_v53 = vld [vmem:[%s3554_s8 + $0xf8] sm:$0xf] }
  0x91   : > { %1731 = vmatpush.bf16.msrb.mxu2 %v2870_v37  ;;  %v3102_v37 = vor.u32 %v3313_v35, %v3101_v32  ;;  %v3150_v54 = vld [vmem:[%s3554_s8 + $0x11c] sm:$0xf0]  ;;  %v3145_v55 = vld [vmem:[%s3554_s8 + $0xfc] sm:$0xf]  ;;  %v2439_v56 = vld [vmem:[%s3554_s8 + $0x120] sm:$0xf0] }
  0x92   : > { %1760 = vmatpush.bf16.msrb.mxu3 %v2934_v40  ;;  %v3295_v40 = vld [vmem:[%s3552_s7 + $0x464] sm:$0xf0]  ;;  %v3773_v59 = vor.u32 %v3150_v54, %v2437_v53  ;;  %v2511_v62 = vld [vmem:[%s3552_s7 + $0x58] sm:$0xf0]  ;;  %v3021_v63 = vld [vmem:[%s3552_s7 + $0x450] sm:$0xf] }
  0x93   : > { %1674 = vmatpush.bf16.msrb.mxu0 %v2734_v57  ;;  %v3030_v42 = vor.u32 %v3295_v40, %v3029_v39  ;;  %v3769_v57 = vor.u32 %v3149_v50, %v2429_v49  ;;  %v3293_v1 = vld [vmem:[%s3552_s7 + $0x454] sm:$0xf0]  ;;  %v3180_v2 = vld [vmem:[%s3552_s7 + $0xd4] sm:$0xf]  ;;  %v2575_v3 = vld [vmem:[%s3552_s7 + $0xd8] sm:$0xf0] }
  0x94   : > { %1703 = vmatpush.bf16.msrb.mxu1 %v2798_v60  ;;  %v3775_v60 = vor.u32 %v3145_v55, %v2439_v56  ;;  %v3022_v4 = vor.u32 %v3293_v1, %v3021_v63  ;;  %v2578_v5 = vor.u32 %v3180_v2, %v2575_v3  ;;  %v3085_v6 = vld [vmem:[%s3552_s7 + $0x4d0] sm:$0xf]  ;;  %v3309_v7 = vld [vmem:[%s3552_s7 + $0x4d4] sm:$0xf0]  ;;  %v3162_v8 = vld [vmem:[%s3552_s7 + $0x44] sm:$0xf] }
  0x95   : > { %1732 = vmatpush.bf16.msrb.mxu2 %v2862_v48  ;;  %v3094_v48 = vor.u32 %v3311_v47, %v3093_v45  ;;  %v2503_v10 = vld [vmem:[%s3552_s7 + $0x48] sm:$0xf0]  ;;  %v3013_v11 = vld [vmem:[%s3552_s7 + $0x440] sm:$0xf]  ;;  %v3178_v19 = vld [vmem:[%s3552_s7 + $0xc4] sm:$0xf] }
  0x96   : > { %1761 = vmatpush.bf16.msrb.mxu3 %v2926_v52  ;;  %v2431_v52 = vld [vmem:[%s3554_s8 + $0x118] sm:$0xf0]  ;;  %v2506_v17 = vor.u32 %v3162_v8, %v2503_v10  ;;  %v3077_v22 = vld [vmem:[%s3552_s7 + $0x4c0] sm:$0xf]  ;;  %v3307_v24 = vld [vmem:[%s3552_s7 + $0x4c4] sm:$0xf0] }
  0x97   : > { %1675 = vmatpush.bf16.msrb.mxu0 %v2726_v9  ;;  %v3771_v58 = vor.u32 %v3144_v51, %v2431_v52  ;;  %v3086_v9 = vor.u32 %v3309_v7, %v3085_v6  ;;  %v3121_v32 = vld [vmem:[%s3554_s8 + $0x34] sm:$0xf0]  ;;  %v3116_v35 = vld [vmem:[%s3554_s8 + $0x14] sm:$0xf]  ;;  %v2327_v36 = vld [vmem:[%s3554_s8 + $0x38] sm:$0xf0] }
  0x98   : > { %1704 = vmatpush.bf16.msrb.mxu1 %v2790_v12  ;;  %v3291_v12 = vld [vmem:[%s3552_s7 + $0x444] sm:$0xf0]  ;;  %v3122_v38 = vld [vmem:[%s3554_s8 + $0x3c] sm:$0xf0]  ;;  %v3117_v39 = vld [vmem:[%s3554_s8 + $0x1c] sm:$0xf] }
  0x99   : > { %1733 = vmatpush.bf16.msrb.mxu2 %v2854_v61  ;;  %v3164_v61 = vld [vmem:[%s3552_s7 + $0x54] sm:$0xf]  ;;  %v3014_v18 = vor.u32 %v3291_v12, %v3013_v11  ;;  %v2335_v40 = vld [vmem:[%s3554_s8 + $0x40] sm:$0xf0]  ;;  %v3005_v47 = vld [vmem:[%s3552_s7 + $0x430] sm:$0xf] }
  0x9a   : > { %1762 = vmatpush.bf16.msrb.mxu3 %v2918_v0  ;;  %1570 = vmatmul.bf16.gmra.mxu0 %v3733_v13  ;;  %v2514_v0 = vor.u32 %v3164_v61, %v2511_v62  ;;  %v3811_v44 = vor.u32 %v3117_v39, %v2335_v40  ;;  %v3160_v45 = vld [vmem:[%s3552_s7 + $0x34] sm:$0xf]  ;;  %v3289_v49 = vld [vmem:[%s3552_s7 + $0x434] sm:$0xf0]  ;;  %v2559_v51 = vld [vmem:[%s3552_s7 + $0xb8] sm:$0xf0] }
  0x9b   : > { %1599 = vmatmul.bf16.gmra.mxu1 %v3735_v14  ;;  %1784 = vmatpush.bf16.msra.mxu0 %v3038_v26  ;;  %v3078_v26 = vor.u32 %v3307_v24, %v3077_v22  ;;  %v3176_v50 = vld [vmem:[%s3552_s7 + $0xb4] sm:$0xf]  ;;  %v3006_v52 = vor.u32 %v3289_v49, %v3005_v47  ;;  %v3069_v54 = vld [vmem:[%s3552_s7 + $0x4b0] sm:$0xf]  ;;  %v3305_v55 = vld [vmem:[%s3552_s7 + $0x4b4] sm:$0xf0] }
  0x9c   : > { %1628 = vmatmul.bf16.gmra.mxu2 %v3737_v15  ;;  %1813 = vmatpush.bf16.msra.mxu1 %v3102_v37  ;;  %v2333_v37 = vld [vmem:[%s3554_s8 + $0x18] sm:$0xf]  ;;  %v2562_v53 = vor.u32 %v3176_v50, %v2559_v51  ;;  %v3158_v56 = vld [vmem:[%s3552_s7 + $0x24] sm:$0xf]  ;;  %v3070_v61 = vor.u32 %v3305_v55, %v3069_v54  ;;  %v2487_v62 = vld [vmem:[%s3552_s7 + $0x28] sm:$0xf0] }
  0x9d   : > { %1657 = vmatmul.bf16.gmra.mxu3 %v3739_v16  ;;  %1842 = vmatpush.bf16.msra.mxu2 %v2530_v20  ;;  %v2567_v20 = vld [vmem:[%s3552_s7 + $0xc8] sm:$0xf0]  ;;  %v3809_v43 = vor.u32 %v3122_v38, %v2333_v37  ;;  %v2997_v63 = vld [vmem:[%s3552_s7 + $0x420] sm:$0xf]  ;;  %v2490_v1 = vor.u32 %v3158_v56, %v2487_v62  ;;  %v3174_v3 = vld [vmem:[%s3552_s7 + $0xa4] sm:$0xf] }
  0x9e   : > { %1871 = vmatpush.bf16.msra.mxu3 %v2594_v29  ;;  %v2570_v23 = vor.u32 %v3178_v19, %v2567_v20  ;;  %v2325_v29 = vld [vmem:[%s3554_s8 + $0x10] sm:$0xf]  ;;  %v3303_v7 = vld [vmem:[%s3552_s7 + $0x4a4] sm:$0xf0]  ;;  %v3126_v11 = vld [vmem:[%s3554_s8 + $0x64] sm:$0xf] }
  0x9f   : > { %1785 = vmatpush.bf16.msra.mxu0 %v3030_v42  ;;  %v3807_v42 = vor.u32 %v3116_v35, %v2327_v36  ;;  %v3131_v10 = vld [vmem:[%s3554_s8 + $0x84] sm:$0xf0]  ;;  %v2367_v12 = vld [vmem:[%s3554_s8 + $0x88] sm:$0xf0]  ;;  %v2375_v20 = vld [vmem:[%s3554_s8 + $0x90] sm:$0xf0] }
  0xa0   : > { %1814 = vmatpush.bf16.msra.mxu1 %v3094_v48  ;;  %v3127_v19 = vld [vmem:[%s3554_s8 + $0x6c] sm:$0xf]  ;;  %v2989_v35 = vld [vmem:[%s3552_s7 + $0x410] sm:$0xf]  ;;  %v3285_v37 = vld [vmem:[%s3552_s7 + $0x414] sm:$0xf0] }
  0xa1   : > { %1843 = vmatpush.bf16.msra.mxu2 %v2522_v41  ;;  %v3805_v41 = vor.u32 %v3121_v32, %v2325_v29  ;;  %v3156_v29 = vld [vmem:[%s3552_s7 + $0x14] sm:$0xf]  ;;  %v2479_v32 = vld [vmem:[%s3552_s7 + $0x18] sm:$0xf0]  ;;  %v2990_v40 = vor.u32 %v3285_v37, %v2989_v35  ;;  %v3301_v47 = vld [vmem:[%s3552_s7 + $0x494] sm:$0xf0] }
  0xa2   : > { %1872 = vmatpush.bf16.msra.mxu3 %v2586_v46  ;;  %v2495_v46 = vld [vmem:[%s3552_s7 + $0x38] sm:$0xf0]  ;;  %v2482_v36 = vor.u32 %v3156_v29, %v2479_v32  ;;  %v3172_v38 = vld [vmem:[%s3552_s7 + $0x94] sm:$0xf]  ;;  %v2471_v50 = vld [vmem:[%s3552_s7 + $0x8] sm:$0xf0] }
  0xa3   : > { %1786 = vmatpush.bf16.msra.mxu0 %v3022_v4  ;;  %v2498_v48 = vor.u32 %v3160_v45, %v2495_v46  ;;  %v2551_v4 = vld [vmem:[%s3552_s7 + $0xa8] sm:$0xf0]  ;;  %v2543_v39 = vld [vmem:[%s3552_s7 + $0x98] sm:$0xf0]  ;;  %v3053_v46 = vld [vmem:[%s3552_s7 + $0x490] sm:$0xf] }
  0xa4   : > { %1815 = vmatpush.bf16.msra.mxu1 %v3086_v9  ;;  %v2554_v6 = vor.u32 %v3174_v3, %v2551_v4  ;;  %v2365_v9 = vld [vmem:[%s3554_s8 + $0x60] sm:$0xf]  ;;  %v2546_v45 = vor.u32 %v3172_v38, %v2543_v39  ;;  %v3054_v49 = vor.u32 %v3301_v47, %v3053_v46  ;;  %v3170_v55 = vld [vmem:[%s3552_s7 + $0x84] sm:$0xf]  ;;  %v2535_v56 = vld [vmem:[%s3552_s7 + $0x88] sm:$0xf0] }
  0xa5   : > { %1844 = vmatpush.bf16.msra.mxu2 %v2514_v0  ;;  %v3287_v0 = vld [vmem:[%s3552_s7 + $0x424] sm:$0xf0]  ;;  %v3841_v22 = vor.u32 %v3131_v10, %v2365_v9  ;;  %v2981_v51 = vld [vmem:[%s3552_s7 + $0x400] sm:$0xf]  ;;  %v2538_v62 = vor.u32 %v3170_v55, %v2535_v56  ;;  %v3136_v3 = vld [vmem:[%s3554_s8 + $0xb4] sm:$0xf] }
  0xa6   : > { %1873 = vmatpush.bf16.msra.mxu3 %v2578_v5  ;;  %v2998_v2 = vor.u32 %v3287_v0, %v2997_v63  ;;  %v3061_v5 = vld [vmem:[%s3552_s7 + $0x4a0] sm:$0xf]  ;;  %v3299_v63 = vld [vmem:[%s3552_s7 + $0x484] sm:$0xf0]  ;;  %v2407_v4 = vld [vmem:[%s3554_s8 + $0xd8] sm:$0xf0] }
  0xa7   : > { %1787 = vmatpush.bf16.msra.mxu0 %v3014_v18  ;;  %v3062_v8 = vor.u32 %v3303_v7, %v3061_v5  ;;  %v3132_v18 = vld [vmem:[%s3554_s8 + $0x8c] sm:$0xf0]  ;;  %v2413_v5 = vld [vmem:[%s3554_s8 + $0xb8] sm:$0xf]  ;;  %v3137_v7 = vld [vmem:[%s3554_s8 + $0xbc] sm:$0xf]  ;;  %v3879_v10 = vor.u32 %v3136_v3, %v2407_v4 }
  0xa8   : > { %1816 = vmatpush.bf16.msra.mxu1 %v3078_v26  ;;  %v3847_v26 = vor.u32 %v3127_v19, %v2375_v20  ;;  %v3200_v19 = vld [vmem:[%s3552_s7 + $0x174] sm:$0xf]  ;;  %v2655_v29 = vld [vmem:[%s3552_s7 + $0x178] sm:$0xf0]  ;;  %v2445_v38 = vld [vmem:[%s3554_s8 + $0x100] sm:$0xf] }
  0xa9   : > { %1845 = vmatpush.bf16.msra.mxu2 %v2506_v17  ;;  %v2373_v17 = vld [vmem:[%s3554_s8 + $0x68] sm:$0xf]  ;;  %v3248_v32 = vld [vmem:[%s3552_s7 + $0x2f4] sm:$0xf]  ;;  %v2847_v35 = vld [vmem:[%s3552_s7 + $0x2f8] sm:$0xf0] }
  0xaa   : > { %1575 = vmatmul.bf16.gmra.mxu0 %v3769_v57  ;;  %1874 = vmatpush.bf16.msra.mxu3 %v2570_v23  ;;  %v3843_v23 = vor.u32 %v3126_v11, %v2367_v12  ;;  %v3845_v24 = vor.u32 %v3132_v18, %v2373_v17  ;;  %v3232_v17 = vld [vmem:[%s3552_s7 + $0x274] sm:$0xf]  ;;  %v2783_v18 = vld [vmem:[%s3552_s7 + $0x278] sm:$0xf0]  ;;  %v2850_v37 = vor.u32 %v3248_v32, %v2847_v35  ;;  %v3151_v39 = vld [vmem:[%s3554_s8 + $0x124] sm:$0xf0] }
  0xab   : > { %1604 = vmatmul.bf16.gmra.mxu1 %v3771_v58  ;;  %1788 = vmatpush.bf16.msra.mxu0 %v3006_v52  ;;  %v3283_v52 = vld [vmem:[%s3552_s7 + $0x404] sm:$0xf0]  ;;  %v2786_v20 = vor.u32 %v3232_v17, %v2783_v18  ;;  %v3230_v46 = vld [vmem:[%s3552_s7 + $0x264] sm:$0xf]  ;;  %v2839_v55 = vld [vmem:[%s3552_s7 + $0x2e8] sm:$0xf0] }
  0xac   : > { %1633 = vmatmul.bf16.gmra.mxu2 %v3773_v59  ;;  %1817 = vmatpush.bf16.msra.mxu1 %v3070_v61  ;;  %v2982_v54 = vor.u32 %v3283_v52, %v2981_v51  ;;  %v3045_v61 = vld [vmem:[%s3552_s7 + $0x480] sm:$0xf]  ;;  %v3146_v51 = vld [vmem:[%s3554_s8 + $0x104] sm:$0xf]  ;;  %v2447_v56 = vld [vmem:[%s3554_s8 + $0x128] sm:$0xf0] }
  0xad   : > { %1662 = vmatmul.bf16.gmra.mxu3 %v3775_v60  ;;  %1846 = vmatpush.bf16.msra.mxu2 %v2498_v48  ;;  %v3154_v48 = vld [vmem:[%s3552_s7 + $0x4] sm:$0xf]  ;;  %v3046_v0 = vor.u32 %v3299_v63, %v3045_v61  ;;  %v2453_v61 = vld [vmem:[%s3554_s8 + $0x108] sm:$0xf]  ;;  %v3913_v3 = vor.u32 %v3146_v51, %v2447_v56  ;;  %v3228_v17 = vld [vmem:[%s3552_s7 + $0x254] sm:$0xf] }
  0xae   : > { %1875 = vmatpush.bf16.msra.mxu3 %v2562_v53  ;;  %v2474_v53 = vor.u32 %v3154_v48, %v2471_v50  ;;  %v2775_v48 = vld [vmem:[%s3552_s7 + $0x268] sm:$0xf0]  ;;  %v2767_v18 = vld [vmem:[%s3552_s7 + $0x258] sm:$0xf0]  ;;  %v3244_v32 = vld [vmem:[%s3552_s7 + $0x2d4] sm:$0xf] }
  0xaf   : > { %1789 = vmatpush.bf16.msra.mxu0 %v2998_v2  ;;  %v3141_v2 = vld [vmem:[%s3554_s8 + $0xd4] sm:$0xf0]  ;;  %v2647_v50 = vld [vmem:[%s3552_s7 + $0x168] sm:$0xf0]  ;;  %v2778_v52 = vor.u32 %v3230_v46, %v2775_v48  ;;  %v2831_v35 = vld [vmem:[%s3552_s7 + $0x2d8] sm:$0xf0] }
  0xb0   : > { %1818 = vmatpush.bf16.msra.mxu1 %v3062_v8  ;;  %v2415_v8 = vld [vmem:[%s3554_s8 + $0xe0] sm:$0xf0]  ;;  %v2343_v56 = vld [vmem:[%s3554_s8 + $0x48] sm:$0xf0]  ;;  %p3107_p11 = scmp.ne.s32.totalorder %s3387_s14, 4 }
  0xb1   : > { %1847 = vmatpush.bf16.msra.mxu2 %v2490_v1  ;;  %v2405_v1 = vld [vmem:[%s3554_s8 + $0xb0] sm:$0xf]  ;;  %v3883_v12 = vor.u32 %v3137_v7, %v2415_v8  ;;  %v2711_v7 = vld [vmem:[%s3552_s7 + $0x1e8] sm:$0xf0]  ;;  %v3194_v48 = vld [vmem:[%s3552_s7 + $0x144] sm:$0xf] }
  0xb2   : > { %1876 = vmatpush.bf16.msra.mxu3 %v2554_v6  ;;  %v3142_v6 = vld [vmem:[%s3554_s8 + $0xdc] sm:$0xf0]  ;;  %v3877_v9 = vor.u32 %v3141_v2, %v2405_v1  ;;  %v2455_v1 = vld [vmem:[%s3554_s8 + $0x130] sm:$0xf0]  ;;  %v3911_v2 = vor.u32 %v3151_v39, %v2445_v38 }
  0xb3   : > { %1790 = vmatpush.bf16.msra.mxu0 %v2990_v40  ;;  %v3881_v11 = vor.u32 %v3142_v6, %v2413_v5  ;;  %v3216_v40 = vld [vmem:[%s3552_s7 + $0x1f4] sm:$0xf]  ;;  %v3214_v6 = vld [vmem:[%s3552_s7 + $0x1e4] sm:$0xf]  ;;  %v2341_v38 = vld [vmem:[%s3554_s8 + $0x20] sm:$0xf] }
  0xb4   : > { %1819 = vmatpush.bf16.msra.mxu1 %v3054_v49  ;;  %v3198_v49 = vld [vmem:[%s3552_s7 + $0x164] sm:$0xf]  ;;  %v2714_v8 = vor.u32 %v3214_v6, %v2711_v7  ;;  %v3212_v39 = vld [vmem:[%s3552_s7 + $0x1d4] sm:$0xf] }
  0xb5   : > { %1848 = vmatpush.bf16.msra.mxu2 %v2482_v36  ;;  %v2658_v36 = vor.u32 %v3200_v19, %v2655_v29  ;;  %v3196_v19 = vld [vmem:[%s3552_s7 + $0x154] sm:$0xf]  ;;  %v2639_v29 = vld [vmem:[%s3552_s7 + $0x158] sm:$0xf0]  ;;  %v3210_v7 = vld [vmem:[%s3552_s7 + $0x1c4] sm:$0xf] }
  0xb6   : > { %1877 = vmatpush.bf16.msra.mxu3 %v2546_v45  ;;  %v2719_v45 = vld [vmem:[%s3552_s7 + $0x1f8] sm:$0xf0] }
  0xb7   : > { %1791 = vmatpush.bf16.msra.mxu0 %v2982_v54  ;;  %v2722_v47 = vor.u32 %v3216_v40, %v2719_v45  ;;  %v3246_v54 = vld [vmem:[%s3552_s7 + $0x2e4] sm:$0xf]  ;;  %v2703_v40 = vld [vmem:[%s3552_s7 + $0x1d8] sm:$0xf0] }
  0xb8   : > { %1820 = vmatpush.bf16.msra.mxu1 %v3046_v0  ;;  %v2842_v63 = vor.u32 %v3246_v54, %v2839_v55  ;;  %v3147_v0 = vld [vmem:[%s3554_s8 + $0x10c] sm:$0xf]  ;;  %v3226_v45 = vld [vmem:[%s3552_s7 + $0x244] sm:$0xf]  ;;  %v2706_v46 = vor.u32 %v3212_v39, %v2703_v40 }
  0xb9   : > { %1849 = vmatpush.bf16.msra.mxu2 %v2474_v53  ;;  %v2650_v53 = vor.u32 %v3198_v49, %v2647_v50  ;;  %v3917_v5 = vor.u32 %v3147_v0, %v2455_v1  ;;  %v2631_v49 = vld [vmem:[%s3552_s7 + $0x148] sm:$0xf0]  ;;  %v3123_v50 = vld [vmem:[%s3554_s8 + $0x44] sm:$0xf0]  ;;  %v3118_v55 = vld [vmem:[%s3554_s8 + $0x24] sm:$0xf] }
  0xba   : > { %1676 = vmatmul.bf16.vlgmr.msrb.gmra.mxu0 %v3805_v41  ;;  %1878 = vmatpush.bf16.msra.mxu3 %v2538_v62  ;;  %v3152_v62 = vld [vmem:[%s3554_s8 + $0x12c] sm:$0xf0]  ;;  %v2823_v54 = vld [vmem:[%s3552_s7 + $0x2c8] sm:$0xf0]  ;;  %v3945_v0 = vor.u32 %v3118_v55, %v2343_v56  ;;  %v3133_v56 = vld [vmem:[%s3554_s8 + $0x94] sm:$0xf0] }
  0xbb   : > { %1705 = vmatmul.bf16.vlgmr.msrb.gmra.mxu1 %v3807_v42  ;;  %1900 = vmatpush.bf16.msrb.mxu0 %v2658_v36  ;;  %v3915_v4 = vor.u32 %v3152_v62, %v2453_v61  ;;  %v2642_v36 = vor.u32 %v3196_v19, %v2639_v29  ;;  %v3943_v62 = vor.u32 %v3123_v50, %v2341_v38  ;;  %v2751_v19 = vld [vmem:[%s3552_s7 + $0x238] sm:$0xf0]  ;;  %v2615_v55 = vld [vmem:[%s3552_s7 + $0x128] sm:$0xf0] }
  0xbc   : > { %1734 = vmatmul.bf16.vlgmr.msrb.gmra.mxu2 %v3809_v43  ;;  %1929 = vmatpush.bf16.msrb.mxu1 %v2722_v47  ;;  %v2759_v47 = vld [vmem:[%s3552_s7 + $0x248] sm:$0xf0]  ;;  %v2687_v50 = vld [vmem:[%s3552_s7 + $0x1b8] sm:$0xf0] }
  0xbd   : > { %1763 = vmatmul.bf16.vlgmr.msrb.gmra.mxu3 %v3811_v44  ;;  %1958 = vmatpush.bf16.msrb.mxu2 %v2786_v20  ;;  %v2770_v20 = vor.u32 %v3228_v17, %v2767_v18  ;;  %v2762_v51 = vor.u32 %v3226_v45, %v2759_v47  ;;  %v3224_v18 = vld [vmem:[%s3552_s7 + $0x234] sm:$0xf] }
  0xbe   : > { %1987 = vmatpush.bf16.msrb.mxu3 %v2850_v37  ;;  %v2834_v37 = vor.u32 %v3244_v32, %v2831_v35  ;;  %v2754_v29 = vor.u32 %v3224_v18, %v2751_v19  ;;  %v2623_v32 = vld [vmem:[%s3552_s7 + $0x138] sm:$0xf0]  ;;  %v3240_v35 = vld [vmem:[%s3552_s7 + $0x2b4] sm:$0xf] }
  0xbf   : > { %1901 = vmatpush.bf16.msrb.mxu0 %v2650_v53  ;;  %v3242_v53 = vld [vmem:[%s3552_s7 + $0x2c4] sm:$0xf] }
  0xc0   : > { %1930 = vmatpush.bf16.msrb.mxu1 %v2714_v8  ;;  %v2826_v61 = vor.u32 %v3242_v53, %v2823_v54  ;;  %v2695_v8 = vld [vmem:[%s3552_s7 + $0x1c8] sm:$0xf0]  ;;  %v3190_v54 = vld [vmem:[%s3552_s7 + $0x124] sm:$0xf] }
  0xc1   : > { %1959 = vmatpush.bf16.msrb.mxu2 %v2778_v52  ;;  %v2634_v52 = vor.u32 %v3194_v48, %v2631_v49  ;;  %v2698_v17 = vor.u32 %v3210_v7, %v2695_v8  ;;  %v2381_v48 = vld [vmem:[%s3554_s8 + $0x70] sm:$0xf]  ;;  %v3208_v49 = vld [vmem:[%s3552_s7 + $0x1b4] sm:$0xf]  ;;  %v2743_v53 = vld [vmem:[%s3552_s7 + $0x228] sm:$0xf0] }
  0xc2   : > { %1988 = vmatpush.bf16.msrb.mxu3 %v2842_v63  ;;  %v3128_v7 = vld [vmem:[%s3554_s8 + $0x74] sm:$0xf]  ;;  %v2383_v8 = vld [vmem:[%s3554_s8 + $0x98] sm:$0xf0]  ;;  %v3973_v19 = vor.u32 %v3133_v56, %v2381_v48 }
  0xc3   : > { %1902 = vmatpush.bf16.msrb.mxu0 %v2642_v36  ;;  %v2815_v36 = vld [vmem:[%s3552_s7 + $0x2b8] sm:$0xf0] }
  0xc4   : > { %1931 = vmatpush.bf16.msrb.mxu1 %v2706_v46  ;;  %v2818_v39 = vor.u32 %v3240_v35, %v2815_v36  ;;  %v3975_v35 = vor.u32 %v3128_v7, %v2383_v8  ;;  %v2671_v7 = vld [vmem:[%s3552_s7 + $0x198] sm:$0xf0]  ;;  %v3218_v8 = vld [vmem:[%s3552_s7 + $0x204] sm:$0xf] }
  0xc5   : > { %1960 = vmatpush.bf16.msrb.mxu2 %v2770_v20  ;;  %v3192_v20 = vld [vmem:[%s3552_s7 + $0x134] sm:$0xf] }
  0xc6   : > { %1989 = vmatpush.bf16.msrb.mxu3 %v2834_v37  ;;  %v2626_v38 = vor.u32 %v3192_v20, %v2623_v32 }
  0xc7   : > { %1903 = vmatpush.bf16.msrb.mxu0 %v2634_v52  ;;  %v2690_v52 = vor.u32 %v3208_v49, %v2687_v50  ;;  %v2607_v49 = vld [vmem:[%s3552_s7 + $0x118] sm:$0xf0]  ;;  %v3236_v50 = vld [vmem:[%s3552_s7 + $0x294] sm:$0xf] }
  0xc8   : > { %1932 = vmatpush.bf16.msrb.mxu1 %v2698_v17 }
  0xc9   : > { %1961 = vmatpush.bf16.msrb.mxu2 %v2762_v51  ;;  %v3222_v51 = vld [vmem:[%s3552_s7 + $0x224] sm:$0xf] }
  0xca   : > { %1681 = vmatmul.bf16.gmra.mxu0 %v3841_v22  ;;  %1990 = vmatpush.bf16.msrb.mxu3 %v2826_v61  ;;  %v2746_v61 = vor.u32 %v3222_v51, %v2743_v53  ;;  %v2799_v51 = vld [vmem:[%s3552_s7 + $0x298] sm:$0xf0] }
  0xcb   : > { %1710 = vmatmul.bf16.gmra.mxu1 %v3843_v23  ;;  %1904 = vmatpush.bf16.msrb.mxu0 %v2626_v38 }
  0xcc   : > { %1739 = vmatmul.bf16.gmra.mxu2 %v3845_v24  ;;  %1933 = vmatpush.bf16.msrb.mxu1 %v2690_v52 }
  0xcd   : > { %1768 = vmatmul.bf16.gmra.mxu3 %v3847_v26  ;;  %1962 = vmatpush.bf16.msrb.mxu2 %v2754_v29 }
  0xce   : > { %1991 = vmatpush.bf16.msrb.mxu3 %v2818_v39  ;;  %v3206_v39 = vld [vmem:[%s3552_s7 + $0x1a4] sm:$0xf] }
  0xd1   : > { %1963 = vmatpush.bf16.msrb.mxu2 %v2746_v61 }
  0xda   : > { %1686 = vmatmul.bf16.gmra.mxu0 %v3877_v9 }
  0xdb   : > { %1715 = vmatmul.bf16.gmra.mxu1 %v3879_v10 }
  0xdc   : > { %1744 = vmatmul.bf16.gmra.mxu2 %v3881_v11 }
  0xdd   : > { %1773 = vmatmul.bf16.gmra.mxu3 %v3883_v12 }
  0xea   : > { %1691 = vmatmul.bf16.gmra.mxu0 %v3911_v2 }
  0xeb   : > { %1720 = vmatmul.bf16.gmra.mxu1 %v3913_v3 }
  0xec   : > { %1749 = vmatmul.bf16.gmra.mxu2 %v3915_v4 }
  0xed   : > { %1778 = vmatmul.bf16.gmra.mxu3 %v3917_v5 }
  0xf7   : > { %v1561_v63 = vpop.f32.mrf.mxu0 }
  0xf8   : > { %v1590_v1 = vpop.f32.mrf.mxu1 }
  0xf9   : > { %v1591_v6 = vadd.f32 %v1590_v1, %v1561_v63  ;;  %v2618_v63 = vor.u32 %v3190_v54, %v2615_v55  ;;  %v3238_v1 = vld [vmem:[%s3552_s7 + $0x2a4] sm:$0xf]  ;;  %v2802_v54 = vor.u32 %v3236_v50, %v2799_v51  ;;  %v2663_v50 = vld [vmem:[%s3552_s7 + $0x188] sm:$0xf0] }
  0xfa   : > { %1792 = vmatmul.bf16.vlgmr.msra.gmra.mxu0 %v3943_v62 }
  0xfb   : > { %1821 = vmatmul.bf16.vlgmr.msra.gmra.mxu1 %v3945_v0  ;;  %1905 = vmatpush.bf16.msrb.mxu0 %v2618_v63 }
  0xfc   : > { %1850 = vmatmul.bf16.vlgmr.msra.gmra.mxu2 %v3636_v25 }
  0xfd   : > { %1879 = vmatmul.bf16.vlgmr.msra.gmra.mxu3 %v3641_v30 }
  0xff   : > { %v1619_v37 = vpop.f32.mrf.mxu2  ;;  %v1563_v40 = vpop.f32.mrf.mxu0 }
 0x100   : > { %v1620_v25 = vadd.f32 %v1619_v37, %v1591_v6  ;;  %v1648_v30 = vpop.f32.mrf.mxu3  ;;  %v1592_v45 = vpop.f32.mrf.mxu1  ;;  %v2807_v6 = vld [vmem:[%s3552_s7 + $0x2a8] sm:$0xf0] }
 0x101   : > { %v1593_v47 = vadd.f32 %v1592_v45, %v1563_v40  ;;  %v2810_v17 = vor.u32 %v3238_v1, %v2807_v6  ;;  %v3220_v40 = vld [vmem:[%s3552_s7 + $0x214] sm:$0xf]  ;;  %v2735_v45 = vld [vmem:[%s3552_s7 + $0x218] sm:$0xf0]  ;;  %v2421_v1 = vld [vmem:[%s3554_s8 + $0xc0] sm:$0xf] }
 0x102   : > { %v3959_v46 = vadd.f32 %v1648_v30, %v1620_v25  ;;  %v2679_v25 = vld [vmem:[%s3552_s7 + $0x1a8] sm:$0xf0]  ;;  %v2738_v48 = vor.u32 %v3220_v40, %v2735_v45  ;;  %v3204_v6 = vld [vmem:[%s3552_s7 + $0x194] sm:$0xf] }
 0x103   : > { %1992 = vmatpush.bf16.msrb.mxu3 %v2810_v17  ;;  %v2682_v30 = vor.u32 %v3206_v39, %v2679_v25  ;;  %v2674_v17 = vor.u32 %v3204_v6, %v2671_v7  ;;  %v3234_v39 = vld [vmem:[%s3552_s7 + $0x284] sm:$0xf]  ;;  %v2791_v25 = vld [vmem:[%s3552_s7 + $0x288] sm:$0xf0]  ;;  %v3264_v6 = vld [vmem:[%s3552_s7 + $0x374] sm:$0xf] }
 0x104   : > { %1964 = vmatpush.bf16.msrb.mxu2 %v2738_v48  ;;  %v2423_v40 = vld [vmem:[%s3554_s8 + $0xe8] sm:$0xf0]  ;;  %v2794_v45 = vor.u32 %v3234_v39, %v2791_v25 }
 0x105   : > { %1934 = vmatpush.bf16.msrb.mxu1 %v2682_v30  ;;  %v3138_v30 = vld [vmem:[%s3554_s8 + $0xc4] sm:$0xf] }
 0x107   : > { %v1621_v18 = vpop.f32.mrf.mxu2  ;;  %v1566_v32 = vpop.f32.mrf.mxu0  ;;  %1993 = vmatpush.bf16.msrb.mxu3 %v2802_v54  ;;  %v4009_v54 = vor.u32 %v3138_v30, %v2423_v40  ;;  %v2461_v30 = vld [vmem:[%s3554_s8 + $0x110] sm:$0xf]  ;;  %v3153_v40 = vld [vmem:[%s3554_s8 + $0x134] sm:$0xf0] }
 0x108   : > { %v1622_v20 = vadd.f32 %v1621_v18, %v1593_v47  ;;  %v1650_v29 = vpop.f32.mrf.mxu3  ;;  %v1595_v36 = vpop.f32.mrf.mxu1  ;;  %v3188_v47 = vld [vmem:[%s3552_s7 + $0x114] sm:$0xf]  ;;  %v2727_v18 = vld [vmem:[%s3552_s7 + $0x208] sm:$0xf0] }
 0x109   : > { %v1596_v38 = vadd.f32 %v1595_v36, %v1566_v32  ;;  %v2610_v53 = vor.u32 %v3188_v47, %v2607_v49  ;;  %v3143_v32 = vld [vmem:[%s3554_s8 + $0xe4] sm:$0xf0]  ;;  %v2730_v36 = vor.u32 %v3218_v8, %v2727_v18  ;;  %1935 = vmatpush.bf16.msrb.mxu1 %v2674_v17  ;;  %v3202_v49 = vld [vmem:[%s3552_s7 + $0x184] sm:$0xf]  ;;  %v2911_v8 = vld [vmem:[%s3552_s7 + $0x378] sm:$0xf0] }
 0x10a   : > { %v3977_v37 = vadd.f32 %v1650_v29, %v1622_v20  ;;  %1797 = vmatmul.bf16.gmra.mxu0 %v3973_v19  ;;  %v3186_v20 = vld [vmem:[%s3552_s7 + $0x104] sm:$0xf]  ;;  %v2599_v29 = vld [vmem:[%s3552_s7 + $0x108] sm:$0xf0]  ;;  %v4005_v48 = vor.u32 %v3143_v32, %v2421_v1  ;;  %v3039_v1 = vld [vmem:[%s3552_s7 + $0x478] sm:$0xf0] }
 0x10b   : > { %1826 = vmatmul.bf16.gmra.mxu1 %v3975_v35  ;;  %1906 = vmatpush.bf16.msrb.mxu0 %v2610_v53  ;;  %v3312_v17 = vld [vmem:[%s3552_s7 + $0x4f4] sm:$0xf]  ;;  %v3103_v18 = vld [vmem:[%s3552_s7 + $0x4f8] sm:$0xf0] }
 0x10c   : > { %1855 = vmatmul.bf16.gmra.mxu2 %v3688_v21  ;;  %1994 = vmatpush.bf16.msrb.mxu3 %v2794_v45  ;;  %v3106_v32 = vor.u32 %v3312_v17, %v3103_v18  ;;  %v3280_v45 = vld [vmem:[%s3552_s7 + $0x3f4] sm:$0xf]  ;;  %v4037_v17 = vor.u32 %v3153_v40, %v2461_v30  ;;  %v2967_v30 = vld [vmem:[%s3552_s7 + $0x3e8] sm:$0xf0] }
 0x10d   : > { %1884 = vmatmul.bf16.gmra.mxu3 %v3693_v27  ;;  %1965 = vmatpush.bf16.msrb.mxu2 %v2730_v36 }
 0x10f   : > { %v1624_v52 = vpop.f32.mrf.mxu2  ;;  %v1568_v55 = vpop.f32.mrf.mxu0 }
 0x110   : > { %v1625_v21 = vadd.f32 %v1624_v52, %v1596_v38  ;;  %v1653_v27 = vpop.f32.mrf.mxu3  ;;  %v1597_v56 = vpop.f32.mrf.mxu1  ;;  %v2602_v38 = vor.u32 %v3186_v20, %v2599_v29  ;;  %v2914_v29 = vor.u32 %v3264_v6, %v2911_v8  ;;  %2103 = vmatpush.bf16.msra.mxu3 %v3106_v32 }
 0x111   : > { %v1598_v63 = vadd.f32 %v1597_v56, %v1568_v55 }
 0x112   : > { %v3991_v61 = vadd.f32 %v1653_v27, %v1625_v21  ;;  %1907 = vmatpush.bf16.msrb.mxu0 %v2602_v38  ;;  %v2666_v21 = vor.u32 %v3202_v49, %v2663_v50  ;;  %v3294_v50 = vld [vmem:[%s3552_s7 + $0x464] sm:$0xf] }
 0x114   : > { %1936 = vmatpush.bf16.msrb.mxu1 %v2666_v21  ;;  %v2903_v21 = vld [vmem:[%s3552_s7 + $0x368] sm:$0xf0] }
 0x116   : > { %2016 = vmatpush.bf16.msra.mxu0 %v2914_v29 }
 0x117   : > { %v1626_v47 = vpop.f32.mrf.mxu2  ;;  %v1571_v53 = vpop.f32.mrf.mxu0 }
 0x118   : > { %v1627_v51 = vadd.f32 %v1626_v47, %v1598_v63  ;;  %v1655_v52 = vpop.f32.mrf.mxu3  ;;  %v1600_v27 = vpop.f32.mrf.mxu1  ;;  %v3296_v63 = vld [vmem:[%s3552_s7 + $0x474] sm:$0xf]  ;;  %v2975_v47 = vld [vmem:[%s3552_s7 + $0x3f8] sm:$0xf0] }
 0x119   : > { %v1601_v56 = vadd.f32 %v1600_v27, %v1571_v53  ;;  %v3042_v7 = vor.u32 %v3296_v63, %v3039_v1  ;;  %v2978_v49 = vor.u32 %v3280_v45, %v2975_v47  ;;  %v3310_v27 = vld [vmem:[%s3552_s7 + $0x4e4] sm:$0xf]  ;;  %v3148_v63 = vld [vmem:[%s3554_s8 + $0x114] sm:$0xf]  ;;  %v2463_v1 = vld [vmem:[%s3554_s8 + $0x138] sm:$0xf0] }
 0x11a   : > { %v4011_v55 = vadd.f32 %v1655_v52, %v1627_v51  ;;  %1802 = vmatmul.bf16.gmra.mxu0 %v4005_v48  ;;  %v3031_v51 = vld [vmem:[%s3552_s7 + $0x468] sm:$0xf0]  ;;  %v3262_v52 = vld [vmem:[%s3552_s7 + $0x364] sm:$0xf]  ;;  %v4039_v32 = vor.u32 %v3148_v63, %v2463_v1  ;;  %v3023_v45 = vld [vmem:[%s3552_s7 + $0x458] sm:$0xf0] }
 0x11b   : > { %1831 = vmatmul.bf16.gmra.mxu1 %v4009_v54  ;;  %2074 = vmatpush.bf16.msra.mxu2 %v3042_v7  ;;  %v3034_v53 = vor.u32 %v3294_v50, %v3031_v51  ;;  %v2906_v6 = vor.u32 %v3262_v52, %v2903_v21  ;;  %v3260_v47 = vld [vmem:[%s3552_s7 + $0x354] sm:$0xf]  ;;  %v2895_v50 = vld [vmem:[%s3552_s7 + $0x358] sm:$0xf0] }
 0x11c   : > { %1860 = vmatmul.bf16.gmra.mxu2 %v3733_v13  ;;  %2045 = vmatpush.bf16.msra.mxu1 %v2978_v49  ;;  %v3308_v51 = vld [vmem:[%s3552_s7 + $0x4d4] sm:$0xf]  ;;  %v3087_v52 = vld [vmem:[%s3552_s7 + $0x4d8] sm:$0xf0]  ;;  %v2898_v21 = vor.u32 %v3260_v47, %v2895_v50 }
 0x11d   : > { %1889 = vmatmul.bf16.gmra.mxu3 %v3735_v14  ;;  %2017 = vmatpush.bf16.msra.mxu0 %v2906_v6 }
 0x11f   : > { %v1629_v20 = vpop.f32.mrf.mxu2  ;;  %v1573_v14 = vpop.f32.mrf.mxu0  ;;  %2075 = vmatpush.bf16.msra.mxu2 %v3034_v53 }
 0x120   : > { %v1630_v36 = vadd.f32 %v1629_v20, %v1601_v56  ;;  %v1658_v13 = vpop.f32.mrf.mxu3  ;;  %v1602_v38 = vpop.f32.mrf.mxu1  ;;  %v3095_v56 = vld [vmem:[%s3552_s7 + $0x4e8] sm:$0xf0] }
 0x121   : > { %v1603_v25 = vadd.f32 %v1602_v38, %v1573_v14  ;;  %v3098_v7 = vor.u32 %v3310_v27, %v3095_v56  ;;  %v3278_v38 = vld [vmem:[%s3552_s7 + $0x3e4] sm:$0xf]  ;;  %v3090_v27 = vor.u32 %v3308_v51, %v3087_v52  ;;  %2018 = vmatpush.bf16.msra.mxu0 %v2898_v21 }
 0x122   : > { %v4023_v39 = vadd.f32 %v1658_v13, %v1630_v36  ;;  %v2970_v40 = vor.u32 %v3278_v38, %v2967_v30  ;;  %v3306_v30 = vld [vmem:[%s3552_s7 + $0x4c4] sm:$0xf] }
 0x123   : > { %2104 = vmatpush.bf16.msra.mxu3 %v3098_v7  ;;  %v3276_v7 = vld [vmem:[%s3552_s7 + $0x3d4] sm:$0xf]  ;;  %v3274_v21 = vld [vmem:[%s3552_s7 + $0x3c4] sm:$0xf] }
 0x124   : > { %2046 = vmatpush.bf16.msra.mxu1 %v2970_v40  ;;  %v3079_v40 = vld [vmem:[%s3552_s7 + $0x4c8] sm:$0xf0] }
 0x127   : > { %v1631_v8 = vpop.f32.mrf.mxu2  ;;  %v1576_v29 = vpop.f32.mrf.mxu0  ;;  %2105 = vmatpush.bf16.msra.mxu3 %v3090_v27  ;;  %v2951_v27 = vld [vmem:[%s3552_s7 + $0x3c8] sm:$0xf0] }
 0x128   : > { %v1632_v18 = vadd.f32 %v1631_v8, %v1603_v25  ;;  %v1660_v20 = vpop.f32.mrf.mxu3  ;;  %v1605_v36 = vpop.f32.mrf.mxu1  ;;  %v3292_v25 = vld [vmem:[%s3552_s7 + $0x454] sm:$0xf]  ;;  %v2959_v8 = vld [vmem:[%s3552_s7 + $0x3d8] sm:$0xf0] }
 0x129   : > { %v1606_v14 = vadd.f32 %v1605_v36, %v1576_v29  ;;  %v3026_v49 = vor.u32 %v3292_v25, %v3023_v45  ;;  %v3015_v29 = vld [vmem:[%s3552_s7 + $0x448] sm:$0xf0]  ;;  %v3258_v36 = vld [vmem:[%s3552_s7 + $0x344] sm:$0xf]  ;;  %v3082_v45 = vor.u32 %v3306_v30, %v3079_v40 }
 0x12a   : > { %v4041_v13 = vadd.f32 %v1660_v20, %v1632_v18  ;;  %1807 = vmatmul.bf16.gmra.mxu0 %v4037_v17  ;;  %v2962_v18 = vor.u32 %v3276_v7, %v2959_v8  ;;  %v3290_v20 = vld [vmem:[%s3552_s7 + $0x444] sm:$0xf]  ;;  %v2879_v7 = vld [vmem:[%s3552_s7 + $0x338] sm:$0xf0]  ;;  %v3304_v8 = vld [vmem:[%s3552_s7 + $0x4b4] sm:$0xf] }
 0x12b   : > { %1836 = vmatmul.bf16.gmra.mxu1 %v4039_v32  ;;  %2076 = vmatpush.bf16.msra.mxu2 %v3026_v49  ;;  %v3018_v38 = vor.u32 %v3290_v20, %v3015_v29  ;;  %v3286_v30 = vld [vmem:[%s3552_s7 + $0x424] sm:$0xf]  ;;  %v2999_v40 = vld [vmem:[%s3552_s7 + $0x428] sm:$0xf0] }
 0x12c   : > { %1865 = vmatmul.bf16.gmra.mxu2 %v3769_v57  ;;  %2047 = vmatpush.bf16.msra.mxu1 %v2962_v18 }
 0x12d   : > { %1894 = vmatmul.bf16.gmra.mxu3 %v3771_v58 }
 0x12e   : > { %2106 = vmatpush.bf16.msra.mxu3 %v3082_v45  ;;  %v3002_v45 = vor.u32 %v3286_v30, %v2999_v40 }
 0x12f   : > { %v1634_v53 = vpop.f32.mrf.mxu2  ;;  %v1578_v58 = vpop.f32.mrf.mxu0  ;;  %2077 = vmatpush.bf16.msra.mxu2 %v3018_v38  ;;  %v2943_v38 = vld [vmem:[%s3552_s7 + $0x3b8] sm:$0xf0] }
 0x130   : > { %v1635_v56 = vadd.f32 %v1634_v53, %v1606_v14  ;;  %v1663_v57 = vpop.f32.mrf.mxu3  ;;  %v1607_v63 = vpop.f32.mrf.mxu1  ;;  %v2887_v14 = vld [vmem:[%s3552_s7 + $0x348] sm:$0xf0] }
 0x131   : > { %v1608_v6 = vadd.f32 %v1607_v63, %v1578_v58  ;;  %v2890_v25 = vor.u32 %v3258_v36, %v2887_v14  ;;  %v3007_v58 = vld [vmem:[%s3552_s7 + $0x438] sm:$0xf0]  ;;  %v3256_v63 = vld [vmem:[%s3552_s7 + $0x334] sm:$0xf] }
 0x132   : > { %v4055_v1 = vadd.f32 %v1663_v57, %v1635_v56  ;;  %v2954_v56 = vor.u32 %v3274_v21, %v2951_v27  ;;  %v3288_v57 = vld [vmem:[%s3552_s7 + $0x434] sm:$0xf] }
 0x133   : > { %2019 = vmatpush.bf16.msra.mxu0 %v2890_v25  ;;  %v3272_v36 = vld [vmem:[%s3552_s7 + $0x3b4] sm:$0xf]  ;;  %v3254_v25 = vld [vmem:[%s3552_s7 + $0x324] sm:$0xf] }
 0x134   : > { %2048 = vmatpush.bf16.msra.mxu1 %v2954_v56  ;;  %v2946_v14 = vor.u32 %v3272_v36, %v2943_v38  ;;  %v2863_v38 = vld [vmem:[%s3552_s7 + $0x318] sm:$0xf0] }
 0x137   : > { %v1636_v47 = vpop.f32.mrf.mxu2  ;;  %v4065_v51 = vpop.f32.mrf.mxu0 }
 0x138   : > { %v1637_v49 = vadd.f32 %v1636_v47, %v1608_v6  ;;  %v1665_v50 = vpop.f32.mrf.mxu3  ;;  %v4067_v52 = vpop.f32.mrf.mxu1  ;;  %v3010_v6 = vor.u32 %v3288_v57, %v3007_v58  ;;  %v2871_v47 = vld [vmem:[%s3552_s7 + $0x328] sm:$0xf0]  ;;  %2049 = vmatpush.bf16.msra.mxu1 %v2946_v14  ;;  %v3300_v14 = vld [vmem:[%s3552_s7 + $0x494] sm:$0xf] }
 0x139   : > { %v2874_v21 = vor.u32 %v3254_v25, %v2871_v47  ;;  %v2927_v47 = vld [vmem:[%s3552_s7 + $0x398] sm:$0xf0] }
 0x13a   : > { %v4069_v53 = vadd.f32 %v1665_v50, %v1637_v49  ;;  %1908 = vmatmul.bf16.vlgmr.msrb.gmra.mxu0 %v3643_v31  ;;  %v3071_v31 = vld [vmem:[%s3552_s7 + $0x4b8] sm:$0xf0]  ;;  %2078 = vmatpush.bf16.msra.mxu2 %v3010_v6  ;;  %v3302_v49 = vld [vmem:[%s3552_s7 + $0x4a4] sm:$0xf]  ;;  %v3063_v50 = vld [vmem:[%s3552_s7 + $0x4a8] sm:$0xf0] }
 0x13b   : > { %1937 = vmatmul.bf16.vlgmr.msrb.gmra.mxu1 %v3647_v34  ;;  %v2882_v34 = vor.u32 %v3256_v63, %v2879_v7  ;;  %v3066_v27 = vor.u32 %v3302_v49, %v3063_v50  ;;  %v3270_v6 = vld [vmem:[%s3552_s7 + $0x3a4] sm:$0xf]  ;;  %v2935_v7 = vld [vmem:[%s3552_s7 + $0x3a8] sm:$0xf0] }
 0x13c   : > { %1966 = vmatmul.bf16.vlgmr.msrb.gmra.mxu2 %v3805_v41  ;;  %v3074_v41 = vor.u32 %v3304_v8, %v3071_v31  ;;  %v2938_v8 = vor.u32 %v3270_v6, %v2935_v7  ;;  %v3284_v31 = vld [vmem:[%s3552_s7 + $0x414] sm:$0xf]  ;;  %v3282_v50 = vld [vmem:[%s3552_s7 + $0x404] sm:$0xf]  ;;  %v2855_v7 = vld [vmem:[%s3552_s7 + $0x308] sm:$0xf0] }
 0x13d   : > { %1995 = vmatmul.bf16.vlgmr.msrb.gmra.mxu3 %v3807_v42  ;;  %2020 = vmatpush.bf16.msra.mxu0 %v2882_v34  ;;  %v2991_v34 = vld [vmem:[%s3552_s7 + $0x418] sm:$0xf0] }
 0x13e   : > { %2107 = vmatpush.bf16.msra.mxu3 %v3074_v41  ;;  %2079 = vmatpush.bf16.msra.mxu2 %v3002_v45  ;;  %v3252_v41 = vld [vmem:[%s3552_s7 + $0x314] sm:$0xf]  ;;  %v2994_v36 = vor.u32 %v3284_v31, %v2991_v34  ;;  %v3047_v31 = vld [vmem:[%s3552_s7 + $0x488] sm:$0xf0] }
 0x13f   : > { %v4083_v18 = vpop.f32.mrf.mxu2  ;;  %v4087_v20 = vpop.f32.mrf.mxu0  ;;  %2050 = vmatpush.bf16.msra.mxu1 %v2938_v8  ;;  %v3268_v45 = vld [vmem:[%s3552_s7 + $0x394] sm:$0xf]  ;;  %v3298_v8 = vld [vmem:[%s3552_s7 + $0x484] sm:$0xf] }
 0x140   : > { %v4085_v42 = vpop.f32.mrf.mxu3  ;;  %v4089_v29 = vpop.f32.mrf.mxu1  ;;  %v2930_v49 = vor.u32 %v3268_v45, %v2927_v47 }
 0x141   : > { %2021 = vmatpush.bf16.msra.mxu0 %v2874_v21  ;;  %v2983_v21 = vld [vmem:[%s3552_s7 + $0x408] sm:$0xf0] }
 0x142   : > { %2108 = vmatpush.bf16.msra.mxu3 %v3066_v27  ;;  %2080 = vmatpush.bf16.msra.mxu2 %v2994_v36  ;;  %v3250_v27 = vld [vmem:[%s3552_s7 + $0x304] sm:$0xf]  ;;  %v2986_v6 = vor.u32 %v3282_v50, %v2983_v21 }
 0x143   : > { %2051 = vmatpush.bf16.msra.mxu1 %v2930_v49  ;;  %v2858_v34 = vor.u32 %v3250_v27, %v2855_v7 }
 0x146   : > { %2081 = vmatpush.bf16.msra.mxu2 %v2986_v6 }
 0x147   : > { %v4099_v56 = vpop.f32.mrf.mxu2  ;;  %v4103_v58 = vpop.f32.mrf.mxu0 }
 0x148   : > { %v4101_v57 = vpop.f32.mrf.mxu3  ;;  %v4105_v63 = vpop.f32.mrf.mxu1 }
 0x14a   : > { %1913 = vmatmul.bf16.gmra.mxu0 %v3695_v28  ;;  %v3055_v28 = vld [vmem:[%s3552_s7 + $0x498] sm:$0xf0] }
 0x14b   : > { %1942 = vmatmul.bf16.gmra.mxu1 %v3699_v33  ;;  %v2866_v33 = vor.u32 %v3252_v41, %v2863_v38  ;;  %v3050_v41 = vor.u32 %v3298_v8, %v3047_v31  ;;  %v3266_v38 = vld [vmem:[%s3552_s7 + $0x384] sm:$0xf] }
 0x14c   : > { %1971 = vmatmul.bf16.gmra.mxu2 %v3841_v22  ;;  %v3058_v22 = vor.u32 %v3300_v14, %v3055_v28  ;;  %v2919_v14 = vld [vmem:[%s3552_s7 + $0x388] sm:$0xf0] }
 0x14d   : > { %2000 = vmatmul.bf16.gmra.mxu3 %v3843_v23  ;;  %2022 = vmatpush.bf16.msra.mxu0 %v2866_v33 }
 0x14e   : > { %2109 = vmatpush.bf16.msra.mxu3 %v3058_v22  ;;  %v2922_v22 = vor.u32 %v3266_v38, %v2919_v14 }
 0x14f   : > { %v4119_v30 = vpop.f32.mrf.mxu2  ;;  %v4123_v40 = vpop.f32.mrf.mxu0 }
 0x150   : > { %v4121_v23 = vpop.f32.mrf.mxu3  ;;  %v4125_v25 = vpop.f32.mrf.mxu1  ;;  %2052 = vmatpush.bf16.msra.mxu1 %v2922_v22  ;;  %v376_v22 = vld [vmem:[#allocation2 + $0x30] sm:$0xff] }
 0x151   : > { %2023 = vmatpush.bf16.msra.mxu0 %v2858_v34 }
 0x152   : > { %2110 = vmatpush.bf16.msra.mxu3 %v3050_v41 }
 0x157   : > { %v4135_v36 = vpop.f32.mrf.mxu2  ;;  %v4141_v33 = vpop.f32.mrf.mxu0 }
 0x158   : > { %v4139_v28 = vpop.f32.mrf.mxu3  ;;  %v4143_v45 = vpop.f32.mrf.mxu1 }
 0x15a   : > { %1918 = vmatmul.bf16.gmra.mxu0 %v3737_v15 }
 0x15b   : > { %1947 = vmatmul.bf16.gmra.mxu1 %v3739_v16  ;;  %v1678_v16 = vadd.f32 %v4065_v51, %v3959_v46 }
 0x15c   : > { %1976 = vmatmul.bf16.gmra.mxu2 %v3877_v9 }
 0x15d   : > { %2005 = vmatmul.bf16.gmra.mxu3 %v3879_v10  ;;  %v1707_v31 = vadd.f32 %v4067_v52, %v1678_v16 }
 0x15f   : > { %v4149_v47 = vpop.f32.mrf.mxu2  ;;  %v4153_v50 = vpop.f32.mrf.mxu0 }
 0x160   : > { %v4151_v49 = vpop.f32.mrf.mxu3  ;;  %v4155_v21 = vpop.f32.mrf.mxu1 }
 0x167   : > { %v4157_v27 = vpop.f32.mrf.mxu2  ;;  %v4161_v7 = vpop.f32.mrf.mxu0 }
 0x168   : > { %v4159_v6 = vpop.f32.mrf.mxu3  ;;  %v4163_v15 = vpop.f32.mrf.mxu1 }
 0x16a   : > { %1923 = vmatmul.bf16.gmra.mxu0 %v3773_v59  ;;  %v1736_v59 = vadd.f32 %v4083_v18, %v1707_v31 }
 0x16b   : > { %1952 = vmatmul.bf16.gmra.mxu1 %v3775_v60  ;;  %v1680_v60 = vadd.f32 %v4087_v20, %v3977_v37  ;;  %v1683_v37 = vadd.f32 %v4103_v58, %v3991_v61  ;;  %v1685_v61 = vadd.f32 %v4123_v40, %v4011_v55  ;;  %v1688_v55 = vadd.f32 %v4141_v33, %v4023_v39 }
 0x16c   : > { %1981 = vmatmul.bf16.gmra.mxu2 %v3911_v2  ;;  %v1765_v2 = vadd.f32 %v4085_v42, %v1736_v59  ;;  %v1690_v39 = vadd.f32 %v4153_v50, %v4041_v13  ;;  %v1693_v13 = vadd.f32 %v4161_v7, %v4055_v1 }
 0x16d   : > { %2010 = vmatmul.bf16.gmra.mxu3 %v3913_v3  ;;  %v1709_v41 = vadd.f32 %v4089_v29, %v1680_v60  ;;  %v378_v60 = vld [vmem:[#allocation2 + $0x58] sm:$0xff] }
 0x16f   : > { %v4171_v9 = vpop.f32.mrf.mxu2  ;;  %v4175_v8 = vpop.f32.mrf.mxu0  ;;  %v1738_v52 = vadd.f32 %v4099_v56, %v1709_v41  ;;  %v1712_v56 = vadd.f32 %v4105_v63, %v1683_v37  ;;  %v1714_v63 = vadd.f32 %v4125_v25, %v1685_v61 }
 0x170   : > { %v4173_v10 = vpop.f32.mrf.mxu3  ;;  %v4178_v34 = vpop.f32.mrf.mxu1  ;;  %v1695_v1 = vadd.f32 %v4175_v8, %v4069_v53 }
 0x171   : > { %v1767_v42 = vadd.f32 %v4101_v57, %v1738_v52  ;;  %v380_v52 = vld [vmem:[#allocation2 + $0x50] sm:$0xff] }
 0x177   : > { %v4184_v46 = vpop.f32.mrf.mxu2  ;;  %v1793_v51 = vpop.f32.mrf.mxu0 }
 0x178   : > { %v4186_v3 = vpop.f32.mrf.mxu3  ;;  %v1794_v38 = vadd.f32 %v1793_v51, %v1765_v2  ;;  %v1822_v14 = vpop.f32.mrf.mxu1 }
 0x17a   : > { %v1823_v16 = vadd.f32 %v1822_v14, %v1794_v38  ;;  %2024 = vmatmul.bf16.vlgmr.msra.gmra.mxu0 %v3809_v43 }
 0x17b   : > { %2053 = vmatmul.bf16.vlgmr.msra.gmra.mxu1 %v3811_v44 }
 0x17c   : > { %2082 = vmatmul.bf16.vlgmr.msra.gmra.mxu2 %v3943_v62  ;;  %v2132_v18 = vadd.f32 %v1823_v16, %v376_v22  ;;  %v1741_v62 = vadd.f32 %v4119_v30, %v1712_v56  ;;  %v1743_v30 = vadd.f32 %v4135_v36, %v1714_v63  ;;  %v1717_v36 = vadd.f32 %v4143_v45, %v1688_v55 }
 0x17d   : > { %2111 = vmatmul.bf16.vlgmr.msra.gmra.mxu3 %v3945_v0  ;;  %v1719_v45 = vadd.f32 %v4155_v21, %v1690_v39 }
 0x17e   : > { %2148 = vst [vmem:[#allocation2 + $0x30] sm:$0xff] %v2132_v18  ;;  %v1770_v57 = vadd.f32 %v4121_v23, %v1741_v62  ;;  %v1772_v40 = vadd.f32 %v4139_v28, %v1743_v30  ;;  %v384_v62 = vld [vmem:[#allocation2 + $0x40] sm:$0xff] }
 0x17f   : > { %v1851_v20 = vpop.f32.mrf.mxu2  ;;  %v1795_v31 = vpop.f32.mrf.mxu0  ;;  %v388_v30 = vld [vmem:[#allocation2 + $0x60] sm:$0xff] }
 0x180   : > { %v1880_v29 = vpop.f32.mrf.mxu3  ;;  %v1796_v43 = vadd.f32 %v1795_v31, %v1767_v42  ;;  %v1824_v44 = vpop.f32.mrf.mxu1 }
 0x181   : > { %v4198_v59 = vadd.f32 %v1880_v29, %v1851_v20  ;;  %v382_v20 = vld [vmem:[#allocation2 + $0x8] sm:$0xff] }
 0x182   : > { %v1825_v2 = vadd.f32 %v1824_v44, %v1796_v43 }
 0x184   : > { %v2134_v0 = vadd.f32 %v1825_v2, %v378_v60 }
 0x186   : > { %2150 = vst [vmem:[#allocation2 + $0x58] sm:$0xff] %v2134_v0 }
 0x187   : > { %v1853_v58 = vpop.f32.mrf.mxu2  ;;  %v1798_v41 = vpop.f32.mrf.mxu0 }
 0x188   : > { %v1882_v51 = vpop.f32.mrf.mxu3  ;;  %v1799_v14 = vadd.f32 %v1798_v41, %v1770_v57  ;;  %v1827_v22 = vpop.f32.mrf.mxu1 }
 0x189   : > { %v4205_v38 = vadd.f32 %v1882_v51, %v1853_v58  ;;  %v386_v58 = vld [vmem:[#allocation2 + $0x10] sm:$0xff] }
 0x18a   : > { %v1828_v16 = vadd.f32 %v1827_v22, %v1799_v14  ;;  %2029 = vmatmul.bf16.gmra.mxu0 %v3845_v24 }
 0x18b   : > { %2058 = vmatmul.bf16.gmra.mxu1 %v3847_v26 }
 0x18c   : > { %2087 = vmatmul.bf16.gmra.mxu2 %v3973_v19  ;;  %v2136_v23 = vadd.f32 %v1828_v16, %v380_v52  ;;  %v1746_v19 = vadd.f32 %v4149_v47, %v1717_v36  ;;  %v1748_v47 = vadd.f32 %v4157_v27, %v1719_v45  ;;  %v1722_v27 = vadd.f32 %v4163_v15, %v1693_v13 }
 0x18d   : > { %2116 = vmatmul.bf16.gmra.mxu3 %v3975_v35  ;;  %v1724_v15 = vadd.f32 %v4178_v34, %v1695_v1 }
 0x18e   : > { %2152 = vst [vmem:[#allocation2 + $0x50] sm:$0xff] %v2136_v23  ;;  %v1775_v28 = vadd.f32 %v4151_v49, %v1746_v19  ;;  %v1777_v50 = vadd.f32 %v4159_v6, %v1748_v47 }
 0x18f   : > { %v1856_v25 = vpop.f32.mrf.mxu2  ;;  %v1800_v18 = vpop.f32.mrf.mxu0 }
 0x190   : > { %v1885_v37 = vpop.f32.mrf.mxu3  ;;  %v1801_v24 = vadd.f32 %v1800_v18, %v1772_v40  ;;  %v1829_v26 = vpop.f32.mrf.mxu1 }
 0x191   : > { %v4216_v42 = vadd.f32 %v1885_v37, %v1856_v25  ;;  %v390_v25 = vld [vmem:[#allocation2 + $0x78] sm:$0xff] }
 0x192   : > { %v1830_v29 = vadd.f32 %v1829_v26, %v1801_v24 }
 0x194   : > { %v2138_v35 = vadd.f32 %v1830_v29, %v382_v20 }
 0x196   : > { %2154 = vst [vmem:[#allocation2 + $0x8] sm:$0xff] %v2138_v35 }
 0x197   : > { %v1858_v33 = vpop.f32.mrf.mxu2  ;;  %v1803_v56 = vpop.f32.mrf.mxu0 }
 0x198   : > { %v1887_v31 = vpop.f32.mrf.mxu3  ;;  %v1804_v44 = vadd.f32 %v1803_v56, %v1775_v28  ;;  %v1832_v60 = vpop.f32.mrf.mxu1 }
 0x199   : > { %v4223_v43 = vadd.f32 %v1887_v31, %v1858_v33 }
 0x19a   : > { %v1833_v2 = vadd.f32 %v1832_v60, %v1804_v44  ;;  %2034 = vmatmul.bf16.gmra.mxu0 %v3881_v11 }
 0x19b   : > { %2063 = vmatmul.bf16.gmra.mxu1 %v3883_v12 }
 0x19c   : > { %2092 = vmatmul.bf16.gmra.mxu2 %v4005_v48  ;;  %v2140_v49 = vadd.f32 %v1833_v2, %v384_v62  ;;  %v1751_v48 = vadd.f32 %v4171_v9, %v1722_v27  ;;  %v1753_v9 = vadd.f32 %v4184_v46, %v1724_v15 }
 0x19d   : > { %2121 = vmatmul.bf16.gmra.mxu3 %v4009_v54 }
 0x19e   : > { %2156 = vst [vmem:[#allocation2 + $0x40] sm:$0xff] %v2140_v49  ;;  %v1780_v6 = vadd.f32 %v4173_v10, %v1751_v48  ;;  %v1782_v10 = vadd.f32 %v4186_v3, %v1753_v9 }
 0x19f   : > { %v1861_v21 = vpop.f32.mrf.mxu2  ;;  %v1805_v0 = vpop.f32.mrf.mxu0 }
 0x1a0   : > { %v1890_v61 = vpop.f32.mrf.mxu3  ;;  %v1806_v11 = vadd.f32 %v1805_v0, %v1777_v50  ;;  %v1834_v12 = vpop.f32.mrf.mxu1 }
 0x1a1   : > { %v4234_v57 = vadd.f32 %v1890_v61, %v1861_v21 }
 0x1a2   : > { %v1835_v51 = vadd.f32 %v1834_v12, %v1806_v11 }
 0x1a4   : > { %v2142_v54 = vadd.f32 %v1835_v51, %v386_v58 }
 0x1a6   : > { %2158 = vst [vmem:[#allocation2 + $0x10] sm:$0xff] %v2142_v54 }
 0x1a7   : > { %v1863_v7 = vpop.f32.mrf.mxu2  ;;  %v1808_v63 = vpop.f32.mrf.mxu0 }
 0x1a8   : > { %v1892_v41 = vpop.f32.mrf.mxu3  ;;  %v1809_v22 = vadd.f32 %v1808_v63, %v1780_v6  ;;  %v1837_v52 = vpop.f32.mrf.mxu1 }
 0x1a9   : > { %v4241_v14 = vadd.f32 %v1892_v41, %v1863_v7 }
 0x1aa   : > { %v1838_v16 = vadd.f32 %v1837_v52, %v1809_v22  ;;  %2039 = vmatmul.bf16.gmra.mxu0 %v3915_v4 }
 0x1ab   : > { %2068 = vmatmul.bf16.gmra.mxu1 %v3917_v5 }
 0x1ac   : > { %2097 = vmatmul.bf16.gmra.mxu2 %v4037_v17  ;;  %v2144_v53 = vadd.f32 %v1838_v16, %v388_v30 }
 0x1ad   : > { %2126 = vmatmul.bf16.gmra.mxu3 %v4039_v32 }
 0x1ae   : > { %2160 = vst [vmem:[#allocation2 + $0x60] sm:$0xff] %v2144_v53 }
 0x1af   : > { %v1866_v8 = vpop.f32.mrf.mxu2  ;;  %v1810_v55 = vpop.f32.mrf.mxu0 }
 0x1b0   : > { %v1895_v34 = vpop.f32.mrf.mxu3  ;;  %v1811_v40 = vadd.f32 %v1810_v55, %v1782_v10  ;;  %v1839_v46 = vpop.f32.mrf.mxu1  ;;  %v377_v55 = vld [vmem:[#allocation2] sm:$0xff] }
 0x1b1   : > { %v4249_v23 = vadd.f32 %v1895_v34, %v1866_v8 }
 0x1b2   : > { %v1840_v37 = vadd.f32 %v1839_v46, %v1811_v40 }
 0x1b4   : > { %v2146_v4 = vadd.f32 %v1840_v37, %v390_v25 }
 0x1b6   : > { %2162 = vst [vmem:[#allocation2 + $0x78] sm:$0xff] %v2146_v4 }
 0x1b7   : > { %v1868_v5 = vpop.f32.mrf.mxu2  ;;  %v1909_v17 = vpop.f32.mrf.mxu0 }
 0x1b8   : > { %v1897_v18 = vpop.f32.mrf.mxu3  ;;  %v1938_v32 = vpop.f32.mrf.mxu1  ;;  %v1910_v27 = vadd.f32 %v1909_v17, %v4198_v59 }
 0x1b9   : > { %v4251_v36 = vadd.f32 %v1897_v18, %v1868_v5 }
 0x1ba   : > { %v1939_v51 = vadd.f32 %v1938_v32, %v1910_v27 }
 0x1bf   : > { %v1967_v24 = vpop.f32.mrf.mxu2  ;;  %v1911_v26 = vpop.f32.mrf.mxu0 }
 0x1c0   : > { %v1996_v3 = vpop.f32.mrf.mxu3  ;;  %v1940_v20 = vpop.f32.mrf.mxu1  ;;  %v1968_v1 = vadd.f32 %v1967_v24, %v1939_v51  ;;  %v1912_v54 = vadd.f32 %v1911_v26, %v4205_v38  ;;  %v379_v26 = vld [vmem:[#allocation2 + $0x18] sm:$0xff] }
 0x1c2   : > { %v1997_v7 = vadd.f32 %v1996_v3, %v1968_v1  ;;  %v1941_v59 = vadd.f32 %v1940_v20, %v1912_v54 }
 0x1c7   : > { %v1969_v19 = vpop.f32.mrf.mxu2  ;;  %v1914_v39 = vpop.f32.mrf.mxu0 }
 0x1c8   : > { %v1998_v29 = vpop.f32.mrf.mxu3  ;;  %v1943_v35 = vpop.f32.mrf.mxu1  ;;  %v1970_v52 = vadd.f32 %v1969_v19, %v1941_v59  ;;  %v1915_v30 = vadd.f32 %v1914_v39, %v4216_v42 }
 0x1ca   : > { %v1999_v53 = vadd.f32 %v1998_v29, %v1970_v52  ;;  %v1944_v40 = vadd.f32 %v1943_v35, %v1915_v30 }
 0x1cf   : > { %v1972_v28 = vpop.f32.mrf.mxu2  ;;  %v1916_v31 = vpop.f32.mrf.mxu0 }
 0x1d0   : > { %v2001_v33 = vpop.f32.mrf.mxu3  ;;  %v1945_v56 = vpop.f32.mrf.mxu1  ;;  %v1973_v37 = vadd.f32 %v1972_v28, %v1944_v40  ;;  %v1917_v5 = vadd.f32 %v1916_v31, %v4223_v43 }
 0x1d2   : > { %v2002_v32 = vadd.f32 %v2001_v33, %v1973_v37  ;;  %v1946_v19 = vadd.f32 %v1945_v56, %v1917_v5  ;;  %v381_v33 = vld [vmem:[#allocation2 + $0x68] sm:$0xff]  ;;  %v385_v37 = vld [vmem:[#allocation2 + $0x20] sm:$0xff] }
 0x1d7   : > { %v1974_v45 = vpop.f32.mrf.mxu2  ;;  %v1919_v60 = vpop.f32.mrf.mxu0 }
 0x1d8   : > { %v2003_v44 = vpop.f32.mrf.mxu3  ;;  %v4253_v62 = vpop.f32.mrf.mxu1  ;;  %v1975_v27 = vadd.f32 %v1974_v45, %v1946_v19  ;;  %v1920_v51 = vadd.f32 %v1919_v60, %v4234_v57 }
 0x1da   : > { %v2004_v43 = vadd.f32 %v2003_v44, %v1975_v27 }
 0x1df   : > { %v4255_v47 = vpop.f32.mrf.mxu2  ;;  %v4259_v13 = vpop.f32.mrf.mxu0 }
 0x1e0   : > { %v4257_v2 = vpop.f32.mrf.mxu3  ;;  %v4261_v49 = vpop.f32.mrf.mxu1  ;;  %v1922_v45 = vadd.f32 %v4259_v13, %v4241_v14 }
 0x1e7   : > { %v4263_v50 = vpop.f32.mrf.mxu2  ;;  %v4267_v61 = vpop.f32.mrf.mxu0 }
 0x1e8   : > { %v4265_v21 = vpop.f32.mrf.mxu3  ;;  %v4269_v0 = vpop.f32.mrf.mxu1  ;;  %v1925_v14 = vadd.f32 %v4267_v61, %v4249_v23 }
 0x1ef   : > { %v4272_v11 = vpop.f32.mrf.mxu2  ;;  %v4276_v58 = vpop.f32.mrf.mxu0 }
 0x1f0   : > { %v4274_v12 = vpop.f32.mrf.mxu3  ;;  %v4278_v48 = vpop.f32.mrf.mxu1  ;;  %v1927_v23 = vadd.f32 %v4276_v58, %v4251_v36 }
 0x1f7   : > { %v4281_v6 = vpop.f32.mrf.mxu2  ;;  %v2025_v63 = vpop.f32.mrf.mxu0 }
 0x1f8   : > { %v4283_v41 = vpop.f32.mrf.mxu3  ;;  %v2054_v15 = vpop.f32.mrf.mxu1  ;;  %v2026_v22 = vadd.f32 %v2025_v63, %v1997_v7 }
 0x1fa   : > { %v2055_v9 = vadd.f32 %v2054_v15, %v2026_v22  ;;  %v1949_v15 = vadd.f32 %v4253_v62, %v1920_v51  ;;  %v1951_v62 = vadd.f32 %v4261_v49, %v1922_v45  ;;  %v1954_v49 = vadd.f32 %v4269_v0, %v1925_v14 }
 0x1fc   : > { %v1978_v56 = vadd.f32 %v4255_v47, %v1949_v15  ;;  %v1980_v47 = vadd.f32 %v4263_v50, %v1951_v62  ;;  %v1983_v50 = vadd.f32 %v4272_v11, %v1954_v49 }
 0x1fe   : > { %v2007_v44 = vadd.f32 %v4257_v2, %v1978_v56  ;;  %v2009_v2 = vadd.f32 %v4265_v21, %v1980_v47  ;;  %v2012_v21 = vadd.f32 %v4274_v12, %v1983_v50 }
 0x1ff   : > { %v2083_v16 = vpop.f32.mrf.mxu2  ;;  %v2027_v34 = vpop.f32.mrf.mxu0 }
 0x200   : > { %v2084_v10 = vadd.f32 %v2083_v16, %v2055_v9  ;;  %v2112_v8 = vpop.f32.mrf.mxu3  ;;  %v2056_v38 = vpop.f32.mrf.mxu1  ;;  %v2028_v25 = vadd.f32 %v2027_v34, %v1999_v53  ;;  %v383_v53 = vld [vmem:[#allocation2 + $0x48] sm:$0xff] }
 0x202   : > { %v2113_v46 = vadd.f32 %v2112_v8, %v2084_v10  ;;  %v2057_v18 = vadd.f32 %v2056_v38, %v2028_v25 }
 0x204   : > { %v2133_v4 = vadd.f32 %v2113_v46, %v377_v55 }
 0x206   : > { %2149 = vst [vmem:[#allocation2] sm:$0xff] %v2133_v4 }
 0x207   : > { %v2085_v17 = vpop.f32.mrf.mxu2  ;;  %v2030_v3 = vpop.f32.mrf.mxu0 }
 0x208   : > { %v2086_v42 = vadd.f32 %v2085_v17, %v2057_v18  ;;  %v2114_v24 = vpop.f32.mrf.mxu3  ;;  %v2059_v20 = vpop.f32.mrf.mxu1  ;;  %v2031_v39 = vadd.f32 %v2030_v3, %v2002_v32 }
 0x20a   : > { %v2115_v29 = vadd.f32 %v2114_v24, %v2086_v42  ;;  %v2060_v28 = vadd.f32 %v2059_v20, %v2031_v39  ;;  %v1956_v20 = vadd.f32 %v4278_v48, %v1927_v23 }
 0x20c   : > { %v2135_v35 = vadd.f32 %v2115_v29, %v379_v26  ;;  %v387_v26 = vld [vmem:[#allocation2 + $0x38] sm:$0xff]  ;;  %v1985_v11 = vadd.f32 %v4281_v6, %v1956_v20 }
 0x20e   : > { %2151 = vst [vmem:[#allocation2 + $0x18] sm:$0xff] %v2135_v35  ;;  %v2014_v58 = vadd.f32 %v4283_v41, %v1985_v11 }
 0x20f   : > { %v2088_v1 = vpop.f32.mrf.mxu2  ;;  %v2032_v7 = vpop.f32.mrf.mxu0 }
 0x210   : > { %v2089_v31 = vadd.f32 %v2088_v1, %v2060_v28  ;;  %v2117_v54 = vpop.f32.mrf.mxu3  ;;  %v2061_v63 = vpop.f32.mrf.mxu1  ;;  %v2033_v22 = vadd.f32 %v2032_v7, %v2004_v43  ;;  %v389_v28 = vld [vmem:[#allocation2 + $0x70] sm:$0xff] }
 0x212   : > { %v2118_v59 = vadd.f32 %v2117_v54, %v2089_v31  ;;  %v2062_v57 = vadd.f32 %v2061_v63, %v2033_v22  ;;  %v391_v63 = vld [vmem:[#allocation2 + $0x28] sm:$0xff] }
 0x214   : > { %v2137_v52 = vadd.f32 %v2118_v59, %v381_v33 }
 0x216   : > { %2153 = vst [vmem:[#allocation2 + $0x68] sm:$0xff] %v2137_v52 }
 0x217   : > { %v2090_v60 = vpop.f32.mrf.mxu2  ;;  %v2035_v16 = vpop.f32.mrf.mxu0 }
 0x218   : > { %v2091_v30 = vadd.f32 %v2090_v60, %v2062_v57  ;;  %v2119_v9 = vpop.f32.mrf.mxu3  ;;  %v2064_v10 = vpop.f32.mrf.mxu1  ;;  %v2036_v34 = vadd.f32 %v2035_v16, %v2007_v44 }
 0x21a   : > { %v2120_v8 = vadd.f32 %v2119_v9, %v2091_v30  ;;  %v2065_v13 = vadd.f32 %v2064_v10, %v2036_v34 }
 0x21c   : > { %v2139_v55 = vadd.f32 %v2120_v8, %v383_v53 }
 0x21e   : > { %2155 = vst [vmem:[#allocation2 + $0x48] sm:$0xff] %v2139_v55 }
 0x21f   : > { %v2093_v38 = vpop.f32.mrf.mxu2  ;;  %v2037_v25 = vpop.f32.mrf.mxu0 }
 0x220   : > { %v2094_v40 = vadd.f32 %v2093_v38, %v2065_v13  ;;  %v2122_v46 = vpop.f32.mrf.mxu3  ;;  %v2066_v4 = vpop.f32.mrf.mxu1  ;;  %v2038_v18 = vadd.f32 %v2037_v25, %v2009_v2 }
 0x222   : > { %v2123_v5 = vadd.f32 %v2122_v46, %v2094_v40  ;;  %v2067_v61 = vadd.f32 %v2066_v4, %v2038_v18 }
 0x224   : > { %v2141_v17 = vadd.f32 %v2123_v5, %v385_v37 }
 0x226   : > { %2157 = vst [vmem:[#allocation2 + $0x20] sm:$0xff] %v2141_v17 }
 0x227   : > { %v2095_v32 = vpop.f32.mrf.mxu2  ;;  %v2040_v3 = vpop.f32.mrf.mxu0 }
 0x228   : > { %v2096_v42 = vadd.f32 %v2095_v32, %v2067_v61  ;;  %v2124_v24 = vpop.f32.mrf.mxu3  ;;  %v2041_v19 = vadd.f32 %v2040_v3, %v2012_v21  ;;  %v2069_v29 = vpop.f32.mrf.mxu1 }
 0x22a   : > { %v2125_v0 = vadd.f32 %v2124_v24, %v2096_v42  ;;  %v2070_v27 = vadd.f32 %v2069_v29, %v2041_v19 }
 0x22c   : > { %v2143_v39 = vadd.f32 %v2125_v0, %v387_v26 }
 0x22e   : > { %2159 = vst [vmem:[#allocation2 + $0x38] sm:$0xff] %v2143_v39 }
 0x22f   : > { %v2098_v36 = vpop.f32.mrf.mxu2  ;;  %v2042_v12 = vpop.f32.mrf.mxu0 }
 0x230   : > { %v2099_v35 = vadd.f32 %v2098_v36, %v2070_v27  ;;  %v2127_v51 = vpop.f32.mrf.mxu3  ;;  %v2043_v43 = vadd.f32 %v2042_v12, %v2014_v58  ;;  %v2071_v54 = vpop.f32.mrf.mxu1 }
 0x232   : > { %v2128_v1 = vadd.f32 %v2127_v51, %v2099_v35  ;;  %v2072_v48 = vadd.f32 %v2071_v54, %v2043_v43 }
 0x234   : > { %v2145_v31 = vadd.f32 %v2128_v1, %v389_v28 }
 0x236   : > { %2161 = vst [vmem:[#allocation2 + $0x70] sm:$0xff] %v2145_v31 }
 0x237   : > { %v2100_v7 = vpop.f32.mrf.mxu2 }
 0x238   : > { %v2101_v33 = vadd.f32 %v2100_v7, %v2072_v48  ;;  %v2129_v6 = vpop.f32.mrf.mxu3 }
 0x23a   : > { %v2130_v15 = vadd.f32 %v2129_v6, %v2101_v33  ;;  %2167 = sbr.rel (%p3107_p11) target bundleno = 591 (0x24f), region = 63 }
 0x23c   : > { %v2147_v59 = vadd.f32 %v2130_v15, %v391_v63 }
 0x23e   : > { %2163 = vst [vmem:[#allocation2 + $0x28] sm:$0xff] %v2147_v59 }
 0x23f   : > { %v2168_v41 = vld [vmem:[#allocation2 + $0x30] sm:$0xff]  ;;  %v2180_v56 = vld [vmem:[#allocation2 + $0x40] sm:$0xff]  ;;  %v2173_v9 = vld [vmem:[#allocation2 + $0x68] sm:$0xff] }
 0x240   : > { %v2172_v22 = vld [vmem:[#allocation2 + $0x50] sm:$0xff]  ;;  %v2184_v45 = vld [vmem:[#allocation2 + $0x60] sm:$0xff]  ;;  %v2170_v34 = vld [vmem:[#allocation2 + $0x58] sm:$0xff] }
 0x241   : > { %v2176_v52 = vmax.f32 %v2168_v41, %v2172_v22  ;;  %v2196_v57 = vld [vmem:[%s4339_s2] sm:$0x3]  ;;  %v2188_v44 = vmax.f32 %v2180_v56, %v2184_v45  ;;  %v2185_v53 = vld [vmem:[#allocation2 + $0x70] sm:$0xff]  ;;  %v2174_v47 = vld [vmem:[#allocation2 + $0x8] sm:$0xff] }
 0x242   : > { %v2169_v60 = vld [vmem:[#allocation2] sm:$0xff]  ;;  %v2198_v30 = vperm.slane %v2196_v57, 0  ;;  %v2199_v8 = vperm.slane %v2196_v57, 1  ;;  %v2182_v55 = vld [vmem:[#allocation2 + $0x10] sm:$0xff]  ;;  %v2178_v13 = vmax.f32 %v2170_v34, %v2174_v47  ;;  %v2186_v38 = vld [vmem:[#allocation2 + $0x78] sm:$0xff] }
 0x243   : > { %v2181_v16 = vld [vmem:[#allocation2 + $0x20] sm:$0xff]  ;;  %v2177_v10 = vmax.f32 %v2169_v60, %v2173_v9  ;;  %v2192_v14 = vmax.f32 %v2176_v52, %v2188_v44  ;;  %v2171_v2 = vld [vmem:[#allocation2 + $0x18] sm:$0xff]  ;;  %v2175_v40 = vld [vmem:[#allocation2 + $0x48] sm:$0xff]  ;;  %v2190_v25 = vmax.f32 %v2182_v55, %v2186_v38 }
 0x244   : > { %v2189_v62 = vmax.f32 %v2181_v16, %v2185_v53  ;;  %v2179_v37 = vmax.f32 %v2171_v2, %v2175_v40  ;;  %v2183_v4 = vld [vmem:[#allocation2 + $0x38] sm:$0xff] }
 0x245   : > { %v2187_v49 = vld [vmem:[#allocation2 + $0x28] sm:$0xff]  ;;  %v2202_v5 = vadd.f32 %v2198_v30, %v2192_v14  ;;  %v2194_v17 = vmax.f32 %v2178_v13, %v2190_v25 }
 0x246   : > { %v2193_v46 = vmax.f32 %v2177_v10, %v2189_v62  ;;  %v2191_v18 = vmax.f32 %v2183_v4, %v2187_v49 }
 0x247   : > { %v2206_v23 = vmax.f32 %v2202_v5, 0.0  ;;  %v2204_v21 = vadd.f32 %v2198_v30, %v2194_v17 }
 0x248   : > { %v2203_v50 = vadd.f32 %v2199_v8, %v2193_v46  ;;  %v2195_v61 = vmax.f32 %v2179_v37, %v2191_v18 }
 0x249   : > { %2210 = vst [vmem:[%s4340_s3] sm:$0xff] %v2206_v23  ;;  %v2208_v24 = vmax.f32 %v2204_v21, 0.0 }
 0x24a   : > { %v2207_v32 = vmax.f32 %v2203_v50, 0.0  ;;  %v2205_v42 = vadd.f32 %v2199_v8, %v2195_v61 }
 0x24b   : > { %2212 = vst [vmem:[%s4340_s3 + $0x10] sm:$0xff] %v2208_v24 }
 0x24c   : > { %2211 = vst [vmem:[%s4340_s3 + $0x8] sm:$0xff] %v2207_v32  ;;  %v2209_v3 = vmax.f32 %v2205_v42, 0.0 }
 0x24e   : > { %2213 = vst [vmem:[%s4340_s3 + $0x18] sm:$0xff] %v2209_v3 }
 0x24f PF: > { %s13_s16 = sadd.s32 1, %s3395_s16   ;;  %s4341_s12 = smov %s3383_s13 }
 0x250   : > { %p10_p12 = scmp.ge.s32.totalorder %s13_s16, 7   ;;  %s4342_s13 = smov %s3453_s20 }
 0x251   : > { %s4343_s14 = smov %s3391_s15  ;;  %s4344_s15 = smov %s4346_s17 }
 0x252   :  { %12 = sbr.rel (!%p10_p12) target bundleno = 3 (0x3), region = 101 }

</bundles_post_ra>
